<compile_context>
chip_gen: v7x
topology: tpu7x:2x2x1
jax: 0.10.0
libtpu: 0.0.40
codegen_flags: <defaults>
</compile_context>

<pallas_src>
import math

import jax
import jax.numpy as jnp
from jax.experimental import pallas as pl
from jax.experimental.pallas import tpu as pltpu

# conv1..conv4 of the PyTorch module
LAYERS = (
    dict(k=5, s=3, p=2, cin=1,   cout=64,  bn=True,  pool=True),
    dict(k=5, s=4, p=2, cin=64,  cout=128, bn=True,  pool=True),
    dict(k=3, s=2, p=1, cin=128, cout=256, bn=True,  pool=True),
    dict(k=3, s=2, p=1, cin=256, cout=256, bn=False, pool=False),
)
NEG_SLOPE = 0.01   # F.leaky_relu default
BN_EPS = 1e-5


# ---------------------------------------------------------------------------
# Fused conv-stage kernel: im2col matmul + BN scale/shift + leaky_relu + pool
# ---------------------------------------------------------------------------
def conv_stage_kernel(p_ref, w_ref, scale_ref, shift_ref, o_ref):
    """p_ref:     (G, TM, K)  bf16  -- G pool-window members per output pixel
       w_ref:     (K, C_out)  bf16  -- resident across grid steps
       scale_ref: (1, C_out)  f32   -- folded BN scale (1 if no BN)
       shift_ref: (1, C_out)  f32   -- folded BN shift + conv bias
       o_ref:     (TM, C_out) f32
    """
    w = w_ref[...]
    scale = scale_ref[...]
    shift = shift_ref[...]
    out = None
    for q in range(p_ref.shape[0]):            # static unroll (G = 1 or 4)
        h = jnp.dot(p_ref[q], w, preferred_element_type=jnp.float32)
        h = h * scale + shift
        h = jnp.where(h > 0, h, NEG_SLOPE * h)
        out = h if out is None else jnp.maximum(out, h)
    o_ref[...] = out.astype(o_ref.dtype)


# ---------------------------------------------------------------------------
# Wrapper helpers (pure data movement in XLA; compute stays in Pallas)
# ---------------------------------------------------------------------------
def _pick_tile_m(m_out):
    if m_out <= 512:
        return m_out
    for t in (512, 256, 128, 64, 32, 16, 8):
        if m_out % t == 0:
            return t
    return m_out


def _extract_patches(x, k, stride, pad):
    """x: (N,H,W,C) f32 -> patches (N,Ho,Wo,k*k*C) bf16, K ordered (dy,dx,c)."""
    n, h, w, c = x.shape
    ho = (h + 2 * pad - k) // stride + 1
    wo = (w + 2 * pad - k) // stride + 1
    xp = jnp.pad(x, ((0, 0), (pad, pad), (pad, pad), (0, 0)))
    cols = []
    for dy in range(k):
        for dx in range(k):
            cols.append(
                xp[:, dy:dy + stride * ho:stride, dx:dx + stride * wo:stride, :])
    patches = jnp.concatenate(cols, axis=-1).astype(jnp.bfloat16)
    return patches, ho, wo


def _conv_stage(x, w_mat, scale, shift, cfg):
    n = x.shape[0]
    k, stride, pad, pool = cfg["k"], cfg["s"], cfg["p"], cfg["pool"]
    c_out = w_mat.shape[1]

    patches, ho, wo = _extract_patches(x, k, stride, pad)
    kdim = patches.shape[-1]

    if pool:
        hp, wp = ho // 2, wo // 2
        p = patches[:, :2 * hp, :2 * wp, :].reshape(n, hp, 2, wp, 2, kdim)
        # group the 4 members of each 2x2 pool window along a leading axis
        p = p.transpose(2, 4, 0, 1, 3, 5).reshape(4, n * hp * wp, kdim)
        g, m_out, oh, ow = 4, n * hp * wp, hp, wp
    else:
        p = patches.reshape(1, n * ho * wo, kdim)
        g, m_out, oh, ow = 1, n * ho * wo, ho, wo

    tm = _pick_tile_m(m_out)
    grid = (m_out // tm,)

    out = pl.pallas_call(
        conv_stage_kernel,
        out_shape=jax.ShapeDtypeStruct((m_out, c_out), jnp.float32),
        grid_spec=pltpu.PrefetchScalarGridSpec(
            num_scalar_prefetch=0,
            grid=grid,
            in_specs=[
                pl.BlockSpec((g, tm, kdim), lambda i: (0, i, 0)),
                pl.BlockSpec((kdim, c_out), lambda i: (0, 0)),   # resident
                pl.BlockSpec((1, c_out), lambda i: (0, 0)),      # resident
                pl.BlockSpec((1, c_out), lambda i: (0, 0)),      # resident
            ],
            out_specs=pl.BlockSpec((tm, c_out), lambda i: (i, 0)),
        ),
        compiler_params=pltpu.CompilerParams(
            dimension_semantics=("parallel",),
        ),
        cost_estimate=pl.CostEstimate(
            flops=2 * g * m_out * kdim * c_out,
            transcendentals=0,
            bytes_accessed=int(p.size * 2 + w_mat.size * 2
                               + (scale.size + shift.size + m_out * c_out) * 4),
        ),
    )(p, w_mat, scale, shift)
    return out.reshape(n, oh, ow, c_out)


def cnn_forward(x_nchw, params):
    """Forward of the PyTorch CNN.  x_nchw: (N, 1, H, W) f32 -> (N, 256)."""
    h = jnp.transpose(x_nchw, (0, 2, 3, 1)).astype(jnp.float32)   # NHWC
    for idx, cfg in enumerate(LAYERS, start=1):
        h = _conv_stage(h, params[f"w{idx}"], params[f"scale{idx}"],
                        params[f"shift{idx}"], cfg)
    n, hh, ww, c = h.shape
    # matches x.view(-1, out_dim): spatial dims are 1x1 at this point
    return h.reshape(n * hh * ww, c)


# ---------------------------------------------------------------------------
# Parameter init mirroring weights_init:
#   kaiming_uniform_(a=0, fan_in, leaky_relu) -> bound = sqrt(2)*sqrt(3/fan_in)
#   conv bias = 0.01; BatchNorm: gamma=1, beta=0, running_mean=0, running_var=1
# BN + conv bias are folded into a per-channel scale/shift.
# TODO(synk): BatchNorm is applied with running statistics (inference mode);
#             training-mode batch statistics would need a cross-tile reduction.
# ---------------------------------------------------------------------------
def init_params(key):
    params = {}
    for idx, cfg in enumerate(LAYERS, start=1):
        k, cin, cout = cfg["k"], cfg["cin"], cfg["cout"]
        fan_in = cin * k * k
        bound = math.sqrt(2.0) * math.sqrt(3.0 / fan_in)
        key, sub = jax.random.split(key)
        w = jax.random.uniform(sub, (k, k, cin, cout), minval=-bound,
                               maxval=bound, dtype=jnp.float32)
        bias = jnp.full((cout,), 0.01, dtype=jnp.float32)
        if cfg["bn"]:
            gamma = jnp.ones((cout,), jnp.float32)
            beta = jnp.zeros((cout,), jnp.float32)
            mean = jnp.zeros((cout,), jnp.float32)
            var = jnp.ones((cout,), jnp.float32)
            scale = gamma / jnp.sqrt(var + BN_EPS)
            shift = beta + (bias - mean) * scale
        else:
            scale = jnp.ones((cout,), jnp.float32)
            shift = bias
        params[f"w{idx}"] = w.reshape(k * k * cin, cout).astype(jnp.bfloat16)
        params[f"scale{idx}"] = scale.reshape(1, cout)
        params[f"shift{idx}"] = shift.reshape(1, cout)
        params[f"w_hwio{idx}"] = w.astype(jnp.bfloat16)   # reference only
    return params


# ---------------------------------------------------------------------------
# Independent pure-JAX reference (lax.conv) for sanity checking the kernel.
# ---------------------------------------------------------------------------
def cnn_ref(x_nchw, params):
    h = jnp.transpose(x_nchw, (0, 2, 3, 1)).astype(jnp.float32)
    for idx, cfg in enumerate(LAYERS, start=1):
        y = jax.lax.conv_general_dilated(
            h.astype(jnp.bfloat16), params[f"w_hwio{idx}"],
            window_strides=(cfg["s"], cfg["s"]),
            padding=[(cfg["p"], cfg["p"])] * 2,
            dimension_numbers=("NHWC", "HWIO", "NHWC"),
            preferred_element_type=jnp.float32)
        y = y * params[f"scale{idx}"].reshape(1, 1, 1, -1) \
            + params[f"shift{idx}"].reshape(1, 1, 1, -1)
        y = jnp.where(y > 0, y, NEG_SLOPE * y)
        if cfg["pool"]:
            n, hh, ww, c = y.shape
            y = y[:, :hh // 2 * 2, :ww // 2 * 2, :]
            y = y.reshape(n, hh // 2, 2, ww // 2, 2, c).max(axis=(2, 4))
        h = y
    n, hh, ww, c = h.shape
    return h.reshape(n * hh * ww, c)


if __name__ == "__main__":
    key = jax.random.PRNGKey(0)
    k_params, k_x = jax.random.split(key)
    params = init_params(k_params)

    # 192x192 input: the smallest-ish size for which conv4's output is 1x1,
    # which is what the module's x.view(-1, out_dim) implies.
    batch, in_ch, hw = 2, 1, 192
    x = jax.random.normal(k_x, (batch, in_ch, hw, hw), dtype=jnp.float32)

    out = jax.jit(cnn_forward)(x, params)
    out = jax.block_until_ready(out)

    ref = cnn_ref(x, params)
    assert out.shape == (batch, 256), out.shape
    assert jnp.allclose(out, ref, atol=1e-2, rtol=1e-2), (
        "kernel mismatch vs reference, max abs diff = "
        f"{float(jnp.max(jnp.abs(out - ref)))}")

    print("KERNEL_OK")
</pallas_src>

<mosaic_0001>
module attributes {stable_mosaic.version = 11 : i64} {
  func.func @conv_stage_kernel(%arg0: i32, %arg1: memref<4x512x25xbf16, #tpu.memory_space<vmem>>, %arg2: memref<25x64xbf16, #tpu.memory_space<vmem>>, %arg3: memref<1x64xf32, #tpu.memory_space<vmem>>, %arg4: memref<1x64xf32, #tpu.memory_space<vmem>>, %arg5: memref<512x64xf32, #tpu.memory_space<vmem>>) attributes {dimension_semantics = [#tpu.dimension_semantics<parallel>], iteration_bounds = array<i64: 4>, scalar_prefetch = 0 : i64, scratch_operands = 0 : i64, tpu.core_type = #tpu.core_type<tc>, window_params = [{transform_indices = @transform_0, window_bounds = array<i64: 4, 512, 25>}, {pipeline_mode = #tpu.pipeline_mode<synchronous>, transform_indices = @transform_1, window_bounds = array<i64: 25, 64>}, {pipeline_mode = #tpu.pipeline_mode<synchronous>, transform_indices = @transform_2, window_bounds = array<i64: 1, 64>}, {pipeline_mode = #tpu.pipeline_mode<synchronous>, transform_indices = @transform_3, window_bounds = array<i64: 1, 64>}, {transform_indices = @transform_4, window_bounds = array<i64: 512, 64>}]} {
    %c0 = arith.constant 0 : index
    %c0_0 = arith.constant 0 : index
    %0 = vector.load %arg2[%c0, %c0_0] : memref<25x64xbf16, #tpu.memory_space<vmem>>, vector<25x64xbf16>
    %c0_1 = arith.constant 0 : index
    %c0_2 = arith.constant 0 : index
    %1 = vector.load %arg3[%c0_1, %c0_2] : memref<1x64xf32, #tpu.memory_space<vmem>>, vector<1x64xf32>
    %c0_3 = arith.constant 0 : index
    %c0_4 = arith.constant 0 : index
    %2 = vector.load %arg4[%c0_3, %c0_4] : memref<1x64xf32, #tpu.memory_space<vmem>>, vector<1x64xf32>
    %c0_5 = arith.constant 0 : index
    %c0_6 = arith.constant 0 : index
    %c0_7 = arith.constant 0 : index
    %3 = vector.load %arg1[%c0_5, %c0_6, %c0_7] : memref<4x512x25xbf16, #tpu.memory_space<vmem>>, vector<1x512x25xbf16>
    %4 = vector.shape_cast %3 : vector<1x512x25xbf16> to vector<512x25xbf16>
    %cst = arith.constant dense<0.000000e+00> : vector<512x64xf32>
    %5 = tpu.matmul %4, %0, %cst {dimension_numbers = #tpu.dot_dimension_numbers<[1], [0], [0], [1], [0, 0, 1, 1], [], []>} : vector<512x25xbf16>, vector<25x64xbf16>, vector<512x64xf32> -> vector<512x64xf32>
    %6 = vector.broadcast %1 : vector<1x64xf32> to vector<512x64xf32>
    %7 = arith.mulf %5, %6 : vector<512x64xf32>
    %8 = vector.broadcast %2 : vector<1x64xf32> to vector<512x64xf32>
    %9 = arith.addf %7, %8 : vector<512x64xf32>
    %cst_8 = arith.constant 0.000000e+00 : f32
    %10 = vector.broadcast %cst_8 : f32 to vector<512x64xf32>
    %11 = arith.cmpf ogt, %9, %10 : vector<512x64xf32>
    %cst_9 = arith.constant 0.00999999977 : f32
    %12 = vector.broadcast %cst_9 : f32 to vector<512x64xf32>
    %13 = arith.mulf %12, %9 : vector<512x64xf32>
    %14 = arith.select %11, %9, %13 : vector<512x64xi1>, vector<512x64xf32>
    %c1 = arith.constant 1 : index
    %c0_10 = arith.constant 0 : index
    %c0_11 = arith.constant 0 : index
    %15 = vector.load %arg1[%c1, %c0_10, %c0_11] : memref<4x512x25xbf16, #tpu.memory_space<vmem>>, vector<1x512x25xbf16>
    %16 = vector.shape_cast %15 : vector<1x512x25xbf16> to vector<512x25xbf16>
    %cst_12 = arith.constant dense<0.000000e+00> : vector<512x64xf32>
    %17 = tpu.matmul %16, %0, %cst_12 {dimension_numbers = #tpu.dot_dimension_numbers<[1], [0], [0], [1], [0, 0, 1, 1], [], []>} : vector<512x25xbf16>, vector<25x64xbf16>, vector<512x64xf32> -> vector<512x64xf32>
    %18 = vector.broadcast %1 : vector<1x64xf32> to vector<512x64xf32>
    %19 = arith.mulf %17, %18 : vector<512x64xf32>
    %20 = vector.broadcast %2 : vector<1x64xf32> to vector<512x64xf32>
    %21 = arith.addf %19, %20 : vector<512x64xf32>
    %cst_13 = arith.constant 0.000000e+00 : f32
    %22 = vector.broadcast %cst_13 : f32 to vector<512x64xf32>
    %23 = arith.cmpf ogt, %21, %22 : vector<512x64xf32>
    %cst_14 = arith.constant 0.00999999977 : f32
    %24 = vector.broadcast %cst_14 : f32 to vector<512x64xf32>
    %25 = arith.mulf %24, %21 : vector<512x64xf32>
    %26 = arith.select %23, %21, %25 : vector<512x64xi1>, vector<512x64xf32>
    %27 = arith.maximumf %14, %26 : vector<512x64xf32>
    %c2 = arith.constant 2 : index
    %c0_15 = arith.constant 0 : index
    %c0_16 = arith.constant 0 : index
    %28 = vector.load %arg1[%c2, %c0_15, %c0_16] : memref<4x512x25xbf16, #tpu.memory_space<vmem>>, vector<1x512x25xbf16>
    %29 = vector.shape_cast %28 : vector<1x512x25xbf16> to vector<512x25xbf16>
    %cst_17 = arith.constant dense<0.000000e+00> : vector<512x64xf32>
    %30 = tpu.matmul %29, %0, %cst_17 {dimension_numbers = #tpu.dot_dimension_numbers<[1], [0], [0], [1], [0, 0, 1, 1], [], []>} : vector<512x25xbf16>, vector<25x64xbf16>, vector<512x64xf32> -> vector<512x64xf32>
    %31 = vector.broadcast %1 : vector<1x64xf32> to vector<512x64xf32>
    %32 = arith.mulf %30, %31 : vector<512x64xf32>
    %33 = vector.broadcast %2 : vector<1x64xf32> to vector<512x64xf32>
    %34 = arith.addf %32, %33 : vector<512x64xf32>
    %cst_18 = arith.constant 0.000000e+00 : f32
    %35 = vector.broadcast %cst_18 : f32 to vector<512x64xf32>
    %36 = arith.cmpf ogt, %34, %35 : vector<512x64xf32>
    %cst_19 = arith.constant 0.00999999977 : f32
    %37 = vector.broadcast %cst_19 : f32 to vector<512x64xf32>
    %38 = arith.mulf %37, %34 : vector<512x64xf32>
    %39 = arith.select %36, %34, %38 : vector<512x64xi1>, vector<512x64xf32>
    %40 = arith.maximumf %27, %39 : vector<512x64xf32>
    %c3 = arith.constant 3 : index
    %c0_20 = arith.constant 0 : index
    %c0_21 = arith.constant 0 : index
    %41 = vector.load %arg1[%c3, %c0_20, %c0_21] : memref<4x512x25xbf16, #tpu.memory_space<vmem>>, vector<1x512x25xbf16>
    %42 = vector.shape_cast %41 : vector<1x512x25xbf16> to vector<512x25xbf16>
    %cst_22 = arith.constant dense<0.000000e+00> : vector<512x64xf32>
    %43 = tpu.matmul %42, %0, %cst_22 {dimension_numbers = #tpu.dot_dimension_numbers<[1], [0], [0], [1], [0, 0, 1, 1], [], []>} : vector<512x25xbf16>, vector<25x64xbf16>, vector<512x64xf32> -> vector<512x64xf32>
    %44 = vector.broadcast %1 : vector<1x64xf32> to vector<512x64xf32>
    %45 = arith.mulf %43, %44 : vector<512x64xf32>
    %46 = vector.broadcast %2 : vector<1x64xf32> to vector<512x64xf32>
    %47 = arith.addf %45, %46 : vector<512x64xf32>
    %cst_23 = arith.constant 0.000000e+00 : f32
    %48 = vector.broadcast %cst_23 : f32 to vector<512x64xf32>
    %49 = arith.cmpf ogt, %47, %48 : vector<512x64xf32>
    %cst_24 = arith.constant 0.00999999977 : f32
    %50 = vector.broadcast %cst_24 : f32 to vector<512x64xf32>
    %51 = arith.mulf %50, %47 : vector<512x64xf32>
    %52 = arith.select %49, %47, %51 : vector<512x64xi1>, vector<512x64xf32>
    %53 = arith.maximumf %40, %52 : vector<512x64xf32>
    %c0_25 = arith.constant 0 : index
    %c0_26 = arith.constant 0 : index
    %54 = vector.load %arg5[%c0_25, %c0_26] : memref<512x64xf32, #tpu.memory_space<vmem>>, vector<512x64xf32>
    tpu.vector_store %arg5[%c0_25, %c0_26], %53 {strides = array<i32>} : memref<512x64xf32, #tpu.memory_space<vmem>>, vector<512x64xf32>,
    return
  }
  func.func @transform_0(%arg0: i32) -> (i32, i32, i32) {
    %c0_i32 = arith.constant 0 : i32
    %c0_i32_0 = arith.constant 0 : i32
    %c0_i32_1 = arith.constant 0 : i32
    return %c0_i32, %arg0, %c0_i32_0 : i32, i32, i32
  }
  func.func @transform_1(%arg0: i32) -> (i32, i32) {
    %c0_i32 = arith.constant 0 : i32
    %c0_i32_0 = arith.constant 0 : i32
    %c0_i32_1 = arith.constant 0 : i32
    return %c0_i32, %c0_i32_0 : i32, i32
  }
  func.func @transform_2(%arg0: i32) -> (i32, i32) {
    %c0_i32 = arith.constant 0 : i32
    %c0_i32_0 = arith.constant 0 : i32
    %c0_i32_1 = arith.constant 0 : i32
    return %c0_i32, %c0_i32_0 : i32, i32
  }
  func.func @transform_3(%arg0: i32) -> (i32, i32) {
    %c0_i32 = arith.constant 0 : i32
    %c0_i32_0 = arith.constant 0 : i32
    %c0_i32_1 = arith.constant 0 : i32
    return %c0_i32, %c0_i32_0 : i32, i32
  }
  func.func @transform_4(%arg0: i32) -> (i32, i32) {
    %c0_i32 = arith.constant 0 : i32
    %c0_i32_0 = arith.constant 0 : i32
    return %arg0, %c0_i32 : i32, i32
  }
}

module attributes {stable_mosaic.version = 11 : i64} {
  func.func @conv_stage_kernel(%arg0: i32, %arg1: memref<4x32x1600xbf16, #tpu.memory_space<vmem>>, %arg2: memref<1600x128xbf16, #tpu.memory_space<vmem>>, %arg3: memref<1x128xf32, #tpu.memory_space<vmem>>, %arg4: memref<1x128xf32, #tpu.memory_space<vmem>>, %arg5: memref<32x128xf32, #tpu.memory_space<vmem>>) attributes {dimension_semantics = [#tpu.dimension_semantics<parallel>], iteration_bounds = array<i64: 1>, scalar_prefetch = 0 : i64, scratch_operands = 0 : i64, tpu.core_type = #tpu.core_type<tc>, window_params = [{transform_indices = @transform_0, window_bounds = array<i64: 4, 32, 1600>}, {pipeline_mode = #tpu.pipeline_mode<synchronous>, transform_indices = @transform_1, window_bounds = array<i64: 1600, 128>}, {pipeline_mode = #tpu.pipeline_mode<synchronous>, transform_indices = @transform_2, window_bounds = array<i64: 1, 128>}, {pipeline_mode = #tpu.pipeline_mode<synchronous>, transform_indices = @transform_3, window_bounds = array<i64: 1, 128>}, {transform_indices = @transform_4, window_bounds = array<i64: 32, 128>}]} {
    %c0 = arith.constant 0 : index
    %c0_0 = arith.constant 0 : index
    %0 = vector.load %arg2[%c0, %c0_0] : memref<1600x128xbf16, #tpu.memory_space<vmem>>, vector<1600x128xbf16>
    %c0_1 = arith.constant 0 : index
    %c0_2 = arith.constant 0 : index
    %1 = vector.load %arg3[%c0_1, %c0_2] : memref<1x128xf32, #tpu.memory_space<vmem>>, vector<1x128xf32>
    %c0_3 = arith.constant 0 : index
    %c0_4 = arith.constant 0 : index
    %2 = vector.load %arg4[%c0_3, %c0_4] : memref<1x128xf32, #tpu.memory_space<vmem>>, vector<1x128xf32>
    %c0_5 = arith.constant 0 : index
    %c0_6 = arith.constant 0 : index
    %c0_7 = arith.constant 0 : index
    %3 = vector.load %arg1[%c0_5, %c0_6, %c0_7] : memref<4x32x1600xbf16, #tpu.memory_space<vmem>>, vector<1x32x1600xbf16>
    %4 = vector.shape_cast %3 : vector<1x32x1600xbf16> to vector<32x1600xbf16>
    %cst = arith.constant dense<0.000000e+00> : vector<32x128xf32>
    %5 = tpu.matmul %4, %0, %cst {dimension_numbers = #tpu.dot_dimension_numbers<[1], [0], [0], [1], [0, 0, 1, 1], [], []>} : vector<32x1600xbf16>, vector<1600x128xbf16>, vector<32x128xf32> -> vector<32x128xf32>
    %6 = vector.broadcast %1 : vector<1x128xf32> to vector<32x128xf32>
    %7 = arith.mulf %5, %6 : vector<32x128xf32>
    %8 = vector.broadcast %2 : vector<1x128xf32> to vector<32x128xf32>
    %9 = arith.addf %7, %8 : vector<32x128xf32>
    %cst_8 = arith.constant 0.000000e+00 : f32
    %10 = vector.broadcast %cst_8 : f32 to vector<32x128xf32>
    %11 = arith.cmpf ogt, %9, %10 : vector<32x128xf32>
    %cst_9 = arith.constant 0.00999999977 : f32
    %12 = vector.broadcast %cst_9 : f32 to vector<32x128xf32>
    %13 = arith.mulf %12, %9 : vector<32x128xf32>
    %14 = arith.select %11, %9, %13 : vector<32x128xi1>, vector<32x128xf32>
    %c1 = arith.constant 1 : index
    %c0_10 = arith.constant 0 : index
    %c0_11 = arith.constant 0 : index
    %15 = vector.load %arg1[%c1, %c0_10, %c0_11] : memref<4x32x1600xbf16, #tpu.memory_space<vmem>>, vector<1x32x1600xbf16>
    %16 = vector.shape_cast %15 : vector<1x32x1600xbf16> to vector<32x1600xbf16>
    %cst_12 = arith.constant dense<0.000000e+00> : vector<32x128xf32>
    %17 = tpu.matmul %16, %0, %cst_12 {dimension_numbers = #tpu.dot_dimension_numbers<[1], [0], [0], [1], [0, 0, 1, 1], [], []>} : vector<32x1600xbf16>, vector<1600x128xbf16>, vector<32x128xf32> -> vector<32x128xf32>
    %18 = vector.broadcast %1 : vector<1x128xf32> to vector<32x128xf32>
    %19 = arith.mulf %17, %18 : vector<32x128xf32>
    %20 = vector.broadcast %2 : vector<1x128xf32> to vector<32x128xf32>
    %21 = arith.addf %19, %20 : vector<32x128xf32>
    %cst_13 = arith.constant 0.000000e+00 : f32
    %22 = vector.broadcast %cst_13 : f32 to vector<32x128xf32>
    %23 = arith.cmpf ogt, %21, %22 : vector<32x128xf32>
    %cst_14 = arith.constant 0.00999999977 : f32
    %24 = vector.broadcast %cst_14 : f32 to vector<32x128xf32>
    %25 = arith.mulf %24, %21 : vector<32x128xf32>
    %26 = arith.select %23, %21, %25 : vector<32x128xi1>, vector<32x128xf32>
    %27 = arith.maximumf %14, %26 : vector<32x128xf32>
    %c2 = arith.constant 2 : index
    %c0_15 = arith.constant 0 : index
    %c0_16 = arith.constant 0 : index
    %28 = vector.load %arg1[%c2, %c0_15, %c0_16] : memref<4x32x1600xbf16, #tpu.memory_space<vmem>>, vector<1x32x1600xbf16>
    %29 = vector.shape_cast %28 : vector<1x32x1600xbf16> to vector<32x1600xbf16>
    %cst_17 = arith.constant dense<0.000000e+00> : vector<32x128xf32>
    %30 = tpu.matmul %29, %0, %cst_17 {dimension_numbers = #tpu.dot_dimension_numbers<[1], [0], [0], [1], [0, 0, 1, 1], [], []>} : vector<32x1600xbf16>, vector<1600x128xbf16>, vector<32x128xf32> -> vector<32x128xf32>
    %31 = vector.broadcast %1 : vector<1x128xf32> to vector<32x128xf32>
    %32 = arith.mulf %30, %31 : vector<32x128xf32>
    %33 = vector.broadcast %2 : vector<1x128xf32> to vector<32x128xf32>
    %34 = arith.addf %32, %33 : vector<32x128xf32>
    %cst_18 = arith.constant 0.000000e+00 : f32
    %35 = vector.broadcast %cst_18 : f32 to vector<32x128xf32>
    %36 = arith.cmpf ogt, %34, %35 : vector<32x128xf32>
    %cst_19 = arith.constant 0.00999999977 : f32
    %37 = vector.broadcast %cst_19 : f32 to vector<32x128xf32>
    %38 = arith.mulf %37, %34 : vector<32x128xf32>
    %39 = arith.select %36, %34, %38 : vector<32x128xi1>, vector<32x128xf32>
    %40 = arith.maximumf %27, %39 : vector<32x128xf32>
    %c3 = arith.constant 3 : index
    %c0_20 = arith.constant 0 : index
    %c0_21 = arith.constant 0 : index
    %41 = vector.load %arg1[%c3, %c0_20, %c0_21] : memref<4x32x1600xbf16, #tpu.memory_space<vmem>>, vector<1x32x1600xbf16>
    %42 = vector.shape_cast %41 : vector<1x32x1600xbf16> to vector<32x1600xbf16>
    %cst_22 = arith.constant dense<0.000000e+00> : vector<32x128xf32>
    %43 = tpu.matmul %42, %0, %cst_22 {dimension_numbers = #tpu.dot_dimension_numbers<[1], [0], [0], [1], [0, 0, 1, 1], [], []>} : vector<32x1600xbf16>, vector<1600x128xbf16>, vector<32x128xf32> -> vector<32x128xf32>
    %44 = vector.broadcast %1 : vector<1x128xf32> to vector<32x128xf32>
    %45 = arith.mulf %43, %44 : vector<32x128xf32>
    %46 = vector.broadcast %2 : vector<1x128xf32> to vector<32x128xf32>
    %47 = arith.addf %45, %46 : vector<32x128xf32>
    %cst_23 = arith.constant 0.000000e+00 : f32
    %48 = vector.broadcast %cst_23 : f32 to vector<32x128xf32>
    %49 = arith.cmpf ogt, %47, %48 : vector<32x128xf32>
    %cst_24 = arith.constant 0.00999999977 : f32
    %50 = vector.broadcast %cst_24 : f32 to vector<32x128xf32>
    %51 = arith.mulf %50, %47 : vector<32x128xf32>
    %52 = arith.select %49, %47, %51 : vector<32x128xi1>, vector<32x128xf32>
    %53 = arith.maximumf %40, %52 : vector<32x128xf32>
    %c0_25 = arith.constant 0 : index
    %c0_26 = arith.constant 0 : index
    %54 = vector.load %arg5[%c0_25, %c0_26] : memref<32x128xf32, #tpu.memory_space<vmem>>, vector<32x128xf32>
    tpu.vector_store %arg5[%c0_25, %c0_26], %53 {strides = array<i32>} : memref<32x128xf32, #tpu.memory_space<vmem>>, vector<32x128xf32>,
    return
  }
  func.func @transform_0(%arg0: i32) -> (i32, i32, i32) {
    %c0_i32 = arith.constant 0 : i32
    %c0_i32_0 = arith.constant 0 : i32
    %c0_i32_1 = arith.constant 0 : i32
    return %c0_i32, %arg0, %c0_i32_0 : i32, i32, i32
  }
  func.func @transform_1(%arg0: i32) -> (i32, i32) {
    %c0_i32 = arith.constant 0 : i32
    %c0_i32_0 = arith.constant 0 : i32
    %c0_i32_1 = arith.constant 0 : i32
    return %c0_i32, %c0_i32_0 : i32, i32
  }
  func.func @transform_2(%arg0: i32) -> (i32, i32) {
    %c0_i32 = arith.constant 0 : i32
    %c0_i32_0 = arith.constant 0 : i32
    %c0_i32_1 = arith.constant 0 : i32
    return %c0_i32, %c0_i32_0 : i32, i32
  }
  func.func @transform_3(%arg0: i32) -> (i32, i32) {
    %c0_i32 = arith.constant 0 : i32
    %c0_i32_0 = arith.constant 0 : i32
    %c0_i32_1 = arith.constant 0 : i32
    return %c0_i32, %c0_i32_0 : i32, i32
  }
  func.func @transform_4(%arg0: i32) -> (i32, i32) {
    %c0_i32 = arith.constant 0 : i32
    %c0_i32_0 = arith.constant 0 : i32
    return %arg0, %c0_i32 : i32, i32
  }
}

module attributes {stable_mosaic.version = 11 : i64} {
  func.func @conv_stage_kernel(%arg0: i32, %arg1: memref<4x2x1152xbf16, #tpu.memory_space<vmem>>, %arg2: memref<1152x256xbf16, #tpu.memory_space<vmem>>, %arg3: memref<1x256xf32, #tpu.memory_space<vmem>>, %arg4: memref<1x256xf32, #tpu.memory_space<vmem>>, %arg5: memref<2x256xf32, #tpu.memory_space<vmem>>) attributes {dimension_semantics = [#tpu.dimension_semantics<parallel>], iteration_bounds = array<i64: 1>, scalar_prefetch = 0 : i64, scratch_operands = 0 : i64, tpu.core_type = #tpu.core_type<tc>, window_params = [{transform_indices = @transform_0, window_bounds = array<i64: 4, 2, 1152>}, {pipeline_mode = #tpu.pipeline_mode<synchronous>, transform_indices = @transform_1, window_bounds = array<i64: 1152, 256>}, {pipeline_mode = #tpu.pipeline_mode<synchronous>, transform_indices = @transform_2, window_bounds = array<i64: 1, 256>}, {pipeline_mode = #tpu.pipeline_mode<synchronous>, transform_indices = @transform_3, window_bounds = array<i64: 1, 256>}, {transform_indices = @transform_4, window_bounds = array<i64: 2, 256>}]} {
    %c0 = arith.constant 0 : index
    %c0_0 = arith.constant 0 : index
    %0 = vector.load %arg2[%c0, %c0_0] : memref<1152x256xbf16, #tpu.memory_space<vmem>>, vector<1152x256xbf16>
    %c0_1 = arith.constant 0 : index
    %c0_2 = arith.constant 0 : index
    %1 = vector.load %arg3[%c0_1, %c0_2] : memref<1x256xf32, #tpu.memory_space<vmem>>, vector<1x256xf32>
    %c0_3 = arith.constant 0 : index
    %c0_4 = arith.constant 0 : index
    %2 = vector.load %arg4[%c0_3, %c0_4] : memref<1x256xf32, #tpu.memory_space<vmem>>, vector<1x256xf32>
    %c0_5 = arith.constant 0 : index
    %c0_6 = arith.constant 0 : index
    %c0_7 = arith.constant 0 : index
    %3 = vector.load %arg1[%c0_5, %c0_6, %c0_7] : memref<4x2x1152xbf16, #tpu.memory_space<vmem>>, vector<1x2x1152xbf16>
    %4 = vector.shape_cast %3 : vector<1x2x1152xbf16> to vector<2x1152xbf16>
    %cst = arith.constant dense<0.000000e+00> : vector<2x256xf32>
    %5 = tpu.matmul %4, %0, %cst {dimension_numbers = #tpu.dot_dimension_numbers<[1], [0], [0], [1], [0, 0, 1, 1], [], []>} : vector<2x1152xbf16>, vector<1152x256xbf16>, vector<2x256xf32> -> vector<2x256xf32>
    %6 = vector.broadcast %1 : vector<1x256xf32> to vector<2x256xf32>
    %7 = arith.mulf %5, %6 : vector<2x256xf32>
    %8 = vector.broadcast %2 : vector<1x256xf32> to vector<2x256xf32>
    %9 = arith.addf %7, %8 : vector<2x256xf32>
    %cst_8 = arith.constant 0.000000e+00 : f32
    %10 = vector.broadcast %cst_8 : f32 to vector<2x256xf32>
    %11 = arith.cmpf ogt, %9, %10 : vector<2x256xf32>
    %cst_9 = arith.constant 0.00999999977 : f32
    %12 = vector.broadcast %cst_9 : f32 to vector<2x256xf32>
    %13 = arith.mulf %12, %9 : vector<2x256xf32>
    %14 = arith.select %11, %9, %13 : vector<2x256xi1>, vector<2x256xf32>
    %c1 = arith.constant 1 : index
    %c0_10 = arith.constant 0 : index
    %c0_11 = arith.constant 0 : index
    %15 = vector.load %arg1[%c1, %c0_10, %c0_11] : memref<4x2x1152xbf16, #tpu.memory_space<vmem>>, vector<1x2x1152xbf16>
    %16 = vector.shape_cast %15 : vector<1x2x1152xbf16> to vector<2x1152xbf16>
    %cst_12 = arith.constant dense<0.000000e+00> : vector<2x256xf32>
    %17 = tpu.matmul %16, %0, %cst_12 {dimension_numbers = #tpu.dot_dimension_numbers<[1], [0], [0], [1], [0, 0, 1, 1], [], []>} : vector<2x1152xbf16>, vector<1152x256xbf16>, vector<2x256xf32> -> vector<2x256xf32>
    %18 = vector.broadcast %1 : vector<1x256xf32> to vector<2x256xf32>
    %19 = arith.mulf %17, %18 : vector<2x256xf32>
    %20 = vector.broadcast %2 : vector<1x256xf32> to vector<2x256xf32>
    %21 = arith.addf %19, %20 : vector<2x256xf32>
    %cst_13 = arith.constant 0.000000e+00 : f32
    %22 = vector.broadcast %cst_13 : f32 to vector<2x256xf32>
    %23 = arith.cmpf ogt, %21, %22 : vector<2x256xf32>
    %cst_14 = arith.constant 0.00999999977 : f32
    %24 = vector.broadcast %cst_14 : f32 to vector<2x256xf32>
    %25 = arith.mulf %24, %21 : vector<2x256xf32>
    %26 = arith.select %23, %21, %25 : vector<2x256xi1>, vector<2x256xf32>
    %27 = arith.maximumf %14, %26 : vector<2x256xf32>
    %c2 = arith.constant 2 : index
    %c0_15 = arith.constant 0 : index
    %c0_16 = arith.constant 0 : index
    %28 = vector.load %arg1[%c2, %c0_15, %c0_16] : memref<4x2x1152xbf16, #tpu.memory_space<vmem>>, vector<1x2x1152xbf16>
    %29 = vector.shape_cast %28 : vector<1x2x1152xbf16> to vector<2x1152xbf16>
    %cst_17 = arith.constant dense<0.000000e+00> : vector<2x256xf32>
    %30 = tpu.matmul %29, %0, %cst_17 {dimension_numbers = #tpu.dot_dimension_numbers<[1], [0], [0], [1], [0, 0, 1, 1], [], []>} : vector<2x1152xbf16>, vector<1152x256xbf16>, vector<2x256xf32> -> vector<2x256xf32>
    %31 = vector.broadcast %1 : vector<1x256xf32> to vector<2x256xf32>
    %32 = arith.mulf %30, %31 : vector<2x256xf32>
    %33 = vector.broadcast %2 : vector<1x256xf32> to vector<2x256xf32>
    %34 = arith.addf %32, %33 : vector<2x256xf32>
    %cst_18 = arith.constant 0.000000e+00 : f32
    %35 = vector.broadcast %cst_18 : f32 to vector<2x256xf32>
    %36 = arith.cmpf ogt, %34, %35 : vector<2x256xf32>
    %cst_19 = arith.constant 0.00999999977 : f32
    %37 = vector.broadcast %cst_19 : f32 to vector<2x256xf32>
    %38 = arith.mulf %37, %34 : vector<2x256xf32>
    %39 = arith.select %36, %34, %38 : vector<2x256xi1>, vector<2x256xf32>
    %40 = arith.maximumf %27, %39 : vector<2x256xf32>
    %c3 = arith.constant 3 : index
    %c0_20 = arith.constant 0 : index
    %c0_21 = arith.constant 0 : index
    %41 = vector.load %arg1[%c3, %c0_20, %c0_21] : memref<4x2x1152xbf16, #tpu.memory_space<vmem>>, vector<1x2x1152xbf16>
    %42 = vector.shape_cast %41 : vector<1x2x1152xbf16> to vector<2x1152xbf16>
    %cst_22 = arith.constant dense<0.000000e+00> : vector<2x256xf32>
    %43 = tpu.matmul %42, %0, %cst_22 {dimension_numbers = #tpu.dot_dimension_numbers<[1], [0], [0], [1], [0, 0, 1, 1], [], []>} : vector<2x1152xbf16>, vector<1152x256xbf16>, vector<2x256xf32> -> vector<2x256xf32>
    %44 = vector.broadcast %1 : vector<1x256xf32> to vector<2x256xf32>
    %45 = arith.mulf %43, %44 : vector<2x256xf32>
    %46 = vector.broadcast %2 : vector<1x256xf32> to vector<2x256xf32>
    %47 = arith.addf %45, %46 : vector<2x256xf32>
    %cst_23 = arith.constant 0.000000e+00 : f32
    %48 = vector.broadcast %cst_23 : f32 to vector<2x256xf32>
    %49 = arith.cmpf ogt, %47, %48 : vector<2x256xf32>
    %cst_24 = arith.constant 0.00999999977 : f32
    %50 = vector.broadcast %cst_24 : f32 to vector<2x256xf32>
    %51 = arith.mulf %50, %47 : vector<2x256xf32>
    %52 = arith.select %49, %47, %51 : vector<2x256xi1>, vector<2x256xf32>
    %53 = arith.maximumf %40, %52 : vector<2x256xf32>
    %c0_25 = arith.constant 0 : index
    %c0_26 = arith.constant 0 : index
    %54 = vector.load %arg5[%c0_25, %c0_26] : memref<2x256xf32, #tpu.memory_space<vmem>>, vector<2x256xf32>
    tpu.vector_store %arg5[%c0_25, %c0_26], %53 {strides = array<i32>} : memref<2x256xf32, #tpu.memory_space<vmem>>, vector<2x256xf32>,
    return
  }
  func.func @transform_0(%arg0: i32) -> (i32, i32, i32) {
    %c0_i32 = arith.constant 0 : i32
    %c0_i32_0 = arith.constant 0 : i32
    %c0_i32_1 = arith.constant 0 : i32
    return %c0_i32, %arg0, %c0_i32_0 : i32, i32, i32
  }
  func.func @transform_1(%arg0: i32) -> (i32, i32) {
    %c0_i32 = arith.constant 0 : i32
    %c0_i32_0 = arith.constant 0 : i32
    %c0_i32_1 = arith.constant 0 : i32
    return %c0_i32, %c0_i32_0 : i32, i32
  }
  func.func @transform_2(%arg0: i32) -> (i32, i32) {
    %c0_i32 = arith.constant 0 : i32
    %c0_i32_0 = arith.constant 0 : i32
    %c0_i32_1 = arith.constant 0 : i32
    return %c0_i32, %c0_i32_0 : i32, i32
  }
  func.func @transform_3(%arg0: i32) -> (i32, i32) {
    %c0_i32 = arith.constant 0 : i32
    %c0_i32_0 = arith.constant 0 : i32
    %c0_i32_1 = arith.constant 0 : i32
    return %c0_i32, %c0_i32_0 : i32, i32
  }
  func.func @transform_4(%arg0: i32) -> (i32, i32) {
    %c0_i32 = arith.constant 0 : i32
    %c0_i32_0 = arith.constant 0 : i32
    return %arg0, %c0_i32 : i32, i32
  }
}

module attributes {stable_mosaic.version = 11 : i64} {
  func.func @conv_stage_kernel(%arg0: i32, %arg1: memref<1x2x2304xbf16, #tpu.memory_space<vmem>>, %arg2: memref<2304x256xbf16, #tpu.memory_space<vmem>>, %arg3: memref<1x256xf32, #tpu.memory_space<vmem>>, %arg4: memref<1x256xf32, #tpu.memory_space<vmem>>, %arg5: memref<2x256xf32, #tpu.memory_space<vmem>>) attributes {dimension_semantics = [#tpu.dimension_semantics<parallel>], iteration_bounds = array<i64: 1>, scalar_prefetch = 0 : i64, scratch_operands = 0 : i64, tpu.core_type = #tpu.core_type<tc>, window_params = [{transform_indices = @transform_0, window_bounds = array<i64: 1, 2, 2304>}, {pipeline_mode = #tpu.pipeline_mode<synchronous>, transform_indices = @transform_1, window_bounds = array<i64: 2304, 256>}, {pipeline_mode = #tpu.pipeline_mode<synchronous>, transform_indices = @transform_2, window_bounds = array<i64: 1, 256>}, {pipeline_mode = #tpu.pipeline_mode<synchronous>, transform_indices = @transform_3, window_bounds = array<i64: 1, 256>}, {transform_indices = @transform_4, window_bounds = array<i64: 2, 256>}]} {
    %c0 = arith.constant 0 : index
    %c0_0 = arith.constant 0 : index
    %0 = vector.load %arg2[%c0, %c0_0] : memref<2304x256xbf16, #tpu.memory_space<vmem>>, vector<2304x256xbf16>
    %c0_1 = arith.constant 0 : index
    %c0_2 = arith.constant 0 : index
    %1 = vector.load %arg3[%c0_1, %c0_2] : memref<1x256xf32, #tpu.memory_space<vmem>>, vector<1x256xf32>
    %c0_3 = arith.constant 0 : index
    %c0_4 = arith.constant 0 : index
    %2 = vector.load %arg4[%c0_3, %c0_4] : memref<1x256xf32, #tpu.memory_space<vmem>>, vector<1x256xf32>
    %c0_5 = arith.constant 0 : index
    %c0_6 = arith.constant 0 : index
    %c0_7 = arith.constant 0 : index
    %3 = vector.load %arg1[%c0_5, %c0_6, %c0_7] : memref<1x2x2304xbf16, #tpu.memory_space<vmem>>, vector<1x2x2304xbf16>
    %4 = vector.shape_cast %3 : vector<1x2x2304xbf16> to vector<2x2304xbf16>
    %cst = arith.constant dense<0.000000e+00> : vector<2x256xf32>
    %5 = tpu.matmul %4, %0, %cst {dimension_numbers = #tpu.dot_dimension_numbers<[1], [0], [0], [1], [0, 0, 1, 1], [], []>} : vector<2x2304xbf16>, vector<2304x256xbf16>, vector<2x256xf32> -> vector<2x256xf32>
    %6 = vector.broadcast %1 : vector<1x256xf32> to vector<2x256xf32>
    %7 = arith.mulf %5, %6 : vector<2x256xf32>
    %8 = vector.broadcast %2 : vector<1x256xf32> to vector<2x256xf32>
    %9 = arith.addf %7, %8 : vector<2x256xf32>
    %cst_8 = arith.constant 0.000000e+00 : f32
    %10 = vector.broadcast %cst_8 : f32 to vector<2x256xf32>
    %11 = arith.cmpf ogt, %9, %10 : vector<2x256xf32>
    %cst_9 = arith.constant 0.00999999977 : f32
    %12 = vector.broadcast %cst_9 : f32 to vector<2x256xf32>
    %13 = arith.mulf %12, %9 : vector<2x256xf32>
    %14 = arith.select %11, %9, %13 : vector<2x256xi1>, vector<2x256xf32>
    %c0_10 = arith.constant 0 : index
    %c0_11 = arith.constant 0 : index
    %15 = vector.load %arg5[%c0_10, %c0_11] : memref<2x256xf32, #tpu.memory_space<vmem>>, vector<2x256xf32>
    tpu.vector_store %arg5[%c0_10, %c0_11], %14 {strides = array<i32>} : memref<2x256xf32, #tpu.memory_space<vmem>>, vector<2x256xf32>,
    return
  }
  func.func @transform_0(%arg0: i32) -> (i32, i32, i32) {
    %c0_i32 = arith.constant 0 : i32
    %c0_i32_0 = arith.constant 0 : i32
    %c0_i32_1 = arith.constant 0 : i32
    return %c0_i32, %arg0, %c0_i32_0 : i32, i32, i32
  }
  func.func @transform_1(%arg0: i32) -> (i32, i32) {
    %c0_i32 = arith.constant 0 : i32
    %c0_i32_0 = arith.constant 0 : i32
    %c0_i32_1 = arith.constant 0 : i32
    return %c0_i32, %c0_i32_0 : i32, i32
  }
  func.func @transform_2(%arg0: i32) -> (i32, i32) {
    %c0_i32 = arith.constant 0 : i32
    %c0_i32_0 = arith.constant 0 : i32
    %c0_i32_1 = arith.constant 0 : i32
    return %c0_i32, %c0_i32_0 : i32, i32
  }
  func.func @transform_3(%arg0: i32) -> (i32, i32) {
    %c0_i32 = arith.constant 0 : i32
    %c0_i32_0 = arith.constant 0 : i32
    %c0_i32_1 = arith.constant 0 : i32
    return %c0_i32, %c0_i32_0 : i32, i32
  }
  func.func @transform_4(%arg0: i32) -> (i32, i32) {
    %c0_i32 = arith.constant 0 : i32
    %c0_i32_0 = arith.constant 0 : i32
    return %arg0, %c0_i32 : i32, i32
  }
}

</mosaic_0001>

<bundles_post_ra>
// kernel: cnn_forward.4
= control target key start
LH: loop header
LB: loop body
LE: loop exit
PB: predicated region body
PF: predicated region fallthrough
CT: control target
= control target key end

     0   :  { %s6423_s15 = smov 0   ;;  %s6425_s16 = smov 0   ;;  %s8944_s0 = inlined_call_operand.vmem [shape: bf16[4,2048,25], index: 0, kind: input, shape index: {}]   ;;  %s8945_s1 = inlined_call_operand.vmem [shape: bf16[25,64], index: 1, kind: input, shape index: {}]   ;;  %s8946_s2 = inlined_call_operand.vmem [shape: f32[1,64], index: 2, kind: input, shape index: {}]   ;;  %s8947_s3 = inlined_call_operand.vmem [shape: f32[1,64], index: 3, kind: input, shape index: {}]   ;;  %s8948_s4 = inlined_call_operand.vmem [shape: f32[2048,64], index: 4, kind: output, shape index: {}]  }
   0x1   :  { %s6427_s17 = smov 0  }
   0x2 LB: > { %s5338_s18 = sadd.s32 4294967295, %s6395_s17   ;;  %s6440_s19 = sadd.s32 1, %s6395_s17   ;;  %s6395_s17 = sphi %s6427_s17, %s9470_s17   ;;  %s6391_s16 = sphi %s6425_s16, %s9469_s16   ;;  %s6387_s15 = sphi %s6423_s15, %s9468_s15  }
   0x3   : > { %s18_s20 = ssub.s32 %s6395_s17, %s6440_s19  ;;  %s21_s21 = sadd.s32 1, %s6391_s16 }
   0x4   : > { %p19_p0 = scmp.eq.s32.totalorder %s18_s20, 0  ;;  %p28_p1 = scmp.ne.s32.totalorder %s6391_s16, %s6387_s15 }
   0x5   : > { %p29_p2 = scmp.eq.s32.totalorder %s6395_s17, 0  ;;  %p5341_p4 = scmp.ge.s32.totalorder %s6395_s17, 4 }
   0x6   : > { %s6449_s22 = scalar_select %p19_p0, %s6391_s16, %s21_s21  }
   0x7   : > { %p30_p3 = por %p29_p2, %p28_p1  ;;  %152 = sbr.rel (%p5341_p4) target bundleno = 82 (0x52), region = 28 }
   0xe   : > { %155 = sbr.rel (!%p30_p3) target bundleno = 82 (0x52), region = 32  ;;  %s157_s23 = sand.u32 (%p30_p3), 1, %s6391_s16  }
   0xf   : > { %s5803_s24 = sshll.u32 (%p30_p3), %s6395_s17, 8  ;;  %s5342_s25 = sshll.u32 (%p30_p3), %s157_s23, 10 }
  0x10   : > { %s6457_s28 = scalar_lea.vmem (%p30_p3), %s8944_s0, %s5803_s24  ;;  %s6462_s29 = scalar_lea.vmem (%p30_p3), [#allocation2], %s5342_s25 }
  0x11   : > { %v178_v0 = vld [vmem:[%s6457_s28] sm:$0xff] (%p30_p3)   ;;  %v182_v1 = vld [vmem:[%s6457_s28 + $0x8] sm:$0xff] (%p30_p3)   ;;  %v186_v2 = vld [vmem:[%s6457_s28 + $0x10] sm:$0xff] (%p30_p3)  }
  0x12   : > { %179 = vst [vmem:[%s6462_s29] sm:$0xff] (%p30_p3), %v178_v0   ;;  %183 = vst [vmem:[%s6462_s29 + $0x8] sm:$0xff] (%p30_p3), %v182_v1   ;;  %v190_v3 = vld [vmem:[%s6457_s28 + $0x18] sm:$0xff] (%p30_p3)   ;;  %v194_v4 = vld [vmem:[%s6457_s28 + $0x20] sm:$0xff] (%p30_p3)  }
  0x13   : > { %187 = vst [vmem:[%s6462_s29 + $0x10] sm:$0xff] (%p30_p3), %v186_v2   ;;  %v198_v5 = vld [vmem:[%s6457_s28 + $0x28] sm:$0xff] (%p30_p3)   ;;  %191 = vst [vmem:[%s6462_s29 + $0x18] sm:$0xff] (%p30_p3), %v190_v3   ;;  %v202_v6 = vld [vmem:[%s6457_s28 + $0x30] sm:$0xff] (%p30_p3)  }
  0x14   : > { %195 = vst [vmem:[%s6462_s29 + $0x20] sm:$0xff] (%p30_p3), %v194_v4   ;;  %199 = vst [vmem:[%s6462_s29 + $0x28] sm:$0xff] (%p30_p3), %v198_v5   ;;  %v206_v7 = vld [vmem:[%s6457_s28 + $0x38] sm:$0xff] (%p30_p3)   ;;  %v210_v8 = vld [vmem:[%s6457_s28 + $0x40] sm:$0xff] (%p30_p3)  }
  0x15   : > { %203 = vst [vmem:[%s6462_s29 + $0x30] sm:$0xff] %v202_v6   ;;  %207 = vst [vmem:[%s6462_s29 + $0x38] sm:$0xff] %v206_v7   ;;  %v214_v9 = vld [vmem:[%s6457_s28 + $0x48] sm:$0xff]   ;;  %v218_v10 = vld [vmem:[%s6457_s28 + $0x50] sm:$0xff]  }
  0x16   : > { %211 = vst [vmem:[%s6462_s29 + $0x40] sm:$0xff] %v210_v8   ;;  %v222_v11 = vld [vmem:[%s6457_s28 + $0x58] sm:$0xff]   ;;  %215 = vst [vmem:[%s6462_s29 + $0x48] sm:$0xff] %v214_v9   ;;  %v226_v12 = vld [vmem:[%s6457_s28 + $0x60] sm:$0xff]  }
  0x17   : > { %219 = vst [vmem:[%s6462_s29 + $0x50] sm:$0xff] %v218_v10   ;;  %223 = vst [vmem:[%s6462_s29 + $0x58] sm:$0xff] %v222_v11   ;;  %v230_v13 = vld [vmem:[%s6457_s28 + $0x68] sm:$0xff]   ;;  %v234_v14 = vld [vmem:[%s6457_s28 + $0x70] sm:$0xff]  }
  0x18   : > { %227 = vst [vmem:[%s6462_s29 + $0x60] sm:$0xff] %v226_v12   ;;  %231 = vst [vmem:[%s6462_s29 + $0x68] sm:$0xff] %v230_v13   ;;  %v238_v15 = vld [vmem:[%s6457_s28 + $0x78] sm:$0xff]   ;;  %v242_v16 = vld [vmem:[%s6457_s28 + $0x80] sm:$0xff]  }
  0x19   : > { %235 = vst [vmem:[%s6462_s29 + $0x70] sm:$0xff] %v234_v14   ;;  %v246_v17 = vld [vmem:[%s6457_s28 + $0x88] sm:$0xff]   ;;  %239 = vst [vmem:[%s6462_s29 + $0x78] sm:$0xff] %v238_v15   ;;  %v250_v18 = vld [vmem:[%s6457_s28 + $0x90] sm:$0xff]  }
  0x1a   : > { %243 = vst [vmem:[%s6462_s29 + $0x80] sm:$0xff] %v242_v16   ;;  %247 = vst [vmem:[%s6462_s29 + $0x88] sm:$0xff] %v246_v17   ;;  %v254_v19 = vld [vmem:[%s6457_s28 + $0x98] sm:$0xff]   ;;  %v258_v20 = vld [vmem:[%s6457_s28 + $0xa0] sm:$0xff]  }
  0x1b   : > { %251 = vst [vmem:[%s6462_s29 + $0x90] sm:$0xff] %v250_v18   ;;  %255 = vst [vmem:[%s6462_s29 + $0x98] sm:$0xff] %v254_v19   ;;  %v262_v21 = vld [vmem:[%s6457_s28 + $0xa8] sm:$0xff]   ;;  %v266_v22 = vld [vmem:[%s6457_s28 + $0xb0] sm:$0xff]  }
  0x1c   : > { %259 = vst [vmem:[%s6462_s29 + $0xa0] sm:$0xff] %v258_v20   ;;  %v270_v23 = vld [vmem:[%s6457_s28 + $0xb8] sm:$0xff]   ;;  %263 = vst [vmem:[%s6462_s29 + $0xa8] sm:$0xff] %v262_v21   ;;  %v274_v24 = vld [vmem:[%s6457_s28 + $0xc0] sm:$0xff]  }
  0x1d   : > { %267 = vst [vmem:[%s6462_s29 + $0xb0] sm:$0xff] %v266_v22   ;;  %271 = vst [vmem:[%s6462_s29 + $0xb8] sm:$0xff] %v270_v23   ;;  %v278_v25 = vld [vmem:[%s6457_s28 + $0xc8] sm:$0xff]   ;;  %v282_v26 = vld [vmem:[%s6457_s28 + $0xd0] sm:$0xff]  }
  0x1e   : > { %275 = vst [vmem:[%s6462_s29 + $0xc0] sm:$0xff] %v274_v24   ;;  %279 = vst [vmem:[%s6462_s29 + $0xc8] sm:$0xff] %v278_v25   ;;  %v286_v27 = vld [vmem:[%s6457_s28 + $0xd8] sm:$0xff]   ;;  %v290_v28 = vld [vmem:[%s6457_s28 + $0xe0] sm:$0xff]  }
  0x1f   : > { %283 = vst [vmem:[%s6462_s29 + $0xd0] sm:$0xff] %v282_v26   ;;  %v294_v29 = vld [vmem:[%s6457_s28 + $0xe8] sm:$0xff]   ;;  %287 = vst [vmem:[%s6462_s29 + $0xd8] sm:$0xff] %v286_v27   ;;  %v298_v30 = vld [vmem:[%s6457_s28 + $0xf0] sm:$0xff]  }
  0x20   : > { %291 = vst [vmem:[%s6462_s29 + $0xe0] sm:$0xff] %v290_v28   ;;  %295 = vst [vmem:[%s6462_s29 + $0xe8] sm:$0xff] %v294_v29   ;;  %v302_v31 = vld [vmem:[%s6457_s28 + $0xf8] sm:$0xff]   ;;  %v306_v32 = vld [vmem:[%s6457_s28 + $0x400] sm:$0xff]  }
  0x21   : > { %299 = vst [vmem:[%s6462_s29 + $0xf0] sm:$0xff] %v298_v30   ;;  %303 = vst [vmem:[%s6462_s29 + $0xf8] sm:$0xff] %v302_v31   ;;  %v310_v33 = vld [vmem:[%s6457_s28 + $0x408] sm:$0xff]   ;;  %v314_v34 = vld [vmem:[%s6457_s28 + $0x410] sm:$0xff]  }
  0x22   : > { %307 = vst [vmem:[%s6462_s29 + $0x100] sm:$0xff] %v306_v32   ;;  %v318_v35 = vld [vmem:[%s6457_s28 + $0x418] sm:$0xff]   ;;  %311 = vst [vmem:[%s6462_s29 + $0x108] sm:$0xff] %v310_v33   ;;  %v322_v36 = vld [vmem:[%s6457_s28 + $0x420] sm:$0xff]  }
  0x23   : > { %315 = vst [vmem:[%s6462_s29 + $0x110] sm:$0xff] %v314_v34   ;;  %319 = vst [vmem:[%s6462_s29 + $0x118] sm:$0xff] %v318_v35   ;;  %v326_v37 = vld [vmem:[%s6457_s28 + $0x428] sm:$0xff]   ;;  %v330_v38 = vld [vmem:[%s6457_s28 + $0x430] sm:$0xff]  }
  0x24   : > { %323 = vst [vmem:[%s6462_s29 + $0x120] sm:$0xff] %v322_v36   ;;  %327 = vst [vmem:[%s6462_s29 + $0x128] sm:$0xff] %v326_v37   ;;  %v334_v39 = vld [vmem:[%s6457_s28 + $0x438] sm:$0xff]   ;;  %v338_v40 = vld [vmem:[%s6457_s28 + $0x440] sm:$0xff]  }
  0x25   : > { %331 = vst [vmem:[%s6462_s29 + $0x130] sm:$0xff] %v330_v38   ;;  %v342_v41 = vld [vmem:[%s6457_s28 + $0x448] sm:$0xff]   ;;  %335 = vst [vmem:[%s6462_s29 + $0x138] sm:$0xff] %v334_v39   ;;  %v346_v42 = vld [vmem:[%s6457_s28 + $0x450] sm:$0xff]  }
  0x26   : > { %339 = vst [vmem:[%s6462_s29 + $0x140] sm:$0xff] %v338_v40   ;;  %343 = vst [vmem:[%s6462_s29 + $0x148] sm:$0xff] %v342_v41   ;;  %v350_v43 = vld [vmem:[%s6457_s28 + $0x458] sm:$0xff]   ;;  %v354_v44 = vld [vmem:[%s6457_s28 + $0x460] sm:$0xff]  }
  0x27   : > { %347 = vst [vmem:[%s6462_s29 + $0x150] sm:$0xff] %v346_v42   ;;  %351 = vst [vmem:[%s6462_s29 + $0x158] sm:$0xff] %v350_v43   ;;  %v358_v45 = vld [vmem:[%s6457_s28 + $0x468] sm:$0xff]   ;;  %v362_v46 = vld [vmem:[%s6457_s28 + $0x470] sm:$0xff]  }
  0x28   : > { %355 = vst [vmem:[%s6462_s29 + $0x160] sm:$0xff] %v354_v44   ;;  %v366_v47 = vld [vmem:[%s6457_s28 + $0x478] sm:$0xff]   ;;  %359 = vst [vmem:[%s6462_s29 + $0x168] sm:$0xff] %v358_v45   ;;  %v370_v48 = vld [vmem:[%s6457_s28 + $0x480] sm:$0xff]  }
  0x29   : > { %363 = vst [vmem:[%s6462_s29 + $0x170] sm:$0xff] %v362_v46   ;;  %367 = vst [vmem:[%s6462_s29 + $0x178] sm:$0xff] %v366_v47   ;;  %v374_v49 = vld [vmem:[%s6457_s28 + $0x488] sm:$0xff]   ;;  %v378_v50 = vld [vmem:[%s6457_s28 + $0x490] sm:$0xff]  }
  0x2a   : > { %371 = vst [vmem:[%s6462_s29 + $0x180] sm:$0xff] %v370_v48   ;;  %375 = vst [vmem:[%s6462_s29 + $0x188] sm:$0xff] %v374_v49   ;;  %v382_v51 = vld [vmem:[%s6457_s28 + $0x498] sm:$0xff]   ;;  %v386_v52 = vld [vmem:[%s6457_s28 + $0x4a0] sm:$0xff]  }
  0x2b   : > { %379 = vst [vmem:[%s6462_s29 + $0x190] sm:$0xff] %v378_v50   ;;  %v390_v53 = vld [vmem:[%s6457_s28 + $0x4a8] sm:$0xff]   ;;  %383 = vst [vmem:[%s6462_s29 + $0x198] sm:$0xff] %v382_v51   ;;  %v394_v54 = vld [vmem:[%s6457_s28 + $0x4b0] sm:$0xff]  }
  0x2c   : > { %387 = vst [vmem:[%s6462_s29 + $0x1a0] sm:$0xff] %v386_v52   ;;  %391 = vst [vmem:[%s6462_s29 + $0x1a8] sm:$0xff] %v390_v53   ;;  %v398_v55 = vld [vmem:[%s6457_s28 + $0x4b8] sm:$0xff]   ;;  %v402_v56 = vld [vmem:[%s6457_s28 + $0x4c0] sm:$0xff]  }
  0x2d   : > { %395 = vst [vmem:[%s6462_s29 + $0x1b0] sm:$0xff] %v394_v54   ;;  %399 = vst [vmem:[%s6462_s29 + $0x1b8] sm:$0xff] %v398_v55   ;;  %v406_v57 = vld [vmem:[%s6457_s28 + $0x4c8] sm:$0xff]   ;;  %v410_v58 = vld [vmem:[%s6457_s28 + $0x4d0] sm:$0xff]  }
  0x2e   : > { %403 = vst [vmem:[%s6462_s29 + $0x1c0] sm:$0xff] %v402_v56   ;;  %v414_v59 = vld [vmem:[%s6457_s28 + $0x4d8] sm:$0xff]   ;;  %407 = vst [vmem:[%s6462_s29 + $0x1c8] sm:$0xff] %v406_v57   ;;  %v418_v60 = vld [vmem:[%s6457_s28 + $0x4e0] sm:$0xff]  }
  0x2f   : > { %411 = vst [vmem:[%s6462_s29 + $0x1d0] sm:$0xff] %v410_v58   ;;  %415 = vst [vmem:[%s6462_s29 + $0x1d8] sm:$0xff] %v414_v59   ;;  %v422_v61 = vld [vmem:[%s6457_s28 + $0x4e8] sm:$0xff]   ;;  %v426_v62 = vld [vmem:[%s6457_s28 + $0x4f0] sm:$0xff]  }
  0x30   : > { %419 = vst [vmem:[%s6462_s29 + $0x1e0] sm:$0xff] %v418_v60   ;;  %423 = vst [vmem:[%s6462_s29 + $0x1e8] sm:$0xff] %v422_v61   ;;  %v430_v63 = vld [vmem:[%s6457_s28 + $0x4f8] sm:$0xff]   ;;  %v434_v0 = vld [vmem:[%s6457_s28 + $0x800] sm:$0xff]  }
  0x31   : > { %427 = vst [vmem:[%s6462_s29 + $0x1f0] sm:$0xff] %v426_v62   ;;  %v438_v1 = vld [vmem:[%s6457_s28 + $0x808] sm:$0xff]   ;;  %431 = vst [vmem:[%s6462_s29 + $0x1f8] sm:$0xff] %v430_v63   ;;  %v442_v2 = vld [vmem:[%s6457_s28 + $0x810] sm:$0xff]  }
  0x32   : > { %435 = vst [vmem:[%s6462_s29 + $0x200] sm:$0xff] %v434_v0   ;;  %439 = vst [vmem:[%s6462_s29 + $0x208] sm:$0xff] %v438_v1   ;;  %v446_v3 = vld [vmem:[%s6457_s28 + $0x818] sm:$0xff]   ;;  %v450_v4 = vld [vmem:[%s6457_s28 + $0x820] sm:$0xff]  }
  0x33   : > { %443 = vst [vmem:[%s6462_s29 + $0x210] sm:$0xff] %v442_v2   ;;  %447 = vst [vmem:[%s6462_s29 + $0x218] sm:$0xff] %v446_v3   ;;  %v454_v5 = vld [vmem:[%s6457_s28 + $0x828] sm:$0xff]   ;;  %v458_v6 = vld [vmem:[%s6457_s28 + $0x830] sm:$0xff]  }
  0x34   : > { %451 = vst [vmem:[%s6462_s29 + $0x220] sm:$0xff] %v450_v4   ;;  %v462_v7 = vld [vmem:[%s6457_s28 + $0x838] sm:$0xff]   ;;  %455 = vst [vmem:[%s6462_s29 + $0x228] sm:$0xff] %v454_v5   ;;  %v466_v8 = vld [vmem:[%s6457_s28 + $0x840] sm:$0xff]  }
  0x35   : > { %459 = vst [vmem:[%s6462_s29 + $0x230] sm:$0xff] %v458_v6   ;;  %463 = vst [vmem:[%s6462_s29 + $0x238] sm:$0xff] %v462_v7   ;;  %v470_v9 = vld [vmem:[%s6457_s28 + $0x848] sm:$0xff]   ;;  %v474_v10 = vld [vmem:[%s6457_s28 + $0x850] sm:$0xff]  }
  0x36   : > { %467 = vst [vmem:[%s6462_s29 + $0x240] sm:$0xff] %v466_v8   ;;  %471 = vst [vmem:[%s6462_s29 + $0x248] sm:$0xff] %v470_v9   ;;  %v478_v11 = vld [vmem:[%s6457_s28 + $0x858] sm:$0xff]   ;;  %v482_v12 = vld [vmem:[%s6457_s28 + $0x860] sm:$0xff]  }
  0x37   : > { %475 = vst [vmem:[%s6462_s29 + $0x250] sm:$0xff] %v474_v10   ;;  %v486_v13 = vld [vmem:[%s6457_s28 + $0x868] sm:$0xff]   ;;  %479 = vst [vmem:[%s6462_s29 + $0x258] sm:$0xff] %v478_v11   ;;  %v490_v14 = vld [vmem:[%s6457_s28 + $0x870] sm:$0xff]  }
  0x38   : > { %483 = vst [vmem:[%s6462_s29 + $0x260] sm:$0xff] %v482_v12   ;;  %487 = vst [vmem:[%s6462_s29 + $0x268] sm:$0xff] %v486_v13   ;;  %v494_v15 = vld [vmem:[%s6457_s28 + $0x878] sm:$0xff]   ;;  %v498_v16 = vld [vmem:[%s6457_s28 + $0x880] sm:$0xff]  }
  0x39   : > { %491 = vst [vmem:[%s6462_s29 + $0x270] sm:$0xff] %v490_v14   ;;  %495 = vst [vmem:[%s6462_s29 + $0x278] sm:$0xff] %v494_v15   ;;  %v502_v17 = vld [vmem:[%s6457_s28 + $0x888] sm:$0xff]   ;;  %v506_v18 = vld [vmem:[%s6457_s28 + $0x890] sm:$0xff]  }
  0x3a   : > { %499 = vst [vmem:[%s6462_s29 + $0x280] sm:$0xff] %v498_v16   ;;  %v510_v19 = vld [vmem:[%s6457_s28 + $0x898] sm:$0xff]   ;;  %503 = vst [vmem:[%s6462_s29 + $0x288] sm:$0xff] %v502_v17   ;;  %v514_v20 = vld [vmem:[%s6457_s28 + $0x8a0] sm:$0xff]  }
  0x3b   : > { %507 = vst [vmem:[%s6462_s29 + $0x290] sm:$0xff] %v506_v18   ;;  %511 = vst [vmem:[%s6462_s29 + $0x298] sm:$0xff] %v510_v19   ;;  %v518_v21 = vld [vmem:[%s6457_s28 + $0x8a8] sm:$0xff]   ;;  %v522_v22 = vld [vmem:[%s6457_s28 + $0x8b0] sm:$0xff]  }
  0x3c   : > { %515 = vst [vmem:[%s6462_s29 + $0x2a0] sm:$0xff] %v514_v20   ;;  %519 = vst [vmem:[%s6462_s29 + $0x2a8] sm:$0xff] %v518_v21   ;;  %v526_v23 = vld [vmem:[%s6457_s28 + $0x8b8] sm:$0xff]   ;;  %v530_v24 = vld [vmem:[%s6457_s28 + $0x8c0] sm:$0xff]  }
  0x3d   : > { %523 = vst [vmem:[%s6462_s29 + $0x2b0] sm:$0xff] %v522_v22   ;;  %v534_v25 = vld [vmem:[%s6457_s28 + $0x8c8] sm:$0xff]   ;;  %527 = vst [vmem:[%s6462_s29 + $0x2b8] sm:$0xff] %v526_v23   ;;  %v538_v26 = vld [vmem:[%s6457_s28 + $0x8d0] sm:$0xff]  }
  0x3e   : > { %531 = vst [vmem:[%s6462_s29 + $0x2c0] sm:$0xff] %v530_v24   ;;  %535 = vst [vmem:[%s6462_s29 + $0x2c8] sm:$0xff] %v534_v25   ;;  %v542_v27 = vld [vmem:[%s6457_s28 + $0x8d8] sm:$0xff]   ;;  %v546_v28 = vld [vmem:[%s6457_s28 + $0x8e0] sm:$0xff]  }
  0x3f   : > { %539 = vst [vmem:[%s6462_s29 + $0x2d0] sm:$0xff] %v538_v26   ;;  %543 = vst [vmem:[%s6462_s29 + $0x2d8] sm:$0xff] %v542_v27   ;;  %v550_v29 = vld [vmem:[%s6457_s28 + $0x8e8] sm:$0xff]   ;;  %v554_v30 = vld [vmem:[%s6457_s28 + $0x8f0] sm:$0xff]  }
  0x40   : > { %547 = vst [vmem:[%s6462_s29 + $0x2e0] sm:$0xff] %v546_v28   ;;  %v558_v31 = vld [vmem:[%s6457_s28 + $0x8f8] sm:$0xff]   ;;  %551 = vst [vmem:[%s6462_s29 + $0x2e8] sm:$0xff] %v550_v29   ;;  %v562_v32 = vld [vmem:[%s6457_s28 + $0xc00] sm:$0xff]  }
  0x41   : > { %555 = vst [vmem:[%s6462_s29 + $0x2f0] sm:$0xff] %v554_v30   ;;  %559 = vst [vmem:[%s6462_s29 + $0x2f8] sm:$0xff] %v558_v31   ;;  %v566_v33 = vld [vmem:[%s6457_s28 + $0xc08] sm:$0xff]   ;;  %v570_v34 = vld [vmem:[%s6457_s28 + $0xc10] sm:$0xff]  }
  0x42   : > { %563 = vst [vmem:[%s6462_s29 + $0x300] sm:$0xff] %v562_v32   ;;  %567 = vst [vmem:[%s6462_s29 + $0x308] sm:$0xff] %v566_v33   ;;  %v574_v35 = vld [vmem:[%s6457_s28 + $0xc18] sm:$0xff]   ;;  %v578_v36 = vld [vmem:[%s6457_s28 + $0xc20] sm:$0xff]  }
  0x43   : > { %571 = vst [vmem:[%s6462_s29 + $0x310] sm:$0xff] %v570_v34   ;;  %v582_v37 = vld [vmem:[%s6457_s28 + $0xc28] sm:$0xff]   ;;  %575 = vst [vmem:[%s6462_s29 + $0x318] sm:$0xff] %v574_v35   ;;  %v586_v38 = vld [vmem:[%s6457_s28 + $0xc30] sm:$0xff]  }
  0x44   : > { %579 = vst [vmem:[%s6462_s29 + $0x320] sm:$0xff] %v578_v36   ;;  %583 = vst [vmem:[%s6462_s29 + $0x328] sm:$0xff] %v582_v37   ;;  %v590_v39 = vld [vmem:[%s6457_s28 + $0xc38] sm:$0xff]   ;;  %v594_v40 = vld [vmem:[%s6457_s28 + $0xc40] sm:$0xff]  }
  0x45   : > { %587 = vst [vmem:[%s6462_s29 + $0x330] sm:$0xff] %v586_v38   ;;  %591 = vst [vmem:[%s6462_s29 + $0x338] sm:$0xff] %v590_v39   ;;  %v598_v41 = vld [vmem:[%s6457_s28 + $0xc48] sm:$0xff]   ;;  %v602_v42 = vld [vmem:[%s6457_s28 + $0xc50] sm:$0xff]  }
  0x46   : > { %595 = vst [vmem:[%s6462_s29 + $0x340] sm:$0xff] %v594_v40   ;;  %v606_v43 = vld [vmem:[%s6457_s28 + $0xc58] sm:$0xff]   ;;  %599 = vst [vmem:[%s6462_s29 + $0x348] sm:$0xff] %v598_v41   ;;  %v610_v44 = vld [vmem:[%s6457_s28 + $0xc60] sm:$0xff]  }
  0x47   : > { %603 = vst [vmem:[%s6462_s29 + $0x350] sm:$0xff] %v602_v42   ;;  %607 = vst [vmem:[%s6462_s29 + $0x358] sm:$0xff] %v606_v43   ;;  %v614_v45 = vld [vmem:[%s6457_s28 + $0xc68] sm:$0xff]   ;;  %v618_v46 = vld [vmem:[%s6457_s28 + $0xc70] sm:$0xff]  }
  0x48   : > { %611 = vst [vmem:[%s6462_s29 + $0x360] sm:$0xff] %v610_v44   ;;  %615 = vst [vmem:[%s6462_s29 + $0x368] sm:$0xff] %v614_v45   ;;  %v622_v47 = vld [vmem:[%s6457_s28 + $0xc78] sm:$0xff]   ;;  %v626_v48 = vld [vmem:[%s6457_s28 + $0xc80] sm:$0xff]  }
  0x49   : > { %619 = vst [vmem:[%s6462_s29 + $0x370] sm:$0xff] %v618_v46   ;;  %v630_v49 = vld [vmem:[%s6457_s28 + $0xc88] sm:$0xff]   ;;  %623 = vst [vmem:[%s6462_s29 + $0x378] sm:$0xff] %v622_v47   ;;  %v634_v50 = vld [vmem:[%s6457_s28 + $0xc90] sm:$0xff]  }
  0x4a   : > { %627 = vst [vmem:[%s6462_s29 + $0x380] sm:$0xff] %v626_v48   ;;  %631 = vst [vmem:[%s6462_s29 + $0x388] sm:$0xff] %v630_v49   ;;  %v638_v51 = vld [vmem:[%s6457_s28 + $0xc98] sm:$0xff]   ;;  %v642_v52 = vld [vmem:[%s6457_s28 + $0xca0] sm:$0xff]  }
  0x4b   : > { %635 = vst [vmem:[%s6462_s29 + $0x390] sm:$0xff] %v634_v50   ;;  %639 = vst [vmem:[%s6462_s29 + $0x398] sm:$0xff] %v638_v51   ;;  %v646_v53 = vld [vmem:[%s6457_s28 + $0xca8] sm:$0xff]   ;;  %v650_v54 = vld [vmem:[%s6457_s28 + $0xcb0] sm:$0xff]  }
  0x4c   : > { %643 = vst [vmem:[%s6462_s29 + $0x3a0] sm:$0xff] %v642_v52   ;;  %v654_v55 = vld [vmem:[%s6457_s28 + $0xcb8] sm:$0xff]   ;;  %647 = vst [vmem:[%s6462_s29 + $0x3a8] sm:$0xff] %v646_v53   ;;  %v658_v56 = vld [vmem:[%s6457_s28 + $0xcc0] sm:$0xff]  }
  0x4d   : > { %651 = vst [vmem:[%s6462_s29 + $0x3b0] sm:$0xff] %v650_v54   ;;  %655 = vst [vmem:[%s6462_s29 + $0x3b8] sm:$0xff] %v654_v55   ;;  %v662_v57 = vld [vmem:[%s6457_s28 + $0xcc8] sm:$0xff]   ;;  %v666_v58 = vld [vmem:[%s6457_s28 + $0xcd0] sm:$0xff]  }
  0x4e   : > { %659 = vst [vmem:[%s6462_s29 + $0x3c0] sm:$0xff] %v658_v56   ;;  %663 = vst [vmem:[%s6462_s29 + $0x3c8] sm:$0xff] %v662_v57   ;;  %v670_v59 = vld [vmem:[%s6457_s28 + $0xcd8] sm:$0xff]   ;;  %v674_v60 = vld [vmem:[%s6457_s28 + $0xce0] sm:$0xff]  }
  0x4f   : > { %667 = vst [vmem:[%s6462_s29 + $0x3d0] sm:$0xff] %v666_v58   ;;  %v678_v61 = vld [vmem:[%s6457_s28 + $0xce8] sm:$0xff]   ;;  %671 = vst [vmem:[%s6462_s29 + $0x3d8] sm:$0xff] %v670_v59   ;;  %v682_v62 = vld [vmem:[%s6457_s28 + $0xcf0] sm:$0xff]  }
  0x50   : > { %675 = vst [vmem:[%s6462_s29 + $0x3e0] sm:$0xff] %v674_v60   ;;  %679 = vst [vmem:[%s6462_s29 + $0x3e8] sm:$0xff] %v678_v61   ;;  %v686_v63 = vld [vmem:[%s6457_s28 + $0xcf8] sm:$0xff]  }
  0x51   : > { %683 = vst [vmem:[%s6462_s29 + $0x3f0] sm:$0xff] %v682_v62   ;;  %687 = vst [vmem:[%s6462_s29 + $0x3f8] sm:$0xff] %v686_v63  }
  0x52 PF: > { %p5345_p5 = scmp.ge.s32.totalorder %s6395_s17, 1  ;;  %p1223_p6 = scmp.lt.s32.totalorder %s6395_s17, 5 }
  0x54   : > { %p1224_p7 = pnand %p5345_p5, %p1223_p6 }
  0x56   : > { %1227 = sbr.rel (%p1224_p7) target bundleno = 703 (0x2bf), region = 73 }
  0x5d   : > { %v6237_v0 = vld [vmem:[%s8945_s1] sm:$0xff]   ;;  %vm1601_vm0 = vcmask 1043456   ;;  %v6238_v1 = vld [vmem:[%s8945_s1 + $0x8] sm:$0x1f]   ;;  %vm1602_vm1 = vcmask 1044480   ;;  %s1230_s8 = sand.u32 1, %s6387_s15  }
  0x5e   : > { %5940 = vmatprep.subr.bf16.mxu0 %v6237_v0  ;;  %6008 = vmatprep.subr.bf16.mxu1 %v6237_v0  ;;  %v6397_v2 = vmov 65535   ;;  %s5346_s9 = sshll.u32 %s1230_s8, 10  ;;  %vm1504_vm2 = vcmask 203776   ;;  %s7980_s24 = sshll.u32 %s5338_s18, 6 }
  0x5f   : > { %5941 = vmatpush3.bf16.msra.mxu0 %v6237_v0  ;;  %6009 = vmatpush3.bf16.msra.mxu1 %v6237_v0  ;;  %v1603_v3 = vsel %vm1601_vm0, 4294967295, %v6397_v2  ;;  %s6726_s10 = scalar_lea.vmem [#allocation2], %s5346_s9  ;;  %p1257_p8 = scmp.lt.s32.totalorder %s7980_s24, 255 }
  0x60   : > { %v1604_v4 = vsel %vm1602_vm1, %v1603_v3, 0  ;;  %v6239_v6 = vld [vmem:[%s6726_s10] sm:$0xff]   ;;  %v6241_v8 = vld [vmem:[%s6726_s10 + $0x8] sm:$0xff]   ;;  %v6243_v10 = vld [vmem:[%s6726_s10 + $0x10] sm:$0xff]  }
  0x61   : > { %v1606_v5 = vand.u32 %v6238_v1, %v1604_v4  ;;  %v6240_v7 = vld [vmem:[%s6726_s10 + $0x100] sm:$0xff]   ;;  %v6242_v9 = vld [vmem:[%s6726_s10 + $0x108] sm:$0xff]   ;;  %5944 = vmatprep.mubr.msk.bf16.mxu0 %vm1504_vm2, %v6239_v6  ;;  %v6244_v11 = vld [vmem:[%s6726_s10 + $0x110] sm:$0xff]   ;;  %s9472_s24 = smov (!%p1257_p8, %s7980_s24), 255 }
  0x62   : > { %6012 = vmatprep.mubr.msk.bf16.mxu1 %vm1504_vm2, %v6240_v7  ;;  %v6245_v12 = vld [vmem:[%s6726_s10 + $0x18] sm:$0xff]   ;;  %v6247_v14 = vld [vmem:[%s6726_s10 + $0x20] sm:$0xff]   ;;  %v6249_v16 = vld [vmem:[%s6726_s10 + $0x28] sm:$0xff]   ;;  %s5348_s17 = sshll.u32 %s9472_s24, 3 }
  0x63   : > { %5942 = vmatprep.subr.bf16.mxu0 %v1606_v5  ;;  %6010 = vmatprep.subr.bf16.mxu1 %v1606_v5  ;;  %v6246_v13 = vld [vmem:[%s6726_s10 + $0x118] sm:$0xff]   ;;  %v6248_v15 = vld [vmem:[%s6726_s10 + $0x120] sm:$0xff]   ;;  %v6250_v17 = vld [vmem:[%s6726_s10 + $0x128] sm:$0xff]   ;;  %s8083_s26 = scalar_lea.vmem %s8948_s4, %s5348_s17 }
  0x64   : > { %5943 = vmatpush3.bf16.msra.mxu0 %v1606_v5  ;;  %6011 = vmatpush3.bf16.msra.mxu1 %v1606_v5  ;;  %v6251_v18 = vld [vmem:[%s6726_s10 + $0x30] sm:$0xff]   ;;  %v6253_v20 = vld [vmem:[%s6726_s10 + $0x38] sm:$0xff]   ;;  %v6255_v22 = vld [vmem:[%s6726_s10 + $0x40] sm:$0xff]  }
  0x65   : > { %6076 = vmatprep.subr.bf16.mxu0 %v6237_v0  ;;  %6144 = vmatprep.subr.bf16.mxu1 %v6237_v0  ;;  %v6252_v19 = vld [vmem:[%s6726_s10 + $0x130] sm:$0xff]   ;;  %v6254_v21 = vld [vmem:[%s6726_s10 + $0x138] sm:$0xff]   ;;  %v6256_v23 = vld [vmem:[%s6726_s10 + $0x140] sm:$0xff]  }
  0x66   : > { %v6257_v24 = vld [vmem:[%s6726_s10 + $0x48] sm:$0xff]   ;;  %v6259_v26 = vld [vmem:[%s6726_s10 + $0x50] sm:$0xff]   ;;  %v6261_v28 = vld [vmem:[%s6726_s10 + $0x58] sm:$0xff]  }
  0x67   : > { %5945 = vmatmul.mubr.msk.bf16.vlgmr.msra.gmra.mrb[0].mxu0 %vm1504_vm2, %v6241_v8  ;;  %6013 = vmatmul.mubr.msk.bf16.vlgmr.msra.gmra.mrb[0].mxu1 %vm1504_vm2, %v6242_v9  ;;  %v6258_v25 = vld [vmem:[%s6726_s10 + $0x148] sm:$0xff]   ;;  %v6260_v27 = vld [vmem:[%s6726_s10 + $0x150] sm:$0xff]   ;;  %v6262_v29 = vld [vmem:[%s6726_s10 + $0x158] sm:$0xff]  }
  0x68   : > { %6077 = vmatpush3.bf16.msra.mxu0 %v6237_v0  ;;  %6145 = vmatpush3.bf16.msra.mxu1 %v6237_v0  ;;  %v6263_v30 = vld [vmem:[%s6726_s10 + $0x60] sm:$0xff]   ;;  %v6265_v32 = vld [vmem:[%s6726_s10 + $0x68] sm:$0xff]   ;;  %v6267_v34 = vld [vmem:[%s6726_s10 + $0x70] sm:$0xff]  }
  0x69   : > { %5948 = vmatprep.mubr.msk.bf16.mxu0 %vm1504_vm2, %v6243_v10  ;;  %6016 = vmatprep.mubr.msk.bf16.mxu1 %vm1504_vm2, %v6244_v11  ;;  %v6264_v31 = vld [vmem:[%s6726_s10 + $0x160] sm:$0xff]   ;;  %v6266_v33 = vld [vmem:[%s6726_s10 + $0x168] sm:$0xff]   ;;  %v6268_v35 = vld [vmem:[%s6726_s10 + $0x170] sm:$0xff]  }
  0x6a   : > { %6078 = vmatprep.subr.bf16.mxu0 %v1606_v5  ;;  %6146 = vmatprep.subr.bf16.mxu1 %v1606_v5  ;;  %v6269_v36 = vld [vmem:[%s6726_s10 + $0x78] sm:$0xff]   ;;  %v6271_v38 = vld [vmem:[%s6726_s10 + $0x80] sm:$0xff]   ;;  %v6273_v40 = vld [vmem:[%s6726_s10 + $0x88] sm:$0xff]  }
  0x6b   : > { %v6270_v37 = vld [vmem:[%s6726_s10 + $0x178] sm:$0xff]   ;;  %v6272_v39 = vld [vmem:[%s6726_s10 + $0x180] sm:$0xff]   ;;  %v6274_v41 = vld [vmem:[%s6726_s10 + $0x188] sm:$0xff]  }
  0x6c   : > { %6079 = vmatpush3.bf16.msra.mxu0 %v1606_v5  ;;  %6147 = vmatpush3.bf16.msra.mxu1 %v1606_v5  ;;  %v6275_v42 = vld [vmem:[%s6726_s10 + $0x90] sm:$0xff]   ;;  %v6277_v44 = vld [vmem:[%s6726_s10 + $0x98] sm:$0xff]   ;;  %v6279_v46 = vld [vmem:[%s6726_s10 + $0xa0] sm:$0xff]  }
  0x6d   : > { %v6276_v43 = vld [vmem:[%s6726_s10 + $0x190] sm:$0xff]   ;;  %v6278_v45 = vld [vmem:[%s6726_s10 + $0x198] sm:$0xff]   ;;  %v6280_v47 = vld [vmem:[%s6726_s10 + $0x1a0] sm:$0xff]  }
  0x6e   : > { %v6281_v48 = vld [vmem:[%s6726_s10 + $0xa8] sm:$0xff]   ;;  %v6283_v50 = vld [vmem:[%s6726_s10 + $0xb0] sm:$0xff]   ;;  %v6285_v52 = vld [vmem:[%s6726_s10 + $0xb8] sm:$0xff]  }
  0x6f   : > { %5949 = vmatmul.mubr.msk.bf16.gmra.mrb[4].mxu0 %vm1504_vm2, %v6245_v12  ;;  %6017 = vmatmul.mubr.msk.bf16.gmra.mrb[4].mxu1 %vm1504_vm2, %v6246_v13  ;;  %v6282_v49 = vld [vmem:[%s6726_s10 + $0x1a8] sm:$0xff]   ;;  %v6284_v51 = vld [vmem:[%s6726_s10 + $0x1b0] sm:$0xff]   ;;  %v6286_v53 = vld [vmem:[%s6726_s10 + $0x1b8] sm:$0xff]  }
  0x70   : > { %5952 = vmatprep.mubr.msk.bf16.mxu0 %vm1504_vm2, %v6247_v14  ;;  %6020 = vmatprep.mubr.msk.bf16.mxu1 %vm1504_vm2, %v6248_v15  ;;  %v6287_v54 = vld [vmem:[%s6726_s10 + $0xc0] sm:$0xff]   ;;  %v6289_v56 = vld [vmem:[%s6726_s10 + $0xc8] sm:$0xff]   ;;  %v6291_v58 = vld [vmem:[%s6726_s10 + $0xd0] sm:$0xff]  }
  0x71   : > { %v6288_v55 = vld [vmem:[%s6726_s10 + $0x1c0] sm:$0xff]   ;;  %v6290_v57 = vld [vmem:[%s6726_s10 + $0x1c8] sm:$0xff]   ;;  %v6292_v59 = vld [vmem:[%s6726_s10 + $0x1d0] sm:$0xff]  }
  0x72   : > { %v6293_v60 = vld [vmem:[%s6726_s10 + $0xd8] sm:$0xff]   ;;  %v6295_v62 = vld [vmem:[%s6726_s10 + $0xe0] sm:$0xff]   ;;  %v6297_v0 = vld [vmem:[%s6726_s10 + $0xe8] sm:$0xff]  }
  0x73   : > { %v6294_v61 = vld [vmem:[%s6726_s10 + $0x1d8] sm:$0xff]   ;;  %v6296_v63 = vld [vmem:[%s6726_s10 + $0x1e0] sm:$0xff]   ;;  %v6298_v1 = vld [vmem:[%s6726_s10 + $0x1e8] sm:$0xff]  }
  0x74   : > { %v6299_v2 = vld [vmem:[%s6726_s10 + $0xf0] sm:$0xff]   ;;  %v6301_v4 = vld [vmem:[%s6726_s10 + $0xf8] sm:$0xff]   ;;  %v6303_v6 = vld [vmem:[%s6726_s10 + $0x200] sm:$0xff]  }
  0x75   : > { %v6300_v3 = vld [vmem:[%s6726_s10 + $0x1f0] sm:$0xff]   ;;  %v6302_v5 = vld [vmem:[%s6726_s10 + $0x1f8] sm:$0xff]   ;;  %v6304_v7 = vld [vmem:[%s6726_s10 + $0x300] sm:$0xff]  }
  0x76   : > { %v6305_v8 = vld [vmem:[%s6726_s10 + $0x208] sm:$0xff]   ;;  %v6307_v10 = vld [vmem:[%s6726_s10 + $0x210] sm:$0xff]   ;;  %v6309_v12 = vld [vmem:[%s6726_s10 + $0x218] sm:$0xff]  }
  0x77   : > { %5953 = vmatmul.mubr.msk.bf16.gmra.mrb[8].mxu0 %vm1504_vm2, %v6249_v16  ;;  %6021 = vmatmul.mubr.msk.bf16.gmra.mrb[8].mxu1 %vm1504_vm2, %v6250_v17  ;;  %v6306_v9 = vld [vmem:[%s6726_s10 + $0x308] sm:$0xff]   ;;  %v6308_v11 = vld [vmem:[%s6726_s10 + $0x310] sm:$0xff]   ;;  %v6310_v13 = vld [vmem:[%s6726_s10 + $0x318] sm:$0xff]  }
  0x78   : > { %5956 = vmatprep.mubr.msk.bf16.mxu0 %vm1504_vm2, %v6251_v18  ;;  %6024 = vmatprep.mubr.msk.bf16.mxu1 %vm1504_vm2, %v6252_v19  ;;  %v6311_v14 = vld [vmem:[%s6726_s10 + $0x220] sm:$0xff]   ;;  %v6313_v16 = vld [vmem:[%s6726_s10 + $0x228] sm:$0xff]   ;;  %v6315_v18 = vld [vmem:[%s6726_s10 + $0x230] sm:$0xff]  }
  0x79   : > { %v6312_v15 = vld [vmem:[%s6726_s10 + $0x320] sm:$0xff]   ;;  %v6314_v17 = vld [vmem:[%s6726_s10 + $0x328] sm:$0xff]   ;;  %v6316_v19 = vld [vmem:[%s6726_s10 + $0x330] sm:$0xff]  }
  0x7f   : > { %5957 = vmatmul.mubr.msk.bf16.gmra.mrb[12].mxu0 %vm1504_vm2, %v6253_v20  ;;  %6025 = vmatmul.mubr.msk.bf16.gmra.mrb[12].mxu1 %vm1504_vm2, %v6254_v21  ;;  %v6317_v20 = vld [vmem:[%s6726_s10 + $0x238] sm:$0xff]  }
  0x80   : > { %5960 = vmatprep.mubr.msk.bf16.mxu0 %vm1504_vm2, %v6255_v22  ;;  %6028 = vmatprep.mubr.msk.bf16.mxu1 %vm1504_vm2, %v6256_v23  ;;  %v6318_v21 = vld [vmem:[%s6726_s10 + $0x338] sm:$0xff]   ;;  %v6319_v22 = vld [vmem:[%s6726_s10 + $0x240] sm:$0xff]  }
  0x81   : > { %v6320_v23 = vld [vmem:[%s6726_s10 + $0x340] sm:$0xff]  }
  0x87   : > { %5961 = vmatmul.mubr.msk.bf16.gmra.mrb[16].mxu0 %vm1504_vm2, %v6257_v24  ;;  %6029 = vmatmul.mubr.msk.bf16.gmra.mrb[16].mxu1 %vm1504_vm2, %v6258_v25  ;;  %v6321_v24 = vld [vmem:[%s6726_s10 + $0x248] sm:$0xff]  }
  0x88   : > { %5964 = vmatprep.mubr.msk.bf16.mxu0 %vm1504_vm2, %v6259_v26  ;;  %6032 = vmatprep.mubr.msk.bf16.mxu1 %vm1504_vm2, %v6260_v27  ;;  %v6322_v25 = vld [vmem:[%s6726_s10 + $0x348] sm:$0xff]   ;;  %v6323_v26 = vld [vmem:[%s6726_s10 + $0x250] sm:$0xff]  }
  0x89   : > { %v6324_v27 = vld [vmem:[%s6726_s10 + $0x350] sm:$0xff]  }
  0x8f   : > { %5965 = vmatmul.mubr.msk.bf16.gmra.mrb[20].mxu0 %vm1504_vm2, %v6261_v28  ;;  %6033 = vmatmul.mubr.msk.bf16.gmra.mrb[20].mxu1 %vm1504_vm2, %v6262_v29  ;;  %v6325_v28 = vld [vmem:[%s6726_s10 + $0x258] sm:$0xff]  }
  0x90   : > { %5968 = vmatprep.mubr.msk.bf16.mxu0 %vm1504_vm2, %v6263_v30  ;;  %6036 = vmatprep.mubr.msk.bf16.mxu1 %vm1504_vm2, %v6264_v31  ;;  %v6326_v29 = vld [vmem:[%s6726_s10 + $0x358] sm:$0xff]   ;;  %v6327_v30 = vld [vmem:[%s6726_s10 + $0x260] sm:$0xff]  }
  0x91   : > { %v6328_v31 = vld [vmem:[%s6726_s10 + $0x360] sm:$0xff]  }
  0x97   : > { %5969 = vmatmul.mubr.msk.bf16.gmra.mrb[24].mxu0 %vm1504_vm2, %v6265_v32  ;;  %6037 = vmatmul.mubr.msk.bf16.gmra.mrb[24].mxu1 %vm1504_vm2, %v6266_v33  ;;  %v6329_v32 = vld [vmem:[%s6726_s10 + $0x268] sm:$0xff]  }
  0x98   : > { %5972 = vmatprep.mubr.msk.bf16.mxu0 %vm1504_vm2, %v6267_v34  ;;  %6040 = vmatprep.mubr.msk.bf16.mxu1 %vm1504_vm2, %v6268_v35  ;;  %v6330_v33 = vld [vmem:[%s6726_s10 + $0x368] sm:$0xff]   ;;  %v6331_v34 = vld [vmem:[%s6726_s10 + $0x270] sm:$0xff]  }
  0x99   : > { %v6332_v35 = vld [vmem:[%s6726_s10 + $0x370] sm:$0xff]  }
  0x9f   : > { %5973 = vmatmul.mubr.msk.bf16.gmra.mrb[28].mxu0 %vm1504_vm2, %v6269_v36  ;;  %6041 = vmatmul.mubr.msk.bf16.gmra.mrb[28].mxu1 %vm1504_vm2, %v6270_v37  ;;  %v6333_v36 = vld [vmem:[%s6726_s10 + $0x278] sm:$0xff]  }
  0xa0   : > { %5976 = vmatprep.mubr.msk.bf16.mxu0 %vm1504_vm2, %v6271_v38  ;;  %6044 = vmatprep.mubr.msk.bf16.mxu1 %vm1504_vm2, %v6272_v39  ;;  %v6334_v37 = vld [vmem:[%s6726_s10 + $0x378] sm:$0xff]   ;;  %v6335_v38 = vld [vmem:[%s6726_s10 + $0x280] sm:$0xff]  }
  0xa1   : > { %v6336_v39 = vld [vmem:[%s6726_s10 + $0x380] sm:$0xff]  }
  0xa7   : > { %5977 = vmatmul.mubr.msk.bf16.gmra.mrb[32].mxu0 %vm1504_vm2, %v6273_v40  ;;  %6045 = vmatmul.mubr.msk.bf16.gmra.mrb[32].mxu1 %vm1504_vm2, %v6274_v41  ;;  %v6337_v40 = vld [vmem:[%s6726_s10 + $0x288] sm:$0xff]  }
  0xa8   : > { %5980 = vmatprep.mubr.msk.bf16.mxu0 %vm1504_vm2, %v6275_v42  ;;  %6048 = vmatprep.mubr.msk.bf16.mxu1 %vm1504_vm2, %v6276_v43  ;;  %v6338_v41 = vld [vmem:[%s6726_s10 + $0x388] sm:$0xff]   ;;  %v6339_v42 = vld [vmem:[%s6726_s10 + $0x290] sm:$0xff]  }
  0xa9   : > { %v6340_v43 = vld [vmem:[%s6726_s10 + $0x390] sm:$0xff]  }
  0xaf   : > { %5981 = vmatmul.mubr.msk.bf16.gmra.mrb[36].mxu0 %vm1504_vm2, %v6277_v44  ;;  %6049 = vmatmul.mubr.msk.bf16.gmra.mrb[36].mxu1 %vm1504_vm2, %v6278_v45  ;;  %v6341_v44 = vld [vmem:[%s6726_s10 + $0x298] sm:$0xff]  }
  0xb0   : > { %5984 = vmatprep.mubr.msk.bf16.mxu0 %vm1504_vm2, %v6279_v46  ;;  %6052 = vmatprep.mubr.msk.bf16.mxu1 %vm1504_vm2, %v6280_v47  ;;  %v6342_v45 = vld [vmem:[%s6726_s10 + $0x398] sm:$0xff]   ;;  %v6343_v46 = vld [vmem:[%s6726_s10 + $0x2a0] sm:$0xff]  }
  0xb1   : > { %v6344_v47 = vld [vmem:[%s6726_s10 + $0x3a0] sm:$0xff]  }
  0xb7   : > { %5985 = vmatmul.mubr.msk.bf16.gmra.mrb[40].mxu0 %vm1504_vm2, %v6281_v48  ;;  %6053 = vmatmul.mubr.msk.bf16.gmra.mrb[40].mxu1 %vm1504_vm2, %v6282_v49  ;;  %v6345_v48 = vld [vmem:[%s6726_s10 + $0x2a8] sm:$0xff]  }
  0xb8   : > { %5988 = vmatprep.mubr.msk.bf16.mxu0 %vm1504_vm2, %v6283_v50  ;;  %6056 = vmatprep.mubr.msk.bf16.mxu1 %vm1504_vm2, %v6284_v51  ;;  %v6346_v49 = vld [vmem:[%s6726_s10 + $0x3a8] sm:$0xff]   ;;  %v6347_v50 = vld [vmem:[%s6726_s10 + $0x2b0] sm:$0xff]  }
  0xb9   : > { %v6348_v51 = vld [vmem:[%s6726_s10 + $0x3b0] sm:$0xff]  }
  0xbf   : > { %5989 = vmatmul.mubr.msk.bf16.gmra.mrb[44].mxu0 %vm1504_vm2, %v6285_v52  ;;  %6057 = vmatmul.mubr.msk.bf16.gmra.mrb[44].mxu1 %vm1504_vm2, %v6286_v53  ;;  %v6949_v52 = vld [vmem:[%s8946_s2] ss:$0 sm:$0xff] }
  0xc0   : > { %5992 = vmatprep.mubr.msk.bf16.mxu0 %vm1504_vm2, %v6287_v54  ;;  %6060 = vmatprep.mubr.msk.bf16.mxu1 %vm1504_vm2, %v6288_v55  ;;  %v6956_v53 = vld [vmem:[%s8947_s3] ss:$0 sm:$0xff] }
  0xc7   : > { %5993 = vmatmul.mubr.msk.bf16.gmra.mrb[48].mxu0 %vm1504_vm2, %v6289_v56  ;;  %6061 = vmatmul.mubr.msk.bf16.gmra.mrb[48].mxu1 %vm1504_vm2, %v6290_v57 }
  0xc8   : > { %5996 = vmatprep.mubr.msk.bf16.mxu0 %vm1504_vm2, %v6291_v58  ;;  %6064 = vmatprep.mubr.msk.bf16.mxu1 %vm1504_vm2, %v6292_v59 }
  0xcf   : > { %5997 = vmatmul.mubr.msk.bf16.gmra.mrb[52].mxu0 %vm1504_vm2, %v6293_v60  ;;  %6065 = vmatmul.mubr.msk.bf16.gmra.mrb[52].mxu1 %vm1504_vm2, %v6294_v61  ;;  %v6349_v60 = vld [vmem:[%s6726_s10 + $0x2b8] sm:$0xff]  }
  0xd0   : > { %6000 = vmatprep.mubr.msk.bf16.mxu0 %vm1504_vm2, %v6295_v62  ;;  %6068 = vmatprep.mubr.msk.bf16.mxu1 %vm1504_vm2, %v6296_v63  ;;  %v6350_v61 = vld [vmem:[%s6726_s10 + $0x3b8] sm:$0xff]  }
  0xd7   : > { %6001 = vmatmul.mubr.msk.bf16.gmra.mrb[56].mxu0 %vm1504_vm2, %v6297_v0  ;;  %6069 = vmatmul.mubr.msk.bf16.gmra.mrb[56].mxu1 %vm1504_vm2, %v6298_v1 }
  0xd8   : > { %6004 = vmatprep.mubr.msk.bf16.mxu0 %vm1504_vm2, %v6299_v2  ;;  %6072 = vmatprep.mubr.msk.bf16.mxu1 %vm1504_vm2, %v6300_v3  ;;  %v6351_v2 = vld [vmem:[%s6726_s10 + $0x2c0] sm:$0xff]  }
  0xd9   : > { %v6352_v3 = vld [vmem:[%s6726_s10 + $0x3c0] sm:$0xff]  }
  0xdf   : > { %6005 = vmatmul.mubr.msk.bf16.gmra.mrb[60].mxu0 %vm1504_vm2, %v6301_v4  ;;  %6073 = vmatmul.mubr.msk.bf16.gmra.mrb[60].mxu1 %vm1504_vm2, %v6302_v5 }
  0xe0   : > { %6080 = vmatprep.mubr.msk.bf16.mxu0 %vm1504_vm2, %v6303_v6  ;;  %6148 = vmatprep.mubr.msk.bf16.mxu1 %vm1504_vm2, %v6304_v7 }
  0xe7   : > { %6081 = vmatmul.mubr.msk.bf16.vlgmr.msra.gmra.mrb[64].mxu0 %vm1504_vm2, %v6305_v8  ;;  %6149 = vmatmul.mubr.msk.bf16.vlgmr.msra.gmra.mrb[64].mxu1 %vm1504_vm2, %v6306_v9 }
  0xe8   : > { %6084 = vmatprep.mubr.msk.bf16.mxu0 %vm1504_vm2, %v6307_v10  ;;  %6152 = vmatprep.mubr.msk.bf16.mxu1 %vm1504_vm2, %v6308_v11 }
  0xef   : > { %6085 = vmatmul.mubr.msk.bf16.gmra.mrb[68].mxu0 %vm1504_vm2, %v6309_v12  ;;  %6153 = vmatmul.mubr.msk.bf16.gmra.mrb[68].mxu1 %vm1504_vm2, %v6310_v13 }
  0xf0   : > { %6088 = vmatprep.mubr.msk.bf16.mxu0 %vm1504_vm2, %v6311_v14  ;;  %6156 = vmatprep.mubr.msk.bf16.mxu1 %vm1504_vm2, %v6312_v15 }
  0xf7   : > { %6089 = vmatmul.mubr.msk.bf16.gmra.mrb[72].mxu0 %vm1504_vm2, %v6313_v16  ;;  %6157 = vmatmul.mubr.msk.bf16.gmra.mrb[72].mxu1 %vm1504_vm2, %v6314_v17 }
  0xf8   : > { %6092 = vmatprep.mubr.msk.bf16.mxu0 %vm1504_vm2, %v6315_v18  ;;  %6160 = vmatprep.mubr.msk.bf16.mxu1 %vm1504_vm2, %v6316_v19 }
  0xff   : > { %6093 = vmatmul.mubr.msk.bf16.gmra.mrb[76].mxu0 %vm1504_vm2, %v6317_v20  ;;  %6161 = vmatmul.mubr.msk.bf16.gmra.mrb[76].mxu1 %vm1504_vm2, %v6318_v21 }
 0x100   : > { %6096 = vmatprep.mubr.msk.bf16.mxu0 %vm1504_vm2, %v6319_v22  ;;  %6164 = vmatprep.mubr.msk.bf16.mxu1 %vm1504_vm2, %v6320_v23 }
 0x107   : > { %6097 = vmatmul.mubr.msk.bf16.gmra.mrb[80].mxu0 %vm1504_vm2, %v6321_v24  ;;  %6165 = vmatmul.mubr.msk.bf16.gmra.mrb[80].mxu1 %vm1504_vm2, %v6322_v25 }
 0x108   : > { %6100 = vmatprep.mubr.msk.bf16.mxu0 %vm1504_vm2, %v6323_v26  ;;  %6168 = vmatprep.mubr.msk.bf16.mxu1 %vm1504_vm2, %v6324_v27 }
 0x10f   : > { %6101 = vmatmul.mubr.msk.bf16.gmra.mrb[84].mxu0 %vm1504_vm2, %v6325_v28  ;;  %6169 = vmatmul.mubr.msk.bf16.gmra.mrb[84].mxu1 %vm1504_vm2, %v6326_v29  ;;  %v6353_v28 = vld [vmem:[%s6726_s10 + $0x2c8] sm:$0xff]  }
 0x110   : > { %6104 = vmatprep.mubr.msk.bf16.mxu0 %vm1504_vm2, %v6327_v30  ;;  %6172 = vmatprep.mubr.msk.bf16.mxu1 %vm1504_vm2, %v6328_v31  ;;  %v6354_v29 = vld [vmem:[%s6726_s10 + $0x3c8] sm:$0xff]  }
 0x117   : > { %6105 = vmatmul.mubr.msk.bf16.gmra.mrb[88].mxu0 %vm1504_vm2, %v6329_v32  ;;  %6173 = vmatmul.mubr.msk.bf16.gmra.mrb[88].mxu1 %vm1504_vm2, %v6330_v33 }
 0x118   : > { %6108 = vmatprep.mubr.msk.bf16.mxu0 %vm1504_vm2, %v6331_v34  ;;  %6176 = vmatprep.mubr.msk.bf16.mxu1 %vm1504_vm2, %v6332_v35 }
 0x11f   : > { %6109 = vmatmul.mubr.msk.bf16.gmra.mrb[92].mxu0 %vm1504_vm2, %v6333_v36  ;;  %6177 = vmatmul.mubr.msk.bf16.gmra.mrb[92].mxu1 %vm1504_vm2, %v6334_v37 }
 0x120   : > { %6112 = vmatprep.mubr.msk.bf16.mxu0 %vm1504_vm2, %v6335_v38  ;;  %6180 = vmatprep.mubr.msk.bf16.mxu1 %vm1504_vm2, %v6336_v39 }
 0x127   : > { %6113 = vmatmul.mubr.msk.bf16.gmra.mrb[96].mxu0 %vm1504_vm2, %v6337_v40  ;;  %6181 = vmatmul.mubr.msk.bf16.gmra.mrb[96].mxu1 %vm1504_vm2, %v6338_v41 }
 0x128   : > { %6116 = vmatprep.mubr.msk.bf16.mxu0 %vm1504_vm2, %v6339_v42  ;;  %6184 = vmatprep.mubr.msk.bf16.mxu1 %vm1504_vm2, %v6340_v43 }
 0x12f   : > { %6117 = vmatmul.mubr.msk.bf16.gmra.mrb[100].mxu0 %vm1504_vm2, %v6341_v44  ;;  %6185 = vmatmul.mubr.msk.bf16.gmra.mrb[100].mxu1 %vm1504_vm2, %v6342_v45  ;;  %v6355_v44 = vld [vmem:[%s6726_s10 + $0x2d0] sm:$0xff]  }
 0x130   : > { %6120 = vmatprep.mubr.msk.bf16.mxu0 %vm1504_vm2, %v6343_v46  ;;  %6188 = vmatprep.mubr.msk.bf16.mxu1 %vm1504_vm2, %v6344_v47  ;;  %v6356_v45 = vld [vmem:[%s6726_s10 + $0x3d0] sm:$0xff]  }
 0x137   : > { %6121 = vmatmul.mubr.msk.bf16.gmra.mrb[104].mxu0 %vm1504_vm2, %v6345_v48  ;;  %6189 = vmatmul.mubr.msk.bf16.gmra.mrb[104].mxu1 %vm1504_vm2, %v6346_v49 }
 0x138   : > { %6124 = vmatprep.mubr.msk.bf16.mxu0 %vm1504_vm2, %v6347_v50  ;;  %6192 = vmatprep.mubr.msk.bf16.mxu1 %vm1504_vm2, %v6348_v51 }
 0x13a   : > { %v5946_v54 = vpop.f32.mrb[0].mxu0  ;;  %v6014_v55 = vpop.f32.mrb[0].mxu1 }
 0x13b   : > { %v1905_v56 = vmul.f32 %v5946_v54, %v6949_v52  ;;  %v2841_v57 = vmul.f32 %v6014_v55, %v6949_v52  ;;  %v1642_v58 = vpop.f32.mrb[1].mxu0  ;;  %v2584_v59 = vpop.f32.mrb[1].mxu1 }
 0x13c   : > { %v1903_v62 = vmul.f32 %v6949_v52, %v1642_v58  ;;  %v2839_v63 = vmul.f32 %v6949_v52, %v2584_v59  ;;  %v5947_v0 = vpop.f32.mrb[2].mxu0  ;;  %v6015_v1 = vpop.f32.mrb[2].mxu1 }
 0x13d   : > { %v1975_v4 = vadd.f32 %v6956_v53, %v1905_v56  ;;  %v2905_v5 = vadd.f32 %v6956_v53, %v2841_v57  ;;  %v1906_v6 = vmul.f32 %v5947_v0, %v6949_v52  ;;  %v2842_v7 = vmul.f32 %v6015_v1, %v6949_v52  ;;  %v1645_v8 = vpop.f32.mrb[3].mxu0  ;;  %v2587_v9 = vpop.f32.mrb[3].mxu1 }
 0x13e   : > { %v1973_v10 = vadd.f32 %v6956_v53, %v1903_v62  ;;  %v2903_v11 = vadd.f32 %v6956_v53, %v2839_v63  ;;  %v1904_v12 = vmul.f32 %v6949_v52, %v1645_v8  ;;  %v2840_v13 = vmul.f32 %v6949_v52, %v2587_v9  ;;  %v6357_v8 = vld [vmem:[%s6726_s10 + $0x2d8] sm:$0xff]  }
 0x13f   : > { %vm2039_vm3 = vcmp.gt.f32.partialorder %v1975_v4, 0.0  ;;  %v2103_v14 = vmul.f32 0.01, %v1975_v4  ;;  %vm2969_vm4 = vcmp.gt.f32.partialorder %v2905_v5, 0.0  ;;  %v3033_v15 = vmul.f32 0.01, %v2905_v5  ;;  %6125 = vmatmul.mubr.msk.bf16.gmra.mrb[108].mxu0 %vm1504_vm2, %v6349_v60  ;;  %6193 = vmatmul.mubr.msk.bf16.gmra.mrb[108].mxu1 %vm1504_vm2, %v6350_v61 }
 0x140   : > { %vm2037_vm5 = vcmp.gt.f32.partialorder %v1973_v10, 0.0  ;;  %v2101_v16 = vmul.f32 0.01, %v1973_v10  ;;  %vm2967_vm6 = vcmp.gt.f32.partialorder %v2903_v11, 0.0  ;;  %v3031_v17 = vmul.f32 0.01, %v2903_v11  ;;  %6128 = vmatprep.mubr.msk.bf16.mxu0 %vm1504_vm2, %v6351_v2  ;;  %6196 = vmatprep.mubr.msk.bf16.mxu1 %vm1504_vm2, %v6352_v3 }
 0x141   : > { %v6978_v18 = vsel %vm2039_vm3, %v1975_v4, %v2103_v14  ;;  %v6980_v19 = vsel %vm2969_vm4, %v2905_v5, %v3033_v15  ;;  %v1976_v20 = vadd.f32 %v6956_v53, %v1906_v6  ;;  %v2906_v21 = vadd.f32 %v6956_v53, %v2842_v7  ;;  %v6358_v9 = vld [vmem:[%s6726_s10 + $0x3d8] sm:$0xff]  }
 0x142   : > { %v6986_v23 = vsel %vm2037_vm5, %v1973_v10, %v2101_v16  ;;  %v6988_v24 = vsel %vm2967_vm6, %v2903_v11, %v3031_v17  ;;  %v1974_v25 = vadd.f32 %v6956_v53, %v1904_v12  ;;  %v5950_v26 = vpop.f32.mrb[4].mxu0  ;;  %v6018_v27 = vpop.f32.mrb[4].mxu1  ;;  %v2904_v36 = vadd.f32 %v6956_v53, %v2840_v13  ;;  %v6359_v10 = vld [vmem:[%s6726_s10 + $0x2e0] sm:$0xff]  }
 0x143   : > { %vm2040_vm7 = vcmp.gt.f32.partialorder %v1976_v20, 0.0  ;;  %v2104_v31 = vmul.f32 0.01, %v1976_v20  ;;  %vm2970_vm8 = vcmp.gt.f32.partialorder %v2906_v21, 0.0  ;;  %v1658_v32 = vpop.f32.mrb[5].mxu0  ;;  %v2600_v33 = vpop.f32.mrb[5].mxu1  ;;  %v1909_v39 = vmul.f32 %v5950_v26, %v6949_v52 }
 0x144   : > { %v3034_v34 = vmul.f32 0.01, %v2906_v21  ;;  %vm2038_vm9 = vcmp.gt.f32.partialorder %v1974_v25, 0.0  ;;  %v2102_v35 = vmul.f32 0.01, %v1974_v25  ;;  %v5951_v37 = vpop.f32.mrb[6].mxu0  ;;  %v2845_v40 = vmul.f32 %v6018_v27, %v6949_v52 }
 0x145   : > { %v6996_v38 = vsel %vm2040_vm7, %v1976_v20, %v2104_v31  ;;  %v1907_v41 = vmul.f32 %v6949_v52, %v1658_v32  ;;  %v6019_v42 = vpop.f32.mrb[6].mxu1  ;;  %v1661_v43 = vpop.f32.mrb[7].mxu0  ;;  %vm2968_vm10 = vcmp.gt.f32.partialorder %v2904_v36, 0.0  ;;  %v3032_v48 = vmul.f32 0.01, %v2904_v36  ;;  %v6360_v16 = vld [vmem:[%s6726_s10 + $0x3e0] sm:$0xff]  }
 0x146   : > { %v7004_v46 = vsel %vm2970_vm8, %v2906_v21, %v3034_v34  ;;  %v7006_v47 = vsel %vm2038_vm9, %v1974_v25, %v2102_v35  ;;  %v2603_v49 = vpop.f32.mrb[7].mxu1  ;;  %v1979_v51 = vadd.f32 %v6956_v53, %v1909_v39  ;;  %v2909_v54 = vadd.f32 %v6956_v53, %v2845_v40 }
 0x147   : > { %9072 = vst [vmem:[#allocation3_spill] sm:$0xff] %v7004_v46  ;;  %9073 = vst [vmem:[#allocation4_spill] sm:$0xff] %v7006_v47  ;;  %v1977_v55 = vadd.f32 %v6956_v53, %v1907_v41  ;;  %6129 = vmatmul.mubr.msk.bf16.gmra.mrb[112].mxu0 %vm1504_vm2, %v6353_v28  ;;  %v7014_v56 = vsel %vm2968_vm10, %v2904_v36, %v3032_v48  ;;  %v2843_v57 = vmul.f32 %v6949_v52, %v2600_v33 }
 0x148   : > { %9074 = vst [vmem:[#allocation5_spill] sm:$0xff] %v7014_v56  ;;  %v1910_v58 = vmul.f32 %v5951_v37, %v6949_v52  ;;  %v2846_v59 = vmul.f32 %v6019_v42, %v6949_v52  ;;  %6197 = vmatmul.mubr.msk.bf16.gmra.mrb[112].mxu1 %vm1504_vm2, %v6354_v29  ;;  %vm2043_vm11 = vcmp.gt.f32.partialorder %v1979_v51, 0.0  ;;  %v2107_v61 = vmul.f32 0.01, %v1979_v51  ;;  %6132 = vmatprep.mubr.msk.bf16.mxu0 %vm1504_vm2, %v6355_v44 }
 0x149   : > { %vm2973_vm12 = vcmp.gt.f32.partialorder %v2909_v54, 0.0  ;;  %6200 = vmatprep.mubr.msk.bf16.mxu1 %vm1504_vm2, %v6356_v45  ;;  %v3037_v62 = vmul.f32 0.01, %v2909_v54  ;;  %vm2041_vm13 = vcmp.gt.f32.partialorder %v1977_v55, 0.0  ;;  %v2105_v63 = vmul.f32 0.01, %v1977_v55 }
 0x14a   : > { %v2907_v0 = vadd.f32 %v6956_v53, %v2843_v57  ;;  %v5954_v1 = vpop.f32.mrb[8].mxu0  ;;  %v7025_v2 = vsel %vm2043_vm11, %v1979_v51, %v2107_v61  ;;  %v1980_v3 = vadd.f32 %v6956_v53, %v1910_v58  ;;  %v2910_v4 = vadd.f32 %v6956_v53, %v2846_v59  ;;  %v6022_v6 = vpop.f32.mrb[8].mxu1 }
 0x14b   : > { %9075 = vst [vmem:[#allocation6_spill] sm:$0xff] %v7025_v2  ;;  %v1908_v5 = vmul.f32 %v6949_v52, %v1661_v43  ;;  %v1674_v7 = vpop.f32.mrb[9].mxu0  ;;  %v7034_v11 = vsel %vm2973_vm12, %v2909_v54, %v3037_v62  ;;  %v7036_v12 = vsel %vm2041_vm13, %v1977_v55, %v2105_v63  ;;  %v2616_v14 = vpop.f32.mrb[9].mxu1  ;;  %v2844_v29 = vmul.f32 %v6949_v52, %v2603_v49  ;;  %v6361_v54 = vld [vmem:[%s6726_s10 + $0x2e8] sm:$0xff]  }
 0x14c   : > { %9076 = vst [vmem:[#allocation7_spill] sm:$0xff] %v7034_v11  ;;  %9077 = vst [vmem:[#allocation8_spill] sm:$0xff] %v7036_v12  ;;  %vm2971_vm14 = vcmp.gt.f32.partialorder %v2907_v0, 0.0  ;;  %v3035_v13 = vmul.f32 0.01, %v2907_v0  ;;  %v5955_v15 = vpop.f32.mrb[10].mxu0  ;;  %v1913_v34 = vmul.f32 %v5954_v1, %v6949_v52  ;;  %v2849_v35 = vmul.f32 %v6022_v6, %v6949_v52 }
 0x14d   : > { %vm2044_vm15 = vcmp.gt.f32.partialorder %v1980_v3, 0.0  ;;  %v2108_v20 = vmul.f32 0.01, %v1980_v3  ;;  %vm2974_vm0 = vcmp.gt.f32.partialorder %v2910_v4, 0.0  ;;  %v6023_v21 = vpop.f32.mrb[10].mxu1  ;;  %v1677_v25 = vpop.f32.mrb[11].mxu0  ;;  %v1978_v28 = vadd.f32 %v6956_v53, %v1908_v5 }
 0x14e   : > { %v7041_v26 = vsel %vm2971_vm14, %v2907_v0, %v3035_v13  ;;  %v3038_v27 = vmul.f32 0.01, %v2910_v4  ;;  %v2619_v31 = vpop.f32.mrb[11].mxu1  ;;  %v2908_v39 = vadd.f32 %v6956_v53, %v2844_v29  ;;  %v1983_v41 = vadd.f32 %v6956_v53, %v1913_v34  ;;  %v6362_v1 = vld [vmem:[%s6726_s10 + $0x3e8] sm:$0xff]  }
 0x14f   : > { %9078 = vst [vmem:[#allocation9_spill] sm:$0xff] %v7041_v26  ;;  %v7047_v33 = vsel %vm2044_vm15, %v1980_v3, %v2108_v20  ;;  %6133 = vmatmul.mubr.msk.bf16.gmra.mrb[116].mxu0 %vm1504_vm2, %v6357_v8  ;;  %vm2042_vm1 = vcmp.gt.f32.partialorder %v1978_v28, 0.0  ;;  %v2106_v37 = vmul.f32 0.01, %v1978_v28  ;;  %v2913_v42 = vadd.f32 %v6956_v53, %v2849_v35 }
 0x150   : > { %9079 = vst [vmem:[#allocation10_spill] sm:$0xff] %v7047_v33  ;;  %v7052_v36 = vsel %vm2974_vm0, %v2910_v4, %v3038_v27  ;;  %6201 = vmatmul.mubr.msk.bf16.gmra.mrb[116].mxu1 %vm1504_vm2, %v6358_v9  ;;  %6136 = vmatprep.mubr.msk.bf16.mxu0 %vm1504_vm2, %v6359_v10  ;;  %v1911_v43 = vmul.f32 %v6949_v52, %v1674_v7  ;;  %vm2972_vm3 = vcmp.gt.f32.partialorder %v2908_v39, 0.0  ;;  %v3036_v45 = vmul.f32 0.01, %v2908_v39  ;;  %v6363_v9 = vld [vmem:[%s6726_s10 + $0x2f0] sm:$0xff]  }
 0x151   : > { %9080 = vst [vmem:[#allocation11_spill] sm:$0xff] %v7052_v36  ;;  %6204 = vmatprep.mubr.msk.bf16.mxu1 %vm1504_vm2, %v6360_v16  ;;  %v7063_v44 = vsel %vm2042_vm1, %v1978_v28, %v2106_v37  ;;  %v2847_v48 = vmul.f32 %v6949_v52, %v2616_v14  ;;  %vm2047_vm4 = vcmp.gt.f32.partialorder %v1983_v41, 0.0  ;;  %v2111_v55 = vmul.f32 0.01, %v1983_v41  ;;  %v6364_v10 = vld [vmem:[%s6726_s10 + $0x3f0] sm:$0xff]  }
 0x152   : > { %9081 = vst [vmem:[#allocation12_spill] sm:$0xff] %v7063_v44  ;;  %v5958_v49 = vpop.f32.mrb[12].mxu0  ;;  %v6026_v51 = vpop.f32.mrb[12].mxu1  ;;  %vm2977_vm5 = vcmp.gt.f32.partialorder %v2913_v42, 0.0  ;;  %v3041_v57 = vmul.f32 0.01, %v2913_v42  ;;  %v7067_v58 = vsel %vm2972_vm3, %v2908_v39, %v3036_v45  ;;  %v1981_v59 = vadd.f32 %v6956_v53, %v1911_v43 }
 0x153   : > { %9082 = vst [vmem:[#allocation13_spill] sm:$0xff] %v7067_v58  ;;  %v2911_v61 = vadd.f32 %v6956_v53, %v2847_v48  ;;  %v1914_v62 = vmul.f32 %v5955_v15, %v6949_v52  ;;  %v1690_v63 = vpop.f32.mrb[13].mxu0  ;;  %v7072_v0 = vpop.f32.mrb[13].mxu1  ;;  %v7077_v4 = vsel %vm2047_vm4, %v1983_v41, %v2111_v55  ;;  %v2850_v6 = vmul.f32 %v6023_v21, %v6949_v52 }
 0x154   : > { %9083 = vst [vmem:[#allocation14_spill] sm:$0xff] %v7077_v4  ;;  %v7079_v5 = vsel %vm2977_vm5, %v2913_v42, %v3041_v57  ;;  %v5959_v7 = vpop.f32.mrb[14].mxu0  ;;  %v7082_v8 = vpop.f32.mrb[14].mxu1  ;;  %vm2045_vm6 = vcmp.gt.f32.partialorder %v1981_v59, 0.0  ;;  %v2109_v14 = vmul.f32 0.01, %v1981_v59  ;;  %v1912_v28 = vmul.f32 %v6949_v52, %v1677_v25 }
 0x155   : > { %9084 = vst [vmem:[#allocation15_spill] sm:$0xff] %v7079_v5  ;;  %vm2975_vm7 = vcmp.gt.f32.partialorder %v2911_v61, 0.0  ;;  %v7088_v15 = vpop.f32.mrb[15].mxu0  ;;  %v7090_v16 = vpop.f32.mrb[15].mxu1  ;;  %v3039_v20 = vmul.f32 0.01, %v2911_v61  ;;  %v1984_v27 = vadd.f32 %v6956_v53, %v1914_v62  ;;  %v2914_v21 = vadd.f32 %v6956_v53, %v2850_v6 }
 0x156   : > { %v7096_v29 = vsel %vm2045_vm6, %v1981_v59, %v2109_v14  ;;  %v2848_v34 = vmul.f32 %v6949_v52, %v2619_v31  ;;  %v1917_v35 = vmul.f32 %v5958_v49, %v6949_v52  ;;  %v2853_v37 = vmul.f32 %v6026_v51, %v6949_v52  ;;  %v6366_v62 = vld [vmem:[%s6726_s10 + $0x3f8] sm:$0xff]  }
 0x157   : > { %6137 = vmatmul.mubr.msk.bf16.gmra.mrb[120].mxu0 %vm1504_vm2, %v6361_v54  ;;  %9085 = vst [vmem:[#allocation16_spill] sm:$0xff] %v7096_v29  ;;  %v7102_v39 = vsel %vm2975_vm7, %v2911_v61, %v3039_v20  ;;  %vm2048_vm8 = vcmp.gt.f32.partialorder %v1984_v27, 0.0  ;;  %v2112_v41 = vmul.f32 0.01, %v1984_v27  ;;  %vm2978_vm9 = vcmp.gt.f32.partialorder %v2914_v21, 0.0  ;;  %v6365_v61 = vld [vmem:[%s6726_s10 + $0x2f8] sm:$0xff]  }
 0x158   : > { %6205 = vmatmul.mubr.msk.bf16.gmra.mrb[120].mxu1 %vm1504_vm2, %v6362_v1  ;;  %9086 = vst [vmem:[#allocation17_spill] sm:$0xff] %v7102_v39  ;;  %6140 = vmatprep.mubr.msk.bf16.mxu0 %vm1504_vm2, %v6363_v9  ;;  %v3042_v31 = vmul.f32 0.01, %v2914_v21  ;;  %v1982_v42 = vadd.f32 %v6956_v53, %v1912_v28  ;;  %v2912_v43 = vadd.f32 %v6956_v53, %v2848_v34 }
 0x159   : > { %6208 = vmatprep.mubr.msk.bf16.mxu1 %vm1504_vm2, %v6364_v10  ;;  %v7110_v49 = vsel %vm2048_vm8, %v1984_v27, %v2112_v41  ;;  %v1987_v51 = vadd.f32 %v6956_v53, %v1917_v35  ;;  %v2917_v54 = vadd.f32 %v6956_v53, %v2853_v37  ;;  %v1915_v55 = vmul.f32 %v6949_v52, %v1690_v63 }
 0x15a   : > { %v5962_v45 = vpop.f32.mrb[16].mxu0  ;;  %v6030_v48 = vpop.f32.mrb[16].mxu1  ;;  %9087 = vst [vmem:[#allocation18_spill] sm:$0xff] %v7110_v49  ;;  %v7120_v1 = vsel %vm2978_vm9, %v2914_v21, %v3042_v31  ;;  %vm2046_vm10 = vcmp.gt.f32.partialorder %v1982_v42, 0.0  ;;  %v2110_v6 = vmul.f32 0.01, %v1982_v42  ;;  %v2851_v31 = vmul.f32 %v6949_v52, %v7072_v0 }
 0x15b   : > { %v1706_v57 = vpop.f32.mrb[17].mxu0  ;;  %v7115_v59 = vpop.f32.mrb[17].mxu1  ;;  %9088 = vst [vmem:[#allocation19_spill] sm:$0xff] %v7120_v1  ;;  %vm2976_vm11 = vcmp.gt.f32.partialorder %v2912_v43, 0.0  ;;  %v3040_v20 = vmul.f32 0.01, %v2912_v43  ;;  %v1985_v34 = vadd.f32 %v6956_v53, %v1915_v55  ;;  %v1918_v14 = vmul.f32 %v5959_v7, %v6949_v52 }
 0x15c   : > { %v7122_v9 = vpop.f32.mrb[18].mxu0  ;;  %v7124_v10 = vpop.f32.mrb[18].mxu1  ;;  %vm2051_vm12 = vcmp.gt.f32.partialorder %v1987_v51, 0.0  ;;  %v2115_v63 = vmul.f32 0.01, %v1987_v51  ;;  %v7130_v28 = vsel %vm2046_vm10, %v1982_v42, %v2110_v6  ;;  %vm2981_vm13 = vcmp.gt.f32.partialorder %v2917_v54, 0.0 }
 0x15d   : > { %v7128_v27 = vpop.f32.mrb[19].mxu0  ;;  %9089 = vst [vmem:[#allocation20_spill] sm:$0xff] %v7130_v28  ;;  %v3045_v21 = vmul.f32 0.01, %v2917_v54  ;;  %v7133_v35 = vpop.f32.mrb[19].mxu1  ;;  %v7135_v37 = vsel %vm2976_vm11, %v2912_v43, %v3040_v20  ;;  %vm2049_vm14 = vcmp.gt.f32.partialorder %v1985_v34, 0.0  ;;  %v1988_v0 = vadd.f32 %v6956_v53, %v1918_v14 }
 0x15e   : > { %9090 = vst [vmem:[#allocation21_spill] sm:$0xff] %v7135_v37  ;;  %v7137_v41 = vsel %vm2051_vm12, %v1987_v51, %v2115_v63  ;;  %v2113_v55 = vmul.f32 0.01, %v1985_v34  ;;  %v2915_v51 = vadd.f32 %v6956_v53, %v2851_v31  ;;  %v2854_v7 = vmul.f32 %v7082_v8, %v6949_v52 }
 0x15f   : > { %9091 = vst [vmem:[#allocation22_spill] sm:$0xff] %v7137_v41  ;;  %6141 = vmatmul.mubr.msk.bf16.gmra.mrb[124].mxu0 %vm1504_vm2, %v6365_v61  ;;  %v7145_v6 = vsel %vm2981_vm13, %v2917_v54, %v3045_v21  ;;  %v1916_v54 = vmul.f32 %v6949_v52, %v7088_v15  ;;  %v2852_v20 = vmul.f32 %v6949_v52, %v7090_v16  ;;  %vm2052_vm15 = vcmp.gt.f32.partialorder %v1988_v0, 0.0 }
 0x160   : > { %9092 = vst [vmem:[#allocation23_spill] sm:$0xff] %v7145_v6  ;;  %6209 = vmatmul.mubr.msk.bf16.gmra.mrb[124].mxu1 %vm1504_vm2, %v6366_v62  ;;  %v7154_v61 = vsel %vm2049_vm14, %v1985_v34, %v2113_v55  ;;  %v1921_v62 = vmul.f32 %v5962_v45, %v6949_v52  ;;  %vm2979_vm2 = vcmp.gt.f32.partialorder %v2915_v51, 0.0  ;;  %v3043_v31 = vmul.f32 0.01, %v2915_v51 }
 0x161   : > { %9093 = vst [vmem:[#allocation24_spill] sm:$0xff] %v7154_v61  ;;  %v2116_v14 = vmul.f32 0.01, %v1988_v0  ;;  %v2918_v8 = vadd.f32 %v6956_v53, %v2854_v7  ;;  %v1986_v34 = vadd.f32 %v6956_v53, %v1916_v54  ;;  %v2916_v55 = vadd.f32 %v6956_v53, %v2852_v20 }
 0x162   : > { %v7161_v63 = vpop.f32.mrb[20].mxu0  ;;  %v7163_v21 = vpop.f32.mrb[20].mxu1  ;;  %v1991_v15 = vadd.f32 %v6956_v53, %v1921_v62  ;;  %v7171_v45 = vsel %vm2979_vm2, %v2915_v51, %v3043_v31  ;;  %v2857_v25 = vmul.f32 %v6030_v48, %v6949_v52  ;;  %v1919_v13 = vmul.f32 %v6949_v52, %v1706_v57 }
 0x163   : > { %v1722_v43 = vpop.f32.mrb[21].mxu0  ;;  %v7169_v16 = vpop.f32.mrb[21].mxu1  ;;  %9094 = vst [vmem:[#allocation25_spill] sm:$0xff] %v7171_v45  ;;  %v7173_v42 = vsel %vm2052_vm15, %v1988_v0, %v2116_v14  ;;  %vm2982_vm0 = vcmp.gt.f32.partialorder %v2918_v8, 0.0  ;;  %v3046_v20 = vmul.f32 0.01, %v2918_v8  ;;  %v2855_v60 = vmul.f32 %v6949_v52, %v7115_v59 }
 0x164   : > { %9095 = vst [vmem:[#allocation26_spill] sm:$0xff] %v7173_v42  ;;  %v7177_v3 = vpop.f32.mrb[22].mxu0  ;;  %v7179_v7 = vpop.f32.mrb[22].mxu1  ;;  %vm2050_vm1 = vcmp.gt.f32.partialorder %v1986_v34, 0.0  ;;  %v2114_v0 = vmul.f32 0.01, %v1986_v34  ;;  %v2921_v14 = vadd.f32 %v6956_v53, %v2857_v25  ;;  %v1989_v40 = vadd.f32 %v6956_v53, %v1919_v13 }
 0x165   : > { %v7183_v62 = vpop.f32.mrb[23].mxu0  ;;  %v7185_v51 = vpop.f32.mrb[23].mxu1  ;;  %vm2980_vm3 = vcmp.gt.f32.partialorder %v2916_v55, 0.0  ;;  %v3044_v31 = vmul.f32 0.01, %v2916_v55  ;;  %vm2055_vm4 = vcmp.gt.f32.partialorder %v1991_v15, 0.0  ;;  %v7187_v48 = vsel %vm2982_vm0, %v2918_v8, %v3046_v20 }
 0x166   : > { %9096 = vst [vmem:[#allocation27_spill] sm:$0xff] %v7187_v48  ;;  %v2119_v57 = vmul.f32 0.01, %v1991_v15  ;;  %v7193_v32 = vsel %vm2050_vm1, %v1986_v34, %v2114_v0  ;;  %vm2985_vm5 = vcmp.gt.f32.partialorder %v2921_v14, 0.0  ;;  %v3049_v20 = vmul.f32 0.01, %v2921_v14 }
 0x167   : > { %9097 = vst [vmem:[#allocation28_spill] sm:$0xff] %v7193_v32  ;;  %v7195_v17 = vsel %vm2980_vm3, %v2916_v55, %v3044_v31  ;;  %vm2053_vm6 = vcmp.gt.f32.partialorder %v1989_v40, 0.0  ;;  %v2117_v54 = vmul.f32 0.01, %v1989_v40  ;;  %v2919_v34 = vadd.f32 %v6956_v53, %v2855_v60 }
 0x168   : > { %9098 = vst [vmem:[#allocation29_spill] sm:$0xff] %v7195_v17  ;;  %v7201_v8 = vsel %vm2055_vm4, %v1991_v15, %v2119_v57  ;;  %v1922_v55 = vmul.f32 %v7122_v9, %v6949_v52  ;;  %v7214_v31 = vsel %vm2985_vm5, %v2921_v14, %v3049_v20  ;;  %v2858_v15 = vmul.f32 %v7124_v10, %v6949_v52 }
 0x169   : > { %9099 = vst [vmem:[#allocation30_spill] sm:$0xff] %v7201_v8  ;;  %9100 = vst [vmem:[#allocation31_spill] sm:$0xff] %v7214_v31  ;;  %v1920_v57 = vmul.f32 %v6949_v52, %v7128_v27  ;;  %v2856_v50 = vmul.f32 %v6949_v52, %v7133_v35  ;;  %v7228_v22 = vsel %vm2053_vm6, %v1989_v40, %v2117_v54  ;;  %vm2983_vm7 = vcmp.gt.f32.partialorder %v2919_v34, 0.0 }
 0x16a   : > { %v7203_v25 = vpop.f32.mrb[24].mxu0  ;;  %v7205_v13 = vpop.f32.mrb[24].mxu1  ;;  %9101 = vst [vmem:[#allocation32_spill] sm:$0xff] %v7228_v22  ;;  %v3047_v14 = vmul.f32 0.01, %v2919_v34  ;;  %v1992_v27 = vadd.f32 %v6956_v53, %v1922_v55  ;;  %v2922_v17 = vadd.f32 %v6956_v53, %v2858_v15  ;;  %v1925_v40 = vmul.f32 %v7161_v63, %v6949_v52 }
 0x16b   : > { %v7210_v0 = vpop.f32.mrb[25].mxu0  ;;  %v7212_v59 = vpop.f32.mrb[25].mxu1  ;;  %v1990_v35 = vadd.f32 %v6956_v53, %v1920_v57  ;;  %v2920_v32 = vadd.f32 %v6956_v53, %v2856_v50  ;;  %v2861_v54 = vmul.f32 %v7163_v21, %v6949_v52  ;;  %v1923_v9 = vmul.f32 %v6949_v52, %v1722_v43 }
 0x16c   : > { %v7222_v30 = vpop.f32.mrb[26].mxu0  ;;  %v7224_v60 = vpop.f32.mrb[26].mxu1  ;;  %v7238_v48 = vsel %vm2983_vm7, %v2919_v34, %v3047_v14  ;;  %vm2056_vm8 = vcmp.gt.f32.partialorder %v1992_v27, 0.0  ;;  %v2120_v55 = vmul.f32 0.01, %v1992_v27  ;;  %vm2986_vm9 = vcmp.gt.f32.partialorder %v2922_v17, 0.0 }
 0x16d   : > { %v7230_v20 = vpop.f32.mrb[27].mxu0  ;;  %v7232_v10 = vpop.f32.mrb[27].mxu1  ;;  %9102 = vst [vmem:[#allocation33_spill] sm:$0xff] %v7238_v48  ;;  %v3050_v15 = vmul.f32 0.01, %v2922_v17  ;;  %vm2054_vm10 = vcmp.gt.f32.partialorder %v1990_v35, 0.0  ;;  %v1995_v63 = vadd.f32 %v6956_v53, %v1925_v40  ;;  %v2925_v14 = vadd.f32 %v6956_v53, %v2861_v54 }
 0x16e   : > { %v2118_v57 = vmul.f32 0.01, %v1990_v35  ;;  %vm2984_vm11 = vcmp.gt.f32.partialorder %v2920_v32, 0.0  ;;  %v7247_v50 = vsel %vm2056_vm8, %v1992_v27, %v2120_v55  ;;  %v3048_v34 = vmul.f32 0.01, %v2920_v32 }
 0x16f   : > { %9103 = vst [vmem:[#allocation34_spill] sm:$0xff] %v7247_v50  ;;  %v7255_v8 = vsel %vm2986_vm9, %v2922_v17, %v3050_v15  ;;  %v1993_v48 = vadd.f32 %v6956_v53, %v1923_v9  ;;  %v2859_v22 = vmul.f32 %v6949_v52, %v7169_v16  ;;  %vm2059_vm12 = vcmp.gt.f32.partialorder %v1995_v63, 0.0 }
 0x170   : > { %9104 = vst [vmem:[#allocation35_spill] sm:$0xff] %v7255_v8  ;;  %v7257_v31 = vsel %vm2054_vm10, %v1990_v35, %v2118_v57  ;;  %v7268_v54 = vsel %vm2984_vm11, %v2920_v32, %v3048_v34  ;;  %v2123_v42 = vmul.f32 0.01, %v1995_v63  ;;  %vm2989_vm13 = vcmp.gt.f32.partialorder %v2925_v14, 0.0 }
 0x171   : > { %9105 = vst [vmem:[#allocation36_spill] sm:$0xff] %v7257_v31  ;;  %9106 = vst [vmem:[#allocation37_spill] sm:$0xff] %v7268_v54  ;;  %v3053_v16 = vmul.f32 0.01, %v2925_v14  ;;  %vm2057_vm14 = vcmp.gt.f32.partialorder %v1993_v48, 0.0  ;;  %v2923_v34 = vadd.f32 %v6956_v53, %v2859_v22  ;;  %v1926_v40 = vmul.f32 %v7177_v3, %v6949_v52 }
 0x172   : > { %v7251_v21 = vpop.f32.mrb[28].mxu0  ;;  %v7253_v43 = vpop.f32.mrb[28].mxu1  ;;  %v7280_v45 = vsel %vm2059_vm12, %v1995_v63, %v2123_v42  ;;  %v2121_v32 = vmul.f32 0.01, %v1993_v48  ;;  %v2862_v9 = vmul.f32 %v7179_v7, %v6949_v52  ;;  %v1924_v54 = vmul.f32 %v6949_v52, %v7183_v62 }
 0x173   : > { %v7262_v27 = vpop.f32.mrb[29].mxu0  ;;  %v7264_v55 = vpop.f32.mrb[29].mxu1  ;;  %9107 = vst [vmem:[#allocation38_spill] sm:$0xff] %v7280_v45  ;;  %v7285_v8 = vsel %vm2989_vm13, %v2925_v14, %v3053_v16  ;;  %v2860_v31 = vmul.f32 %v6949_v52, %v7185_v51  ;;  %vm2987_vm2 = vcmp.gt.f32.partialorder %v2923_v34, 0.0  ;;  %v3051_v22 = vmul.f32 0.01, %v2923_v34 }
 0x174   : > { %v7270_v17 = vpop.f32.mrb[30].mxu0  ;;  %v7272_v35 = vpop.f32.mrb[30].mxu1  ;;  %9108 = vst [vmem:[#allocation39_spill] sm:$0xff] %v7285_v8  ;;  %v7295_v63 = vsel %vm2057_vm14, %v1993_v48, %v2121_v32  ;;  %v1996_v3 = vadd.f32 %v6956_v53, %v1926_v40  ;;  %v2926_v14 = vadd.f32 %v6956_v53, %v2862_v9  ;;  %v1994_v16 = vadd.f32 %v6956_v53, %v1924_v54 }
 0x175   : > { %v7276_v15 = vpop.f32.mrb[31].mxu0  ;;  %v7278_v57 = vpop.f32.mrb[31].mxu1  ;;  %9109 = vst [vmem:[#allocation40_spill] sm:$0xff] %v7295_v63  ;;  %v2924_v7 = vadd.f32 %v6956_v53, %v2860_v31  ;;  %v7301_v50 = vsel %vm2987_vm2, %v2923_v34, %v3051_v22  ;;  %v1929_v62 = vmul.f32 %v7203_v25, %v6949_v52  ;;  %v2865_v51 = vmul.f32 %v7205_v13, %v6949_v52 }
 0x176   : > { %9110 = vst [vmem:[#allocation41_spill] sm:$0xff] %v7301_v50  ;;  %v1927_v48 = vmul.f32 %v6949_v52, %v7210_v0  ;;  %vm2060_vm15 = vcmp.gt.f32.partialorder %v1996_v3, 0.0  ;;  %v2124_v31 = vmul.f32 0.01, %v1996_v3  ;;  %vm2990_vm0 = vcmp.gt.f32.partialorder %v2926_v14, 0.0 }
 0x177   : > { %v3054_v25 = vmul.f32 0.01, %v2926_v14  ;;  %vm2058_vm1 = vcmp.gt.f32.partialorder %v1994_v16, 0.0  ;;  %v2122_v13 = vmul.f32 0.01, %v1994_v16  ;;  %vm2988_vm3 = vcmp.gt.f32.partialorder %v2924_v7, 0.0 }
 0x178   : > { %v7319_v22 = vsel %vm2060_vm15, %v1996_v3, %v2124_v31  ;;  %v3052_v0 = vmul.f32 0.01, %v2924_v7  ;;  %v1999_v42 = vadd.f32 %v6956_v53, %v1929_v62  ;;  %v2929_v8 = vadd.f32 %v6956_v53, %v2865_v51 }
 0x179   : > { %9111 = vst [vmem:[#allocation42_spill] sm:$0xff] %v7319_v22  ;;  %v7327_v50 = vsel %vm2990_vm0, %v2926_v14, %v3054_v25  ;;  %v7329_v63 = vsel %vm2058_vm1, %v1994_v16, %v2122_v13  ;;  %v1997_v61 = vadd.f32 %v6956_v53, %v1927_v48  ;;  %v2863_v6 = vmul.f32 %v6949_v52, %v7212_v59 }
 0x17a   : > { %v7309_v32 = vpop.f32.mrb[32].mxu0  ;;  %v7311_v40 = vpop.f32.mrb[32].mxu1  ;;  %9112 = vst [vmem:[#allocation43_spill] sm:$0xff] %v7327_v50  ;;  %9113 = vst [vmem:[#allocation44_spill] sm:$0xff] %v7329_v63  ;;  %v7340_v51 = vsel %vm2988_vm3, %v2924_v7, %v3052_v0  ;;  %vm2063_vm4 = vcmp.gt.f32.partialorder %v1999_v42, 0.0  ;;  %vm2993_vm5 = vcmp.gt.f32.partialorder %v2929_v8, 0.0  ;;  %v1930_v13 = vmul.f32 %v7222_v30, %v6949_v52 }
 0x17b   : > { %v7315_v9 = vpop.f32.mrb[33].mxu0  ;;  %v7317_v34 = vpop.f32.mrb[33].mxu1  ;;  %9114 = vst [vmem:[#allocation45_spill] sm:$0xff] %v7340_v51  ;;  %v2127_v41 = vmul.f32 0.01, %v1999_v42  ;;  %vm2061_vm6 = vcmp.gt.f32.partialorder %v1997_v61, 0.0  ;;  %v2927_v25 = vadd.f32 %v6956_v53, %v2863_v6  ;;  %v2866_v7 = vmul.f32 %v7224_v60, %v6949_v52 }
 0x17c   : > { %v7323_v45 = vpop.f32.mrb[34].mxu0  ;;  %v7325_v54 = vpop.f32.mrb[34].mxu1  ;;  %v3057_v16 = vmul.f32 0.01, %v2929_v8  ;;  %v2125_v59 = vmul.f32 0.01, %v1997_v61  ;;  %v1928_v0 = vmul.f32 %v6949_v52, %v7230_v20  ;;  %v2864_v14 = vmul.f32 %v6949_v52, %v7232_v10 }
 0x17d   : > { %v7334_v3 = vpop.f32.mrb[35].mxu0  ;;  %v7336_v31 = vpop.f32.mrb[35].mxu1  ;;  %v7344_v48 = vsel %vm2063_vm4, %v1999_v42, %v2127_v41  ;;  %vm2991_vm7 = vcmp.gt.f32.partialorder %v2927_v25, 0.0  ;;  %v3055_v30 = vmul.f32 0.01, %v2927_v25  ;;  %v2000_v20 = vadd.f32 %v6956_v53, %v1930_v13 }
 0x17e   : > { %9115 = vst [vmem:[#allocation46_spill] sm:$0xff] %v7344_v48  ;;  %v7349_v37 = vsel %vm2993_vm5, %v2929_v8, %v3057_v16  ;;  %v7363_v42 = vsel %vm2061_vm6, %v1997_v61, %v2125_v59  ;;  %v2930_v16 = vadd.f32 %v6956_v53, %v2866_v7  ;;  %v1998_v10 = vadd.f32 %v6956_v53, %v1928_v0 }
 0x17f   : > { %9116 = vst [vmem:[#allocation47_spill] sm:$0xff] %v7349_v37  ;;  %9117 = vst [vmem:[#allocation48_spill] sm:$0xff] %v7363_v42  ;;  %v2928_v51 = vadd.f32 %v6956_v53, %v2864_v14  ;;  %v7377_v61 = vsel %vm2991_vm7, %v2927_v25, %v3055_v30  ;;  %v1933_v59 = vmul.f32 %v7251_v21, %v6949_v52  ;;  %vm2064_vm8 = vcmp.gt.f32.partialorder %v2000_v20, 0.0 }
 0x180   : > { %9118 = vst [vmem:[#allocation49_spill] sm:$0xff] %v7377_v61  ;;  %v2869_v6 = vmul.f32 %v7253_v43, %v6949_v52  ;;  %v1931_v13 = vmul.f32 %v6949_v52, %v7262_v27  ;;  %v2128_v37 = vmul.f32 0.01, %v2000_v20  ;;  %vm2994_vm9 = vcmp.gt.f32.partialorder %v2930_v16, 0.0 }
 0x181   : > { %v3058_v25 = vmul.f32 0.01, %v2930_v16  ;;  %vm2062_vm10 = vcmp.gt.f32.partialorder %v1998_v10, 0.0  ;;  %v2126_v30 = vmul.f32 0.01, %v1998_v10  ;;  %vm2992_vm11 = vcmp.gt.f32.partialorder %v2928_v51, 0.0 }
 0x182   : > { %v7357_v62 = vpop.f32.mrb[36].mxu0  ;;  %v7359_v41 = vpop.f32.mrb[36].mxu1  ;;  %v7391_v21 = vsel %vm2064_vm8, %v2000_v20, %v2128_v37  ;;  %v3056_v43 = vmul.f32 0.01, %v2928_v51  ;;  %v2003_v48 = vadd.f32 %v6956_v53, %v1933_v59  ;;  %v2933_v27 = vadd.f32 %v6956_v53, %v2869_v6 }
 0x183   : > { %v7365_v8 = vpop.f32.mrb[37].mxu0  ;;  %v7367_v60 = vpop.f32.mrb[37].mxu1  ;;  %9119 = vst [vmem:[#allocation50_spill] sm:$0xff] %v7391_v21  ;;  %v7395_v22 = vsel %vm2994_vm9, %v2930_v16, %v3058_v25  ;;  %v7397_v28 = vsel %vm2062_vm10, %v1998_v10, %v2126_v30  ;;  %v2001_v14 = vadd.f32 %v6956_v53, %v1931_v13  ;;  %v2867_v61 = vmul.f32 %v6949_v52, %v7264_v55 }
 0x184   : > { %v7373_v63 = vpop.f32.mrb[38].mxu0  ;;  %v7375_v50 = vpop.f32.mrb[38].mxu1  ;;  %9120 = vst [vmem:[#allocation51_spill] sm:$0xff] %v7395_v22  ;;  %9121 = vst [vmem:[#allocation52_spill] sm:$0xff] %v7397_v28  ;;  %v7404_v1 = vsel %vm2992_vm11, %v2928_v51, %v3056_v43  ;;  %vm2067_vm12 = vcmp.gt.f32.partialorder %v2003_v48, 0.0  ;;  %vm2997_vm13 = vcmp.gt.f32.partialorder %v2933_v27, 0.0  ;;  %v1934_v30 = vmul.f32 %v7270_v17, %v6949_v52 }
 0x185   : > { %v7385_v7 = vpop.f32.mrb[39].mxu0  ;;  %v7387_v0 = vpop.f32.mrb[39].mxu1  ;;  %9122 = vst [vmem:[#allocation53_spill] sm:$0xff] %v7404_v1  ;;  %v2131_v37 = vmul.f32 0.01, %v2003_v48  ;;  %vm2065_vm14 = vcmp.gt.f32.partialorder %v2001_v14, 0.0  ;;  %v2931_v25 = vadd.f32 %v6956_v53, %v2867_v61  ;;  %v2870_v1 = vmul.f32 %v7272_v35, %v6949_v52 }
 0x186   : > { %v3061_v16 = vmul.f32 0.01, %v2933_v27  ;;  %v2129_v51 = vmul.f32 0.01, %v2001_v14  ;;  %v1932_v28 = vmul.f32 %v6949_v52, %v7276_v15  ;;  %v2004_v35 = vadd.f32 %v6956_v53, %v1934_v30 }
 0x187   : > { %v7416_v13 = vsel %vm2067_vm12, %v2003_v48, %v2131_v37  ;;  %v2868_v48 = vmul.f32 %v6949_v52, %v7278_v57  ;;  %vm2995_vm2 = vcmp.gt.f32.partialorder %v2931_v25, 0.0  ;;  %v1937_v49 = vmul.f32 %v7309_v32, %v6949_v52 }
 0x188   : > { %9123 = vst [vmem:[#allocation54_spill] sm:$0xff] %v7416_v13  ;;  %v7425_v6 = vsel %vm2997_vm13, %v2933_v27, %v3061_v16  ;;  %v7440_v22 = vsel %vm2065_vm14, %v2001_v14, %v2129_v51  ;;  %v3059_v27 = vmul.f32 0.01, %v2931_v25  ;;  %v2934_v16 = vadd.f32 %v6956_v53, %v2870_v1 }
 0x189   : > { %9124 = vst [vmem:[#allocation55_spill] sm:$0xff] %v7425_v6  ;;  %9125 = vst [vmem:[#allocation56_spill] sm:$0xff] %v7440_v22  ;;  %v2002_v15 = vadd.f32 %v6956_v53, %v1932_v28  ;;  %v2932_v57 = vadd.f32 %v6956_v53, %v2868_v48  ;;  %v2873_v17 = vmul.f32 %v7311_v40, %v6949_v52  ;;  %vm2068_vm15 = vcmp.gt.f32.partialorder %v2004_v35, 0.0 }
 0x18a   : > { %v7406_v20 = vpop.f32.mrb[40].mxu0  ;;  %v7408_v59 = vpop.f32.mrb[40].mxu1  ;;  %v7446_v21 = vsel %vm2995_vm2, %v2931_v25, %v3059_v27  ;;  %v1935_v14 = vmul.f32 %v6949_v52, %v7315_v9  ;;  %v2132_v1 = vmul.f32 0.01, %v2004_v35  ;;  %vm2998_vm0 = vcmp.gt.f32.partialorder %v2934_v16, 0.0 }
 0x18b   : > { %v7412_v10 = vpop.f32.mrb[41].mxu0  ;;  %v7414_v55 = vpop.f32.mrb[41].mxu1  ;;  %9126 = vst [vmem:[#allocation57_spill] sm:$0xff] %v7446_v21  ;;  %v3062_v28 = vmul.f32 0.01, %v2934_v16  ;;  %vm2066_vm1 = vcmp.gt.f32.partialorder %v2002_v15, 0.0  ;;  %v2007_v32 = vadd.f32 %v6956_v53, %v1937_v49  ;;  %v2937_v40 = vadd.f32 %v6956_v53, %v2873_v17 }
 0x18c   : > { %v7421_v43 = vpop.f32.mrb[42].mxu0  ;;  %v7423_v42 = vpop.f32.mrb[42].mxu1  ;;  %v2130_v30 = vmul.f32 0.01, %v2002_v15  ;;  %vm2996_vm3 = vcmp.gt.f32.partialorder %v2932_v57, 0.0  ;;  %v7456_v25 = vsel %vm2068_vm15, %v2004_v35, %v2132_v1  ;;  %v2005_v21 = vadd.f32 %v6956_v53, %v1935_v14 }
 0x18d   : > { %v7433_v37 = vpop.f32.mrb[43].mxu0  ;;  %v7435_v61 = vpop.f32.mrb[43].mxu1  ;;  %9127 = vst [vmem:[#allocation58_spill] sm:$0xff] %v7456_v25  ;;  %v3060_v48 = vmul.f32 0.01, %v2932_v57  ;;  %v7464_v6 = vsel %vm2998_vm0, %v2934_v16, %v3062_v28  ;;  %v2871_v22 = vmul.f32 %v6949_v52, %v7317_v34  ;;  %vm2071_vm4 = vcmp.gt.f32.partialorder %v2007_v32, 0.0 }
 0x18e   : > { %9128 = vst [vmem:[#allocation59_spill] sm:$0xff] %v7464_v6  ;;  %v7466_v51 = vsel %vm2066_vm1, %v2002_v15, %v2130_v30  ;;  %v2135_v13 = vmul.f32 0.01, %v2007_v32  ;;  %vm3001_vm5 = vcmp.gt.f32.partialorder %v2937_v40, 0.0  ;;  %v3065_v34 = vmul.f32 0.01, %v2937_v40 }
 0x18f   : > { %9129 = vst [vmem:[#allocation60_spill] sm:$0xff] %v7466_v51  ;;  %v7477_v17 = vsel %vm2996_vm3, %v2932_v57, %v3060_v48  ;;  %vm2069_vm6 = vcmp.gt.f32.partialorder %v2005_v21, 0.0  ;;  %v2133_v57 = vmul.f32 0.01, %v2005_v21  ;;  %v2935_v48 = vadd.f32 %v6956_v53, %v2871_v22 }
 0x190   : > { %9130 = vst [vmem:[#allocation61_spill] sm:$0xff] %v7477_v17  ;;  %v7489_v39 = vsel %vm2071_vm4, %v2007_v32, %v2135_v13  ;;  %v1938_v49 = vmul.f32 %v7323_v45, %v6949_v52  ;;  %v7494_v6 = vsel %vm3001_vm5, %v2937_v40, %v3065_v34  ;;  %v2874_v14 = vmul.f32 %v7325_v54, %v6949_v52  ;;  %v7512_v54 = vld [vmem:[%s8947_s3] ss:$0 sm:$0xff] }
 0x191   : > { %9131 = vst [vmem:[#allocation62_spill] sm:$0xff] %v7489_v39  ;;  %9132 = vst [vmem:[#allocation63_spill] sm:$0xff] %v7494_v6  ;;  %v1936_v17 = vmul.f32 %v6949_v52, %v7334_v3  ;;  %v2872_v51 = vmul.f32 %v6949_v52, %v7336_v31  ;;  %v7504_v32 = vsel %vm2069_vm6, %v2005_v21, %v2133_v57  ;;  %vm2999_vm7 = vcmp.gt.f32.partialorder %v2935_v48, 0.0 }
 0x192   : > { %v7460_v27 = vpop.f32.mrb[44].mxu0  ;;  %v7462_v9 = vpop.f32.mrb[44].mxu1  ;;  %9133 = vst [vmem:[#allocation64_spill] sm:$0xff] %v7504_v32  ;;  %v3063_v22 = vmul.f32 0.01, %v2935_v48  ;;  %v2008_v45 = vadd.f32 %v6956_v53, %v1938_v49  ;;  %v2938_v40 = vadd.f32 %v6956_v53, %v2874_v14 }
 0x193   : > { %v7471_v35 = vpop.f32.mrb[45].mxu0  ;;  %v7473_v1 = vpop.f32.mrb[45].mxu1  ;;  %v2006_v34 = vadd.f32 %v6956_v53, %v1936_v17  ;;  %v2936_v52 = vadd.f32 %v7512_v54, %v2872_v51  ;;  %v7524_v49 = vld [vmem:[%s8946_s2] ss:$0 sm:$0xff] }
 0x194   : > { %v7479_v16 = vpop.f32.mrb[46].mxu0  ;;  %v7481_v15 = vpop.f32.mrb[46].mxu1  ;;  %v7519_v21 = vsel %vm2999_vm7, %v2935_v48, %v3063_v22  ;;  %v1941_v53 = vmul.f32 %v7524_v49, %v7357_v62  ;;  %v2877_v17 = vmul.f32 %v7524_v49, %v7359_v41  ;;  %v1939_v51 = vmul.f32 %v7524_v49, %v7365_v8 }
 0x195   : > { %v7485_v28 = vpop.f32.mrb[47].mxu0  ;;  %v7487_v30 = vpop.f32.mrb[47].mxu1  ;;  %9134 = vst [vmem:[#allocation65_spill] sm:$0xff] %v7519_v21  ;;  %vm2072_vm8 = vcmp.gt.f32.partialorder %v2008_v45, 0.0  ;;  %v2136_v22 = vmul.f32 0.01, %v2008_v45  ;;  %v2875_v58 = vmul.f32 %v7524_v49, %v7367_v60  ;;  %v1942_v60 = vmul.f32 %v7524_v49, %v7373_v63 }
 0x196   : > { %vm3002_vm9 = vcmp.gt.f32.partialorder %v2938_v40, 0.0  ;;  %v3066_v62 = vmul.f32 0.01, %v2938_v40  ;;  %vm2070_vm10 = vcmp.gt.f32.partialorder %v2006_v34, 0.0  ;;  %v2134_v41 = vmul.f32 0.01, %v2006_v34 }
 0x197   : > { %vm3000_vm11 = vcmp.gt.f32.partialorder %v2936_v52, 0.0  ;;  %v7542_v39 = vsel %vm2072_vm8, %v2008_v45, %v2136_v22  ;;  %v3064_v8 = vmul.f32 0.01, %v2936_v52  ;;  %v2011_v25 = vadd.f32 %v7512_v54, %v1941_v53 }
 0x198   : > { %9135 = vst [vmem:[#allocation66_spill] sm:$0xff] %v7542_v39  ;;  %v2941_v29 = vadd.f32 %v7512_v54, %v2877_v17  ;;  %v7550_v21 = vsel %vm3002_vm9, %v2938_v40, %v3066_v62  ;;  %v7552_v32 = vsel %vm2070_vm10, %v2006_v34, %v2134_v41  ;;  %v2009_v4 = vadd.f32 %v7512_v54, %v1939_v51 }
 0x199   : > { %9136 = vst [vmem:[#allocation67_spill] sm:$0xff] %v7550_v21  ;;  %9137 = vst [vmem:[#allocation68_spill] sm:$0xff] %v7552_v32  ;;  %v7559_v22 = vsel %vm3000_vm11, %v2936_v52, %v3064_v8  ;;  %vm2075_vm12 = vcmp.gt.f32.partialorder %v2011_v25, 0.0  ;;  %v2139_v53 = vmul.f32 0.01, %v2011_v25  ;;  %v2939_v51 = vadd.f32 %v7512_v54, %v2875_v58 }
 0x19a   : > { %v7515_v3 = vpop.f32.mrb[48].mxu0  ;;  %v7517_v31 = vpop.f32.mrb[48].mxu1  ;;  %9138 = vst [vmem:[#allocation69_spill] sm:$0xff] %v7559_v22  ;;  %vm3005_vm13 = vcmp.gt.f32.partialorder %v2941_v29, 0.0  ;;  %v3069_v40 = vmul.f32 0.01, %v2941_v29  ;;  %v2878_v17 = vmul.f32 %v7524_v49, %v7375_v50  ;;  %v1940_v45 = vmul.f32 %v7524_v49, %v7385_v7 }
 0x19b   : > { %v7532_v14 = vpop.f32.mrb[49].mxu0  ;;  %v7534_v57 = vpop.f32.mrb[49].mxu1  ;;  %vm2073_vm14 = vcmp.gt.f32.partialorder %v2009_v4, 0.0  ;;  %v7563_v34 = vsel %vm2075_vm12, %v2011_v25, %v2139_v53  ;;  %v2137_v62 = vmul.f32 0.01, %v2009_v4  ;;  %v2876_v25 = vmul.f32 %v7524_v49, %v7387_v0 }
 0x19c   : > { %v7538_v13 = vpop.f32.mrb[50].mxu0  ;;  %v7540_v6 = vpop.f32.mrb[50].mxu1  ;;  %9139 = vst [vmem:[#allocation70_spill] sm:$0xff] %v7563_v34  ;;  %v7572_v8 = vsel %vm3005_vm13, %v2941_v29, %v3069_v40  ;;  %vm3003_vm2 = vcmp.gt.f32.partialorder %v2939_v51, 0.0  ;;  %v3067_v29 = vmul.f32 0.01, %v2939_v51  ;;  %v2012_v7 = vadd.f32 %v7512_v54, %v1942_v60 }
 0x19d   : > { %v7546_v5 = vpop.f32.mrb[51].mxu0  ;;  %v7548_v48 = vpop.f32.mrb[51].mxu1  ;;  %9140 = vst [vmem:[#allocation71_spill] sm:$0xff] %v7572_v8  ;;  %v7586_v22 = vsel %vm2073_vm14, %v2009_v4, %v2137_v62  ;;  %v2942_v32 = vadd.f32 %v7512_v54, %v2878_v17  ;;  %v2010_v0 = vadd.f32 %v7512_v54, %v1940_v45  ;;  %v2940_v21 = vadd.f32 %v7512_v54, %v2876_v25 }
 0x19e   : > { %9141 = vst [vmem:[#allocation72_spill] sm:$0xff] %v7586_v22  ;;  %v7600_v4 = vsel %vm3003_vm2, %v2939_v51, %v3067_v29  ;;  %v1945_v62 = vmul.f32 %v7524_v49, %v7406_v20  ;;  %v2881_v63 = vmul.f32 %v7524_v49, %v7408_v59  ;;  %v1943_v60 = vmul.f32 %v7524_v49, %v7412_v10 }
 0x19f   : > { %9142 = vst [vmem:[#allocation73_spill] sm:$0xff] %v7600_v4  ;;  %vm2076_vm15 = vcmp.gt.f32.partialorder %v2012_v7, 0.0  ;;  %v2140_v17 = vmul.f32 0.01, %v2012_v7  ;;  %vm3006_vm0 = vcmp.gt.f32.partialorder %v2942_v32, 0.0  ;;  %vm2074_vm1 = vcmp.gt.f32.partialorder %v2010_v0, 0.0 }
 0x1a0   : > { %v3070_v25 = vmul.f32 0.01, %v2942_v32  ;;  %v2138_v8 = vmul.f32 0.01, %v2010_v0  ;;  %vm3004_vm3 = vcmp.gt.f32.partialorder %v2940_v21, 0.0  ;;  %v2015_v20 = vadd.f32 %v7512_v54, %v1945_v62 }
 0x1a1   : > { %v7610_v51 = vsel %vm2076_vm15, %v2012_v7, %v2140_v17  ;;  %v3068_v29 = vmul.f32 0.01, %v2940_v21  ;;  %v2945_v59 = vadd.f32 %v7512_v54, %v2881_v63  ;;  %v2013_v45 = vadd.f32 %v7512_v54, %v1943_v60 }
 0x1a2   : > { %v7568_v41 = vpop.f32.mrb[52].mxu0  ;;  %v7570_v52 = vpop.f32.mrb[52].mxu1  ;;  %9143 = vst [vmem:[#allocation74_spill] sm:$0xff] %v7610_v51  ;;  %v7614_v34 = vsel %vm3006_vm0, %v2942_v32, %v3070_v25  ;;  %v7616_v10 = vsel %vm2074_vm1, %v2010_v0, %v2138_v8  ;;  %v2879_v4 = vmul.f32 %v7524_v49, %v7414_v55  ;;  %vm2079_vm4 = vcmp.gt.f32.partialorder %v2015_v20, 0.0 }
 0x1a3   : > { %v7580_v53 = vpop.f32.mrb[53].mxu0  ;;  %v7582_v58 = vpop.f32.mrb[53].mxu1  ;;  %9144 = vst [vmem:[#allocation75_spill] sm:$0xff] %v7614_v34  ;;  %9145 = vst [vmem:[#allocation76_spill] sm:$0xff] %v7616_v10  ;;  %v7627_v17 = vsel %vm3004_vm3, %v2940_v21, %v3068_v29  ;;  %v2143_v63 = vmul.f32 0.01, %v2015_v20  ;;  %v1946_v7 = vmul.f32 %v7524_v49, %v7421_v43  ;;  %v1944_v10 = vmul.f32 %v7524_v49, %v7433_v37 }
 0x1a4   : > { %v7588_v40 = vpop.f32.mrb[54].mxu0  ;;  %v7590_v50 = vpop.f32.mrb[54].mxu1  ;;  %9146 = vst [vmem:[#allocation77_spill] sm:$0xff] %v7627_v17  ;;  %vm3009_vm5 = vcmp.gt.f32.partialorder %v2945_v59, 0.0  ;;  %v3073_v55 = vmul.f32 0.01, %v2945_v59  ;;  %v2943_v29 = vadd.f32 %v7512_v54, %v2879_v4  ;;  %v2882_v17 = vmul.f32 %v7524_v49, %v7423_v42 }
 0x1a5   : > { %v7596_v39 = vpop.f32.mrb[55].mxu0  ;;  %v7598_v44 = vpop.f32.mrb[55].mxu1  ;;  %vm2077_vm6 = vcmp.gt.f32.partialorder %v2013_v45, 0.0  ;;  %v7639_v25 = vsel %vm2079_vm4, %v2015_v20, %v2143_v63  ;;  %v2141_v21 = vmul.f32 0.01, %v2013_v45  ;;  %v2880_v20 = vmul.f32 %v7524_v49, %v7435_v61 }
 0x1a6   : > { %9147 = vst [vmem:[#allocation78_spill] sm:$0xff] %v7639_v25  ;;  %v7648_v0 = vsel %vm3009_vm5, %v2945_v59, %v3073_v55  ;;  %vm3007_vm7 = vcmp.gt.f32.partialorder %v2943_v29, 0.0  ;;  %v3071_v43 = vmul.f32 0.01, %v2943_v29  ;;  %v2016_v33 = vadd.f32 %v7512_v54, %v1946_v7 }
 0x1a7   : > { %9148 = vst [vmem:[#allocation79_spill] sm:$0xff] %v7648_v0  ;;  %v7658_v63 = vsel %vm2077_vm6, %v2013_v45, %v2141_v21  ;;  %v2946_v59 = vadd.f32 %v7512_v54, %v2882_v17  ;;  %v2014_v55 = vadd.f32 %v7512_v54, %v1944_v10  ;;  %v2944_v42 = vadd.f32 %v7512_v54, %v2880_v20 }
 0x1a8   : > { %9149 = vst [vmem:[#allocation80_spill] sm:$0xff] %v7658_v63  ;;  %v7664_v26 = vsel %vm3007_vm7, %v2943_v29, %v3071_v43  ;;  %v1949_v37 = vmul.f32 %v7524_v49, %v7460_v27  ;;  %v2885_v61 = vmul.f32 %v7524_v49, %v7462_v9  ;;  %v1947_v45 = vmul.f32 %v7524_v49, %v7471_v35 }
 0x1a9   : > { %9150 = vst [vmem:[#allocation81_spill] sm:$0xff] %v7664_v26  ;;  %vm2080_vm8 = vcmp.gt.f32.partialorder %v2016_v33, 0.0  ;;  %v2144_v17 = vmul.f32 0.01, %v2016_v33  ;;  %vm3010_vm9 = vcmp.gt.f32.partialorder %v2946_v59, 0.0  ;;  %vm2078_vm10 = vcmp.gt.f32.partialorder %v2014_v55, 0.0 }
 0x1aa   : > { %v7621_v22 = vpop.f32.mrb[56].mxu0  ;;  %v7623_v36 = vpop.f32.mrb[56].mxu1  ;;  %v3074_v29 = vmul.f32 0.01, %v2946_v59  ;;  %v2142_v20 = vmul.f32 0.01, %v2014_v55  ;;  %v2019_v43 = vadd.f32 %v7512_v54, %v1949_v37  ;;  %v2949_v35 = vadd.f32 %v7512_v54, %v2885_v61 }
 0x1ab   : > { %v7629_v32 = vpop.f32.mrb[57].mxu0  ;;  %v7631_v8 = vpop.f32.mrb[57].mxu1  ;;  %vm3008_vm11 = vcmp.gt.f32.partialorder %v2944_v42, 0.0  ;;  %v7678_v27 = vsel %vm2080_vm8, %v2016_v33, %v2144_v17  ;;  %v3072_v9 = vmul.f32 0.01, %v2944_v42  ;;  %v2017_v0 = vadd.f32 %v7512_v54, %v1947_v45 }
 0x1ac   : > { %v7635_v62 = vpop.f32.mrb[58].mxu0  ;;  %v7637_v60 = vpop.f32.mrb[58].mxu1  ;;  %9151 = vst [vmem:[#allocation82_spill] sm:$0xff] %v7678_v27  ;;  %v7686_v26 = vsel %vm3010_vm9, %v2946_v59, %v3074_v29  ;;  %v7688_v63 = vsel %vm2078_vm10, %v2014_v55, %v2142_v20  ;;  %v2883_v25 = vmul.f32 %v7524_v49, %v7473_v1  ;;  %vm2083_vm12 = vcmp.gt.f32.partialorder %v2019_v43, 0.0 }
 0x1ad   : > { %v7644_v34 = vpop.f32.mrb[59].mxu0  ;;  %v7646_v51 = vpop.f32.mrb[59].mxu1  ;;  %9152 = vst [vmem:[#allocation83_spill] sm:$0xff] %v7686_v26  ;;  %9153 = vst [vmem:[#allocation84_spill] sm:$0xff] %v7688_v63  ;;  %v7699_v61 = vsel %vm3008_vm11, %v2944_v42, %v3072_v9  ;;  %v2147_v12 = vmul.f32 0.01, %v2019_v43  ;;  %v1950_v42 = vmul.f32 %v7524_v49, %v7479_v16  ;;  %v2886_v37 = vmul.f32 %v7524_v49, %v7481_v15 }
 0x1ae   : > { %9154 = vst [vmem:[#allocation85_spill] sm:$0xff] %v7699_v61  ;;  %vm3013_vm13 = vcmp.gt.f32.partialorder %v2949_v35, 0.0  ;;  %v3077_v1 = vmul.f32 0.01, %v2949_v35  ;;  %vm2081_vm14 = vcmp.gt.f32.partialorder %v2017_v0, 0.0  ;;  %v2947_v11 = vadd.f32 %v7512_v54, %v2883_v25 }
 0x1af   : > { %v7707_v29 = vsel %vm2083_vm12, %v2019_v43, %v2147_v12  ;;  %v2145_v20 = vmul.f32 0.01, %v2017_v0  ;;  %v1948_v26 = vmul.f32 %v7524_v49, %v7485_v28  ;;  %v2884_v45 = vmul.f32 %v7524_v49, %v7487_v30 }
 0x1b0   : > { %9155 = vst [vmem:[#allocation86_spill] sm:$0xff] %v7707_v29  ;;  %v7712_v9 = vsel %vm3013_vm13, %v2949_v35, %v3077_v1  ;;  %vm3011_vm2 = vcmp.gt.f32.partialorder %v2947_v11, 0.0  ;;  %v3075_v25 = vmul.f32 0.01, %v2947_v11  ;;  %v2020_v35 = vadd.f32 %v7512_v54, %v1950_v42 }
 0x1b1   : > { %9156 = vst [vmem:[#allocation87_spill] sm:$0xff] %v7712_v9  ;;  %v7722_v43 = vsel %vm2081_vm14, %v2017_v0, %v2145_v20  ;;  %v2950_v15 = vadd.f32 %v7512_v54, %v2886_v37  ;;  %v2018_v28 = vadd.f32 %v7512_v54, %v1948_v26  ;;  %v2948_v1 = vadd.f32 %v7512_v54, %v2884_v45 }
 0x1b2   : > { %v7674_v10 = vpop.f32.mrb[60].mxu0  ;;  %v7676_v21 = vpop.f32.mrb[60].mxu1  ;;  %9157 = vst [vmem:[#allocation88_spill] sm:$0xff] %v7722_v43  ;;  %v7736_v0 = vsel %vm3011_vm2, %v2947_v11, %v3075_v25  ;;  %v1953_v20 = vmul.f32 %v7524_v49, %v7515_v3  ;;  %v2889_v12 = vmul.f32 %v7524_v49, %v7517_v31  ;;  %v1951_v42 = vmul.f32 %v7524_v49, %v7532_v14 }
 0x1b3   : > { %v7682_v4 = vpop.f32.mrb[61].mxu0  ;;  %v7684_v7 = vpop.f32.mrb[61].mxu1  ;;  %9158 = vst [vmem:[#allocation89_spill] sm:$0xff] %v7736_v0  ;;  %vm2084_vm15 = vcmp.gt.f32.partialorder %v2020_v35, 0.0  ;;  %v2148_v9 = vmul.f32 0.01, %v2020_v35  ;;  %v2887_v43 = vmul.f32 %v7524_v49, %v7534_v57  ;;  %v1952_v47 = vmul.f32 %v7524_v49, %v7546_v5 }
 0x1b4   : > { %v7693_v33 = vpop.f32.mrb[62].mxu0  ;;  %v7695_v17 = vpop.f32.mrb[62].mxu1  ;;  %vm3014_vm0 = vcmp.gt.f32.partialorder %v2950_v15, 0.0  ;;  %v3078_v3 = vmul.f32 0.01, %v2950_v15  ;;  %vm2082_vm1 = vcmp.gt.f32.partialorder %v2018_v28, 0.0  ;;  %v2023_v27 = vadd.f32 %v7512_v54, %v1953_v20 }
 0x1b5   : > { %v7701_v59 = vpop.f32.mrb[63].mxu0  ;;  %v7703_v55 = vpop.f32.mrb[63].mxu1  ;;  %v2146_v31 = vmul.f32 0.01, %v2018_v28  ;;  %vm3012_vm3 = vcmp.gt.f32.partialorder %v2948_v1, 0.0  ;;  %v7754_v29 = vsel %vm2084_vm15, %v2020_v35, %v2148_v9  ;;  %v2953_v2 = vadd.f32 %v7512_v54, %v2889_v12 }
 0x1b6   : > { %9159 = vst [vmem:[#allocation90_spill] sm:$0xff] %v7754_v29  ;;  %v3076_v14 = vmul.f32 0.01, %v2948_v1  ;;  %v7758_v56 = vsel %vm3014_vm0, %v2950_v15, %v3078_v3  ;;  %v2021_v0 = vadd.f32 %v7512_v54, %v1951_v42  ;;  %vm2087_vm4 = vcmp.gt.f32.partialorder %v2023_v27, 0.0 }
 0x1b7   : > { %9160 = vst [vmem:[#allocation91_spill] sm:$0xff] %v7758_v56  ;;  %v7760_v45 = vsel %vm2082_vm1, %v2018_v28, %v2146_v31  ;;  %v2151_v9 = vmul.f32 0.01, %v2023_v27  ;;  %vm3017_vm5 = vcmp.gt.f32.partialorder %v2953_v2, 0.0  ;;  %v3081_v12 = vmul.f32 0.01, %v2953_v2 }
 0x1b8   : > { %9161 = vst [vmem:[#allocation92_spill] sm:$0xff] %v7760_v45  ;;  %v7767_v46 = vsel %vm3012_vm3, %v2948_v1, %v3076_v14  ;;  %vm2085_vm6 = vcmp.gt.f32.partialorder %v2021_v0, 0.0  ;;  %v2149_v57 = vmul.f32 0.01, %v2021_v0  ;;  %v2951_v42 = vadd.f32 %v7512_v54, %v2887_v43 }
 0x1b9   : > { %9162 = vst [vmem:[#allocation93_spill] sm:$0xff] %v7767_v46  ;;  %v7775_v20 = vsel %vm2087_vm4, %v2023_v27, %v2151_v9  ;;  %v1954_v1 = vmul.f32 %v7524_v49, %v7538_v13  ;;  %v7784_v14 = vsel %vm3017_vm5, %v2953_v2, %v3081_v12  ;;  %v2890_v35 = vmul.f32 %v7524_v49, %v7540_v6 }
 0x1ba   : > { %v7724_v61 = vpop.f32.mrb[64].mxu0  ;;  %v7726_v16 = vpop.f32.mrb[64].mxu1  ;;  %9163 = vst [vmem:[#allocation94_spill] sm:$0xff] %v7775_v20  ;;  %9164 = vst [vmem:[#allocation95_spill] sm:$0xff] %v7784_v14  ;;  %v2888_v27 = vmul.f32 %v7524_v49, %v7548_v48  ;;  %v7799_v46 = vsel %vm2085_vm6, %v2021_v0, %v2149_v57  ;;  %vm3015_vm7 = vcmp.gt.f32.partialorder %v2951_v42, 0.0  ;;  %v2022_v45 = vadd.f32 %v7512_v54, %v1952_v47 }
 0x1bb   : > { %v7732_v30 = vpop.f32.mrb[65].mxu0  ;;  %v7734_v63 = vpop.f32.mrb[65].mxu1  ;;  %9165 = vst [vmem:[#allocation96_spill] sm:$0xff] %v7799_v46  ;;  %v3079_v2 = vmul.f32 0.01, %v2951_v42  ;;  %v2024_v5 = vadd.f32 %v7512_v54, %v1954_v1  ;;  %v2954_v48 = vadd.f32 %v7512_v54, %v2890_v35  ;;  %v1957_v0 = vmul.f32 %v7524_v49, %v7568_v41 }
 0x1bc   : > { %v7744_v37 = vpop.f32.mrb[66].mxu0  ;;  %v7746_v26 = vpop.f32.mrb[66].mxu1  ;;  %v2952_v56 = vadd.f32 %v7512_v54, %v2888_v27  ;;  %v2893_v57 = vmul.f32 %v7524_v49, %v7570_v52  ;;  %v1955_v13 = vmul.f32 %v7524_v49, %v7580_v53  ;;  %vm2086_vm10 = vcmp.gt.f32.partialorder %v2022_v45, 0.0 }
 0x1bd   : > { %v7750_v11 = vpop.f32.mrb[67].mxu0  ;;  %v7752_v25 = vpop.f32.mrb[67].mxu1  ;;  %v7809_v29 = vsel %vm3015_vm7, %v2951_v42, %v3079_v2  ;;  %vm2088_vm8 = vcmp.gt.f32.partialorder %v2024_v5, 0.0  ;;  %v2152_v35 = vmul.f32 0.01, %v2024_v5  ;;  %vm3018_vm9 = vcmp.gt.f32.partialorder %v2954_v48, 0.0 }
 0x1be   : > { %9166 = vst [vmem:[#allocation97_spill] sm:$0xff] %v7809_v29  ;;  %v3082_v47 = vmul.f32 0.01, %v2954_v48  ;;  %v2150_v27 = vmul.f32 0.01, %v2022_v45  ;;  %vm3016_vm11 = vcmp.gt.f32.partialorder %v2952_v56, 0.0  ;;  %v2027_v41 = vadd.f32 %v7512_v54, %v1957_v0 }
 0x1bf   : > { %v7819_v42 = vsel %vm2088_vm8, %v2024_v5, %v2152_v35  ;;  %v3080_v2 = vmul.f32 0.01, %v2952_v56  ;;  %v2957_v52 = vadd.f32 %v7512_v54, %v2893_v57  ;;  %v2025_v29 = vadd.f32 %v7512_v54, %v1955_v13 }
 0x1c0   : > { %9167 = vst [vmem:[#allocation98_spill] sm:$0xff] %v7819_v42  ;;  %v7827_v20 = vsel %vm3018_vm9, %v2954_v48, %v3082_v47  ;;  %v7829_v1 = vsel %vm2086_vm10, %v2022_v45, %v2150_v27  ;;  %v2891_v46 = vmul.f32 %v7524_v49, %v7582_v58  ;;  %vm2091_vm12 = vcmp.gt.f32.partialorder %v2027_v41, 0.0 }
 0x1c1   : > { %9169 = vst [vmem:[#allocation100_spill] sm:$0xff] %v7827_v20  ;;  %9170 = vst [vmem:[#allocation101_spill] sm:$0xff] %v7829_v1  ;;  %v7840_v57 = vsel %vm3016_vm11, %v2952_v56, %v3080_v2  ;;  %vm3021_vm13 = vcmp.gt.f32.partialorder %v2957_v52, 0.0  ;;  %v3085_v58 = vmul.f32 0.01, %v2957_v52  ;;  %vm2089_vm14 = vcmp.gt.f32.partialorder %v2025_v29, 0.0 }
 0x1c2   : > { %v7771_v15 = vpop.f32.mrb[68].mxu0  ;;  %v7773_v28 = vpop.f32.mrb[68].mxu1  ;;  %9172 = vst [vmem:[#allocation103_spill] sm:$0xff] %v7840_v57  ;;  %v2153_v56 = vmul.f32 0.01, %v2025_v29  ;;  %v2955_v2 = vadd.f32 %v7512_v54, %v2891_v46  ;;  %v1958_v0 = vmul.f32 %v7524_v49, %v7588_v40  ;;  %v2894_v13 = vmul.f32 %v7524_v49, %v7590_v50 }
 0x1c3   : > { %v7780_v3 = vpop.f32.mrb[69].mxu0  ;;  %v7782_v31 = vpop.f32.mrb[69].mxu1  ;;  %v7857_v20 = vsel %vm3021_vm13, %v2957_v52, %v3085_v58  ;;  %v1956_v57 = vmul.f32 %v7524_v49, %v7596_v39  ;;  %v2892_v1 = vmul.f32 %v7524_v49, %v7598_v44  ;;  %v1961_v44 = vmul.f32 %v7524_v49, %v7621_v22 }
 0x1c4   : > { %v7792_v9 = vpop.f32.mrb[70].mxu0  ;;  %v7794_v43 = vpop.f32.mrb[70].mxu1  ;;  %9174 = vst [vmem:[#allocation105_spill] sm:$0xff] %v7857_v20  ;;  %vm3019_vm2 = vcmp.gt.f32.partialorder %v2955_v2, 0.0  ;;  %v3083_v46 = vmul.f32 0.01, %v2955_v2  ;;  %v2028_v40 = vadd.f32 %v7512_v54, %v1958_v0  ;;  %v2958_v52 = vadd.f32 %v7512_v54, %v2894_v13 }
 0x1c5   : > { %v7801_v12 = vpop.f32.mrb[71].mxu0  ;;  %v7803_v6 = vpop.f32.mrb[71].mxu1  ;;  %v2026_v58 = vadd.f32 %v7512_v54, %v1956_v57  ;;  %v2956_v50 = vadd.f32 %v7512_v54, %v2892_v1  ;;  %v2897_v39 = vmul.f32 %v7524_v49, %v7623_v36 }
 0x1c6   : > { %v7873_v42 = vsel %vm3019_vm2, %v2955_v2, %v3083_v46  ;;  %vm2092_vm15 = vcmp.gt.f32.partialorder %v2028_v40, 0.0  ;;  %v2156_v1 = vmul.f32 0.01, %v2028_v40  ;;  %vm3022_vm0 = vcmp.gt.f32.partialorder %v2958_v52, 0.0 }
 0x1c7   : > { %9176 = vst [vmem:[#allocation107_spill] sm:$0xff] %v7873_v42  ;;  %v3086_v22 = vmul.f32 0.01, %v2958_v52  ;;  %vm2090_vm1 = vcmp.gt.f32.partialorder %v2026_v58, 0.0  ;;  %v2154_v36 = vmul.f32 0.01, %v2026_v58  ;;  %v2961_v20 = vadd.f32 %v7512_v54, %v2897_v39 }
 0x1c8   : > { %vm3020_vm3 = vcmp.gt.f32.partialorder %v2956_v50, 0.0  ;;  %v7891_v46 = vsel %vm2092_vm15, %v2028_v40, %v2156_v1 }
 0x1c9   : > { %9179 = vst [vmem:[#allocation110_spill] sm:$0xff] %v7891_v46  ;;  %v7899_v42 = vsel %vm3022_vm0, %v2958_v52, %v3086_v22  ;;  %vm3025_vm5 = vcmp.gt.f32.partialorder %v2961_v20, 0.0  ;;  %v2896_v52 = vmul.f32 %v7524_v49, %v7646_v51 }
 0x1ca   : > { %v7823_v14 = vpop.f32.mrb[72].mxu0  ;;  %v7825_v53 = vpop.f32.mrb[72].mxu1  ;;  %9181 = vst [vmem:[#allocation112_spill] sm:$0xff] %v7899_v42 }
 0x1cb   : > { %9168 = vst [vmem:[#allocation99_spill] sm:$0xff] %v7825_v53  ;;  %v7834_v5 = vpop.f32.mrb[73].mxu0  ;;  %v7836_v35 = vpop.f32.mrb[73].mxu1  ;;  %v2155_v53 = vmul.f32 0.01, %v2027_v41 }
 0x1cc   : > { %9171 = vst [vmem:[#allocation102_spill] sm:$0xff] %v7836_v35  ;;  %v7842_v48 = vpop.f32.mrb[74].mxu0  ;;  %v7844_v45 = vpop.f32.mrb[74].mxu1 }
 0x1cd   : > { %v7848_v47 = vpop.f32.mrb[75].mxu0  ;;  %v7850_v27 = vpop.f32.mrb[75].mxu1  ;;  %v7852_v35 = vsel %vm2091_vm12, %v2027_v41, %v2155_v53  ;;  %v7867_v53 = vsel %vm2089_vm14, %v2025_v29, %v2153_v56  ;;  %v1959_v29 = vmul.f32 %v7524_v49, %v7629_v32  ;;  %v3084_v32 = vmul.f32 0.01, %v2956_v50 }
 0x1ce   : > { %9173 = vst [vmem:[#allocation104_spill] sm:$0xff] %v7852_v35  ;;  %9175 = vst [vmem:[#allocation106_spill] sm:$0xff] %v7867_v53  ;;  %v2031_v41 = vadd.f32 %v7512_v54, %v1961_v44  ;;  %v7901_v53 = vsel %vm2090_vm1, %v2026_v58, %v2154_v36  ;;  %v3089_v58 = vmul.f32 0.01, %v2961_v20  ;;  %v1962_v36 = vmul.f32 %v7524_v49, %v7635_v62 }
 0x1cf   : > { %9182 = vst [vmem:[#allocation113_spill] sm:$0xff] %v7901_v53  ;;  %v7912_v39 = vsel %vm3020_vm3, %v2956_v50, %v3084_v32  ;;  %v2898_v50 = vmul.f32 %v7524_v49, %v7637_v60  ;;  %v1960_v32 = vmul.f32 %v7524_v49, %v7644_v34  ;;  %vm5211_vm1 = vcmask 523264  }
 0x1d0   : > { %9184 = vst [vmem:[#allocation115_spill] sm:$0xff] %v7912_v39  ;;  %vm2095_vm4 = vcmp.gt.f32.partialorder %v2031_v41, 0.0  ;;  %v2032_v34 = vadd.f32 %v7512_v54, %v1962_v36  ;;  %v2960_v39 = vadd.f32 %v7512_v54, %v2896_v52  ;;  %v1963_v36 = vmul.f32 %v7524_v49, %v7682_v4 }
 0x1d1   : > { %v2030_v51 = vadd.f32 %v7512_v54, %v1960_v32 }
 0x1d2   : > { %v7881_v56 = vpop.f32.mrb[76].mxu0  ;;  %v7883_v0 = vpop.f32.mrb[76].mxu1  ;;  %vm2096_vm8 = vcmp.gt.f32.partialorder %v2032_v34, 0.0  ;;  %vm3024_vm11 = vcmp.gt.f32.partialorder %v2960_v39, 0.0  ;;  %v2033_v52 = vadd.f32 %v7512_v54, %v1963_v36 }
 0x1d3   : > { %v7887_v13 = vpop.f32.mrb[77].mxu0  ;;  %v7889_v2 = vpop.f32.mrb[77].mxu1  ;;  %vm2094_vm10 = vcmp.gt.f32.partialorder %v2030_v51, 0.0 }
 0x1d4   : > { %9177 = vst [vmem:[#allocation108_spill] sm:$0xff] %v7887_v13  ;;  %9178 = vst [vmem:[#allocation109_spill] sm:$0xff] %v7889_v2  ;;  %v7895_v35 = vpop.f32.mrb[78].mxu0  ;;  %v7897_v57 = vpop.f32.mrb[78].mxu1  ;;  %v2029_v2 = vadd.f32 %v7512_v54, %v1959_v29  ;;  %v2895_v13 = vmul.f32 %v7524_v49, %v7631_v8  ;;  %vm2097_vm14 = vcmp.gt.f32.partialorder %v2033_v52, 0.0 }
 0x1d5   : > { %9180 = vst [vmem:[#allocation111_spill] sm:$0xff] %v7897_v57  ;;  %v7906_v40 = vpop.f32.mrb[79].mxu0  ;;  %v7908_v1 = vpop.f32.mrb[79].mxu1  ;;  %v2159_v57 = vmul.f32 0.01, %v2031_v41 }
 0x1d6   : > { %9183 = vst [vmem:[#allocation114_spill] sm:$0xff] %v7908_v1  ;;  %vm2093_vm6 = vcmp.gt.f32.partialorder %v2029_v2, 0.0  ;;  %v2157_v8 = vmul.f32 0.01, %v2029_v2  ;;  %v2959_v22 = vadd.f32 %v7512_v54, %v2895_v13  ;;  %v7921_v1 = vsel %vm3025_vm5, %v2961_v20, %v3089_v58 }
 0x1d7   : > { %v7916_v29 = vsel %vm2095_vm4, %v2031_v41, %v2159_v57  ;;  %9186 = vst [vmem:[#allocation117_spill] sm:$0xff] %v7921_v1  ;;  %v2962_v58 = vadd.f32 %v7512_v54, %v2898_v50  ;;  %v2901_v57 = vmul.f32 %v7524_v49, %v7676_v21  ;;  %v2160_v1 = vmul.f32 0.01, %v2032_v34 }
 0x1d8   : > { %9185 = vst [vmem:[#allocation116_spill] sm:$0xff] %v7916_v29  ;;  %v7935_v13 = vsel %vm2093_vm6, %v2029_v2, %v2157_v8  ;;  %vm3023_vm7 = vcmp.gt.f32.partialorder %v2959_v22, 0.0  ;;  %v3087_v62 = vmul.f32 0.01, %v2959_v22  ;;  %v1965_v8 = vmul.f32 %v7524_v49, %v7674_v10 }
 0x1d9   : > { %9187 = vst [vmem:[#allocation118_spill] sm:$0xff] %v7935_v13  ;;  %vm3026_vm9 = vcmp.gt.f32.partialorder %v2962_v58, 0.0  ;;  %v2158_v10 = vmul.f32 0.01, %v2030_v51  ;;  %v3088_v21 = vmul.f32 0.01, %v2960_v39  ;;  %v2965_v29 = vadd.f32 %v7512_v54, %v2901_v57 }
 0x1da   : > { %v7929_v44 = vpop.f32.mrb[80].mxu0  ;;  %v7931_v41 = vpop.f32.mrb[80].mxu1  ;;  %v7949_v2 = vsel %vm3023_vm7, %v2959_v22, %v3087_v62  ;;  %v3090_v22 = vmul.f32 0.01, %v2962_v58  ;;  %v7963_v62 = vsel %vm2096_vm8, %v2032_v34, %v2160_v1  ;;  %v2035_v4 = vadd.f32 %v7512_v54, %v1965_v8 }
 0x1db   : > { %v7937_v20 = vpop.f32.mrb[81].mxu0  ;;  %v7939_v60 = vpop.f32.mrb[81].mxu1  ;;  %9188 = vst [vmem:[#allocation119_spill] sm:$0xff] %v7949_v2  ;;  %9191 = vst [vmem:[#allocation122_spill] sm:$0xff] %v7963_v62  ;;  %v2899_v2 = vmul.f32 %v7524_v49, %v7684_v7  ;;  %vm3029_vm13 = vcmp.gt.f32.partialorder %v2965_v29, 0.0 }
 0x1dc   : > { %v7945_v53 = vpop.f32.mrb[82].mxu0  ;;  %v7947_v42 = vpop.f32.mrb[82].mxu1  ;;  %v7967_v46 = vsel %vm3026_vm9, %v2962_v58, %v3090_v22  ;;  %vm2099_vm12 = vcmp.gt.f32.partialorder %v2035_v4, 0.0  ;;  %v2163_v1 = vmul.f32 0.01, %v2035_v4 }
 0x1dd   : > { %v7957_v50 = vpop.f32.mrb[83].mxu0  ;;  %v7959_v32 = vpop.f32.mrb[83].mxu1  ;;  %9192 = vst [vmem:[#allocation123_spill] sm:$0xff] %v7967_v46  ;;  %v3093_v7 = vmul.f32 0.01, %v2965_v29  ;;  %v2963_v22 = vadd.f32 %v7512_v54, %v2899_v2 }
 0x1de   : > { %9189 = vst [vmem:[#allocation120_spill] sm:$0xff] %v7957_v50  ;;  %9190 = vst [vmem:[#allocation121_spill] sm:$0xff] %v7959_v32  ;;  %v7969_v32 = vsel %vm2094_vm10, %v2030_v51, %v2158_v10  ;;  %v7976_v50 = vsel %vm3024_vm11, %v2960_v39, %v3088_v21  ;;  %v7992_v8 = vsel %vm2099_vm12, %v2035_v4, %v2163_v1  ;;  %v2161_v36 = vmul.f32 0.01, %v2033_v52 }
 0x1df   : > { %9193 = vst [vmem:[#allocation124_spill] sm:$0xff] %v7969_v32  ;;  %9194 = vst [vmem:[#allocation125_spill] sm:$0xff] %v7976_v50  ;;  %v1966_v10 = vmul.f32 %v7524_v49, %v7693_v33  ;;  %v8001_v58 = vsel %vm3029_vm13, %v2965_v29, %v3093_v7  ;;  %v2902_v50 = vmul.f32 %v7524_v49, %v7695_v17  ;;  %vm3027_vm2 = vcmp.gt.f32.partialorder %v2963_v22, 0.0 }
 0x1e0   : > { %9195 = vst [vmem:[#allocation126_spill] sm:$0xff] %v7992_v8  ;;  %9196 = vst [vmem:[#allocation127_spill] sm:$0xff] %v8001_v58  ;;  %v1964_v32 = vmul.f32 %v7524_v49, %v7701_v59  ;;  %v2900_v4 = vmul.f32 %v7524_v49, %v7703_v55  ;;  %v8017_v29 = vsel %vm2097_vm14, %v2033_v52, %v2161_v36  ;;  %v3091_v17 = vmul.f32 0.01, %v2963_v22 }
 0x1e1   : > { %9198 = vst [vmem:[#allocation129_spill] sm:$0xff] %v8017_v29  ;;  %v2036_v59 = vadd.f32 %v7512_v54, %v1966_v10  ;;  %v2966_v7 = vadd.f32 %v7512_v54, %v2902_v50  ;;  %v4829_v33 = vmul.f32 %v7524_v49, %v7726_v16  ;;  %v3833_v29 = vmul.f32 %v7524_v49, %v7732_v30 }
 0x1e2   : > { %v7982_v57 = vpop.f32.mrb[84].mxu0  ;;  %v7984_v34 = vpop.f32.mrb[84].mxu1  ;;  %v2034_v55 = vadd.f32 %v7512_v54, %v1964_v32  ;;  %v2964_v46 = vadd.f32 %v7512_v54, %v2900_v4  ;;  %v8023_v62 = vsel %vm3027_vm2, %v2963_v22, %v3091_v17  ;;  %v9205_v30 = vmax.f32 %v6978_v18, %v6980_v19 }
 0x1e3   : > { %v7988_v51 = vpop.f32.mrb[85].mxu0  ;;  %v7990_v39 = vpop.f32.mrb[85].mxu1  ;;  %9199 = vst [vmem:[#allocation130_spill] sm:$0xff] %v8023_v62  ;;  %vm2100_vm15 = vcmp.gt.f32.partialorder %v2036_v59, 0.0  ;;  %v2164_v36 = vmul.f32 0.01, %v2036_v59  ;;  %v4893_v16 = vadd.f32 %v7512_v54, %v4829_v33  ;;  %v3836_v33 = vmul.f32 %v7524_v49, %v7744_v37 }
 0x1e4   : > { %v7997_v21 = vpop.f32.mrb[86].mxu0  ;;  %v7999_v13 = vpop.f32.mrb[86].mxu1  ;;  %vm3030_vm0 = vcmp.gt.f32.partialorder %v2966_v7, 0.0  ;;  %v3094_v50 = vmul.f32 0.01, %v2966_v7  ;;  %vm2098_vm3 = vcmp.gt.f32.partialorder %v2034_v55, 0.0  ;;  %v3834_v18 = vmul.f32 %v7524_v49, %v7750_v11 }
 0x1e5   : > { %v8010_v2 = vpop.f32.mrb[87].mxu0  ;;  %v8012_v1 = vpop.f32.mrb[87].mxu1  ;;  %v2162_v32 = vmul.f32 0.01, %v2034_v55  ;;  %vm3028_vm4 = vcmp.gt.f32.partialorder %v2964_v46, 0.0  ;;  %v8036_v22 = vsel %vm2100_vm15, %v2036_v59, %v2164_v36  ;;  %v4827_v59 = vmul.f32 %v7524_v49, %v7734_v63 }
 0x1e6   : > { %9197 = vst [vmem:[#allocation128_spill] sm:$0xff] %v8012_v1  ;;  %v3835_v1 = vmul.f32 %v7524_v49, %v7724_v61  ;;  %9200 = vst [vmem:[#allocation131_spill] sm:$0xff] %v8036_v22  ;;  %v3092_v61 = vmul.f32 0.01, %v2964_v46  ;;  %v8044_v52 = vsel %vm3030_vm0, %v2966_v7, %v3094_v50  ;;  %vm4957_vm6 = vcmp.gt.f32.partialorder %v4893_v16, 0.0 }
 0x1e7   : > { %9201 = vst [vmem:[#allocation132_spill] sm:$0xff] %v8044_v52  ;;  %v8046_v62 = vsel %vm2098_vm3, %v2034_v55, %v2162_v32  ;;  %v5021_v63 = vmul.f32 0.01, %v4893_v16  ;;  %v3897_v32 = vadd.f32 %v7512_v54, %v3833_v29  ;;  %v4830_v52 = vmul.f32 %v7524_v49, %v7746_v26 }
 0x1e8   : > { %v3899_v10 = vadd.f32 %v7512_v54, %v3835_v1  ;;  %9202 = vst [vmem:[#allocation133_spill] sm:$0xff] %v8046_v62  ;;  %v8058_v58 = vsel %vm3028_vm4, %v2964_v46, %v3092_v61  ;;  %v4891_v61 = vadd.f32 %v7512_v54, %v4827_v59  ;;  %v3900_v37 = vadd.f32 %v7512_v54, %v3836_v33 }
 0x1e9   : > { %9204 = vst [vmem:[#allocation135_spill] sm:$0xff] %v8058_v58  ;;  %v5085_v62 = vsel %vm4957_vm6, %v4893_v16, %v5021_v63  ;;  %vm3961_vm7 = vcmp.gt.f32.partialorder %v3897_v32, 0.0  ;;  %v4025_v29 = vmul.f32 0.01, %v3897_v32  ;;  %v4894_v59 = vadd.f32 %v7512_v54, %v4830_v52 }
 0x1ea   : > { %v8040_v4 = vpop.f32.mrb[88].mxu0  ;;  %v8042_v17 = vpop.f32.mrb[88].mxu1  ;;  %vm3963_vm5 = vcmp.gt.f32.partialorder %v3899_v10, 0.0  ;;  %v4027_v7 = vmul.f32 0.01, %v3899_v10  ;;  %vm4955_vm8 = vcmp.gt.f32.partialorder %v4891_v61, 0.0  ;;  %v4828_v19 = vmul.f32 %v7524_v49, %v7752_v25 }
 0x1eb   : > { %v8052_v36 = vpop.f32.mrb[89].mxu0  ;;  %v8054_v1 = vpop.f32.mrb[89].mxu1  ;;  %v9206_v63 = vmax.f32 %v6986_v23, %v6988_v24  ;;  %vm3964_vm9 = vcmp.gt.f32.partialorder %v3900_v37, 0.0  ;;  %v4028_v33 = vmul.f32 0.01, %v3900_v37  ;;  %vm4958_vm10 = vcmp.gt.f32.partialorder %v4894_v59, 0.0 }
 0x1ec   : > { %9203 = vst [vmem:[#allocation134_spill] sm:$0xff] %v8054_v1  ;;  %v8060_v50 = vpop.f32.mrb[90].mxu0  ;;  %v8062_v55 = vpop.f32.mrb[90].mxu1  ;;  %v4091_v46 = vsel %vm3963_vm5, %v3899_v10, %v4027_v7  ;;  %v5019_v10 = vmul.f32 0.01, %v4891_v61  ;;  %v4089_v7 = vsel %vm3961_vm7, %v3897_v32, %v4025_v29  ;;  %v3898_v25 = vadd.f32 %v7512_v54, %v3834_v18  ;;  %v9209_v18 = vld [vmem:[#allocation3_spill] sm:$0xff] }
 0x1ed   : > { %v8068_v8 = vpop.f32.mrb[91].mxu0  ;;  %v8070_v1 = vpop.f32.mrb[91].mxu1  ;;  %v4155_v58 = vmax.f32 %v9205_v30, %v4091_v46  ;;  %v4153_v46 = vmax.f32 %v9206_v63, %v4089_v7  ;;  %v5022_v11 = vmul.f32 0.01, %v4894_v59  ;;  %v3839_v29 = vmul.f32 %v7524_v49, %v7771_v15 }
 0x1ee   : > { %v5083_v22 = vsel %vm4955_vm8, %v4891_v61, %v5019_v10  ;;  %v4092_v61 = vsel %vm3964_vm9, %v3900_v37, %v4028_v33  ;;  %v4833_v10 = vmul.f32 %v7524_v49, %v7773_v28  ;;  %v9210_v63 = vmax.f32 %v6996_v38, %v9209_v18 }
 0x1ef   : > { %v5149_v26 = vmax.f32 %v4155_v58, %v5085_v62  ;;  %v4892_v58 = vadd.f32 %v7512_v54, %v4828_v19  ;;  %v5147_v24 = vmax.f32 %v4153_v46, %v5083_v22  ;;  %vm3962_vm11 = vcmp.gt.f32.partialorder %v3898_v25, 0.0 }
 0x1f0   : > { %v4156_v19 = vmax.f32 %v9210_v63, %v4092_v61  ;;  %v3903_v15 = vadd.f32 %v7512_v54, %v3839_v29  ;;  %v4897_v28 = vadd.f32 %v7512_v54, %v4833_v10  ;;  %v3837_v33 = vmul.f32 %v7524_v49, %v7780_v3 }
 0x1f1   : > { %5214 = vst.msk [vmem:[%s8083_s26 + $0x10] sm:$0xff] %vm5211_vm1, %v5149_v26  ;;  %5212 = vst.msk [vmem:[%s8083_s26] sm:$0xff] %vm5211_vm1, %v5147_v24  ;;  %vm4956_vm12 = vcmp.gt.f32.partialorder %v4892_v58, 0.0  ;;  %v5020_v22 = vmul.f32 0.01, %v4892_v58  ;;  %v4831_v38 = vmul.f32 %v7524_v49, %v7782_v31 }
 0x1f2   : > { %v8091_v16 = vpop.f32.mrb[92].mxu0  ;;  %v8093_v30 = vpop.f32.mrb[92].mxu1  ;;  %vm3967_vm13 = vcmp.gt.f32.partialorder %v3903_v15, 0.0  ;;  %v4031_v24 = vmul.f32 0.01, %v3903_v15  ;;  %vm4961_vm14 = vcmp.gt.f32.partialorder %v4897_v28, 0.0 }
 0x1f3   : > { %v8098_v52 = vpop.f32.mrb[93].mxu0  ;;  %v8100_v62 = vpop.f32.mrb[93].mxu1  ;;  %v5084_v63 = vsel %vm4956_vm12, %v4892_v58, %v5020_v22  ;;  %v5025_v29 = vmul.f32 0.01, %v4897_v28  ;;  %v3840_v58 = vmul.f32 %v7524_v49, %v7792_v9 }
 0x1f4   : > { %9207 = vst [vmem:[#allocation136_spill] sm:$0xff] %v8100_v62  ;;  %v8106_v32 = vpop.f32.mrb[94].mxu0  ;;  %v8108_v23 = vpop.f32.mrb[94].mxu1  ;;  %v5086_v62 = vsel %vm4958_vm10, %v4894_v59, %v5022_v11  ;;  %v9211_v59 = vld [vmem:[#allocation4_spill] sm:$0xff]  ;;  %v9212_v11 = vld [vmem:[#allocation5_spill] sm:$0xff]  ;;  %v4095_v10 = vsel %vm3967_vm13, %v3903_v15, %v4031_v24 }
 0x1f5   : > { %9208 = vst [vmem:[#allocation137_spill] sm:$0xff] %v8108_v23  ;;  %v8114_v26 = vpop.f32.mrb[95].mxu0  ;;  %v8116_v7 = vpop.f32.mrb[95].mxu1  ;;  %v4026_v23 = vmul.f32 0.01, %v3898_v25  ;;  %v5150_v37 = vmax.f32 %v4156_v19, %v5086_v62  ;;  %v9213_v61 = vmax.f32 %v9211_v59, %v9212_v11  ;;  %v3901_v62 = vadd.f32 %v7512_v54, %v3837_v33  ;;  %v9216_v33 = vld [vmem:[#allocation7_spill] sm:$0xff] }
 0x1f6   : > { %v4834_v19 = vmul.f32 %v7524_v49, %v7794_v43  ;;  %v5089_v11 = vsel %vm4961_vm14, %v4897_v28, %v5025_v29  ;;  %v3904_v43 = vadd.f32 %v7512_v54, %v3840_v58 }
 0x1f7   : > { %v4090_v46 = vsel %vm3962_vm11, %v3898_v25, %v4026_v23  ;;  %5215 = vst.msk [vmem:[%s8083_s26 + $0x18] sm:$0xff] %vm5211_vm1, %v5150_v37  ;;  %v4895_v25 = vadd.f32 %v7512_v54, %v4831_v38  ;;  %vm3965_vm2 = vcmp.gt.f32.partialorder %v3901_v62, 0.0 }
 0x1f8   : > { %v4154_v18 = vmax.f32 %v9213_v61, %v4090_v46  ;;  %v9215_v46 = vld [vmem:[#allocation6_spill] sm:$0xff]  ;;  %v4029_v61 = vmul.f32 0.01, %v3901_v62  ;;  %vm3968_vm0 = vcmp.gt.f32.partialorder %v3904_v43, 0.0  ;;  %v4032_v58 = vmul.f32 0.01, %v3904_v43 }
 0x1f9   : > { %v9217_v59 = vmax.f32 %v9215_v46, %v9216_v33  ;;  %vm4959_vm15 = vcmp.gt.f32.partialorder %v4895_v25, 0.0  ;;  %v5023_v9 = vmul.f32 0.01, %v4895_v25  ;;  %v4832_v46 = vmul.f32 %v7524_v49, %v7803_v6  ;;  %v9220_v33 = vld [vmem:[#allocation8_spill] sm:$0xff] }
 0x1fa   : > { %v8136_v3 = vpop.f32.mrb[96].mxu0  ;;  %v8138_v23 = vpop.f32.mrb[96].mxu1  ;;  %v5148_v31 = vmax.f32 %v4154_v18, %v5084_v63  ;;  %v4898_v18 = vadd.f32 %v7512_v54, %v4834_v19  ;;  %v4093_v29 = vsel %vm3965_vm2, %v3901_v62, %v4029_v61  ;;  %v8175_v62 = vld [vmem:[%s8947_s3] ss:$0 sm:$0xff]  ;;  %v4096_v19 = vsel %vm3968_vm0, %v3904_v43, %v4032_v58 }
 0x1fb   : > { %9214 = vst [vmem:[#allocation3_spill] sm:$0xff] %v8138_v23  ;;  %v8144_v22 = vpop.f32.mrb[97].mxu0  ;;  %v8146_v37 = vpop.f32.mrb[97].mxu1  ;;  %v4159_v38 = vmax.f32 %v9217_v59, %v4095_v10  ;;  %v3838_v10 = vmul.f32 %v7524_v49, %v7801_v12  ;;  %v4896_v49 = vadd.f32 %v8175_v62, %v4832_v46 }
 0x1fc   : > { %v8151_v23 = vpop.f32.mrb[98].mxu0  ;;  %v8153_v15 = vpop.f32.mrb[98].mxu1  ;;  %5213 = vst.msk [vmem:[%s8083_s26 + $0x8] sm:$0xff] %vm5211_vm1, %v5148_v31  ;;  %v9221_v31 = vld [vmem:[#allocation9_spill] sm:$0xff]  ;;  %vm4962_vm3 = vcmp.gt.f32.partialorder %v4898_v18, 0.0 }
 0x1fd   : > { %9218 = vst [vmem:[#allocation4_spill] sm:$0xff] %v8151_v23  ;;  %9219 = vst [vmem:[#allocation5_spill] sm:$0xff] %v8153_v15  ;;  %v8159_v63 = vpop.f32.mrb[99].mxu0  ;;  %v8161_v24 = vpop.f32.mrb[99].mxu1  ;;  %v5153_v28 = vmax.f32 %v4159_v38, %v5089_v11  ;;  %v9222_v59 = vmax.f32 %v9220_v33, %v9221_v31  ;;  %v5087_v23 = vsel %vm4959_vm15, %v4895_v25, %v5023_v9  ;;  %v5026_v54 = vmul.f32 0.01, %v4898_v18 }
 0x1fe   : > { %v3902_v12 = vadd.f32 %v8175_v62, %v3838_v10  ;;  %v8182_v25 = vld [vmem:[%s8946_s2] ss:$0 sm:$0xff]  ;;  %v9224_v9 = vld [vmem:[#allocation10_spill] sm:$0xff]  ;;  %vm4960_vm5 = vcmp.gt.f32.partialorder %v4896_v49, 0.0  ;;  %v5024_v43 = vmul.f32 0.01, %v4896_v49 }
 0x1ff   : > { %v4157_v15 = vmax.f32 %v9222_v59, %v4093_v29  ;;  %5218 = vst.msk [vmem:[%s8083_s26 + $0x30] sm:$0xff] %vm5211_vm1, %v5153_v28  ;;  %v3843_v38 = vmul.f32 %v8182_v25, %v7823_v14  ;;  %v9223_v11 = vld [vmem:[#allocation99_spill] sm:$0xff]  ;;  %v5090_v10 = vsel %vm4962_vm3, %v4898_v18, %v5026_v54 }
 0x200   : > { %v4837_v61 = vmul.f32 %v8182_v25, %v9223_v11  ;;  %v9225_v28 = vld [vmem:[#allocation11_spill] sm:$0xff]  ;;  %vm3966_vm4 = vcmp.gt.f32.partialorder %v3902_v12, 0.0  ;;  %v4030_v46 = vmul.f32 0.01, %v3902_v12  ;;  %v9230_v11 = vld [vmem:[#allocation102_spill] sm:$0xff] }
 0x201   : > { %v5151_v6 = vmax.f32 %v4157_v15, %v5087_v23  ;;  %v9226_v29 = vmax.f32 %v9224_v9, %v9225_v28  ;;  %v3907_v14 = vadd.f32 %v8175_v62, %v3843_v38  ;;  %v4835_v9 = vmul.f32 %v8182_v25, %v9230_v11  ;;  %v9232_v38 = vld [vmem:[#allocation12_spill] sm:$0xff] }
 0x202   : > { %v8191_v23 = vpop.f32.mrb[100].mxu0  ;;  %v8193_v15 = vpop.f32.mrb[100].mxu1  ;;  %v4901_v31 = vadd.f32 %v8175_v62, %v4837_v61  ;;  %v4094_v54 = vsel %vm3966_vm4, %v3902_v12, %v4030_v46 }
 0x203   : > { %v4160_v33 = vmax.f32 %v9226_v29, %v4096_v19  ;;  %9227 = vst [vmem:[#allocation6_spill] sm:$0xff] %v8191_v23  ;;  %9228 = vst [vmem:[#allocation7_spill] sm:$0xff] %v8193_v15  ;;  %v8199_v59 = vpop.f32.mrb[101].mxu0  ;;  %v8201_v58 = vpop.f32.mrb[101].mxu1  ;;  %v3841_v19 = vmul.f32 %v8182_v25, %v7834_v5  ;;  %v9233_v29 = vld [vmem:[#allocation13_spill] sm:$0xff]  ;;  %v5088_v23 = vsel %vm4960_vm5, %v4896_v49, %v5024_v43  ;;  %vm3971_vm6 = vcmp.gt.f32.partialorder %v3907_v14, 0.0 }
 0x204   : > { %5216 = vst.msk [vmem:[%s8083_s26 + $0x20] sm:$0xff] %vm5211_vm1, %v5151_v6  ;;  %9229 = vst [vmem:[#allocation8_spill] sm:$0xff] %v8199_v59  ;;  %v8207_v6 = vpop.f32.mrb[102].mxu0  ;;  %v8209_v28 = vpop.f32.mrb[102].mxu1  ;;  %v9234_v15 = vmax.f32 %v9232_v38, %v9233_v29  ;;  %v4035_v59 = vmul.f32 0.01, %v3907_v14  ;;  %v4899_v46 = vadd.f32 %v8175_v62, %v4835_v9  ;;  %v3844_v49 = vmul.f32 %v8182_v25, %v7842_v48 }
 0x205   : > { %v5154_v18 = vmax.f32 %v4160_v33, %v5090_v10  ;;  %9231 = vst [vmem:[#allocation9_spill] sm:$0xff] %v8209_v28  ;;  %v8214_v33 = vpop.f32.mrb[103].mxu0  ;;  %v8216_v12 = vpop.f32.mrb[103].mxu1  ;;  %vm4965_vm7 = vcmp.gt.f32.partialorder %v4901_v31, 0.0  ;;  %v5029_v5 = vmul.f32 0.01, %v4901_v31  ;;  %v3905_v10 = vadd.f32 %v8175_v62, %v3841_v19 }
 0x206   : > { %v4158_v61 = vmax.f32 %v9234_v15, %v4094_v54  ;;  %9235 = vst [vmem:[#allocation99_spill] sm:$0xff] %v8216_v12  ;;  %v4099_v28 = vsel %vm3971_vm6, %v3907_v14, %v4035_v59  ;;  %v4838_v15 = vmul.f32 %v8182_v25, %v7844_v45  ;;  %v9236_v43 = vld [vmem:[#allocation14_spill] sm:$0xff]  ;;  %v9237_v54 = vld [vmem:[#allocation15_spill] sm:$0xff]  ;;  %vm4963_vm9 = vcmp.gt.f32.partialorder %v4899_v46, 0.0 }
 0x207   : > { %5219 = vst.msk [vmem:[%s8083_s26 + $0x38] sm:$0xff] %vm5211_vm1, %v5154_v18  ;;  %v9238_v38 = vmax.f32 %v9236_v43, %v9237_v54  ;;  %v5093_v12 = vsel %vm4965_vm7, %v4901_v31, %v5029_v5  ;;  %vm3969_vm8 = vcmp.gt.f32.partialorder %v3905_v10, 0.0  ;;  %v4033_v18 = vmul.f32 0.01, %v3905_v10  ;;  %v9240_v5 = vld [vmem:[#allocation17_spill] sm:$0xff] }
 0x208   : > { %v5152_v11 = vmax.f32 %v4158_v61, %v5088_v23  ;;  %v5027_v19 = vmul.f32 0.01, %v4899_v46  ;;  %v3908_v23 = vadd.f32 %v8175_v62, %v3844_v49  ;;  %v4902_v14 = vadd.f32 %v8175_v62, %v4838_v15  ;;  %v9239_v61 = vld [vmem:[#allocation16_spill] sm:$0xff] }
 0x209   : > { %v4163_v29 = vmax.f32 %v9238_v38, %v4099_v28  ;;  %v4097_v59 = vsel %vm3969_vm8, %v3905_v10, %v4033_v18  ;;  %v3842_v45 = vmul.f32 %v8182_v25, %v7848_v47  ;;  %v4836_v9 = vmul.f32 %v8182_v25, %v7850_v27 }
 0x20a   : > { %5217 = vst.msk [vmem:[%s8083_s26 + $0x28] sm:$0xff] %vm5211_vm1, %v5152_v11  ;;  %v8237_v31 = vpop.f32.mrb[104].mxu0  ;;  %v8239_v28 = vpop.f32.mrb[104].mxu1  ;;  %v9241_v11 = vmax.f32 %v9239_v61, %v9240_v5  ;;  %v5091_v54 = vsel %vm4963_vm9, %v4899_v46, %v5027_v19  ;;  %vm3972_vm10 = vcmp.gt.f32.partialorder %v3908_v23, 0.0  ;;  %v4036_v49 = vmul.f32 0.01, %v3908_v23 }
 0x20b   : > { %v5157_v48 = vmax.f32 %v4163_v29, %v5093_v12  ;;  %v8244_v15 = vpop.f32.mrb[105].mxu0  ;;  %v8246_v12 = vpop.f32.mrb[105].mxu1  ;;  %vm4966_vm11 = vcmp.gt.f32.partialorder %v4902_v14, 0.0  ;;  %v5030_v47 = vmul.f32 0.01, %v4902_v14  ;;  %v3906_v27 = vadd.f32 %v8175_v62, %v3842_v45  ;;  %v9246_v5 = vld [vmem:[#allocation18_spill] sm:$0xff] }
 0x20c   : > { %v4161_v43 = vmax.f32 %v9241_v11, %v4097_v59  ;;  %9242 = vst [vmem:[#allocation10_spill] sm:$0xff] %v8246_v12  ;;  %v4900_v10 = vadd.f32 %v8175_v62, %v4836_v9  ;;  %v8252_v38 = vpop.f32.mrb[106].mxu0  ;;  %v8254_v29 = vpop.f32.mrb[106].mxu1  ;;  %v4100_v18 = vsel %vm3972_vm10, %v3908_v23, %v4036_v49  ;;  %v3847_v19 = vmul.f32 %v8182_v25, %v7881_v56  ;;  %v9247_v45 = vld [vmem:[#allocation19_spill] sm:$0xff]  ;;  %v9249_v49 = vld [vmem:[#allocation108_spill] sm:$0xff] }
 0x20d   : > { %5222 = vst.msk [vmem:[%s8083_s26 + $0x50] sm:$0xff] %vm5211_vm1, %v5157_v48  ;;  %9243 = vst [vmem:[#allocation11_spill] sm:$0xff] %v8254_v29  ;;  %v4841_v59 = vmul.f32 %v8182_v25, %v7883_v0  ;;  %v8260_v48 = vpop.f32.mrb[107].mxu0  ;;  %v8262_v61 = vpop.f32.mrb[107].mxu1  ;;  %v9248_v11 = vmax.f32 %v9246_v5, %v9247_v45  ;;  %v5094_v12 = vsel %vm4966_vm11, %v4902_v14, %v5030_v47  ;;  %vm3970_vm12 = vcmp.gt.f32.partialorder %v3906_v27, 0.0  ;;  %v9251_v14 = vld [vmem:[#allocation20_spill] sm:$0xff] }
 0x20e   : > { %v5155_v46 = vmax.f32 %v4161_v43, %v5091_v54  ;;  %9244 = vst [vmem:[#allocation102_spill] sm:$0xff] %v8260_v48  ;;  %9245 = vst [vmem:[#allocation12_spill] sm:$0xff] %v8262_v61  ;;  %v4034_v29 = vmul.f32 0.01, %v3906_v27  ;;  %vm4964_vm13 = vcmp.gt.f32.partialorder %v4900_v10, 0.0  ;;  %v3911_v56 = vadd.f32 %v8175_v62, %v3847_v19  ;;  %v9250_v48 = vld [vmem:[#allocation109_spill] sm:$0xff] }
 0x20f   : > { %v4164_v9 = vmax.f32 %v9248_v11, %v4100_v18  ;;  %v5028_v23 = vmul.f32 0.01, %v4900_v10  ;;  %v4905_v0 = vadd.f32 %v8175_v62, %v4841_v59  ;;  %v3845_v61 = vmul.f32 %v8182_v25, %v9249_v49  ;;  %v9252_v47 = vld [vmem:[#allocation21_spill] sm:$0xff] }
 0x210   : > { %5220 = vst.msk [vmem:[%s8083_s26 + $0x40] sm:$0xff] %vm5211_vm1, %v5155_v46  ;;  %v4098_v54 = vsel %vm3970_vm12, %v3906_v27, %v4034_v29  ;;  %v4839_v18 = vmul.f32 %v8182_v25, %v9250_v48  ;;  %v9253_v5 = vmax.f32 %v9251_v14, %v9252_v47  ;;  %vm3975_vm14 = vcmp.gt.f32.partialorder %v3911_v56, 0.0  ;;  %v9259_v14 = vld [vmem:[#allocation23_spill] sm:$0xff] }
 0x211   : > { %v5158_v43 = vmax.f32 %v4164_v9, %v5094_v12  ;;  %v5092_v11 = vsel %vm4964_vm13, %v4900_v10, %v5028_v23  ;;  %v4039_v46 = vmul.f32 0.01, %v3911_v56  ;;  %vm4969_vm2 = vcmp.gt.f32.partialorder %v4905_v0, 0.0  ;;  %v9256_v23 = vld [vmem:[#allocation111_spill] sm:$0xff] }
 0x212   : > { %v4162_v45 = vmax.f32 %v9253_v5, %v4098_v54  ;;  %v5033_v19 = vmul.f32 0.01, %v4905_v0  ;;  %v3909_v12 = vadd.f32 %v8175_v62, %v3845_v61  ;;  %v4903_v27 = vadd.f32 %v8175_v62, %v4839_v18  ;;  %v8282_v29 = vpop.f32.mrb[108].mxu0  ;;  %v8284_v59 = vpop.f32.mrb[108].mxu1  ;;  %v9258_v61 = vld [vmem:[#allocation22_spill] sm:$0xff] }
 0x213   : > { %5223 = vst.msk [vmem:[%s8083_s26 + $0x58] sm:$0xff] %vm5211_vm1, %v5158_v43  ;;  %9254 = vst [vmem:[#allocation13_spill] sm:$0xff] %v8282_v29  ;;  %v4103_v9 = vsel %vm3975_vm14, %v3911_v56, %v4039_v46  ;;  %v3848_v10 = vmul.f32 %v8182_v25, %v7895_v35  ;;  %v4842_v54 = vmul.f32 %v8182_v25, %v9256_v23  ;;  %v8290_v43 = vpop.f32.mrb[109].mxu0  ;;  %v8292_v49 = vpop.f32.mrb[109].mxu1 }
 0x214   : > { %9255 = vst [vmem:[#allocation14_spill] sm:$0xff] %v8284_v59  ;;  %v5156_v48 = vmax.f32 %v4162_v45, %v5092_v11  ;;  %9257 = vst [vmem:[#allocation15_spill] sm:$0xff] %v8292_v49  ;;  %v9260_v47 = vmax.f32 %v9258_v61, %v9259_v14  ;;  %v5097_v5 = vsel %vm4969_vm2, %v4905_v0, %v5033_v19  ;;  %vm3973_vm15 = vcmp.gt.f32.partialorder %v3909_v12, 0.0  ;;  %v8297_v59 = vpop.f32.mrb[110].mxu0  ;;  %v8299_v56 = vpop.f32.mrb[110].mxu1  ;;  %v9263_v61 = vld [vmem:[#allocation114_spill] sm:$0xff] }
 0x215   : > { %v4037_v29 = vmul.f32 0.01, %v3909_v12  ;;  %9261 = vst [vmem:[#allocation16_spill] sm:$0xff] %v8297_v59  ;;  %9262 = vst [vmem:[#allocation17_spill] sm:$0xff] %v8299_v56  ;;  %vm4967_vm0 = vcmp.gt.f32.partialorder %v4903_v27, 0.0  ;;  %v3912_v45 = vadd.f32 %v8175_v62, %v3848_v10  ;;  %v4906_v11 = vadd.f32 %v8175_v62, %v4842_v54  ;;  %v8305_v46 = vpop.f32.mrb[111].mxu0 }
 0x216   : > { %v4167_v18 = vmax.f32 %v9260_v47, %v4103_v9  ;;  %5221 = vst.msk [vmem:[%s8083_s26 + $0x48] sm:$0xff] %vm5211_vm1, %v5156_v48  ;;  %v5031_v35 = vmul.f32 0.01, %v4903_v27  ;;  %v8307_v23 = vpop.f32.mrb[111].mxu1  ;;  %v3846_v9 = vmul.f32 %v8182_v25, %v7906_v40  ;;  %v4840_v14 = vmul.f32 %v8182_v25, %v9263_v61  ;;  %v9264_v47 = vld [vmem:[#allocation24_spill] sm:$0xff]  ;;  %v9265_v48 = vld [vmem:[#allocation25_spill] sm:$0xff] }
 0x217   : > { %v4101_v19 = vsel %vm3973_vm15, %v3909_v12, %v4037_v29  ;;  %v9266_v56 = vmax.f32 %v9264_v47, %v9265_v48  ;;  %vm3976_vm3 = vcmp.gt.f32.partialorder %v3912_v45, 0.0  ;;  %v4040_v10 = vmul.f32 0.01, %v3912_v45 }
 0x218   : > { %v5161_v0 = vmax.f32 %v4167_v18, %v5097_v5  ;;  %v5095_v49 = vsel %vm4967_vm0, %v4903_v27, %v5031_v35  ;;  %vm4970_vm4 = vcmp.gt.f32.partialorder %v4906_v11, 0.0  ;;  %v5034_v54 = vmul.f32 0.01, %v4906_v11  ;;  %v9267_v27 = vld [vmem:[#allocation26_spill] sm:$0xff]  ;;  %v9268_v35 = vld [vmem:[#allocation27_spill] sm:$0xff] }
 0x219   : > { %v4165_v59 = vmax.f32 %v9266_v56, %v4101_v19  ;;  %v3910_v12 = vadd.f32 %v8175_v62, %v3846_v9  ;;  %v4904_v29 = vadd.f32 %v8175_v62, %v4840_v14  ;;  %v4104_v18 = vsel %vm3976_vm3, %v3912_v45, %v4040_v10 }
 0x21a   : > { %5226 = vst.msk [vmem:[%s8083_s26 + $0x70] sm:$0xff] %vm5211_vm1, %v5161_v0  ;;  %v3851_v5 = vmul.f32 %v8182_v25, %v7929_v44  ;;  %v4845_v56 = vmul.f32 %v8182_v25, %v7931_v41  ;;  %v9269_v19 = vmax.f32 %v9267_v27, %v9268_v35  ;;  %v5098_v47 = vsel %vm4970_vm4, %v4906_v11, %v5034_v54  ;;  %v8327_v48 = vpop.f32.mrb[112].mxu0 }
 0x21b   : > { %v5159_v40 = vmax.f32 %v4165_v59, %v5095_v49  ;;  %vm3974_vm5 = vcmp.gt.f32.partialorder %v3910_v12, 0.0  ;;  %v4038_v0 = vmul.f32 0.01, %v3910_v12  ;;  %vm4968_vm6 = vcmp.gt.f32.partialorder %v4904_v29, 0.0  ;;  %v8333_v45 = vpop.f32.mrb[112].mxu1  ;;  %v8335_v41 = vpop.f32.mrb[113].mxu0 }
 0x21c   : > { %v4168_v61 = vmax.f32 %v9269_v19, %v4104_v18  ;;  %v5032_v59 = vmul.f32 0.01, %v4904_v29  ;;  %v3915_v49 = vadd.f32 %v8175_v62, %v3851_v5  ;;  %v4909_v44 = vadd.f32 %v8175_v62, %v4845_v56  ;;  %9270 = vst [vmem:[#allocation18_spill] sm:$0xff] %v8335_v41  ;;  %v8341_v54 = vpop.f32.mrb[113].mxu1  ;;  %v9271_v18 = vld [vmem:[#allocation28_spill] sm:$0xff]  ;;  %v9272_v5 = vld [vmem:[#allocation29_spill] sm:$0xff] }
 0x21d   : > { %5224 = vst.msk [vmem:[%s8083_s26 + $0x60] sm:$0xff] %vm5211_vm1, %v5159_v40  ;;  %v4102_v14 = vsel %vm3974_vm5, %v3910_v12, %v4038_v0  ;;  %v3849_v11 = vmul.f32 %v8182_v25, %v7937_v20  ;;  %v4843_v10 = vmul.f32 %v8182_v25, %v7939_v60  ;;  %v8343_v40 = vpop.f32.mrb[114].mxu0  ;;  %v9273_v27 = vmax.f32 %v9271_v18, %v9272_v5  ;;  %v8348_v41 = vpop.f32.mrb[114].mxu1  ;;  %v9277_v18 = vld [vmem:[#allocation30_spill] sm:$0xff]  ;;  %v9278_v5 = vld [vmem:[#allocation31_spill] sm:$0xff] }
 0x21e   : > { %v5162_v9 = vmax.f32 %v4168_v61, %v5098_v47  ;;  %v5096_v35 = vsel %vm4968_vm6, %v4904_v29, %v5032_v59  ;;  %vm3979_vm7 = vcmp.gt.f32.partialorder %v3915_v49, 0.0  ;;  %v4043_v19 = vmul.f32 0.01, %v3915_v49  ;;  %9274 = vst [vmem:[#allocation19_spill] sm:$0xff] %v8348_v41  ;;  %v8350_v12 = vpop.f32.mrb[115].mxu0  ;;  %v8356_v47 = vpop.f32.mrb[115].mxu1 }
 0x21f   : > { %v4166_v56 = vmax.f32 %v9273_v27, %v4102_v14  ;;  %9275 = vst [vmem:[#allocation108_spill] sm:$0xff] %v8350_v12  ;;  %vm4973_vm8 = vcmp.gt.f32.partialorder %v4909_v44, 0.0  ;;  %v5037_v20 = vmul.f32 0.01, %v4909_v44  ;;  %v3913_v60 = vadd.f32 %v8175_v62, %v3849_v11  ;;  %9276 = vst [vmem:[#allocation109_spill] sm:$0xff] %v8356_v47 }
 0x220   : > { %5227 = vst.msk [vmem:[%s8083_s26 + $0x78] sm:$0xff] %vm5211_vm1, %v5162_v9  ;;  %v4907_v61 = vadd.f32 %v8175_v62, %v4843_v10  ;;  %v4107_v14 = vsel %vm3979_vm7, %v3915_v49, %v4043_v19  ;;  %v3852_v29 = vmul.f32 %v8182_v25, %v7945_v53  ;;  %v4846_v59 = vmul.f32 %v8182_v25, %v7947_v42  ;;  %v9281_v19 = vld [vmem:[#allocation121_spill] sm:$0xff] }
 0x221   : > { %v5160_v0 = vmax.f32 %v4166_v56, %v5096_v35  ;;  %v9279_v27 = vmax.f32 %v9277_v18, %v9278_v5  ;;  %v5101_v12 = vsel %vm4973_vm8, %v4909_v44, %v5037_v20  ;;  %vm3977_vm9 = vcmp.gt.f32.partialorder %v3913_v60, 0.0  ;;  %v9280_v35 = vld [vmem:[#allocation120_spill] sm:$0xff]  ;;  %v9283_v18 = vld [vmem:[#allocation33_spill] sm:$0xff] }
 0x222   : > { %v4041_v41 = vmul.f32 0.01, %v3913_v60  ;;  %vm4971_vm10 = vcmp.gt.f32.partialorder %v4907_v61, 0.0  ;;  %v5035_v11 = vmul.f32 0.01, %v4907_v61  ;;  %v3916_v49 = vadd.f32 %v8175_v62, %v3852_v29  ;;  %v8373_v44 = vpop.f32.mrb[116].mxu0 }
 0x223   : > { %v4171_v9 = vmax.f32 %v9279_v27, %v4107_v14  ;;  %5225 = vst.msk [vmem:[%s8083_s26 + $0x68] sm:$0xff] %vm5211_vm1, %v5160_v0  ;;  %v4910_v10 = vadd.f32 %v8175_v62, %v4846_v59  ;;  %v3850_v42 = vmul.f32 %v8182_v25, %v9280_v35  ;;  %v4844_v14 = vmul.f32 %v8182_v25, %v9281_v19  ;;  %v9282_v20 = vld [vmem:[#allocation32_spill] sm:$0xff]  ;;  %v8378_v29 = vpop.f32.mrb[116].mxu1  ;;  %v8380_v59 = vpop.f32.mrb[117].mxu0 }
 0x224   : > { %v4105_v56 = vsel %vm3977_vm9, %v3913_v60, %v4041_v41  ;;  %v9284_v0 = vmax.f32 %v9282_v20, %v9283_v18  ;;  %v5099_v27 = vsel %vm4971_vm10, %v4907_v61, %v5035_v11  ;;  %vm3980_vm11 = vcmp.gt.f32.partialorder %v3916_v49, 0.0  ;;  %9285 = vst [vmem:[#allocation20_spill] sm:$0xff] %v8380_v59  ;;  %v8388_v35 = vpop.f32.mrb[118].mxu0  ;;  %v9287_v18 = vld [vmem:[#allocation34_spill] sm:$0xff] }
 0x225   : > { %v5165_v53 = vmax.f32 %v4171_v9, %v5101_v12  ;;  %v4044_v47 = vmul.f32 0.01, %v3916_v49  ;;  %vm4974_vm12 = vcmp.gt.f32.partialorder %v4910_v10, 0.0  ;;  %v5038_v41 = vmul.f32 0.01, %v4910_v10  ;;  %v8386_v9 = vpop.f32.mrb[117].mxu1 }
 0x226   : > { %v4169_v5 = vmax.f32 %v9284_v0, %v4105_v56  ;;  %v3914_v12 = vadd.f32 %v8175_v62, %v3850_v42  ;;  %v4908_v60 = vadd.f32 %v8175_v62, %v4844_v14  ;;  %9286 = vst [vmem:[#allocation21_spill] sm:$0xff] %v8388_v35  ;;  %v3855_v56 = vmul.f32 %v8182_v25, %v7982_v57  ;;  %v8396_v20 = vpop.f32.mrb[119].mxu0  ;;  %v9288_v42 = vld [vmem:[#allocation35_spill] sm:$0xff] }
 0x227   : > { %5230 = vst.msk [vmem:[%s8083_s26 + $0x90] sm:$0xff] %vm5211_vm1, %v5165_v53  ;;  %v4108_v11 = vsel %vm3980_vm11, %v3916_v49, %v4044_v47  ;;  %v4849_v19 = vmul.f32 %v8182_v25, %v7984_v34  ;;  %v8394_v53 = vpop.f32.mrb[118].mxu1  ;;  %v9289_v0 = vmax.f32 %v9287_v18, %v9288_v42  ;;  %v5102_v59 = vsel %vm4974_vm12, %v4910_v10, %v5038_v41  ;;  %v9291_v41 = vld [vmem:[#allocation36_spill] sm:$0xff] }
 0x228   : > { %v5163_v61 = vmax.f32 %v4169_v5, %v5099_v27  ;;  %vm3978_vm13 = vcmp.gt.f32.partialorder %v3914_v12, 0.0  ;;  %v4042_v35 = vmul.f32 0.01, %v3914_v12  ;;  %v8401_v5 = vpop.f32.mrb[119].mxu1  ;;  %vm4972_vm14 = vcmp.gt.f32.partialorder %v4908_v60, 0.0 }
 0x229   : > { %v4172_v14 = vmax.f32 %v9289_v0, %v4108_v11  ;;  %9290 = vst [vmem:[#allocation111_spill] sm:$0xff] %v8401_v5  ;;  %v5036_v57 = vmul.f32 0.01, %v4908_v60  ;;  %v3919_v34 = vadd.f32 %v8175_v62, %v3855_v56  ;;  %v4913_v47 = vadd.f32 %v8175_v62, %v4849_v19  ;;  %v9292_v11 = vld [vmem:[#allocation37_spill] sm:$0xff] }
 0x22a   : > { %5228 = vst.msk [vmem:[%s8083_s26 + $0x80] sm:$0xff] %vm5211_vm1, %v5163_v61  ;;  %v4106_v27 = vsel %vm3978_vm13, %v3914_v12, %v4042_v35  ;;  %v3853_v18 = vmul.f32 %v8182_v25, %v7988_v51  ;;  %v4847_v10 = vmul.f32 %v8182_v25, %v7990_v39  ;;  %v9293_v42 = vmax.f32 %v9291_v41, %v9292_v11  ;;  %v8418_v51 = vpop.f32.mrb[120].mxu0 }
 0x22b   : > { %v5166_v49 = vmax.f32 %v4172_v14, %v5102_v59  ;;  %v5100_v5 = vsel %vm4972_vm14, %v4908_v60, %v5036_v57  ;;  %vm3983_vm2 = vcmp.gt.f32.partialorder %v3919_v34, 0.0  ;;  %v4047_v61 = vmul.f32 0.01, %v3919_v34  ;;  %v8424_v14 = vpop.f32.mrb[120].mxu1  ;;  %v8426_v57 = vpop.f32.mrb[121].mxu0 }
 0x22c   : > { %v4170_v0 = vmax.f32 %v9293_v42, %v4106_v27  ;;  %vm4977_vm15 = vcmp.gt.f32.partialorder %v4913_v47, 0.0  ;;  %v5041_v56 = vmul.f32 0.01, %v4913_v47  ;;  %v3917_v59 = vadd.f32 %v8175_v62, %v3853_v18  ;;  %9294 = vst [vmem:[#allocation22_spill] sm:$0xff] %v8426_v57  ;;  %v9296_v27 = vld [vmem:[#allocation39_spill] sm:$0xff]  ;;  %v8431_v42 = vpop.f32.mrb[121].mxu1 }
 0x22d   : > { %5231 = vst.msk [vmem:[%s8083_s26 + $0x98] sm:$0xff] %vm5211_vm1, %v5166_v49  ;;  %v4911_v12 = vadd.f32 %v8175_v62, %v4847_v10  ;;  %v4111_v39 = vsel %vm3983_vm2, %v3919_v34, %v4047_v61  ;;  %v3856_v19 = vmul.f32 %v8182_v25, %v7997_v21  ;;  %v4850_v60 = vmul.f32 %v8182_v25, %v7999_v13  ;;  %v9295_v49 = vld [vmem:[#allocation38_spill] sm:$0xff] }
 0x22e   : > { %v5164_v35 = vmax.f32 %v4170_v0, %v5100_v5  ;;  %v9297_v41 = vmax.f32 %v9295_v49, %v9296_v27  ;;  %v5105_v11 = vsel %vm4977_vm15, %v4913_v47, %v5041_v56  ;;  %vm3981_vm0 = vcmp.gt.f32.partialorder %v3917_v59, 0.0  ;;  %9298 = vst [vmem:[#allocation23_spill] sm:$0xff] %v8431_v42  ;;  %v8433_v5 = vpop.f32.mrb[122].mxu0  ;;  %v8439_v0 = vpop.f32.mrb[122].mxu1  ;;  %v9300_v49 = vld [vmem:[#allocation128_spill] sm:$0xff] }
 0x22f   : > { %v4045_v10 = vmul.f32 0.01, %v3917_v59  ;;  %9299 = vst [vmem:[#allocation114_spill] sm:$0xff] %v8433_v5  ;;  %vm4975_vm3 = vcmp.gt.f32.partialorder %v4911_v12, 0.0  ;;  %v5039_v13 = vmul.f32 0.01, %v4911_v12  ;;  %v3920_v21 = vadd.f32 %v8175_v62, %v3856_v19 }
 0x230   : > { %v4175_v18 = vmax.f32 %v9297_v41, %v4111_v39  ;;  %5229 = vst.msk [vmem:[%s8083_s26 + $0x88] sm:$0xff] %vm5211_vm1, %v5164_v35  ;;  %v4914_v34 = vadd.f32 %v8175_v62, %v4850_v60  ;;  %v8441_v61 = vpop.f32.mrb[123].mxu0  ;;  %v3854_v39 = vmul.f32 %v8182_v25, %v8010_v2  ;;  %v4848_v27 = vmul.f32 %v8182_v25, %v9300_v49  ;;  %v8447_v35 = vpop.f32.mrb[123].mxu1  ;;  %v9302_v41 = vld [vmem:[#allocation40_spill] sm:$0xff]  ;;  %v9303_v5 = vld [vmem:[#allocation41_spill] sm:$0xff] }
 0x231   : > { %v4109_v56 = vsel %vm3981_vm0, %v3917_v59, %v4045_v10  ;;  %9301 = vst [vmem:[#allocation24_spill] sm:$0xff] %v8447_v35  ;;  %v9304_v42 = vmax.f32 %v9302_v41, %v9303_v5  ;;  %v5103_v57 = vsel %vm4975_vm3, %v4911_v12, %v5039_v13  ;;  %vm3984_vm4 = vcmp.gt.f32.partialorder %v3920_v21, 0.0  ;;  %v9305_v12 = vld [vmem:[#allocation42_spill] sm:$0xff]  ;;  %v9306_v5 = vld [vmem:[#allocation43_spill] sm:$0xff] }
 0x232   : > { %v5169_v47 = vmax.f32 %v4175_v18, %v5105_v11  ;;  %v4048_v60 = vmul.f32 0.01, %v3920_v21  ;;  %vm4978_vm5 = vcmp.gt.f32.partialorder %v4914_v34, 0.0  ;;  %v5042_v59 = vmul.f32 0.01, %v4914_v34  ;;  %v8463_v35 = vpop.f32.mrb[124].mxu0 }
 0x233   : > { %v4173_v19 = vmax.f32 %v9304_v42, %v4109_v56  ;;  %v3918_v18 = vadd.f32 %v8175_v62, %v3854_v39  ;;  %v4912_v2 = vadd.f32 %v8175_v62, %v4848_v27  ;;  %v3859_v49 = vmul.f32 %v8182_v25, %v8040_v4  ;;  %v8469_v39 = vpop.f32.mrb[124].mxu1 }
 0x234   : > { %5234 = vst.msk [vmem:[%s8083_s26 + $0xb0] sm:$0xff] %vm5211_vm1, %v5169_v47  ;;  %v4112_v10 = vsel %vm3984_vm4, %v3920_v21, %v4048_v60  ;;  %v4853_v42 = vmul.f32 %v8182_v25, %v8042_v17  ;;  %v9307_v13 = vmax.f32 %v9305_v12, %v9306_v5  ;;  %v5106_v41 = vsel %vm4978_vm5, %v4914_v34, %v5042_v59  ;;  %v8471_v17 = vpop.f32.mrb[125].mxu0  ;;  %v9310_v60 = vld [vmem:[#allocation134_spill] sm:$0xff]  ;;  %v9312_v12 = vld [vmem:[#allocation45_spill] sm:$0xff] }
 0x235   : > { %v5167_v11 = vmax.f32 %v4173_v19, %v5103_v57  ;;  %vm3982_vm6 = vcmp.gt.f32.partialorder %v3918_v18, 0.0  ;;  %v4046_v47 = vmul.f32 0.01, %v3918_v18  ;;  %vm4976_vm7 = vcmp.gt.f32.partialorder %v4912_v2, 0.0  ;;  %9308 = vst [vmem:[#allocation25_spill] sm:$0xff] %v8469_v39  ;;  %9309 = vst [vmem:[#allocation26_spill] sm:$0xff] %v8471_v17 }
 0x236   : > { %v4176_v56 = vmax.f32 %v9307_v13, %v4112_v10  ;;  %v5040_v57 = vmul.f32 0.01, %v4912_v2  ;;  %v3923_v21 = vadd.f32 %v8175_v62, %v3859_v49  ;;  %v4917_v4 = vadd.f32 %v8175_v62, %v4853_v42  ;;  %v8479_v10 = vpop.f32.mrb[126].mxu0  ;;  %v9311_v49 = vld [vmem:[#allocation44_spill] sm:$0xff] }
 0x237   : > { %5232 = vst.msk [vmem:[%s8083_s26 + $0xa0] sm:$0xff] %vm5211_vm1, %v5167_v11  ;;  %v4110_v19 = vsel %vm3982_vm6, %v3918_v18, %v4046_v47  ;;  %v3857_v34 = vmul.f32 %v8182_v25, %v8052_v36  ;;  %v4851_v59 = vmul.f32 %v8182_v25, %v9310_v60  ;;  %v8477_v11 = vpop.f32.mrb[125].mxu1  ;;  %v9313_v5 = vmax.f32 %v9311_v49, %v9312_v12  ;;  %v8486_v18 = vpop.f32.mrb[127].mxu0  ;;  %v9315_v49 = vld [vmem:[#allocation46_spill] sm:$0xff]  ;;  %v9316_v12 = vld [vmem:[#allocation47_spill] sm:$0xff] }
 0x238   : > { %v5170_v27 = vmax.f32 %v4176_v56, %v5106_v41  ;;  %v5104_v13 = vsel %vm4976_vm7, %v4912_v2, %v5040_v57  ;;  %vm3987_vm8 = vcmp.gt.f32.partialorder %v3923_v21, 0.0  ;;  %v4051_v39 = vmul.f32 0.01, %v3923_v21  ;;  %v8484_v17 = vpop.f32.mrb[126].mxu1  ;;  %9314 = vst [vmem:[#allocation27_spill] sm:$0xff] %v8486_v18 }
 0x239   : > { %v4174_v42 = vmax.f32 %v9313_v5, %v4110_v19  ;;  %vm4981_vm9 = vcmp.gt.f32.partialorder %v4917_v4, 0.0  ;;  %v5045_v36 = vmul.f32 0.01, %v4917_v4  ;;  %v3921_v56 = vadd.f32 %v8175_v62, %v3857_v34  ;;  %v8492_v47 = vpop.f32.mrb[127].mxu1 }
 0x23a   : > { %5235 = vst.msk [vmem:[%s8083_s26 + $0xb8] sm:$0xff] %vm5211_vm1, %v5170_v27  ;;  %v4915_v41 = vadd.f32 %v8175_v62, %v4851_v59  ;;  %v4115_v19 = vsel %vm3987_vm8, %v3923_v21, %v4051_v39  ;;  %v3860_v2 = vmul.f32 %v8182_v25, %v8060_v50  ;;  %v4854_v57 = vmul.f32 %v8182_v25, %v8062_v55 }
 0x23b   : > { %v5168_v60 = vmax.f32 %v4174_v42, %v5104_v13  ;;  %v9317_v5 = vmax.f32 %v9315_v49, %v9316_v12  ;;  %v5109_v18 = vsel %vm4981_vm9, %v4917_v4, %v5045_v36  ;;  %vm3985_vm10 = vcmp.gt.f32.partialorder %v3921_v56, 0.0  ;;  %v9318_v4 = vld [vmem:[#allocation48_spill] sm:$0xff]  ;;  %v9319_v36 = vld [vmem:[#allocation49_spill] sm:$0xff] }
 0x23c   : > { %v4049_v34 = vmul.f32 0.01, %v3921_v56  ;;  %vm4979_vm11 = vcmp.gt.f32.partialorder %v4915_v41, 0.0  ;;  %v5043_v59 = vmul.f32 0.01, %v4915_v41  ;;  %v3924_v21 = vadd.f32 %v8175_v62, %v3860_v2 }
 0x23d   : > { %v4179_v27 = vmax.f32 %v9317_v5, %v4115_v19  ;;  %5233 = vst.msk [vmem:[%s8083_s26 + $0xa8] sm:$0xff] %vm5211_vm1, %v5168_v60  ;;  %v4918_v39 = vadd.f32 %v8175_v62, %v4854_v57  ;;  %v3858_v55 = vmul.f32 %v8182_v25, %v8068_v8  ;;  %v4852_v13 = vmul.f32 %v8182_v25, %v8070_v1 }
 0x23e   : > { %v4113_v42 = vsel %vm3985_vm10, %v3921_v56, %v4049_v34  ;;  %v9320_v19 = vmax.f32 %v9318_v4, %v9319_v36  ;;  %v5107_v12 = vsel %vm4979_vm11, %v4915_v41, %v5043_v59  ;;  %vm3988_vm12 = vcmp.gt.f32.partialorder %v3924_v21, 0.0  ;;  %v9321_v41 = vld [vmem:[#allocation50_spill] sm:$0xff]  ;;  %v9324_v36 = vld [vmem:[#allocation136_spill] sm:$0xff] }
 0x23f   : > { %v5173_v50 = vmax.f32 %v4179_v27, %v5109_v18  ;;  %v4052_v60 = vmul.f32 0.01, %v3924_v21  ;;  %vm4982_vm13 = vcmp.gt.f32.partialorder %v4918_v39, 0.0  ;;  %v5046_v2 = vmul.f32 0.01, %v4918_v39  ;;  %v9322_v27 = vld [vmem:[#allocation51_spill] sm:$0xff] }
 0x240   : > { %v4177_v49 = vmax.f32 %v9320_v19, %v4113_v42  ;;  %v3922_v18 = vadd.f32 %v8175_v62, %v3858_v55  ;;  %v4916_v56 = vadd.f32 %v8175_v62, %v4852_v13  ;;  %v3863_v1 = vmul.f32 %v8182_v25, %v8091_v16 }
 0x241   : > { %5238 = vst.msk [vmem:[%s8083_s26 + $0xd0] sm:$0xff] %vm5211_vm1, %v5173_v50  ;;  %v4116_v57 = vsel %vm3988_vm12, %v3924_v21, %v4052_v60  ;;  %v4857_v5 = vmul.f32 %v8182_v25, %v8093_v30  ;;  %v9323_v34 = vmax.f32 %v9321_v41, %v9322_v27  ;;  %v5110_v42 = vsel %vm4982_vm13, %v4918_v39, %v5046_v2  ;;  %v9325_v39 = vld [vmem:[#allocation52_spill] sm:$0xff]  ;;  %v9328_v27 = vld [vmem:[#allocation137_spill] sm:$0xff] }
 0x242   : > { %v5171_v8 = vmax.f32 %v4177_v49, %v5107_v12  ;;  %vm3986_vm14 = vcmp.gt.f32.partialorder %v3922_v18, 0.0  ;;  %v4050_v50 = vmul.f32 0.01, %v3922_v18  ;;  %vm4980_vm2 = vcmp.gt.f32.partialorder %v4916_v56, 0.0  ;;  %v9326_v49 = vld [vmem:[#allocation53_spill] sm:$0xff] }
 0x243   : > { %v4180_v59 = vmax.f32 %v9323_v34, %v4116_v57  ;;  %v5044_v55 = vmul.f32 0.01, %v4916_v56  ;;  %v3927_v21 = vadd.f32 %v8175_v62, %v3863_v1  ;;  %v4921_v13 = vadd.f32 %v8175_v62, %v4857_v5 }
 0x244   : > { %5236 = vst.msk [vmem:[%s8083_s26 + $0xc0] sm:$0xff] %vm5211_vm1, %v5171_v8  ;;  %v4114_v4 = vsel %vm3986_vm14, %v3922_v18, %v4050_v50  ;;  %v3861_v30 = vmul.f32 %v8182_v25, %v8098_v52  ;;  %v4855_v19 = vmul.f32 %v8182_v25, %v9324_v36  ;;  %v9327_v12 = vmax.f32 %v9325_v39, %v9326_v49  ;;  %v9333_v49 = vld [vmem:[#allocation57_spill] sm:$0xff] }
 0x245   : > { %v5174_v16 = vmax.f32 %v4180_v59, %v5110_v42  ;;  %v5108_v2 = vsel %vm4980_vm2, %v4916_v56, %v5044_v55  ;;  %vm3991_vm15 = vcmp.gt.f32.partialorder %v3927_v21, 0.0  ;;  %v4055_v8 = vmul.f32 0.01, %v3927_v21  ;;  %v9329_v56 = vld [vmem:[#allocation54_spill] sm:$0xff]  ;;  %v9330_v59 = vld [vmem:[#allocation55_spill] sm:$0xff] }
 0x246   : > { %v4178_v60 = vmax.f32 %v9327_v12, %v4114_v4  ;;  %vm4985_vm0 = vcmp.gt.f32.partialorder %v4921_v13, 0.0  ;;  %v5049_v57 = vmul.f32 0.01, %v4921_v13  ;;  %v3925_v18 = vadd.f32 %v8175_v62, %v3861_v30 }
 0x247   : > { %5239 = vst.msk [vmem:[%s8083_s26 + $0xd8] sm:$0xff] %vm5211_vm1, %v5174_v16  ;;  %v4919_v1 = vadd.f32 %v8175_v62, %v4855_v19  ;;  %v4119_v5 = vsel %vm3991_vm15, %v3927_v21, %v4055_v8  ;;  %v3864_v41 = vmul.f32 %v8182_v25, %v8106_v32  ;;  %v4858_v34 = vmul.f32 %v8182_v25, %v9328_v27 }
 0x248   : > { %v5172_v52 = vmax.f32 %v4178_v60, %v5108_v2  ;;  %v9331_v42 = vmax.f32 %v9329_v56, %v9330_v59  ;;  %v5113_v55 = vsel %vm4985_vm0, %v4921_v13, %v5049_v57  ;;  %vm3989_vm3 = vcmp.gt.f32.partialorder %v3925_v18, 0.0  ;;  %v9332_v13 = vld [vmem:[#allocation56_spill] sm:$0xff] }
 0x249   : > { %v4053_v16 = vmul.f32 0.01, %v3925_v18  ;;  %vm4983_vm4 = vcmp.gt.f32.partialorder %v4919_v1, 0.0  ;;  %v5047_v4 = vmul.f32 0.01, %v4919_v1  ;;  %v3928_v21 = vadd.f32 %v8175_v62, %v3864_v41  ;;  %v9335_v41 = vld [vmem:[#allocation3_spill] sm:$0xff] }
 0x24a   : > { %v4183_v50 = vmax.f32 %v9331_v42, %v4119_v5  ;;  %5237 = vst.msk [vmem:[%s8083_s26 + $0xc8] sm:$0xff] %vm5211_vm1, %v5172_v52  ;;  %v4922_v30 = vadd.f32 %v8175_v62, %v4858_v34  ;;  %v3862_v19 = vmul.f32 %v8182_v25, %v8114_v26  ;;  %v4856_v39 = vmul.f32 %v8182_v25, %v8116_v7  ;;  %v9337_v34 = vld [vmem:[#allocation59_spill] sm:$0xff] }
 0x24b   : > { %v4117_v36 = vsel %vm3989_vm3, %v3925_v18, %v4053_v16  ;;  %v9334_v12 = vmax.f32 %v9332_v13, %v9333_v49  ;;  %v5111_v2 = vsel %vm4983_vm4, %v4919_v1, %v5047_v4  ;;  %vm3992_vm5 = vcmp.gt.f32.partialorder %v3928_v21, 0.0  ;;  %v9336_v1 = vld [vmem:[#allocation58_spill] sm:$0xff] }
 0x24c   : > { %v5177_v32 = vmax.f32 %v4183_v50, %v5113_v55  ;;  %v4056_v8 = vmul.f32 0.01, %v3928_v21  ;;  %vm4986_vm6 = vcmp.gt.f32.partialorder %v4922_v30, 0.0  ;;  %v5050_v57 = vmul.f32 0.01, %v4922_v30 }
 0x24d   : > { %v4181_v60 = vmax.f32 %v9334_v12, %v4117_v36  ;;  %v3926_v18 = vadd.f32 %v8175_v62, %v3862_v19  ;;  %v4920_v52 = vadd.f32 %v8175_v62, %v4856_v39  ;;  %v3867_v7 = vmul.f32 %v8182_v25, %v8136_v3  ;;  %v9340_v19 = vld [vmem:[#allocation61_spill] sm:$0xff] }
 0x24e   : > { %5242 = vst.msk [vmem:[%s8083_s26 + $0xf0] sm:$0xff] %vm5211_vm1, %v5177_v32  ;;  %v4120_v5 = vsel %vm3992_vm5, %v3928_v21, %v4056_v8  ;;  %v4861_v27 = vmul.f32 %v8182_v25, %v9335_v41  ;;  %v9338_v56 = vmax.f32 %v9336_v1, %v9337_v34  ;;  %v5114_v42 = vsel %vm4986_vm6, %v4922_v30, %v5050_v57  ;;  %v9339_v30 = vld [vmem:[#allocation60_spill] sm:$0xff] }
 0x24f   : > { %v5175_v26 = vmax.f32 %v4181_v60, %v5111_v2  ;;  %vm3990_vm7 = vcmp.gt.f32.partialorder %v3926_v18, 0.0  ;;  %v4054_v50 = vmul.f32 0.01, %v3926_v18  ;;  %vm4984_vm8 = vcmp.gt.f32.partialorder %v4920_v52, 0.0 }
 0x250   : > { %v4184_v59 = vmax.f32 %v9338_v56, %v4120_v5  ;;  %v5048_v55 = vmul.f32 0.01, %v4920_v52  ;;  %v3931_v16 = vadd.f32 %v8175_v62, %v3867_v7  ;;  %v4925_v4 = vadd.f32 %v8175_v62, %v4861_v27  ;;  %v9345_v7 = vld [vmem:[#allocation63_spill] sm:$0xff] }
 0x251   : > { %5240 = vst.msk [vmem:[%s8083_s26 + $0xe0] sm:$0xff] %vm5211_vm1, %v5175_v26  ;;  %v4118_v21 = vsel %vm3990_vm7, %v3926_v18, %v4054_v50  ;;  %v3865_v32 = vmul.f32 %v8182_v25, %v8144_v22  ;;  %v4859_v36 = vmul.f32 %v8182_v25, %v8146_v37  ;;  %v9341_v39 = vmax.f32 %v9339_v30, %v9340_v19  ;;  %v9342_v18 = vld [vmem:[#allocation4_spill] sm:$0xff]  ;;  %v9343_v26 = vld [vmem:[#allocation5_spill] sm:$0xff] }
 0x252   : > { %v5178_v3 = vmax.f32 %v4184_v59, %v5114_v42  ;;  %v5112_v49 = vsel %vm4984_vm8, %v4920_v52, %v5048_v55  ;;  %vm3995_vm9 = vcmp.gt.f32.partialorder %v3931_v16, 0.0  ;;  %v4059_v12 = vmul.f32 0.01, %v3931_v16  ;;  %v9344_v52 = vld [vmem:[#allocation62_spill] sm:$0xff] }
 0x253   : > { %v4182_v13 = vmax.f32 %v9341_v39, %v4118_v21  ;;  %vm4989_vm10 = vcmp.gt.f32.partialorder %v4925_v4, 0.0  ;;  %v5053_v60 = vmul.f32 0.01, %v4925_v4  ;;  %v3929_v2 = vadd.f32 %v8175_v62, %v3865_v32  ;;  %v9348_v21 = vld [vmem:[#allocation65_spill] sm:$0xff] }
 0x254   : > { %5243 = vst.msk [vmem:[%s8083_s26 + $0xf8] sm:$0xff] %vm5211_vm1, %v5178_v3  ;;  %v4923_v8 = vadd.f32 %v8175_v62, %v4859_v36  ;;  %v4123_v57 = vsel %vm3995_vm9, %v3931_v16, %v4059_v12  ;;  %v3868_v37 = vmul.f32 %v8182_v25, %v9342_v18  ;;  %v4862_v5 = vmul.f32 %v8182_v25, %v9343_v26 }
 0x255   : > { %v5176_v22 = vmax.f32 %v4182_v13, %v5112_v49  ;;  %v9346_v41 = vmax.f32 %v9344_v52, %v9345_v7  ;;  %v5117_v1 = vsel %vm4989_vm10, %v4925_v4, %v5053_v60  ;;  %vm3993_vm11 = vcmp.gt.f32.partialorder %v3929_v2, 0.0  ;;  %v9347_v4 = vld [vmem:[#allocation64_spill] sm:$0xff]  ;;  %v9350_v60 = vld [vmem:[#allocation6_spill] sm:$0xff] }
 0x256   : > { %v4057_v34 = vmul.f32 0.01, %v3929_v2  ;;  %vm4987_vm12 = vcmp.gt.f32.partialorder %v4923_v8, 0.0  ;;  %v5051_v56 = vmul.f32 0.01, %v4923_v8  ;;  %v3932_v59 = vadd.f32 %v8175_v62, %v3868_v37 }
 0x257   : > { %v4187_v27 = vmax.f32 %v9346_v41, %v4123_v57  ;;  %5241 = vst.msk [vmem:[%s8083_s26 + $0xe8] sm:$0xff] %vm5211_vm1, %v5176_v22  ;;  %v4926_v42 = vadd.f32 %v8175_v62, %v4862_v5  ;;  %v3866_v16 = vmul.f32 %v8182_v25, %v8159_v63  ;;  %v4860_v3 = vmul.f32 %v8182_v25, %v8161_v24  ;;  %v9353_v57 = vld [vmem:[#allocation67_spill] sm:$0xff] }
 0x258   : > { %v4121_v55 = vsel %vm3993_vm11, %v3929_v2, %v4057_v34  ;;  %v9349_v32 = vmax.f32 %v9347_v4, %v9348_v21  ;;  %v5115_v30 = vsel %vm4987_vm12, %v4923_v8, %v5051_v56  ;;  %vm3996_vm13 = vcmp.gt.f32.partialorder %v3932_v59, 0.0  ;;  %v9351_v2 = vld [vmem:[#allocation7_spill] sm:$0xff]  ;;  %v9352_v8 = vld [vmem:[#allocation66_spill] sm:$0xff]  ;;  %v9355_v34 = vld [vmem:[#allocation8_spill] sm:$0xff] }
 0x259   : > { %v5181_v50 = vmax.f32 %v4187_v27, %v5117_v1  ;;  %v4060_v19 = vmul.f32 0.01, %v3932_v59  ;;  %vm4990_vm14 = vcmp.gt.f32.partialorder %v4926_v42, 0.0  ;;  %v5054_v39 = vmul.f32 0.01, %v4926_v42 }
 0x25a   : > { %v4185_v36 = vmax.f32 %v9349_v32, %v4121_v55  ;;  %v3930_v13 = vadd.f32 %v8175_v62, %v3866_v16  ;;  %v4924_v49 = vadd.f32 %v8175_v62, %v4860_v3  ;;  %v3871_v24 = vmul.f32 %v8182_v25, %v9350_v60 }
 0x25b   : > { %5246 = vst.msk [vmem:[%s8083_s26 + $0x110] sm:$0xff] %vm5211_vm1, %v5181_v50  ;;  %v4124_v12 = vsel %vm3996_vm13, %v3932_v59, %v4060_v19  ;;  %v4865_v22 = vmul.f32 %v8182_v25, %v9351_v2  ;;  %v9354_v18 = vmax.f32 %v9352_v8, %v9353_v57  ;;  %v5118_v26 = vsel %vm4990_vm14, %v4926_v42, %v5054_v39  ;;  %v9356_v42 = vld [vmem:[#allocation68_spill] sm:$0xff]  ;;  %v9357_v50 = vld [vmem:[#allocation69_spill] sm:$0xff] }
 0x25c   : > { %v5179_v63 = vmax.f32 %v4185_v36, %v5115_v30  ;;  %vm3994_vm2 = vcmp.gt.f32.partialorder %v3930_v13, 0.0  ;;  %v4058_v5 = vmul.f32 0.01, %v3930_v13  ;;  %vm4988_vm15 = vcmp.gt.f32.partialorder %v4924_v49, 0.0  ;;  %v9359_v39 = vld [vmem:[#allocation9_spill] sm:$0xff] }
 0x25d   : > { %v4188_v37 = vmax.f32 %v9354_v18, %v4124_v12  ;;  %v5052_v52 = vmul.f32 0.01, %v4924_v49  ;;  %v3935_v7 = vadd.f32 %v8175_v62, %v3871_v24  ;;  %v4929_v41 = vadd.f32 %v8175_v62, %v4865_v22 }
 0x25e   : > { %5244 = vst.msk [vmem:[%s8083_s26 + $0x100] sm:$0xff] %vm5211_vm1, %v5179_v63  ;;  %v4122_v1 = vsel %vm3994_vm2, %v3930_v13, %v4058_v5  ;;  %v3869_v56 = vmul.f32 %v8182_v25, %v9355_v34  ;;  %v4863_v59 = vmul.f32 %v8182_v25, %v8201_v58  ;;  %v9358_v55 = vmax.f32 %v9356_v42, %v9357_v50  ;;  %v9361_v63 = vld [vmem:[#allocation71_spill] sm:$0xff] }
 0x25f   : > { %v5182_v27 = vmax.f32 %v4188_v37, %v5118_v26  ;;  %v5116_v3 = vsel %vm4988_vm15, %v4924_v49, %v5052_v52  ;;  %vm3999_vm0 = vcmp.gt.f32.partialorder %v3935_v7, 0.0  ;;  %v4063_v4 = vmul.f32 0.01, %v3935_v7  ;;  %v9360_v49 = vld [vmem:[#allocation70_spill] sm:$0xff]  ;;  %v9363_v26 = vld [vmem:[#allocation99_spill] sm:$0xff]  ;;  %v9364_v52 = vld [vmem:[#allocation72_spill] sm:$0xff] }
 0x260   : > { %v4186_v16 = vmax.f32 %v9358_v55, %v4122_v1  ;;  %vm4993_vm3 = vcmp.gt.f32.partialorder %v4929_v41, 0.0  ;;  %v5057_v21 = vmul.f32 0.01, %v4929_v41  ;;  %v3933_v32 = vadd.f32 %v8175_v62, %v3869_v56 }
 0x261   : > { %5247 = vst.msk [vmem:[%s8083_s26 + $0x118] sm:$0xff] %vm5211_vm1, %v5182_v27  ;;  %v4927_v36 = vadd.f32 %v8175_v62, %v4863_v59  ;;  %v4127_v19 = vsel %vm3999_vm0, %v3935_v7, %v4063_v4  ;;  %v3872_v58 = vmul.f32 %v8182_v25, %v8207_v6  ;;  %v4866_v13 = vmul.f32 %v8182_v25, %v9359_v39  ;;  %v9365_v7 = vld [vmem:[#allocation73_spill] sm:$0xff]  ;;  %v9368_v4 = vld [vmem:[#allocation75_spill] sm:$0xff] }
 0x262   : > { %v5180_v30 = vmax.f32 %v4186_v16, %v5116_v3  ;;  %v9362_v12 = vmax.f32 %v9360_v49, %v9361_v63  ;;  %v5121_v24 = vsel %vm4993_vm3, %v4929_v41, %v5057_v21  ;;  %vm3997_vm4 = vcmp.gt.f32.partialorder %v3933_v32, 0.0  ;;  %v9367_v3 = vld [vmem:[#allocation74_spill] sm:$0xff] }
 0x263   : > { %v4061_v2 = vmul.f32 0.01, %v3933_v32  ;;  %vm4991_vm5 = vcmp.gt.f32.partialorder %v4927_v36, 0.0  ;;  %v5055_v22 = vmul.f32 0.01, %v4927_v36  ;;  %v3936_v8 = vadd.f32 %v8175_v62, %v3872_v58  ;;  %v9370_v49 = vld [vmem:[#allocation10_spill] sm:$0xff] }
 0x264   : > { %v4191_v60 = vmax.f32 %v9362_v12, %v4127_v19  ;;  %5245 = vst.msk [vmem:[%s8083_s26 + $0x108] sm:$0xff] %vm5211_vm1, %v5180_v30  ;;  %v4930_v57 = vadd.f32 %v8175_v62, %v4866_v13  ;;  %v3870_v37 = vmul.f32 %v8182_v25, %v8214_v33  ;;  %v4864_v5 = vmul.f32 %v8182_v25, %v9363_v26  ;;  %v9371_v12 = vld [vmem:[#allocation76_spill] sm:$0xff] }
 0x265   : > { %v4125_v18 = vsel %vm3997_vm4, %v3933_v32, %v4061_v2  ;;  %v9366_v41 = vmax.f32 %v9364_v52, %v9365_v7  ;;  %v5119_v1 = vsel %vm4991_vm5, %v4927_v36, %v5055_v22  ;;  %vm4000_vm6 = vcmp.gt.f32.partialorder %v3936_v8, 0.0  ;;  %v9375_v7 = vld [vmem:[#allocation78_spill] sm:$0xff] }
 0x266   : > { %v5185_v6 = vmax.f32 %v4191_v60, %v5121_v24  ;;  %v4064_v34 = vmul.f32 0.01, %v3936_v8  ;;  %vm4994_vm7 = vcmp.gt.f32.partialorder %v4930_v57, 0.0  ;;  %v5058_v56 = vmul.f32 0.01, %v4930_v57  ;;  %v9372_v60 = vld [vmem:[#allocation77_spill] sm:$0xff] }
 0x267   : > { %v4189_v27 = vmax.f32 %v9366_v41, %v4125_v18  ;;  %v3934_v59 = vadd.f32 %v8175_v62, %v3870_v37  ;;  %v4928_v42 = vadd.f32 %v8175_v62, %v4864_v5  ;;  %v3875_v55 = vmul.f32 %v8182_v25, %v8237_v31  ;;  %v9374_v5 = vld [vmem:[#allocation11_spill] sm:$0xff] }
 0x268   : > { %5250 = vst.msk [vmem:[%s8083_s26 + $0x130] sm:$0xff] %vm5211_vm1, %v5185_v6  ;;  %v4128_v50 = vsel %vm4000_vm6, %v3936_v8, %v4064_v34  ;;  %v4869_v16 = vmul.f32 %v8182_v25, %v8239_v28  ;;  %v9369_v21 = vmax.f32 %v9367_v3, %v9368_v4  ;;  %v5122_v36 = vsel %vm4994_vm7, %v4930_v57, %v5058_v56  ;;  %v9376_v41 = vld [vmem:[#allocation79_spill] sm:$0xff] }
 0x269   : > { %v5183_v33 = vmax.f32 %v4189_v27, %v5119_v1  ;;  %vm3998_vm8 = vcmp.gt.f32.partialorder %v3934_v59, 0.0  ;;  %v4062_v30 = vmul.f32 0.01, %v3934_v59  ;;  %vm4992_vm9 = vcmp.gt.f32.partialorder %v4928_v42, 0.0  ;;  %v8691_v4 = vld [vmem:[%s8946_s2] ss:$0 sm:$0xff] }
 0x26a   : > { %v4192_v32 = vmax.f32 %v9369_v21, %v4128_v50  ;;  %v5056_v19 = vmul.f32 0.01, %v4928_v42  ;;  %v3939_v58 = vadd.f32 %v8175_v62, %v3875_v55  ;;  %v4933_v39 = vadd.f32 %v8175_v62, %v4869_v16  ;;  %v9378_v16 = vld [vmem:[#allocation102_spill] sm:$0xff]  ;;  %v9379_v21 = vld [vmem:[#allocation12_spill] sm:$0xff] }
 0x26b   : > { %5248 = vst.msk [vmem:[%s8083_s26 + $0x120] sm:$0xff] %vm5211_vm1, %v5183_v33  ;;  %v4126_v13 = vsel %vm3998_vm8, %v3934_v59, %v4062_v30  ;;  %v3873_v28 = vmul.f32 %v8182_v25, %v8244_v15  ;;  %v4867_v63 = vmul.f32 %v8182_v25, %v9370_v49  ;;  %v9373_v24 = vmax.f32 %v9371_v12, %v9372_v60  ;;  %v9384_v60 = vld [vmem:[#allocation14_spill] sm:$0xff] }
 0x26c   : > { %v5186_v31 = vmax.f32 %v4192_v32, %v5122_v36  ;;  %v5120_v22 = vsel %vm4992_vm9, %v4928_v42, %v5056_v19  ;;  %vm4003_vm10 = vcmp.gt.f32.partialorder %v3939_v58, 0.0  ;;  %v4067_v8 = vmul.f32 0.01, %v3939_v58  ;;  %v9380_v32 = vld [vmem:[#allocation80_spill] sm:$0xff]  ;;  %v9381_v36 = vld [vmem:[#allocation81_spill] sm:$0xff] }
 0x26d   : > { %v4190_v2 = vmax.f32 %v9373_v24, %v4126_v13  ;;  %vm4997_vm11 = vcmp.gt.f32.partialorder %v4933_v39, 0.0  ;;  %v5061_v57 = vmul.f32 0.01, %v4933_v39  ;;  %v3937_v6 = vadd.f32 %v8175_v62, %v3873_v28 }
 0x26e   : > { %5251 = vst.msk [vmem:[%s8083_s26 + $0x138] sm:$0xff] %vm5211_vm1, %v5186_v31  ;;  %v4931_v18 = vadd.f32 %v8175_v62, %v4867_v63  ;;  %v4131_v37 = vsel %vm4003_vm10, %v3939_v58, %v4067_v8  ;;  %v3876_v26 = vmul.f32 %v8182_v25, %v8252_v38  ;;  %v4870_v52 = vmul.f32 %v8182_v25, %v9374_v5  ;;  %v8683_v38 = vld [vmem:[%s8947_s3] ss:$0 sm:$0xff]  ;;  %v9383_v63 = vld [vmem:[#allocation13_spill] sm:$0xff] }
 0x26f   : > { %v5184_v15 = vmax.f32 %v4190_v2, %v5120_v22  ;;  %v9377_v27 = vmax.f32 %v9375_v7, %v9376_v41  ;;  %v5125_v34 = vsel %vm4997_vm11, %v4933_v39, %v5061_v57  ;;  %vm4001_vm12 = vcmp.gt.f32.partialorder %v3937_v6, 0.0  ;;  %v9385_v2 = vld [vmem:[#allocation82_spill] sm:$0xff]  ;;  %v9386_v22 = vld [vmem:[#allocation83_spill] sm:$0xff] }
 0x270   : > { %v4065_v56 = vmul.f32 0.01, %v3937_v6  ;;  %vm4995_vm13 = vcmp.gt.f32.partialorder %v4931_v18, 0.0  ;;  %v5059_v59 = vmul.f32 0.01, %v4931_v18  ;;  %v3940_v42 = vadd.f32 %v8175_v62, %v3876_v26  ;;  %v9388_v41 = vld [vmem:[#allocation15_spill] sm:$0xff] }
 0x271   : > { %v4195_v1 = vmax.f32 %v9377_v27, %v4131_v37  ;;  %5249 = vst.msk [vmem:[%s8083_s26 + $0x128] sm:$0xff] %vm5211_vm1, %v5184_v15  ;;  %v4934_v33 = vadd.f32 %v8683_v38, %v4870_v52  ;;  %v3874_v3 = vmul.f32 %v8182_v25, %v9378_v16  ;;  %v4868_v62 = vmul.f32 %v8691_v4, %v9379_v21  ;;  %v9392_v21 = vld [vmem:[#allocation16_spill] sm:$0xff] }
 0x272   : > { %v4129_v55 = vsel %vm4001_vm12, %v3937_v6, %v4065_v56  ;;  %v9382_v30 = vmax.f32 %v9380_v32, %v9381_v36  ;;  %v5123_v58 = vsel %vm4995_vm13, %v4931_v18, %v5059_v59  ;;  %vm4004_vm14 = vcmp.gt.f32.partialorder %v3940_v42, 0.0  ;;  %v9393_v32 = vld [vmem:[#allocation17_spill] sm:$0xff] }
 0x273   : > { %v5189_v50 = vmax.f32 %v4195_v1, %v5125_v34  ;;  %v4068_v39 = vmul.f32 0.01, %v3940_v42  ;;  %vm4998_vm2 = vcmp.gt.f32.partialorder %v4934_v33, 0.0  ;;  %v5062_v25 = vmul.f32 0.01, %v4934_v33  ;;  %v9389_v1 = vld [vmem:[#allocation84_spill] sm:$0xff] }
 0x274   : > { %v4193_v19 = vmax.f32 %v9382_v30, %v4129_v55  ;;  %v3938_v31 = vadd.f32 %v8683_v38, %v3874_v3  ;;  %v4932_v13 = vadd.f32 %v8683_v38, %v4868_v62  ;;  %v3879_v12 = vmul.f32 %v8691_v4, %v9383_v63  ;;  %v9390_v34 = vld [vmem:[#allocation85_spill] sm:$0xff]  ;;  %v9394_v30 = vld [vmem:[#allocation86_spill] sm:$0xff] }
 0x275   : > { %5254 = vst.msk [vmem:[%s8083_s26 + $0x150] sm:$0xff] %vm5211_vm1, %v5189_v50  ;;  %v4132_v49 = vsel %vm4004_vm14, %v3940_v42, %v4068_v39  ;;  %v4873_v24 = vmul.f32 %v8691_v4, %v9384_v60  ;;  %v9387_v8 = vmax.f32 %v9385_v2, %v9386_v22  ;;  %v5126_v6 = vsel %vm4998_vm2, %v4934_v33, %v5062_v25  ;;  %v9397_v2 = vld [vmem:[#allocation88_spill] sm:$0xff]  ;;  %v9398_v22 = vld [vmem:[#allocation89_spill] sm:$0xff] }
 0x276   : > { %v5187_v28 = vmax.f32 %v4193_v19, %v5123_v58  ;;  %vm4002_vm15 = vcmp.gt.f32.partialorder %v3938_v31, 0.0  ;;  %v4066_v18 = vmul.f32 0.01, %v3938_v31  ;;  %vm4996_vm0 = vcmp.gt.f32.partialorder %v4932_v13, 0.0  ;;  %v9395_v19 = vld [vmem:[#allocation87_spill] sm:$0xff] }
 0x277   : > { %v4196_v57 = vmax.f32 %v9387_v8, %v4132_v49  ;;  %v5060_v15 = vmul.f32 0.01, %v4932_v13  ;;  %v3943_v37 = vadd.f32 %v8683_v38, %v3879_v12  ;;  %v4937_v26 = vadd.f32 %v8683_v38, %v4873_v24 }
 0x278   : > { %5252 = vst.msk [vmem:[%s8083_s26 + $0x140] sm:$0xff] %vm5211_vm1, %v5187_v28  ;;  %v4130_v52 = vsel %vm4002_vm15, %v3938_v31, %v4066_v18  ;;  %v3877_v7 = vmul.f32 %v8691_v4, %v8290_v43  ;;  %v4871_v27 = vmul.f32 %v8691_v4, %v9388_v41  ;;  %v9391_v56 = vmax.f32 %v9389_v1, %v9390_v34  ;;  %v9401_v41 = vld [vmem:[#allocation91_spill] sm:$0xff] }
 0x279   : > { %v5190_v5 = vmax.f32 %v4196_v57, %v5126_v6  ;;  %v5124_v42 = vsel %vm4996_vm0, %v4932_v13, %v5060_v15  ;;  %vm4007_vm3 = vcmp.gt.f32.partialorder %v3943_v37, 0.0  ;;  %v4071_v33 = vmul.f32 0.01, %v3943_v37 }
 0x27a   : > { %v4194_v59 = vmax.f32 %v9391_v56, %v4130_v52  ;;  %vm5001_vm4 = vcmp.gt.f32.partialorder %v4937_v26, 0.0  ;;  %v5065_v50 = vmul.f32 0.01, %v4937_v26  ;;  %v3941_v55 = vadd.f32 %v8683_v38, %v3877_v7  ;;  %v9400_v7 = vld [vmem:[#allocation90_spill] sm:$0xff] }
 0x27b   : > { %5255 = vst.msk [vmem:[%s8083_s26 + $0x158] sm:$0xff] %vm5211_vm1, %v5190_v5  ;;  %v4935_v16 = vadd.f32 %v8683_v38, %v4871_v27  ;;  %v4135_v3 = vsel %vm4007_vm3, %v3943_v37, %v4071_v33  ;;  %v3880_v62 = vmul.f32 %v8691_v4, %v9392_v21  ;;  %v4874_v36 = vmul.f32 %v8691_v4, %v9393_v32 }
 0x27c   : > { %v5188_v43 = vmax.f32 %v4194_v59, %v5124_v42  ;;  %v9396_v58 = vmax.f32 %v9394_v30, %v9395_v19  ;;  %v5129_v25 = vsel %vm5001_vm4, %v4937_v26, %v5065_v50  ;;  %vm4005_vm5 = vcmp.gt.f32.partialorder %v3941_v55, 0.0 }
 0x27d   : > { %v4069_v31 = vmul.f32 0.01, %v3941_v55  ;;  %vm4999_vm6 = vcmp.gt.f32.partialorder %v4935_v16, 0.0  ;;  %v5063_v13 = vmul.f32 0.01, %v4935_v16  ;;  %v3944_v28 = vadd.f32 %v8683_v38, %v3880_v62 }
 0x27e   : > { %v4199_v39 = vmax.f32 %v9396_v58, %v4135_v3  ;;  %5253 = vst.msk [vmem:[%s8083_s26 + $0x148] sm:$0xff] %vm5211_vm1, %v5188_v43  ;;  %v4938_v49 = vadd.f32 %v8683_v38, %v4874_v36  ;;  %v3878_v60 = vmul.f32 %v8691_v4, %v8305_v46  ;;  %v4872_v24 = vmul.f32 %v8691_v4, %v8307_v23  ;;  %v9404_v43 = vld [vmem:[#allocation92_spill] sm:$0xff]  ;;  %v9405_v3 = vld [vmem:[#allocation93_spill] sm:$0xff] }
 0x27f   : > { %v4133_v12 = vsel %vm4005_vm5, %v3941_v55, %v4069_v31  ;;  %v9399_v8 = vmax.f32 %v9397_v2, %v9398_v22  ;;  %v5127_v6 = vsel %vm4999_vm6, %v4935_v16, %v5063_v13  ;;  %vm4008_vm7 = vcmp.gt.f32.partialorder %v3944_v28, 0.0  ;;  %v9403_v55 = vld [vmem:[#allocation18_spill] sm:$0xff]  ;;  %v9407_v31 = vld [vmem:[#allocation19_spill] sm:$0xff] }
 0x280   : > { %v5193_v63 = vmax.f32 %v4199_v39, %v5129_v25  ;;  %v4072_v18 = vmul.f32 0.01, %v3944_v28  ;;  %vm5002_vm8 = vcmp.gt.f32.partialorder %v4938_v49, 0.0  ;;  %v5066_v15 = vmul.f32 0.01, %v4938_v49 }
 0x281   : > { %v4197_v57 = vmax.f32 %v9399_v8, %v4133_v12  ;;  %v3942_v37 = vadd.f32 %v8683_v38, %v3878_v60  ;;  %v4936_v26 = vadd.f32 %v8683_v38, %v4872_v24  ;;  %v3883_v23 = vmul.f32 %v8691_v4, %v8327_v48 }
 0x282   : > { %5258 = vst.msk [vmem:[%s8083_s26 + $0x170] sm:$0xff] %vm5211_vm1, %v5193_v63  ;;  %v4136_v5 = vsel %vm4008_vm7, %v3944_v28, %v4072_v18  ;;  %v4877_v52 = vmul.f32 %v8691_v4, %v8333_v45  ;;  %v9402_v27 = vmax.f32 %v9400_v7, %v9401_v41  ;;  %v5130_v34 = vsel %vm5002_vm8, %v4938_v49, %v5066_v15  ;;  %v9408_v28 = vld [vmem:[#allocation94_spill] sm:$0xff]  ;;  %v9409_v49 = vld [vmem:[#allocation95_spill] sm:$0xff]  ;;  %v9412_v15 = vld [vmem:[#allocation109_spill] sm:$0xff] }
 0x283   : > { %v5191_v46 = vmax.f32 %v4197_v57, %v5127_v6  ;;  %vm4006_vm9 = vcmp.gt.f32.partialorder %v3942_v37, 0.0  ;;  %v4070_v56 = vmul.f32 0.01, %v3942_v37  ;;  %vm5000_vm10 = vcmp.gt.f32.partialorder %v4936_v26, 0.0  ;;  %v9411_v6 = vld [vmem:[#allocation108_spill] sm:$0xff] }
 0x284   : > { %v4200_v1 = vmax.f32 %v9402_v27, %v4136_v5  ;;  %v5064_v59 = vmul.f32 0.01, %v4936_v26  ;;  %v3947_v42 = vadd.f32 %v8683_v38, %v3883_v23  ;;  %v4941_v33 = vadd.f32 %v8683_v38, %v4877_v52 }
 0x285   : > { %5256 = vst.msk [vmem:[%s8083_s26 + $0x160] sm:$0xff] %vm5211_vm1, %v5191_v46  ;;  %v4134_v50 = vsel %vm4006_vm9, %v3942_v37, %v4070_v56  ;;  %v3881_v45 = vmul.f32 %v8691_v4, %v9403_v55  ;;  %v4875_v16 = vmul.f32 %v8691_v4, %v8341_v54  ;;  %v9406_v21 = vmax.f32 %v9404_v43, %v9405_v3  ;;  %v9414_v46 = vld [vmem:[#allocation97_spill] sm:$0xff] }
 0x286   : > { %v5194_v48 = vmax.f32 %v4200_v1, %v5130_v34  ;;  %v5128_v32 = vsel %vm5000_vm10, %v4936_v26, %v5064_v59  ;;  %vm4011_vm11 = vcmp.gt.f32.partialorder %v3947_v42, 0.0  ;;  %v4075_v36 = vmul.f32 0.01, %v3947_v42  ;;  %v9413_v26 = vld [vmem:[#allocation96_spill] sm:$0xff] }
 0x287   : > { %v4198_v62 = vmax.f32 %v9406_v21, %v4134_v50  ;;  %vm5005_vm12 = vcmp.gt.f32.partialorder %v4941_v33, 0.0  ;;  %v5069_v30 = vmul.f32 0.01, %v4941_v33  ;;  %v3945_v19 = vadd.f32 %v8683_v38, %v3881_v45 }
 0x288   : > { %5259 = vst.msk [vmem:[%s8083_s26 + $0x178] sm:$0xff] %vm5211_vm1, %v5194_v48  ;;  %v4939_v58 = vadd.f32 %v8683_v38, %v4875_v16  ;;  %v4139_v25 = vsel %vm4011_vm11, %v3947_v42, %v4075_v36  ;;  %v3884_v54 = vmul.f32 %v8691_v4, %v8343_v40  ;;  %v4878_v13 = vmul.f32 %v8691_v4, %v9407_v31  ;;  %v9417_v48 = vld [vmem:[#allocation100_spill] sm:$0xff] }
 0x289   : > { %v5192_v39 = vmax.f32 %v4198_v62, %v5128_v32  ;;  %v9410_v63 = vmax.f32 %v9408_v28, %v9409_v49  ;;  %v5133_v60 = vsel %vm5005_vm12, %v4941_v33, %v5069_v30  ;;  %vm4009_vm13 = vcmp.gt.f32.partialorder %v3945_v19, 0.0  ;;  %v9416_v33 = vld [vmem:[#allocation98_spill] sm:$0xff]  ;;  %v9419_v32 = vld [vmem:[#allocation20_spill] sm:$0xff]  ;;  %v9420_v30 = vld [vmem:[#allocation101_spill] sm:$0xff] }
 0x28a   : > { %v4073_v24 = vmul.f32 0.01, %v3945_v19  ;;  %vm5003_vm14 = vcmp.gt.f32.partialorder %v4939_v58, 0.0  ;;  %v5067_v2 = vmul.f32 0.01, %v4939_v58  ;;  %v3948_v22 = vadd.f32 %v8683_v38, %v3884_v54 }
 0x28b   : > { %v4203_v12 = vmax.f32 %v9410_v63, %v4139_v25  ;;  %5257 = vst.msk [vmem:[%s8083_s26 + $0x168] sm:$0xff] %vm5211_vm1, %v5192_v39  ;;  %v4942_v8 = vadd.f32 %v8683_v38, %v4878_v13  ;;  %v3882_v18 = vmul.f32 %v8691_v4, %v9411_v6  ;;  %v4876_v37 = vmul.f32 %v8691_v4, %v9412_v15 }
 0x28c   : > { %v4137_v57 = vsel %vm4009_vm13, %v3945_v19, %v4073_v24  ;;  %v9415_v5 = vmax.f32 %v9413_v26, %v9414_v46  ;;  %v5131_v52 = vsel %vm5003_vm14, %v4939_v58, %v5067_v2  ;;  %vm4012_vm2 = vcmp.gt.f32.partialorder %v3948_v22, 0.0  ;;  %v9421_v19 = vld [vmem:[#allocation103_spill] sm:$0xff]  ;;  %v9424_v24 = vld [vmem:[#allocation104_spill] sm:$0xff]  ;;  %v9425_v2 = vld [vmem:[#allocation105_spill] sm:$0xff] }
 0x28d   : > { %v5197_v40 = vmax.f32 %v4203_v12, %v5133_v60  ;;  %v4076_v7 = vmul.f32 0.01, %v3948_v22  ;;  %vm5006_vm15 = vcmp.gt.f32.partialorder %v4942_v8, 0.0  ;;  %v5070_v41 = vmul.f32 0.01, %v4942_v8  ;;  %v9423_v12 = vld [vmem:[#allocation21_spill] sm:$0xff] }
 0x28e   : > { %v4201_v23 = vmax.f32 %v9415_v5, %v4137_v57  ;;  %v3946_v27 = vadd.f32 %v8683_v38, %v3882_v18  ;;  %v4940_v1 = vadd.f32 %v8683_v38, %v4876_v37  ;;  %v3887_v59 = vmul.f32 %v8691_v4, %v8373_v44  ;;  %v9427_v46 = vld [vmem:[#allocation111_spill] sm:$0xff] }
 0x28f   : > { %5262 = vst.msk [vmem:[%s8083_s26 + $0x190] sm:$0xff] %vm5211_vm1, %v5197_v40  ;;  %v4140_v56 = vsel %vm4012_vm2, %v3948_v22, %v4076_v7  ;;  %v4881_v42 = vmul.f32 %v8691_v4, %v8378_v29  ;;  %v9418_v50 = vmax.f32 %v9416_v33, %v9417_v48  ;;  %v5134_v45 = vsel %vm5006_vm15, %v4942_v8, %v5070_v41 }
 0x290   : > { %v5195_v34 = vmax.f32 %v4201_v23, %v5131_v52  ;;  %vm4010_vm0 = vcmp.gt.f32.partialorder %v3946_v27, 0.0  ;;  %v4074_v16 = vmul.f32 0.01, %v3946_v27  ;;  %vm5004_vm3 = vcmp.gt.f32.partialorder %v4940_v1, 0.0  ;;  %v9428_v23 = vld [vmem:[#allocation106_spill] sm:$0xff]  ;;  %v9429_v52 = vld [vmem:[#allocation107_spill] sm:$0xff] }
 0x291   : > { %v4204_v55 = vmax.f32 %v9418_v50, %v4140_v56  ;;  %v5068_v43 = vmul.f32 0.01, %v4940_v1  ;;  %v3951_v3 = vadd.f32 %v8683_v38, %v3887_v59  ;;  %v4945_v21 = vadd.f32 %v8683_v38, %v4881_v42  ;;  %v9431_v50 = vld [vmem:[#allocation110_spill] sm:$0xff] }
 0x292   : > { %5260 = vst.msk [vmem:[%s8083_s26 + $0x180] sm:$0xff] %vm5211_vm1, %v5195_v34  ;;  %v4138_v62 = vsel %vm4010_vm0, %v3946_v27, %v4074_v16  ;;  %v3885_v29 = vmul.f32 %v8691_v4, %v9419_v32  ;;  %v4879_v36 = vmul.f32 %v8691_v4, %v8386_v9  ;;  %v9422_v58 = vmax.f32 %v9420_v30, %v9421_v19  ;;  %v9436_v19 = vld [vmem:[#allocation113_spill] sm:$0xff] }
 0x293   : > { %v5198_v44 = vmax.f32 %v4204_v55, %v5134_v45  ;;  %v5132_v25 = vsel %vm5004_vm3, %v4940_v1, %v5068_v43  ;;  %vm4015_vm4 = vcmp.gt.f32.partialorder %v3951_v3, 0.0  ;;  %v4079_v54 = vmul.f32 0.01, %v3951_v3  ;;  %v9432_v55 = vld [vmem:[#allocation112_spill] sm:$0xff] }
 0x294   : > { %v4202_v39 = vmax.f32 %v9422_v58, %v4138_v62  ;;  %vm5009_vm5 = vcmp.gt.f32.partialorder %v4945_v21, 0.0  ;;  %v5073_v31 = vmul.f32 0.01, %v4945_v21  ;;  %v3949_v13 = vadd.f32 %v8683_v38, %v3885_v29  ;;  %v9434_v29 = vld [vmem:[#allocation22_spill] sm:$0xff]  ;;  %v9437_v58 = vld [vmem:[#allocation115_spill] sm:$0xff] }
 0x295   : > { %5263 = vst.msk [vmem:[%s8083_s26 + $0x198] sm:$0xff] %vm5211_vm1, %v5198_v44  ;;  %v4943_v28 = vadd.f32 %v8683_v38, %v4879_v36  ;;  %v4143_v63 = vsel %vm4015_vm4, %v3951_v3, %v4079_v54  ;;  %v3888_v9 = vmul.f32 %v8691_v4, %v9423_v12  ;;  %v4882_v60 = vmul.f32 %v8691_v4, %v8394_v53  ;;  %v9435_v36 = vld [vmem:[#allocation23_spill] sm:$0xff] }
 0x296   : > { %v5196_v49 = vmax.f32 %v4202_v39, %v5132_v25  ;;  %v9426_v22 = vmax.f32 %v9424_v24, %v9425_v2  ;;  %v5137_v40 = vsel %vm5009_vm5, %v4945_v21, %v5073_v31  ;;  %vm4013_vm6 = vcmp.gt.f32.partialorder %v3949_v13, 0.0  ;;  %v9440_v2 = vld [vmem:[#allocation116_spill] sm:$0xff] }
 0x297   : > { %v4077_v57 = vmul.f32 0.01, %v3949_v13  ;;  %vm5007_vm7 = vcmp.gt.f32.partialorder %v4943_v28, 0.0  ;;  %v5071_v6 = vmul.f32 0.01, %v4943_v28  ;;  %v3952_v18 = vadd.f32 %v8683_v38, %v3888_v9  ;;  %v9439_v9 = vld [vmem:[#allocation114_spill] sm:$0xff] }
 0x298   : > { %v4207_v8 = vmax.f32 %v9426_v22, %v4143_v63  ;;  %5261 = vst.msk [vmem:[%s8083_s26 + $0x188] sm:$0xff] %vm5211_vm1, %v5196_v49  ;;  %v4946_v15 = vadd.f32 %v8683_v38, %v4882_v60  ;;  %v3886_v53 = vmul.f32 %v8691_v4, %v8396_v20  ;;  %v4880_v5 = vmul.f32 %v8691_v4, %v9427_v46  ;;  %v9441_v22 = vld [vmem:[#allocation117_spill] sm:$0xff]  ;;  %v9443_v46 = vld [vmem:[#allocation24_spill] sm:$0xff] }
 0x299   : > { %v4141_v26 = vsel %vm4013_vm6, %v3949_v13, %v4077_v57  ;;  %v9430_v7 = vmax.f32 %v9428_v23, %v9429_v52  ;;  %v5135_v27 = vsel %vm5007_vm7, %v4943_v28, %v5071_v6  ;;  %vm4016_vm8 = vcmp.gt.f32.partialorder %v3952_v18, 0.0  ;;  %v9444_v23 = vld [vmem:[#allocation118_spill] sm:$0xff]  ;;  %v9445_v52 = vld [vmem:[#allocation119_spill] sm:$0xff] }
 0x29a   : > { %v5201_v37 = vmax.f32 %v4207_v8, %v5137_v40  ;;  %v4080_v1 = vmul.f32 0.01, %v3952_v18  ;;  %vm5010_vm9 = vcmp.gt.f32.partialorder %v4946_v15, 0.0  ;;  %v5074_v34 = vmul.f32 0.01, %v4946_v15 }
 0x29b   : > { %v4205_v41 = vmax.f32 %v9430_v7, %v4141_v26  ;;  %v3950_v56 = vadd.f32 %v8683_v38, %v3886_v53  ;;  %v4944_v59 = vadd.f32 %v8683_v38, %v4880_v5  ;;  %v3891_v33 = vmul.f32 %v8691_v4, %v8418_v51 }
 0x29c   : > { %5266 = vst.msk [vmem:[%s8083_s26 + $0x1b0] sm:$0xff] %vm5211_vm1, %v5201_v37  ;;  %v4144_v42 = vsel %vm4016_vm8, %v3952_v18, %v4080_v1  ;;  %v4885_v48 = vmul.f32 %v8691_v4, %v8424_v14  ;;  %v9433_v45 = vmax.f32 %v9431_v50, %v9432_v55  ;;  %v5138_v43 = vsel %vm5010_vm9, %v4946_v15, %v5074_v34  ;;  %v9448_v50 = vld [vmem:[#allocation122_spill] sm:$0xff]  ;;  %v9449_v55 = vld [vmem:[#allocation123_spill] sm:$0xff] }
 0x29d   : > { %v5199_v20 = vmax.f32 %v4205_v41, %v5135_v27  ;;  %vm4014_vm10 = vcmp.gt.f32.partialorder %v3950_v56, 0.0  ;;  %v4078_v3 = vmul.f32 0.01, %v3950_v56  ;;  %vm5008_vm11 = vcmp.gt.f32.partialorder %v4944_v59, 0.0 }
 0x29e   : > { %v4208_v16 = vmax.f32 %v9433_v45, %v4144_v42  ;;  %v5072_v21 = vmul.f32 0.01, %v4944_v59  ;;  %v3955_v44 = vadd.f32 %v8683_v38, %v3891_v33  ;;  %v4949_v62 = vadd.f32 %v8683_v38, %v4885_v48  ;;  %v9447_v33 = vld [vmem:[#allocation25_spill] sm:$0xff] }
 0x29f   : > { %5264 = vst.msk [vmem:[%s8083_s26 + $0x1a0] sm:$0xff] %vm5211_vm1, %v5199_v20  ;;  %v4142_v32 = vsel %vm4014_vm10, %v3950_v56, %v4078_v3  ;;  %v3889_v14 = vmul.f32 %v8691_v4, %v9434_v29  ;;  %v4883_v30 = vmul.f32 %v8691_v4, %v9435_v36  ;;  %v9438_v39 = vmax.f32 %v9436_v19, %v9437_v58  ;;  %v9452_v36 = vld [vmem:[#allocation124_spill] sm:$0xff] }
 0x2a0   : > { %v5202_v51 = vmax.f32 %v4208_v16, %v5138_v43  ;;  %v5136_v54 = vsel %vm5008_vm11, %v4944_v59, %v5072_v21  ;;  %vm4019_vm12 = vcmp.gt.f32.partialorder %v3955_v44, 0.0  ;;  %v4083_v31 = vmul.f32 0.01, %v3955_v44 }
 0x2a1   : > { %v4206_v25 = vmax.f32 %v9438_v39, %v4142_v32  ;;  %vm5013_vm13 = vcmp.gt.f32.partialorder %v4949_v62, 0.0  ;;  %v5077_v13 = vmul.f32 0.01, %v4949_v62  ;;  %v3953_v28 = vadd.f32 %v8683_v38, %v3889_v14  ;;  %v9451_v32 = vld [vmem:[#allocation26_spill] sm:$0xff] }
 0x2a2   : > { %5267 = vst.msk [vmem:[%s8083_s26 + $0x1b8] sm:$0xff] %vm5211_vm1, %v5202_v51  ;;  %v4947_v49 = vadd.f32 %v8683_v38, %v4883_v30  ;;  %v4147_v12 = vsel %vm4019_vm12, %v3955_v44, %v4083_v31  ;;  %v3892_v60 = vmul.f32 %v8691_v4, %v9439_v9  ;;  %v4886_v24 = vmul.f32 %v8691_v4, %v8439_v0  ;;  %v9453_v30 = vld [vmem:[#allocation125_spill] sm:$0xff]  ;;  %v9456_v9 = vld [vmem:[#allocation127_spill] sm:$0xff] }
 0x2a3   : > { %v5200_v63 = vmax.f32 %v4206_v25, %v5136_v54  ;;  %v9442_v8 = vmax.f32 %v9440_v2, %v9441_v22  ;;  %v5141_v57 = vsel %vm5013_vm13, %v4949_v62, %v5077_v13  ;;  %vm4017_vm14 = vcmp.gt.f32.partialorder %v3953_v28, 0.0 }
 0x2a4   : > { %v4081_v6 = vmul.f32 0.01, %v3953_v28  ;;  %vm5011_vm2 = vcmp.gt.f32.partialorder %v4947_v49, 0.0  ;;  %v5075_v18 = vmul.f32 0.01, %v4947_v49  ;;  %v3956_v15 = vadd.f32 %v8683_v38, %v3892_v60 }
 0x2a5   : > { %v4211_v40 = vmax.f32 %v9442_v8, %v4147_v12  ;;  %5265 = vst.msk [vmem:[%s8083_s26 + $0x1a8] sm:$0xff] %vm5211_vm1, %v5200_v63  ;;  %v4950_v37 = vadd.f32 %v8683_v38, %v4886_v24  ;;  %v3890_v0 = vmul.f32 %v8691_v4, %v8441_v61  ;;  %v4884_v5 = vmul.f32 %v8691_v4, %v9443_v46  ;;  %v9455_v12 = vld [vmem:[#allocation126_spill] sm:$0xff] }
 0x2a6   : > { %v4145_v53 = vsel %vm4017_vm14, %v3953_v28, %v4081_v6  ;;  %v9446_v7 = vmax.f32 %v9444_v23, %v9445_v52  ;;  %v5139_v27 = vsel %vm5011_vm2, %v4947_v49, %v5075_v18  ;;  %vm4020_vm15 = vcmp.gt.f32.partialorder %v3956_v15, 0.0  ;;  %v9458_v18 = vld [vmem:[#allocation27_spill] sm:$0xff] }
 0x2a7   : > { %v5205_v26 = vmax.f32 %v4211_v40, %v5141_v57  ;;  %v4084_v1 = vmul.f32 0.01, %v3956_v15  ;;  %vm5014_vm0 = vcmp.gt.f32.partialorder %v4950_v37, 0.0  ;;  %v5078_v34 = vmul.f32 0.01, %v4950_v37 }
 0x2a8   : > { %v4209_v41 = vmax.f32 %v9446_v7, %v4145_v53  ;;  %v3954_v56 = vadd.f32 %v8683_v38, %v3890_v0  ;;  %v4948_v59 = vadd.f32 %v8683_v38, %v4884_v5  ;;  %v3895_v42 = vmul.f32 %v8691_v4, %v8463_v35 }
 0x2a9   : > { %5270 = vst.msk [vmem:[%s8083_s26 + $0x1d0] sm:$0xff] %vm5211_vm1, %v5205_v26  ;;  %v4148_v20 = vsel %vm4020_vm15, %v3956_v15, %v4084_v1  ;;  %v4889_v48 = vmul.f32 %v8691_v4, %v9447_v33  ;;  %v9450_v45 = vmax.f32 %v9448_v50, %v9449_v55  ;;  %v5142_v43 = vsel %vm5014_vm0, %v4950_v37, %v5078_v34  ;;  %v9459_v37 = vld [vmem:[#allocation129_spill] sm:$0xff]  ;;  %v9460_v26 = vld [vmem:[#allocation130_spill] sm:$0xff] }
 0x2aa   : > { %v5203_v61 = vmax.f32 %v4209_v41, %v5139_v27  ;;  %vm4018_vm3 = vcmp.gt.f32.partialorder %v3954_v56, 0.0  ;;  %v4082_v3 = vmul.f32 0.01, %v3954_v56  ;;  %vm5012_vm4 = vcmp.gt.f32.partialorder %v4948_v59, 0.0  ;;  %v9465_v33 = vld [vmem:[#allocation133_spill] sm:$0xff] }
 0x2ab   : > { %v4212_v16 = vmax.f32 %v9450_v45, %v4148_v20  ;;  %v5076_v21 = vmul.f32 0.01, %v4948_v59  ;;  %v3959_v44 = vadd.f32 %v8683_v38, %v3895_v42  ;;  %v4953_v62 = vadd.f32 %v8683_v38, %v4889_v48  ;;  %v9466_v48 = vld [vmem:[#allocation135_spill] sm:$0xff] }
 0x2ac   : > { %5268 = vst.msk [vmem:[%s8083_s26 + $0x1c0] sm:$0xff] %vm5211_vm1, %v5203_v61  ;;  %v4146_v51 = vsel %vm4018_vm3, %v3954_v56, %v4082_v3  ;;  %v3893_v29 = vmul.f32 %v8691_v4, %v9451_v32  ;;  %v4887_v14 = vmul.f32 %v8691_v4, %v8477_v11  ;;  %v9454_v19 = vmax.f32 %v9452_v36, %v9453_v30 }
 0x2ad   : > { %v5206_v35 = vmax.f32 %v4212_v16, %v5142_v43  ;;  %v5140_v39 = vsel %vm5012_vm4, %v4948_v59, %v5076_v21  ;;  %vm4023_vm5 = vcmp.gt.f32.partialorder %v3959_v44, 0.0  ;;  %v4087_v25 = vmul.f32 0.01, %v3959_v44 }
 0x2ae   : > { %v4210_v58 = vmax.f32 %v9454_v19, %v4146_v51  ;;  %vm5017_vm6 = vcmp.gt.f32.partialorder %v4953_v62, 0.0  ;;  %v5081_v54 = vmul.f32 0.01, %v4953_v62  ;;  %v3957_v31 = vadd.f32 %v8683_v38, %v3893_v29 }
 0x2af   : > { %5271 = vst.msk [vmem:[%s8083_s26 + $0x1d8] sm:$0xff] %vm5211_vm1, %v5206_v35  ;;  %v4951_v13 = vadd.f32 %v8683_v38, %v4887_v14  ;;  %v4151_v49 = vsel %vm4023_vm5, %v3959_v44, %v4087_v25  ;;  %v3896_v11 = vmul.f32 %v8691_v4, %v8479_v10  ;;  %v4890_v63 = vmul.f32 %v8691_v4, %v8484_v17 }
 0x2b0   : > { %v5204_v28 = vmax.f32 %v4210_v58, %v5140_v39  ;;  %v9457_v60 = vmax.f32 %v9455_v12, %v9456_v9  ;;  %v5145_v2 = vsel %vm5017_vm6, %v4953_v62, %v5081_v54  ;;  %vm4021_vm7 = vcmp.gt.f32.partialorder %v3957_v31, 0.0 }
 0x2b1   : > { %v4085_v22 = vmul.f32 0.01, %v3957_v31  ;;  %vm5015_vm8 = vcmp.gt.f32.partialorder %v4951_v13, 0.0  ;;  %v5079_v8 = vmul.f32 0.01, %v4951_v13  ;;  %v3960_v40 = vadd.f32 %v8683_v38, %v3896_v11 }
 0x2b2   : > { %v4215_v24 = vmax.f32 %v9457_v60, %v4151_v49  ;;  %5269 = vst.msk [vmem:[%s8083_s26 + $0x1c8] sm:$0xff] %vm5211_vm1, %v5204_v28  ;;  %v4954_v57 = vadd.f32 %v8683_v38, %v4890_v63  ;;  %v3894_v17 = vmul.f32 %v8691_v4, %v9458_v18  ;;  %v4888_v15 = vmul.f32 %v8691_v4, %v8492_v47  ;;  %v9462_v47 = vld [vmem:[#allocation131_spill] sm:$0xff]  ;;  %v9463_v4 = vld [vmem:[#allocation132_spill] sm:$0xff] }
 0x2b3   : > { %v4149_v6 = vsel %vm4021_vm7, %v3957_v31, %v4085_v22  ;;  %v9461_v53 = vmax.f32 %v9459_v37, %v9460_v26  ;;  %v5143_v46 = vsel %vm5015_vm8, %v4951_v13, %v5079_v8  ;;  %vm4024_vm9 = vcmp.gt.f32.partialorder %v3960_v40, 0.0 }
 0x2b4   : > { %v5209_v10 = vmax.f32 %v4215_v24, %v5145_v2  ;;  %v4088_v5 = vmul.f32 0.01, %v3960_v40  ;;  %vm5018_vm10 = vcmp.gt.f32.partialorder %v4954_v57, 0.0  ;;  %v5082_v23 = vmul.f32 0.01, %v4954_v57 }
 0x2b5   : > { %v4213_v0 = vmax.f32 %v9461_v53, %v4149_v6  ;;  %v3958_v52 = vadd.f32 %v8683_v38, %v3894_v17  ;;  %v4952_v7 = vadd.f32 %v8683_v38, %v4888_v15  ;;  %v9464_v1 = vmax.f32 %v9462_v47, %v9463_v4 }
 0x2b6   : > { %5274 = vst.msk [vmem:[%s8083_s26 + $0x1f0] sm:$0xff] %vm5211_vm1, %v5209_v10  ;;  %v4152_v27 = vsel %vm4024_vm9, %v3960_v40, %v4088_v5  ;;  %v5146_v59 = vsel %vm5018_vm10, %v4954_v57, %v5082_v23  ;;  %v9467_v50 = vmax.f32 %v9465_v33, %v9466_v48 }
 0x2b7   : > { %v5207_v41 = vmax.f32 %v4213_v0, %v5143_v46  ;;  %v4216_v34 = vmax.f32 %v9464_v1, %v4152_v27  ;;  %vm4022_vm11 = vcmp.gt.f32.partialorder %v3958_v52, 0.0  ;;  %v4086_v56 = vmul.f32 0.01, %v3958_v52 }
 0x2b8   : > { %vm5016_vm12 = vcmp.gt.f32.partialorder %v4952_v7, 0.0  ;;  %v5080_v61 = vmul.f32 0.01, %v4952_v7 }
 0x2b9   : > { %5272 = vst.msk [vmem:[%s8083_s26 + $0x1e0] sm:$0xff] %vm5211_vm1, %v5207_v41  ;;  %v5210_v20 = vmax.f32 %v4216_v34, %v5146_v59  ;;  %v4150_v42 = vsel %vm4022_vm11, %v3958_v52, %v4086_v56 }
 0x2ba   : > { %v4214_v38 = vmax.f32 %v9467_v50, %v4150_v42  ;;  %v5144_v55 = vsel %vm5016_vm12, %v4952_v7, %v5080_v61 }
 0x2bb   : > { %5275 = vst.msk [vmem:[%s8083_s26 + $0x1f8] sm:$0xff] %vm5211_vm1, %v5210_v20 }
 0x2bc   : > { %v5208_v45 = vmax.f32 %v4214_v38, %v5144_v55 }
 0x2be   : > { %5273 = vst.msk [vmem:[%s8083_s26 + $0x1e8] sm:$0xff] %vm5211_vm1, %v5208_v45 }
 0x2bf PF: > { %p11_p9 = scmp.ge.s32.totalorder %s6440_s19, 6   ;;  %s9468_s15 = smov %s6391_s16 }
 0x2c0   : > { %s9469_s16 = smov %s6449_s22  ;;  %s9470_s17 = smov %s6440_s19 }
 0x2c1   :  { %13 = sbr.rel (!%p11_p9) target bundleno = 2 (0x2), region = 115 }

// kernel: cnn_forward.5
= control target key start
LH: loop header
LB: loop body
LE: loop exit
PB: predicated region body
PF: predicated region fallthrough
CT: control target
= control target key end

     0   :  { %vm978_vm0 = vcmask 523264   ;;  %s6214_s1 = inlined_call_operand.vmem [shape: bf16[1600,128], index: 1, kind: input, shape index: {}]   ;;  %s6215_s0 = inlined_call_operand.vmem [shape: bf16[4,32,1600], index: 0, kind: input, shape index: {}]   ;;  %s6216_s2 = inlined_call_operand.vmem [shape: f32[1,128], index: 2, kind: input, shape index: {}]   ;;  %s6217_s3 = inlined_call_operand.vmem [shape: f32[1,128], index: 3, kind: input, shape index: {}]   ;;  %s6218_s4 = inlined_call_operand.vmem [shape: f32[32,128], index: 4, kind: output, shape index: {}]  }
   0x1   :  { %v4386_v0 = vld [vmem:[%s6214_s1 + $0x40] sm:$0xff]   ;;  %v4409_v4 = vld [vmem:[%s6214_s1 + $0x48] sm:$0xff]   ;;  %v4433_v8 = vld [vmem:[%s6214_s1 + $0x50] sm:$0xff]  }
   0x2   :  { %v4391_v1 = vld [vmem:[%s6214_s1 + $0xc0] sm:$0xff]   ;;  %3262 = vmatprep.subr.bf16.mxu0 %v4386_v0  ;;  %v4415_v5 = vld [vmem:[%s6214_s1 + $0xc8] sm:$0xff]   ;;  %v4439_v9 = vld [vmem:[%s6214_s1 + $0xd0] sm:$0xff]  }
   0x3   :  { %v4397_v2 = vld [vmem:[%s6214_s1] sm:$0xff]   ;;  %3290 = vmatprep.subr.bf16.mxu1 %v4391_v1  ;;  %v4421_v6 = vld [vmem:[%s6214_s1 + $0x8] sm:$0xff]   ;;  %v4445_v10 = vld [vmem:[%s6214_s1 + $0x10] sm:$0xff]  }
   0x4   :  { %v4403_v3 = vld [vmem:[%s6214_s1 + $0x80] sm:$0xff]   ;;  %3263 = vmatpush3.bf16.msra.mxu0 %v4397_v2  ;;  %v4427_v7 = vld [vmem:[%s6214_s1 + $0x88] sm:$0xff]   ;;  %v4451_v11 = vld [vmem:[%s6214_s1 + $0x90] sm:$0xff]  }
   0x5   :  { %3291 = vmatpush3.bf16.msra.mxu1 %v4403_v3  ;;  %3264 = vmatprep.subr.bf16.mxu0 %v4409_v4  ;;  %v4457_v12 = vld [vmem:[%s6214_s1 + $0x58] sm:$0xff]   ;;  %v4481_v16 = vld [vmem:[%s6214_s1 + $0x60] sm:$0xff]   ;;  %v4505_v20 = vld [vmem:[%s6214_s1 + $0x68] sm:$0xff]  }
   0x6   :  { %3292 = vmatprep.subr.bf16.mxu1 %v4415_v5  ;;  %v4463_v13 = vld [vmem:[%s6214_s1 + $0xd8] sm:$0xff]   ;;  %v4487_v17 = vld [vmem:[%s6214_s1 + $0xe0] sm:$0xff]   ;;  %v4511_v21 = vld [vmem:[%s6214_s1 + $0xe8] sm:$0xff]  }
   0x7   :  { %v4469_v14 = vld [vmem:[%s6214_s1 + $0x18] sm:$0xff]   ;;  %v4493_v18 = vld [vmem:[%s6214_s1 + $0x20] sm:$0xff]   ;;  %v4517_v22 = vld [vmem:[%s6214_s1 + $0x28] sm:$0xff]  }
   0x8   :  { %3265 = vmatpush3.bf16.msra.mxu0 %v4421_v6  ;;  %v4475_v15 = vld [vmem:[%s6214_s1 + $0x98] sm:$0xff]   ;;  %v4499_v19 = vld [vmem:[%s6214_s1 + $0xa0] sm:$0xff]   ;;  %v4523_v23 = vld [vmem:[%s6214_s1 + $0xa8] sm:$0xff]  }
   0x9   :  { %3293 = vmatpush3.bf16.msra.mxu1 %v4427_v7  ;;  %3266 = vmatprep.subr.bf16.mxu0 %v4433_v8  ;;  %v4529_v24 = vld [vmem:[%s6214_s1 + $0x70] sm:$0xff]   ;;  %v4553_v28 = vld [vmem:[%s6214_s1 + $0x78] sm:$0xff]   ;;  %v4043_v35 = vld [vmem:[%s6215_s0 + $0xc] ss:$52 sps:$4 sm:$0xff]  }
   0xa   :  { %3294 = vmatprep.subr.bf16.mxu1 %v4439_v9  ;;  %v4535_v25 = vld [vmem:[%s6214_s1 + $0xf0] sm:$0xff]   ;;  %v4559_v29 = vld [vmem:[%s6214_s1 + $0xf8] sm:$0xff]   ;;  %v4590_v36 = vld [vmem:[%s6214_s1 + $0x140] sm:$0xff]   ;;  %1066 = vmatprep.mubr.bf16.mxu1 %v4043_v35 }
   0xb   :  { %v4541_v26 = vld [vmem:[%s6214_s1 + $0x30] sm:$0xff]   ;;  %v4565_v30 = vld [vmem:[%s6214_s1 + $0x38] sm:$0xff]   ;;  %v4595_v37 = vld [vmem:[%s6214_s1 + $0x1c0] sm:$0xff]  }
   0xc   :  { %3267 = vmatpush3.bf16.msra.mxu0 %v4445_v10  ;;  %v4547_v27 = vld [vmem:[%s6214_s1 + $0xb0] sm:$0xff]   ;;  %v4571_v31 = vld [vmem:[%s6214_s1 + $0xb8] sm:$0xff]   ;;  %v4601_v38 = vld [vmem:[%s6214_s1 + $0x100] sm:$0xff]  }
   0xd   :  { %3295 = vmatpush3.bf16.msra.mxu1 %v4451_v11  ;;  %3268 = vmatprep.subr.bf16.mxu0 %v4457_v12  ;;  %v4038_v32 = vld [vmem:[%s6215_s0] ss:$52 sps:$4 sm:$0xff]   ;;  %v4040_v33 = vld [vmem:[%s6215_s0 + $0x4] ss:$52 sps:$4 sm:$0xff]   ;;  %v4041_v34 = vld [vmem:[%s6215_s0 + $0x8] ss:$52 sps:$4 sm:$0xff]  }
   0xe   :  { %3296 = vmatprep.subr.bf16.mxu1 %v4463_v13  ;;  %1017 = vmatprep.mubr.bf16.mxu0 %v4040_v33  ;;  %v4607_v39 = vld [vmem:[%s6214_s1 + $0x180] sm:$0xff]   ;;  %v4613_v40 = vld [vmem:[%s6214_s1 + $0x148] sm:$0xff]   ;;  %v4637_v44 = vld [vmem:[%s6214_s1 + $0x150] sm:$0xff]  }
   0xf   :  { %v4619_v41 = vld [vmem:[%s6214_s1 + $0x1c8] sm:$0xff]   ;;  %v4643_v45 = vld [vmem:[%s6214_s1 + $0x1d0] sm:$0xff]   ;;  %v4661_v48 = vld [vmem:[%s6214_s1 + $0x158] sm:$0xff]  }
  0x10   :  { %3269 = vmatpush3.bf16.msra.mxu0 %v4469_v14  ;;  %v4625_v42 = vld [vmem:[%s6214_s1 + $0x108] sm:$0xff]   ;;  %v4649_v46 = vld [vmem:[%s6214_s1 + $0x110] sm:$0xff]   ;;  %v4667_v49 = vld [vmem:[%s6214_s1 + $0x1d8] sm:$0xff]  }
  0x11   :  { %3297 = vmatpush3.bf16.msra.mxu1 %v4475_v15  ;;  %3270 = vmatprep.subr.bf16.mxu0 %v4481_v16  ;;  %v4631_v43 = vld [vmem:[%s6214_s1 + $0x188] sm:$0xff]   ;;  %v4655_v47 = vld [vmem:[%s6214_s1 + $0x190] sm:$0xff]   ;;  %v4673_v50 = vld [vmem:[%s6214_s1 + $0x118] sm:$0xff]  }
  0x12   :  { %3298 = vmatprep.subr.bf16.mxu1 %v4487_v17  ;;  %v4679_v51 = vld [vmem:[%s6214_s1 + $0x198] sm:$0xff]   ;;  %v4685_v52 = vld [vmem:[%s6214_s1 + $0x160] sm:$0xff]   ;;  %v4709_v56 = vld [vmem:[%s6214_s1 + $0x168] sm:$0xff]  }
  0x13   :  { %v4691_v53 = vld [vmem:[%s6214_s1 + $0x1e0] sm:$0xff]   ;;  %v4715_v57 = vld [vmem:[%s6214_s1 + $0x1e8] sm:$0xff]   ;;  %v4751_v33 = vld [vmem:[%s6214_s1 + $0x1f0] sm:$0xff]  }
  0x14   :  { %3271 = vmatpush3.bf16.msra.mxu0 %v4493_v18  ;;  %v4697_v54 = vld [vmem:[%s6214_s1 + $0x120] sm:$0xff]   ;;  %6310 = vst [vmem:[#allocation3_spill] sm:$0xff] %v4715_v57  ;;  %v4068_v59 = vld [vmem:[%s6215_s0 + $0x74] ss:$52 sps:$4 sm:$0xff]   ;;  %6312 = vst [vmem:[#allocation5_spill] sm:$0xff] %v4751_v33 }
  0x15   :  { %3299 = vmatpush3.bf16.msra.mxu1 %v4499_v19  ;;  %3272 = vmatprep.subr.bf16.mxu0 %v4505_v20  ;;  %v4703_v55 = vld [vmem:[%s6214_s1 + $0x1a0] sm:$0xff]   ;;  %v4728_v60 = vld [vmem:[%s6214_s1 + $0x128] sm:$0xff]   ;;  %v4763_v35 = vld [vmem:[%s6214_s1 + $0x1b0] sm:$0xff]  }
  0x16   :  { %3300 = vmatprep.subr.bf16.mxu1 %v4511_v21  ;;  %6309 = vst [vmem:[#allocation2_spill] sm:$0xff] %v4703_v55  ;;  %v4066_v58 = vld [vmem:[%s6215_s0 + $0x6c] ss:$52 sps:$4 sm:$0xff]   ;;  %v4072_v62 = vld [vmem:[%s6215_s0 + $0x68] ss:$52 sps:$4 sm:$0xff]   ;;  %6313 = vst [vmem:[#allocation6_spill] sm:$0xff] %v4763_v35 }
  0x17   :  { %v4733_v61 = vld [vmem:[%s6214_s1 + $0x1a8] sm:$0xff]   ;;  %v4073_v63 = vld [vmem:[%s6215_s0 + $0x70] ss:$52 sps:$4 sm:$0xff]  }
  0x18   :  { %3273 = vmatpush3.bf16.msra.mxu0 %v4517_v22  ;;  %6311 = vst [vmem:[#allocation4_spill] sm:$0xff] %v4733_v61 }
  0x19   :  { %3301 = vmatpush3.bf16.msra.mxu1 %v4523_v23  ;;  %3274 = vmatprep.subr.bf16.mxu0 %v4529_v24 }
  0x1a   :  { %3302 = vmatprep.subr.bf16.mxu1 %v4535_v25 }
  0x1c   :  { %3275 = vmatpush3.bf16.msra.mxu0 %v4541_v26 }
  0x1d   :  { %3303 = vmatpush3.bf16.msra.mxu1 %v4547_v27  ;;  %3276 = vmatprep.subr.bf16.mxu0 %v4553_v28 }
  0x1e   :  { %3304 = vmatprep.subr.bf16.mxu1 %v4559_v29 }
  0x20   :  { %3277 = vmatpush3.bf16.msra.mxu0 %v4565_v30 }
  0x21   :  { %3305 = vmatpush3.bf16.msra.mxu1 %v4571_v31  ;;  %3318 = vmatprep.subr.bf16.mxu0 %v4590_v36 }
  0x22   :  { %3346 = vmatprep.subr.bf16.mxu1 %v4595_v37 }
  0x23   :  { %1018 = vmatmul.mubr.bf16.vlgmr.msra.gmra.mrb[0].mxu0 %v4038_v32  ;;  %v4746_v32 = vld [vmem:[%s6214_s1 + $0x170] sm:$0xff]  }
  0x24   :  { %1067 = vmatmul.mubr.bf16.vlgmr.msra.gmra.mrb[0].mxu1 %v4041_v34  ;;  %3319 = vmatpush3.bf16.msra.mxu0 %v4601_v38  ;;  %v4757_v34 = vld [vmem:[%s6214_s1 + $0x130] sm:$0xff]  }
  0x25   :  { %3347 = vmatpush3.bf16.msra.mxu1 %v4607_v39  ;;  %3320 = vmatprep.subr.bf16.mxu0 %v4613_v40 }
  0x26   :  { %3348 = vmatprep.subr.bf16.mxu1 %v4619_v41  ;;  %1025 = vmatprep.mubr.bf16.mxu0 %v4066_v58  ;;  %v4769_v58 = vld [vmem:[%s6214_s1 + $0x178] sm:$0xff]  }
  0x27   :  { %1074 = vmatprep.mubr.bf16.mxu1 %v4068_v59  ;;  %v4775_v59 = vld [vmem:[%s6214_s1 + $0x1f8] sm:$0xff]  }
  0x28   :  { %3321 = vmatpush3.bf16.msra.mxu0 %v4625_v42  ;;  %6314 = vst [vmem:[#allocation7_spill] sm:$0xff] %v4775_v59 }
  0x29   :  { %3349 = vmatpush3.bf16.msra.mxu1 %v4631_v43  ;;  %3322 = vmatprep.subr.bf16.mxu0 %v4637_v44 }
  0x2a   :  { %3350 = vmatprep.subr.bf16.mxu1 %v4643_v45 }
  0x2b   :  { %1026 = vmatmul.mubr.bf16.gmra.mrb[4].mxu0 %v4072_v62  ;;  %v4781_v62 = vld [vmem:[%s6214_s1 + $0x138] sm:$0xff]  }
  0x2c   :  { %3323 = vmatpush3.bf16.msra.mxu0 %v4649_v46  ;;  %1075 = vmatmul.mubr.bf16.gmra.mrb[4].mxu1 %v4073_v63  ;;  %v4787_v63 = vld [vmem:[%s6214_s1 + $0x1b8] sm:$0xff]  }
  0x2d   :  { %3351 = vmatpush3.bf16.msra.mxu1 %v4655_v47  ;;  %3324 = vmatprep.subr.bf16.mxu0 %v4661_v48  ;;  %6315 = vst [vmem:[#allocation8_spill] sm:$0xff] %v4787_v63 }
  0x2e   :  { %3352 = vmatprep.subr.bf16.mxu1 %v4667_v49 }
  0x30   :  { %3325 = vmatpush3.bf16.msra.mxu0 %v4673_v50 }
  0x31   :  { %3353 = vmatpush3.bf16.msra.mxu1 %v4679_v51  ;;  %3326 = vmatprep.subr.bf16.mxu0 %v4685_v52 }
  0x32   :  { %3354 = vmatprep.subr.bf16.mxu1 %v4691_v53 }
  0x34   :  { %3327 = vmatpush3.bf16.msra.mxu0 %v4697_v54 }
  0x35   :  { %3355 = vmatpush3.bf16.msra.mxu1 %v4703_v55  ;;  %3328 = vmatprep.subr.bf16.mxu0 %v4709_v56  ;;  %v4817_v55 = vld [vmem:[%s6214_s1 + $0x200] sm:$0xff]  }
  0x36   :  { %3356 = vmatprep.subr.bf16.mxu1 %v4715_v57  ;;  %v4806_v57 = vld [vmem:[%s6214_s1 + $0x240] sm:$0xff]   ;;  %6317 = vst [vmem:[#allocation10_spill] sm:$0xff] %v4817_v55 }
  0x38   :  { %3329 = vmatpush3.bf16.msra.mxu0 %v4728_v60 }
  0x39   :  { %3357 = vmatpush3.bf16.msra.mxu1 %v4733_v61  ;;  %3330 = vmatprep.subr.bf16.mxu0 %v4746_v32  ;;  %v4087_v61 = vld [vmem:[%s6215_s0 + $0x1c] ss:$52 sps:$4 sm:$0xff]  }
  0x3a   :  { %3358 = vmatprep.subr.bf16.mxu1 %v4751_v33  ;;  %v4084_v33 = vld [vmem:[%s6215_s0 + $0x14] ss:$52 sps:$4 sm:$0xff]   ;;  %1164 = vmatprep.mubr.bf16.mxu1 %v4087_v61 }
  0x3b   :  { %1115 = vmatprep.mubr.bf16.mxu0 %v4084_v33  ;;  %v4823_v33 = vld [vmem:[%s6214_s1 + $0x280] sm:$0xff]   ;;  %v4829_v61 = vld [vmem:[%s6214_s1 + $0x248] sm:$0xff]  }
  0x3c   :  { %3331 = vmatpush3.bf16.msra.mxu0 %v4757_v34  ;;  %6318 = vst [vmem:[#allocation11_spill] sm:$0xff] %v4823_v33  ;;  %6319 = vst [vmem:[#allocation12_spill] sm:$0xff] %v4829_v61 }
  0x3d   :  { %3359 = vmatpush3.bf16.msra.mxu1 %v4763_v35  ;;  %3332 = vmatprep.subr.bf16.mxu0 %v4769_v58  ;;  %v4082_v35 = vld [vmem:[%s6215_s0 + $0x10] ss:$52 sps:$4 sm:$0xff]  }
  0x3e   :  { %3360 = vmatprep.subr.bf16.mxu1 %v4775_v59  ;;  %v4085_v59 = vld [vmem:[%s6215_s0 + $0x18] ss:$52 sps:$4 sm:$0xff]  }
  0x40   :  { %3333 = vmatpush3.bf16.msra.mxu0 %v4781_v62 }
  0x41   :  { %3361 = vmatpush3.bf16.msra.mxu1 %v4787_v63  ;;  %v4811_v63 = vld [vmem:[%s6214_s1 + $0x2c0] sm:$0xff]   ;;  %3374 = vmatprep.subr.bf16.mxu0 %v4806_v57 }
  0x42   :  { %6316 = vst [vmem:[#allocation9_spill] sm:$0xff] %v4811_v63  ;;  %3402 = vmatprep.subr.bf16.mxu1 %v4811_v63  ;;  %v4847_v63 = vld [vmem:[%s6214_s1 + $0x288] sm:$0xff]  }
  0x43   :  { %1116 = vmatmul.mubr.bf16.vlgmr.msra.gmra.mrb[8].mxu0 %v4082_v35  ;;  %v4835_v35 = vld [vmem:[%s6214_s1 + $0x2c8] sm:$0xff]   ;;  %6322 = vst [vmem:[#allocation15_spill] sm:$0xff] %v4847_v63 }
  0x44   :  { %1165 = vmatmul.mubr.bf16.vlgmr.msra.gmra.mrb[8].mxu1 %v4085_v59  ;;  %3375 = vmatpush3.bf16.msra.mxu0 %v4817_v55  ;;  %6320 = vst [vmem:[#allocation13_spill] sm:$0xff] %v4835_v35  ;;  %v4841_v59 = vld [vmem:[%s6214_s1 + $0x208] sm:$0xff]   ;;  %v4901_v55 = vld [vmem:[%s6214_s1 + $0x218] sm:$0xff]  }
  0x45   :  { %3403 = vmatpush3.bf16.msra.mxu1 %v4823_v33  ;;  %3376 = vmatprep.subr.bf16.mxu0 %v4829_v61  ;;  %6321 = vst [vmem:[#allocation14_spill] sm:$0xff] %v4841_v59  ;;  %v4096_v33 = vld [vmem:[%s6215_s0 + $0x7c] ss:$52 sps:$4 sm:$0xff]   ;;  %v4098_v61 = vld [vmem:[%s6215_s0 + $0x78] ss:$52 sps:$4 sm:$0xff]   ;;  %6329 = vst [vmem:[#allocation22_spill] sm:$0xff] %v4901_v55 }
  0x46   :  { %3404 = vmatprep.subr.bf16.mxu1 %v4835_v35  ;;  %1123 = vmatprep.mubr.bf16.mxu0 %v4096_v33  ;;  %v4860_v35 = vld [vmem:[%s6214_s1 + $0x250] sm:$0xff]  }
  0x47   :  { %6323 = vst [vmem:[#allocation16_spill] sm:$0xff] %v4860_v35  ;;  %v4875_v33 = vld [vmem:[%s6214_s1 + $0x210] sm:$0xff]  }
  0x48   :  { %3377 = vmatpush3.bf16.msra.mxu0 %v4841_v59  ;;  %v4865_v59 = vld [vmem:[%s6214_s1 + $0x2d0] sm:$0xff]   ;;  %6325 = vst [vmem:[#allocation18_spill] sm:$0xff] %v4875_v33 }
  0x49   :  { %3405 = vmatpush3.bf16.msra.mxu1 %v4847_v63  ;;  %6324 = vst [vmem:[#allocation17_spill] sm:$0xff] %v4865_v59  ;;  %3378 = vmatprep.subr.bf16.mxu0 %v4860_v35  ;;  %v4101_v63 = vld [vmem:[%s6215_s0 + $0x84] ss:$52 sps:$4 sm:$0xff]   ;;  %v4105_v35 = vld [vmem:[%s6215_s0 + $0x80] ss:$52 sps:$4 sm:$0xff]  }
  0x4a   :  { %3406 = vmatprep.subr.bf16.mxu1 %v4865_v59  ;;  %1172 = vmatprep.mubr.bf16.mxu1 %v4101_v63  ;;  %v4889_v59 = vld [vmem:[%s6214_s1 + $0x258] sm:$0xff]  }
  0x4b   :  { %1124 = vmatmul.mubr.bf16.gmra.mrb[12].mxu0 %v4098_v61  ;;  %v4880_v61 = vld [vmem:[%s6214_s1 + $0x290] sm:$0xff]   ;;  %6327 = vst [vmem:[#allocation20_spill] sm:$0xff] %v4889_v59  ;;  %v4895_v63 = vld [vmem:[%s6214_s1 + $0x2d8] sm:$0xff]  }
  0x4c   :  { %6326 = vst [vmem:[#allocation19_spill] sm:$0xff] %v4880_v61  ;;  %3379 = vmatpush3.bf16.msra.mxu0 %v4875_v33  ;;  %6328 = vst [vmem:[#allocation21_spill] sm:$0xff] %v4895_v63  ;;  %1173 = vmatmul.mubr.bf16.gmra.mrb[12].mxu1 %v4105_v35  ;;  %v4907_v33 = vld [vmem:[%s6214_s1 + $0x298] sm:$0xff]   ;;  %v4913_v35 = vld [vmem:[%s6214_s1 + $0x260] sm:$0xff]  }
  0x4d   :  { %3407 = vmatpush3.bf16.msra.mxu1 %v4880_v61  ;;  %3380 = vmatprep.subr.bf16.mxu0 %v4889_v59  ;;  %6330 = vst [vmem:[#allocation23_spill] sm:$0xff] %v4907_v33  ;;  %6331 = vst [vmem:[#allocation24_spill] sm:$0xff] %v4913_v35  ;;  %v4919_v61 = vld [vmem:[%s6214_s1 + $0x2e0] sm:$0xff]  }
  0x4e   :  { %3408 = vmatprep.subr.bf16.mxu1 %v4895_v63  ;;  %6332 = vst [vmem:[#allocation25_spill] sm:$0xff] %v4919_v61  ;;  %v4925_v63 = vld [vmem:[%s6214_s1 + $0x220] sm:$0xff]  }
  0x4f   :  { %6333 = vst [vmem:[#allocation26_spill] sm:$0xff] %v4925_v63  ;;  %v4131_v59 = vld [vmem:[%s6215_s0 + $0x2c] ss:$52 sps:$4 sm:$0xff]  }
  0x50   :  { %3381 = vmatpush3.bf16.msra.mxu0 %v4901_v55  ;;  %v4931_v55 = vld [vmem:[%s6214_s1 + $0x2a0] sm:$0xff]   ;;  %1262 = vmatprep.mubr.bf16.mxu1 %v4131_v59  ;;  %v4138_v59 = vld [vmem:[%s6215_s0 + $0x94] ss:$52 sps:$4 sm:$0xff]  }
  0x51   :  { %3409 = vmatpush3.bf16.msra.mxu1 %v4907_v33  ;;  %3382 = vmatprep.subr.bf16.mxu0 %v4913_v35  ;;  %6334 = vst [vmem:[#allocation27_spill] sm:$0xff] %v4931_v55  ;;  %v4937_v33 = vld [vmem:[%s6214_s1 + $0x268] sm:$0xff]  }
  0x52   :  { %3410 = vmatprep.subr.bf16.mxu1 %v4919_v61  ;;  %6335 = vst [vmem:[#allocation28_spill] sm:$0xff] %v4937_v33  ;;  %v4943_v35 = vld [vmem:[%s6214_s1 + $0x2e8] sm:$0xff]  }
  0x53   :  { %6336 = vst [vmem:[#allocation29_spill] sm:$0xff] %v4943_v35  ;;  %v4949_v61 = vld [vmem:[%s6214_s1 + $0x228] sm:$0xff]  }
  0x54   :  { %3383 = vmatpush3.bf16.msra.mxu0 %v4925_v63  ;;  %6337 = vst [vmem:[#allocation30_spill] sm:$0xff] %v4949_v61  ;;  %v4955_v63 = vld [vmem:[%s6214_s1 + $0x2a8] sm:$0xff]  }
  0x55   :  { %3411 = vmatpush3.bf16.msra.mxu1 %v4931_v55  ;;  %3384 = vmatprep.subr.bf16.mxu0 %v4937_v33  ;;  %6338 = vst [vmem:[#allocation31_spill] sm:$0xff] %v4955_v63  ;;  %v4961_v55 = vld [vmem:[%s6214_s1 + $0x270] sm:$0xff]  }
  0x56   :  { %3412 = vmatprep.subr.bf16.mxu1 %v4943_v35  ;;  %6339 = vst [vmem:[#allocation32_spill] sm:$0xff] %v4961_v55  ;;  %v4967_v33 = vld [vmem:[%s6214_s1 + $0x2f0] sm:$0xff]  }
  0x57   :  { %6340 = vst [vmem:[#allocation33_spill] sm:$0xff] %v4967_v33  ;;  %v4973_v35 = vld [vmem:[%s6214_s1 + $0x230] sm:$0xff]  }
  0x58   :  { %3385 = vmatpush3.bf16.msra.mxu0 %v4949_v61  ;;  %6341 = vst [vmem:[#allocation34_spill] sm:$0xff] %v4973_v35  ;;  %v4979_v61 = vld [vmem:[%s6214_s1 + $0x2b0] sm:$0xff]  }
  0x59   :  { %3413 = vmatpush3.bf16.msra.mxu1 %v4955_v63  ;;  %3386 = vmatprep.subr.bf16.mxu0 %v4961_v55  ;;  %6342 = vst [vmem:[#allocation35_spill] sm:$0xff] %v4979_v61  ;;  %v4985_v63 = vld [vmem:[%s6214_s1 + $0x278] sm:$0xff]  }
  0x5a   :  { %3414 = vmatprep.subr.bf16.mxu1 %v4967_v33  ;;  %6343 = vst [vmem:[#allocation36_spill] sm:$0xff] %v4985_v63  ;;  %v4991_v55 = vld [vmem:[%s6214_s1 + $0x2f8] sm:$0xff]  }
  0x5b   :  { %6344 = vst [vmem:[#allocation37_spill] sm:$0xff] %v4991_v55  ;;  %v4997_v33 = vld [vmem:[%s6214_s1 + $0x238] sm:$0xff]  }
  0x5c   :  { %3387 = vmatpush3.bf16.msra.mxu0 %v4973_v35  ;;  %6345 = vst [vmem:[#allocation38_spill] sm:$0xff] %v4997_v33  ;;  %v5003_v35 = vld [vmem:[%s6214_s1 + $0x2b8] sm:$0xff]  }
  0x5d   :  { %3415 = vmatpush3.bf16.msra.mxu1 %v4979_v61  ;;  %3388 = vmatprep.subr.bf16.mxu0 %v4985_v63  ;;  %6346 = vst [vmem:[#allocation39_spill] sm:$0xff] %v5003_v35  ;;  %v4126_v61 = vld [vmem:[%s6215_s0 + $0x20] ss:$52 sps:$4 sm:$0xff]   ;;  %v4128_v63 = vld [vmem:[%s6215_s0 + $0x24] ss:$52 sps:$4 sm:$0xff]  }
  0x5e   :  { %3416 = vmatprep.subr.bf16.mxu1 %v4991_v55  ;;  %v4129_v55 = vld [vmem:[%s6215_s0 + $0x28] ss:$52 sps:$4 sm:$0xff]   ;;  %1213 = vmatprep.mubr.bf16.mxu0 %v4128_v63  ;;  %v4134_v63 = vld [vmem:[%s6215_s0 + $0x8c] ss:$52 sps:$4 sm:$0xff]  }
  0x60   :  { %3389 = vmatpush3.bf16.msra.mxu0 %v4997_v33  ;;  %v5023_v33 = vld [vmem:[%s6214_s1 + $0x300] sm:$0xff]  }
  0x61   :  { %3417 = vmatpush3.bf16.msra.mxu1 %v5003_v35  ;;  %v5028_v35 = vld [vmem:[%s6214_s1 + $0x308] sm:$0xff]   ;;  %3958 = vmatprep.subr.bf16.mxu0 %v5023_v33 }
  0x62   :  { %3436 = vmatprep.subr.bf16.mxu1 %v4386_v0  ;;  %v4136_v0 = vld [vmem:[%s6215_s0 + $0x88] ss:$52 sps:$4 sm:$0xff]  }
  0x63   :  { %1214 = vmatmul.mubr.bf16.vlgmr.msra.gmra.mrb[16].mxu0 %v4126_v61  ;;  %v5061_v61 = vld [vmem:[%s6214_s1 + $0x318] sm:$0xff]  }
  0x64   :  { %1263 = vmatmul.mubr.bf16.vlgmr.msra.gmra.mrb[16].mxu1 %v4129_v55  ;;  %3959 = vmatpush3.bf16.msra.mxu0 %v5023_v33  ;;  %v5044_v55 = vld [vmem:[%s6214_s1 + $0x310] sm:$0xff]  }
  0x65   :  { %3437 = vmatpush3.bf16.msra.mxu1 %v4397_v2  ;;  %3960 = vmatprep.subr.bf16.mxu0 %v5028_v35  ;;  %v4140_v2 = vld [vmem:[%s6215_s0 + $0x90] ss:$52 sps:$4 sm:$0xff]  }
  0x66   :  { %3438 = vmatprep.subr.bf16.mxu1 %v4409_v4  ;;  %1221 = vmatprep.mubr.bf16.mxu0 %v4134_v63  ;;  %v4142_v4 = vld [vmem:[%s6215_s0 + $0x30] ss:$52 sps:$4 sm:$0xff]   ;;  %v4146_v63 = vld [vmem:[%s6215_s0 + $0xd4] ss:$52 sps:$4 sm:$0xff]  }
  0x67   :  { %1270 = vmatprep.mubr.bf16.mxu1 %v4138_v59  ;;  %v4177_v59 = vld [vmem:[%s6215_s0 + $0x100] ss:$52 sps:$4 sm:$0xff]  }
  0x68   :  { %3961 = vmatpush3.bf16.msra.mxu0 %v5028_v35 }
  0x69   :  { %3439 = vmatpush3.bf16.msra.mxu1 %v4421_v6  ;;  %3962 = vmatprep.subr.bf16.mxu0 %v5044_v55  ;;  %v4143_v6 = vld [vmem:[%s6215_s0 + $0x98] ss:$52 sps:$4 sm:$0xff]  }
  0x6a   :  { %3440 = vmatprep.subr.bf16.mxu1 %v4433_v8  ;;  %v4149_v8 = vld [vmem:[%s6215_s0 + $0xdc] ss:$52 sps:$4 sm:$0xff]  }
  0x6b   :  { %1222 = vmatmul.mubr.bf16.gmra.mrb[20].mxu0 %v4136_v0  ;;  %v6381_v0 = vld [vmem:[#allocation33_spill] sm:$0xff] }
  0x6c   :  { %3966 = vmatprep.mubr.msk.bf16.mxu0 %vm978_vm0, %v4142_v4  ;;  %1271 = vmatmul.mubr.bf16.gmra.mrb[20].mxu1 %v4140_v2  ;;  %v6382_v2 = vld [vmem:[#allocation35_spill] sm:$0xff]  ;;  %v6383_v4 = vld [vmem:[#allocation37_spill] sm:$0xff] }
  0x6d   :  { %3963 = vmatpush3.bf16.msra.mxu0 %v5044_v55  ;;  %3441 = vmatpush3.bf16.msra.mxu1 %v4445_v10  ;;  %v4156_v10 = vld [vmem:[%s6215_s0 + $0x144] ss:$52 sps:$4 sm:$0xff]  }
  0x6e   :  { %3964 = vmatprep.subr.bf16.mxu0 %v5061_v61  ;;  %3442 = vmatprep.subr.bf16.mxu1 %v4457_v12  ;;  %v4164_v12 = vld [vmem:[%s6215_s0 + $0xec] ss:$52 sps:$4 sm:$0xff]  }
  0x6f   :  { %1557 = vmatprep.mubr.bf16.mxu1 %v4146_v63  ;;  %v4174_v63 = vld [vmem:[%s6215_s0 + $0xf8] ss:$52 sps:$4 sm:$0xff]  }
  0x71   :  { %3965 = vmatpush3.bf16.msra.mxu0 %v5061_v61  ;;  %3443 = vmatpush3.bf16.msra.mxu1 %v4469_v14  ;;  %v4159_v14 = vld [vmem:[%s6215_s0 + $0x14c] ss:$52 sps:$4 sm:$0xff]  }
  0x72   :  { %3444 = vmatprep.subr.bf16.mxu1 %v4481_v16  ;;  %3464 = vmatprep.subr.bf16.mxu0 %v4391_v1  ;;  %v4144_v1 = vld [vmem:[%s6215_s0 + $0xd0] ss:$52 sps:$4 sm:$0xff]  }
  0x73   :  { %v6348_v16 = vld [vmem:[#allocation10_spill] sm:$0xff] }
  0x74   :  { %3967 = vmatmul.mubr.msk.bf16.vlgmr.msra.gmra.mrb[24].mxu0 %vm978_vm0, %v4143_v6  ;;  %v4178_v6 = vld [vmem:[%s6215_s0 + $0x168] ss:$52 sps:$4 sm:$0xff]  }
  0x75   :  { %3445 = vmatpush3.bf16.msra.mxu1 %v4493_v18  ;;  %3465 = vmatpush3.bf16.msra.mxu0 %v4403_v3  ;;  %v4150_v3 = vld [vmem:[%s6215_s0 + $0x13c] ss:$52 sps:$4 sm:$0xff]  }
  0x76   :  { %3446 = vmatprep.subr.bf16.mxu1 %v4505_v20  ;;  %3466 = vmatprep.subr.bf16.mxu0 %v4415_v5  ;;  %v4152_v5 = vld [vmem:[%s6215_s0 + $0x138] ss:$52 sps:$4 sm:$0xff]   ;;  %v6350_v18 = vld [vmem:[#allocation12_spill] sm:$0xff] }
  0x77   :  { %1606 = vmatprep.mubr.bf16.mxu0 %v4149_v8  ;;  %v6351_v20 = vld [vmem:[#allocation4_spill] sm:$0xff]  ;;  %v6384_v8 = vld [vmem:[#allocation39_spill] sm:$0xff] }
  0x79   :  { %3447 = vmatpush3.bf16.msra.mxu1 %v4517_v22  ;;  %3467 = vmatpush3.bf16.msra.mxu0 %v4427_v7  ;;  %v4155_v7 = vld [vmem:[%s6215_s0 + $0xe4] ss:$52 sps:$4 sm:$0xff]  }
  0x7a   :  { %3448 = vmatprep.subr.bf16.mxu1 %v4529_v24  ;;  %3468 = vmatprep.subr.bf16.mxu0 %v4439_v9  ;;  %v4147_v9 = vld [vmem:[%s6215_s0 + $0xd8] ss:$52 sps:$4 sm:$0xff]   ;;  %v4170_v24 = vld [vmem:[%s6215_s0 + $0xf4] ss:$52 sps:$4 sm:$0xff]  }
  0x7b   :  { %v6353_v22 = vld [vmem:[#allocation5_spill] sm:$0xff] }
  0x7d   :  { %3449 = vmatpush3.bf16.msra.mxu1 %v4541_v26  ;;  %3469 = vmatpush3.bf16.msra.mxu0 %v4451_v11  ;;  %v4158_v11 = vld [vmem:[%s6215_s0 + $0x140] ss:$52 sps:$4 sm:$0xff]  }
  0x7e   :  { %3450 = vmatprep.subr.bf16.mxu1 %v4553_v28  ;;  %3470 = vmatprep.subr.bf16.mxu0 %v4463_v13  ;;  %v4153_v13 = vld [vmem:[%s6215_s0 + $0xe0] ss:$52 sps:$4 sm:$0xff]  }
  0x7f   :  { %v6356_v26 = vld [vmem:[#allocation18_spill] sm:$0xff]  ;;  %v6358_v28 = vld [vmem:[#allocation20_spill] sm:$0xff] }
  0x81   :  { %3451 = vmatpush3.bf16.msra.mxu1 %v4565_v30  ;;  %3471 = vmatpush3.bf16.msra.mxu0 %v4475_v15  ;;  %v6347_v15 = vld [vmem:[#allocation2_spill] sm:$0xff]  ;;  %v6359_v30 = vld [vmem:[#allocation8_spill] sm:$0xff] }
  0x82   :  { %3472 = vmatprep.subr.bf16.mxu0 %v4487_v17  ;;  %3492 = vmatprep.subr.bf16.mxu1 %v4590_v36  ;;  %v6349_v17 = vld [vmem:[#allocation3_spill] sm:$0xff]  ;;  %v6361_v36 = vld [vmem:[#allocation24_spill] sm:$0xff] }
  0x84   :  { %1558 = vmatmul.mubr.bf16.vlgmr.msra.gmra.mrb[24].mxu1 %v4144_v1  ;;  %v5247_v1 = vld [vmem:[%s6214_s1 + $0x40] sm:$0xff]  }
  0x85   :  { %3473 = vmatpush3.bf16.msra.mxu0 %v4499_v19  ;;  %3493 = vmatpush3.bf16.msra.mxu1 %v4601_v38  ;;  %v4161_v19 = vld [vmem:[%s6215_s0 + $0x148] ss:$52 sps:$4 sm:$0xff]  }
  0x86   :  { %3474 = vmatprep.subr.bf16.mxu0 %v4511_v21  ;;  %3494 = vmatprep.subr.bf16.mxu1 %v4613_v40  ;;  %v6352_v21 = vld [vmem:[#allocation14_spill] sm:$0xff]  ;;  %v4165_v38 = vld [vmem:[%s6215_s0 + $0x154] ss:$52 sps:$4 sm:$0xff]  }
  0x87   :  { %1565 = vmatprep.mubr.bf16.mxu1 %v4150_v3  ;;  %v6364_v40 = vld [vmem:[#allocation11_spill] sm:$0xff]  ;;  %v5253_v3 = vld [vmem:[%s6214_s1 + $0xc0] sm:$0xff]  }
  0x89   :  { %3475 = vmatpush3.bf16.msra.mxu0 %v4523_v23  ;;  %3495 = vmatpush3.bf16.msra.mxu1 %v4625_v42  ;;  %v6354_v23 = vld [vmem:[#allocation16_spill] sm:$0xff]  ;;  %v6366_v42 = vld [vmem:[#allocation13_spill] sm:$0xff] }
  0x8a   :  { %3476 = vmatprep.subr.bf16.mxu0 %v4535_v25  ;;  %3496 = vmatprep.subr.bf16.mxu1 %v4637_v44  ;;  %v6355_v25 = vld [vmem:[#allocation6_spill] sm:$0xff] }
  0x8b   :  { %v6367_v44 = vld [vmem:[#allocation30_spill] sm:$0xff] }
  0x8c   :  { %1566 = vmatmul.mubr.bf16.gmra.mrb[28].mxu1 %v4152_v5  ;;  %v4179_v5 = vld [vmem:[%s6215_s0 + $0x164] ss:$52 sps:$4 sm:$0xff]  }
  0x8d   :  { %3477 = vmatpush3.bf16.msra.mxu0 %v4547_v27  ;;  %3497 = vmatpush3.bf16.msra.mxu1 %v4649_v46  ;;  %v6357_v27 = vld [vmem:[#allocation7_spill] sm:$0xff]  ;;  %v6369_v46 = vld [vmem:[#allocation32_spill] sm:$0xff] }
  0x8e   :  { %3478 = vmatprep.subr.bf16.mxu0 %v4559_v29  ;;  %3498 = vmatprep.subr.bf16.mxu1 %v4661_v48  ;;  %v4162_v29 = vld [vmem:[%s6215_s0 + $0xe8] ss:$52 sps:$4 sm:$0xff]  }
  0x8f   :  { %1655 = vmatprep.mubr.bf16.mxu1 %v4155_v7  ;;  %v4176_v48 = vld [vmem:[%s6215_s0 + $0xfc] ss:$52 sps:$4 sm:$0xff]   ;;  %v4187_v7 = vld [vmem:[%s6215_s0 + $0x1ac] ss:$52 sps:$4 sm:$0xff]  }
  0x91   :  { %3479 = vmatpush3.bf16.msra.mxu0 %v4571_v31  ;;  %3499 = vmatpush3.bf16.msra.mxu1 %v4673_v50  ;;  %v6360_v31 = vld [vmem:[#allocation22_spill] sm:$0xff]  ;;  %v6372_v50 = vld [vmem:[#allocation19_spill] sm:$0xff] }
  0x92   :  { %3500 = vmatprep.subr.bf16.mxu1 %v4685_v52  ;;  %3520 = vmatprep.subr.bf16.mxu0 %v4595_v37  ;;  %v6362_v37 = vld [vmem:[#allocation9_spill] sm:$0xff] }
  0x93   :  { %v6374_v52 = vld [vmem:[#allocation21_spill] sm:$0xff] }
  0x94   :  { %1607 = vmatmul.mubr.bf16.vlgmr.msra.gmra.mrb[28].mxu0 %v4147_v9  ;;  %v5266_v9 = vld [vmem:[%s6214_s1] sm:$0xff]  }
  0x95   :  { %3501 = vmatpush3.bf16.msra.mxu1 %v4697_v54  ;;  %3521 = vmatpush3.bf16.msra.mxu0 %v4607_v39  ;;  %v6363_v39 = vld [vmem:[#allocation26_spill] sm:$0xff] }
  0x96   :  { %3502 = vmatprep.subr.bf16.mxu1 %v4709_v56  ;;  %3522 = vmatprep.subr.bf16.mxu0 %v4619_v41  ;;  %v6365_v41 = vld [vmem:[#allocation28_spill] sm:$0xff]  ;;  %v6375_v54 = vld [vmem:[#allocation38_spill] sm:$0xff]  ;;  %v6376_v56 = vld [vmem:[#allocation23_spill] sm:$0xff] }
  0x97   :  { %1614 = vmatprep.mubr.bf16.mxu0 %v4156_v10  ;;  %v5272_v10 = vld [vmem:[%s6214_s1 + $0x80] sm:$0xff]  }
  0x99   :  { %3503 = vmatpush3.bf16.msra.mxu1 %v4728_v60  ;;  %3523 = vmatpush3.bf16.msra.mxu0 %v4631_v43  ;;  %v4167_v43 = vld [vmem:[%s6215_s0 + $0x150] ss:$52 sps:$4 sm:$0xff]  }
  0x9a   :  { %3504 = vmatprep.subr.bf16.mxu1 %v4746_v32  ;;  %3524 = vmatprep.subr.bf16.mxu0 %v4643_v45  ;;  %v6368_v45 = vld [vmem:[#allocation15_spill] sm:$0xff]  ;;  %v4171_v60 = vld [vmem:[%s6215_s0 + $0x15c] ss:$52 sps:$4 sm:$0xff]  }
  0x9b   :  { %v6378_v32 = vld [vmem:[#allocation27_spill] sm:$0xff] }
  0x9c   :  { %1615 = vmatmul.mubr.bf16.gmra.mrb[32].mxu0 %v4158_v11  ;;  %v5278_v11 = vld [vmem:[%s6214_s1 + $0x48] sm:$0xff]  }
  0x9d   :  { %3505 = vmatpush3.bf16.msra.mxu1 %v4757_v34  ;;  %3525 = vmatpush3.bf16.msra.mxu0 %v4655_v47  ;;  %v6370_v47 = vld [vmem:[#allocation17_spill] sm:$0xff] }
  0x9e   :  { %3506 = vmatprep.subr.bf16.mxu1 %v4769_v58  ;;  %3526 = vmatprep.subr.bf16.mxu0 %v4667_v49  ;;  %v6371_v49 = vld [vmem:[#allocation34_spill] sm:$0xff]  ;;  %v6379_v34 = vld [vmem:[#allocation29_spill] sm:$0xff] }
  0x9f   :  { %1704 = vmatprep.mubr.bf16.mxu0 %v4164_v12  ;;  %v4173_v58 = vld [vmem:[%s6215_s0 + $0x158] ss:$52 sps:$4 sm:$0xff]  }
  0xa0   :  { %v5284_v12 = vld [vmem:[%s6214_s1 + $0xc8] sm:$0xff]  }
  0xa1   :  { %3507 = vmatpush3.bf16.msra.mxu1 %v4781_v62  ;;  %3527 = vmatpush3.bf16.msra.mxu0 %v4679_v51  ;;  %v6373_v51 = vld [vmem:[#allocation36_spill] sm:$0xff]  ;;  %v6380_v62 = vld [vmem:[#allocation31_spill] sm:$0xff] }
  0xa2   :  { %3528 = vmatprep.subr.bf16.mxu0 %v4691_v53  ;;  %3548 = vmatprep.subr.bf16.mxu1 %v4806_v57  ;;  %v4168_v53 = vld [vmem:[%s6215_s0 + $0xf0] ss:$52 sps:$4 sm:$0xff]   ;;  %v6377_v57 = vld [vmem:[#allocation25_spill] sm:$0xff] }
  0xa4   :  { %1656 = vmatmul.mubr.bf16.vlgmr.msra.gmra.mrb[32].mxu1 %v4153_v13  ;;  %v4181_v13 = vld [vmem:[%s6215_s0 + $0x160] ss:$52 sps:$4 sm:$0xff]  }
  0xa5   :  { %3529 = vmatpush3.bf16.msra.mxu0 %v6347_v15  ;;  %3549 = vmatpush3.bf16.msra.mxu1 %v6348_v16  ;;  %v5299_v15 = vld [vmem:[%s6214_s1 + $0x88] sm:$0xff]   ;;  %v5305_v16 = vld [vmem:[%s6214_s1 + $0x50] sm:$0xff]  }
  0xa6   :  { %3530 = vmatprep.subr.bf16.mxu0 %v6349_v17  ;;  %3550 = vmatprep.subr.bf16.mxu1 %v6350_v18  ;;  %v5311_v17 = vld [vmem:[%s6214_s1 + $0xd0] sm:$0xff]   ;;  %v4184_v18 = vld [vmem:[%s6215_s0 + $0x1a4] ss:$52 sps:$4 sm:$0xff]  }
  0xa7   :  { %1663 = vmatprep.mubr.bf16.mxu1 %v4159_v14  ;;  %v5293_v14 = vld [vmem:[%s6214_s1 + $0x8] sm:$0xff]  }
  0xa9   :  { %3531 = vmatpush3.bf16.msra.mxu0 %v6351_v20  ;;  %3551 = vmatpush3.bf16.msra.mxu1 %v6352_v21  ;;  %v5326_v20 = vld [vmem:[%s6214_s1 + $0x90] sm:$0xff]   ;;  %v5332_v21 = vld [vmem:[%s6214_s1 + $0x58] sm:$0xff]  }
  0xaa   :  { %3532 = vmatprep.subr.bf16.mxu0 %v6353_v22  ;;  %3552 = vmatprep.subr.bf16.mxu1 %v6354_v23  ;;  %v5338_v22 = vld [vmem:[%s6214_s1 + $0xd8] sm:$0xff]  }
  0xab   :  { %v5344_v23 = vld [vmem:[%s6214_s1 + $0x18] sm:$0xff]  }
  0xac   :  { %1664 = vmatmul.mubr.bf16.gmra.mrb[36].mxu1 %v4161_v19  ;;  %v5320_v19 = vld [vmem:[%s6214_s1 + $0x10] sm:$0xff]  }
  0xad   :  { %3533 = vmatpush3.bf16.msra.mxu0 %v6355_v25  ;;  %3553 = vmatpush3.bf16.msra.mxu1 %v6356_v26  ;;  %v5356_v25 = vld [vmem:[%s6214_s1 + $0x60] sm:$0xff]  }
  0xae   :  { %3534 = vmatprep.subr.bf16.mxu0 %v6357_v27  ;;  %3554 = vmatprep.subr.bf16.mxu1 %v6358_v28  ;;  %v5362_v26 = vld [vmem:[%s6214_s1 + $0xe0] sm:$0xff]  }
  0xaf   :  { %1753 = vmatprep.mubr.bf16.mxu1 %v4170_v24  ;;  %v5350_v24 = vld [vmem:[%s6214_s1 + $0x98] sm:$0xff]   ;;  %v5368_v27 = vld [vmem:[%s6214_s1 + $0x20] sm:$0xff]  }
  0xb0   :  { %v5374_v28 = vld [vmem:[%s6214_s1 + $0xa0] sm:$0xff]  }
  0xb1   :  { %3535 = vmatpush3.bf16.msra.mxu0 %v6359_v30  ;;  %3555 = vmatpush3.bf16.msra.mxu1 %v6360_v31  ;;  %v5386_v30 = vld [vmem:[%s6214_s1 + $0xe8] sm:$0xff]  }
  0xb2   :  { %3556 = vmatprep.subr.bf16.mxu1 %v6361_v36  ;;  %3576 = vmatprep.subr.bf16.mxu0 %v6362_v37  ;;  %v5392_v31 = vld [vmem:[%s6214_s1 + $0x28] sm:$0xff]   ;;  %v5404_v37 = vld [vmem:[%s6214_s1 + $0x70] sm:$0xff]  }
  0xb3   :  { %v5398_v36 = vld [vmem:[%s6214_s1 + $0xa8] sm:$0xff]  }
  0xb4   :  { %1705 = vmatmul.mubr.bf16.vlgmr.msra.gmra.mrb[36].mxu0 %v4162_v29  ;;  %v5380_v29 = vld [vmem:[%s6214_s1 + $0x68] sm:$0xff]  }
  0xb5   :  { %3557 = vmatpush3.bf16.msra.mxu1 %v6363_v39  ;;  %3577 = vmatpush3.bf16.msra.mxu0 %v6364_v40 }
  0xb6   :  { %3558 = vmatprep.subr.bf16.mxu1 %v6365_v41  ;;  %3578 = vmatprep.subr.bf16.mxu0 %v6366_v42  ;;  %v5416_v42 = vld [vmem:[%s6214_s1 + $0x30] sm:$0xff]  }
  0xb7   :  { %1712 = vmatprep.mubr.bf16.mxu0 %v4165_v38  ;;  %v5410_v38 = vld [vmem:[%s6214_s1 + $0xf0] sm:$0xff]  }
  0xb8   :  { %6385 = vst [vmem:[#allocation2_spill] sm:$0xff] %v5410_v38 }
  0xb9   :  { %3559 = vmatpush3.bf16.msra.mxu1 %v6367_v44  ;;  %3579 = vmatpush3.bf16.msra.mxu0 %v6368_v45 }
  0xba   :  { %3560 = vmatprep.subr.bf16.mxu1 %v6369_v46  ;;  %3580 = vmatprep.subr.bf16.mxu0 %v6370_v47 }
  0xbc   :  { %1713 = vmatmul.mubr.bf16.gmra.mrb[40].mxu0 %v4167_v43  ;;  %v5422_v43 = vld [vmem:[%s6214_s1 + $0xb0] sm:$0xff]  }
  0xbd   :  { %3561 = vmatpush3.bf16.msra.mxu1 %v6371_v49  ;;  %3581 = vmatpush3.bf16.msra.mxu0 %v6372_v50  ;;  %6386 = vst [vmem:[#allocation10_spill] sm:$0xff] %v5422_v43  ;;  %v5434_v50 = vld [vmem:[%s6214_s1 + $0xf8] sm:$0xff]  }
  0xbe   :  { %3562 = vmatprep.subr.bf16.mxu1 %v6373_v51  ;;  %3582 = vmatprep.subr.bf16.mxu0 %v6374_v52  ;;  %6387 = vst [vmem:[#allocation3_spill] sm:$0xff] %v5434_v50 }
  0xbf   :  { %1802 = vmatprep.mubr.bf16.mxu0 %v4176_v48  ;;  %v5428_v48 = vld [vmem:[%s6214_s1 + $0x78] sm:$0xff]  }
  0xc1   :  { %3563 = vmatpush3.bf16.msra.mxu1 %v6375_v54  ;;  %3583 = vmatpush3.bf16.msra.mxu0 %v6376_v56 }
  0xc2   :  { %3584 = vmatprep.subr.bf16.mxu0 %v6377_v57  ;;  %3970 = vmatprep.subr.bf16.mxu1 %v5023_v33 }
  0xc4   :  { %1754 = vmatmul.mubr.bf16.vlgmr.msra.gmra.mrb[40].mxu1 %v4168_v53 }
  0xc5   :  { %3585 = vmatpush3.bf16.msra.mxu0 %v6378_v32  ;;  %3971 = vmatpush3.bf16.msra.mxu1 %v5023_v33  ;;  %v4182_v32 = vld [vmem:[%s6215_s0 + $0x1a0] ss:$52 sps:$4 sm:$0xff]  }
  0xc6   :  { %3586 = vmatprep.subr.bf16.mxu0 %v6379_v34  ;;  %3972 = vmatprep.subr.bf16.mxu1 %v5028_v35  ;;  %v4185_v34 = vld [vmem:[%s6215_s0 + $0x1a8] ss:$52 sps:$4 sm:$0xff]  }
  0xc7   :  { %1761 = vmatprep.mubr.bf16.mxu1 %v4171_v60 }
  0xc9   :  { %3587 = vmatpush3.bf16.msra.mxu0 %v6380_v62  ;;  %3973 = vmatpush3.bf16.msra.mxu1 %v5028_v35 }
  0xca   :  { %3588 = vmatprep.subr.bf16.mxu0 %v6381_v0  ;;  %3974 = vmatprep.subr.bf16.mxu1 %v5044_v55 }
  0xcc   :  { %1762 = vmatmul.mubr.bf16.gmra.mrb[44].mxu1 %v4173_v58 }
  0xcd   :  { %3589 = vmatpush3.bf16.msra.mxu0 %v6382_v2  ;;  %3975 = vmatpush3.bf16.msra.mxu1 %v5044_v55 }
  0xce   :  { %3590 = vmatprep.subr.bf16.mxu0 %v6383_v4  ;;  %3976 = vmatprep.subr.bf16.mxu1 %v5061_v61 }
  0xcf   :  { %3978 = vmatprep.mubr.msk.bf16.mxu1 %vm978_vm0, %v4177_v59 }
  0xd1   :  { %3591 = vmatpush3.bf16.msra.mxu0 %v6384_v8  ;;  %3977 = vmatpush3.bf16.msra.mxu1 %v5061_v61 }
  0xd2   :  { %3610 = vmatprep.subr.bf16.mxu0 %v5247_v1  ;;  %3638 = vmatprep.subr.bf16.mxu1 %v5253_v3 }
  0xd4   :  { %1803 = vmatmul.mubr.bf16.vlgmr.msra.gmra.mrb[44].mxu0 %v4174_v63  ;;  %3979 = vmatmul.mubr.msk.bf16.vlgmr.msra.gmra.mrb[48].mxu1 %vm978_vm0, %v4178_v6  ;;  %v5448_v63 = vld [vmem:[%s6214_s1 + $0x38] sm:$0xff]  }
  0xd5   :  { %3611 = vmatpush3.bf16.msra.mxu0 %v5266_v9  ;;  %3639 = vmatpush3.bf16.msra.mxu1 %v5272_v10  ;;  %v5454_v6 = vld [vmem:[%s6214_s1 + $0xb8] sm:$0xff]  }
  0xd6   :  { %3612 = vmatprep.subr.bf16.mxu0 %v5278_v11  ;;  %3640 = vmatprep.subr.bf16.mxu1 %v5284_v12  ;;  %6388 = vst [vmem:[#allocation12_spill] sm:$0xff] %v5454_v6 }
  0xd7   :  { %1810 = vmatprep.mubr.bf16.mxu0 %v4179_v5  ;;  %2138 = vmatprep.mubr.bf16.mxu1 %v4187_v7  ;;  %v5460_v5 = vld [vmem:[%s6214_s1 + $0x140] sm:$0xff]  }
  0xd8   :  { %v5466_v7 = vld [vmem:[%s6214_s1 + $0x1c0] sm:$0xff]  }
  0xd9   :  { %3613 = vmatpush3.bf16.msra.mxu0 %v5293_v14  ;;  %3641 = vmatpush3.bf16.msra.mxu1 %v5299_v15  ;;  %6389 = vst [vmem:[#allocation4_spill] sm:$0xff] %v5466_v7 }
  0xda   :  { %3614 = vmatprep.subr.bf16.mxu0 %v5305_v16  ;;  %3642 = vmatprep.subr.bf16.mxu1 %v5311_v17 }
  0xdc   :  { %1811 = vmatmul.mubr.bf16.gmra.mrb[48].mxu0 %v4181_v13 }
  0xdd   :  { %3615 = vmatpush3.bf16.msra.mxu0 %v5320_v19  ;;  %3643 = vmatpush3.bf16.msra.mxu1 %v5326_v20 }
  0xde   :  { %3616 = vmatprep.subr.bf16.mxu0 %v5332_v21  ;;  %3644 = vmatprep.subr.bf16.mxu1 %v5338_v22 }
  0xdf   :  { %2089 = vmatprep.mubr.bf16.mxu0 %v4184_v18  ;;  %v4188_v18 = vld [vmem:[%s6215_s0 + $0x20c] ss:$52 sps:$4 sm:$0xff]  }
  0xe1   :  { %3617 = vmatpush3.bf16.msra.mxu0 %v5344_v23  ;;  %3645 = vmatpush3.bf16.msra.mxu1 %v5350_v24 }
  0xe2   :  { %3618 = vmatprep.subr.bf16.mxu0 %v5356_v25  ;;  %3646 = vmatprep.subr.bf16.mxu1 %v5362_v26 }
  0xe5   :  { %3619 = vmatpush3.bf16.msra.mxu0 %v5368_v27  ;;  %3647 = vmatpush3.bf16.msra.mxu1 %v5374_v28 }
  0xe6   :  { %3620 = vmatprep.subr.bf16.mxu0 %v5380_v29  ;;  %3648 = vmatprep.subr.bf16.mxu1 %v5386_v30 }
  0xe9   :  { %3621 = vmatpush3.bf16.msra.mxu0 %v5392_v31  ;;  %3649 = vmatpush3.bf16.msra.mxu1 %v5398_v36 }
  0xea   :  { %3622 = vmatprep.subr.bf16.mxu0 %v5404_v37  ;;  %3650 = vmatprep.subr.bf16.mxu1 %v5410_v38 }
  0xed   :  { %3623 = vmatpush3.bf16.msra.mxu0 %v5416_v42  ;;  %3651 = vmatpush3.bf16.msra.mxu1 %v5422_v43 }
  0xee   :  { %3624 = vmatprep.subr.bf16.mxu0 %v5428_v48  ;;  %3652 = vmatprep.subr.bf16.mxu1 %v5434_v50 }
  0xf1   :  { %3625 = vmatpush3.bf16.msra.mxu0 %v5448_v63  ;;  %3653 = vmatpush3.bf16.msra.mxu1 %v5454_v6 }
  0xf2   :  { %3666 = vmatprep.subr.bf16.mxu0 %v5460_v5  ;;  %3694 = vmatprep.subr.bf16.mxu1 %v5466_v7 }
  0xf4   :  { %2090 = vmatmul.mubr.bf16.vlgmr.msra.gmra.mrb[52].mxu0 %v4182_v32  ;;  %2139 = vmatmul.mubr.bf16.vlgmr.msra.gmra.mrb[52].mxu1 %v4185_v34  ;;  %v4196_v32 = vld [vmem:[%s6215_s0 + $0x1b4] ss:$52 sps:$4 sm:$0xff]   ;;  %v4199_v34 = vld [vmem:[%s6215_s0 + $0x1bc] ss:$52 sps:$4 sm:$0xff]  }
  0xf5   :  { %2097 = vmatprep.mubr.bf16.mxu0 %v4188_v18  ;;  %v5546_v18 = vld [vmem:[%s6214_s1 + $0x190] sm:$0xff]  }
  0xf6   :  { %v3278_v39 = vpop.f32.mrb[0].mxu0  ;;  %6397 = vst [vmem:[#allocation8_spill] sm:$0xff] %v5546_v18 }
  0xf7   :  { %v3306_v40 = vpop.f32.mrb[0].mxu1  ;;  %v3279_v41 = vpop.f32.mrb[1].mxu0 }
  0xf8   :  { %v3280_v44 = vadd.f32 %v3279_v41, %v3278_v39  ;;  %v3307_v45 = vpop.f32.mrb[1].mxu1  ;;  %v3281_v47 = vpop.f32.mrb[2].mxu0  ;;  %v4190_v39 = vld [vmem:[%s6215_s0 + $0x214] ss:$52 sps:$4 sm:$0xff]   ;;  %v5486_v41 = vld [vmem:[%s6214_s1 + $0x180] sm:$0xff]  }
  0xf9   :  { %v3308_v52 = vadd.f32 %v3307_v45, %v3306_v40  ;;  %v3309_v53 = vpop.f32.mrb[2].mxu1  ;;  %v3282_v56 = vpop.f32.mrb[3].mxu0  ;;  %v5480_v40 = vld [vmem:[%s6214_s1 + $0x100] sm:$0xff]   ;;  %6390 = vst [vmem:[#allocation14_spill] sm:$0xff] %v5486_v41  ;;  %3695 = vmatpush3.bf16.msra.mxu1 %v5486_v41  ;;  %v5498_v45 = vld [vmem:[%s6214_s1 + $0x1c8] sm:$0xff]   ;;  %2146 = vmatprep.mubr.bf16.mxu1 %v4190_v39  ;;  %v5552_v39 = vld [vmem:[%s6214_s1 + $0x158] sm:$0xff]  }
  0xfa   :  { %v3283_v57 = vadd.f32 %v3282_v56, %v3281_v47  ;;  %v3310_v60 = vpop.f32.mrb[3].mxu1  ;;  %3667 = vmatpush3.bf16.msra.mxu0 %v5480_v40  ;;  %6391 = vst [vmem:[#allocation5_spill] sm:$0xff] %v5498_v45  ;;  %3696 = vmatprep.subr.bf16.mxu1 %v5498_v45  ;;  %v4192_v47 = vld [vmem:[%s6215_s0 + $0x208] ss:$52 sps:$4 sm:$0xff]   ;;  %6398 = vst [vmem:[#allocation22_spill] sm:$0xff] %v5552_v39 }
  0xfb   :  { %v5443_v58 = vadd.f32 %v3308_v52, %v3280_v44  ;;  %v3311_v59 = vadd.f32 %v3310_v60, %v3309_v53  ;;  %v5492_v44 = vld [vmem:[%s6214_s1 + $0x148] sm:$0xff]   ;;  %v4193_v52 = vld [vmem:[%s6215_s0 + $0x210] ss:$52 sps:$4 sm:$0xff]  }
  0xfc   :  { %3668 = vmatprep.subr.bf16.mxu0 %v5492_v44  ;;  %v5510_v53 = vld [vmem:[%s6214_s1 + $0x108] sm:$0xff]   ;;  %v5528_v60 = vld [vmem:[%s6214_s1 + $0x1d0] sm:$0xff]   ;;  %2098 = vmatmul.mubr.bf16.gmra.mrb[56].mxu0 %v4192_v47  ;;  %v5558_v47 = vld [vmem:[%s6214_s1 + $0x1d8] sm:$0xff]  }
  0xfd   :  { %v5469_v13 = vadd.f32 %v3311_v59, %v3283_v57  ;;  %6392 = vst [vmem:[#allocation16_spill] sm:$0xff] %v5510_v53  ;;  %v5516_v56 = vld [vmem:[%s6214_s1 + $0x188] sm:$0xff]   ;;  %v5522_v57 = vld [vmem:[%s6214_s1 + $0x150] sm:$0xff]   ;;  %6395 = vst [vmem:[#allocation7_spill] sm:$0xff] %v5528_v60  ;;  %2147 = vmatmul.mubr.bf16.gmra.mrb[56].mxu1 %v4193_v52  ;;  %2187 = vmatprep.mubr.bf16.mxu0 %v4196_v32 }
  0xfe   :  { %3669 = vmatpush3.bf16.msra.mxu0 %v5510_v53  ;;  %6393 = vst [vmem:[#allocation6_spill] sm:$0xff] %v5516_v56  ;;  %3697 = vmatpush3.bf16.msra.mxu1 %v5516_v56  ;;  %6394 = vst [vmem:[#allocation18_spill] sm:$0xff] %v5522_v57  ;;  %v5540_v59 = vld [vmem:[%s6214_s1 + $0x110] sm:$0xff]   ;;  %v5564_v52 = vld [vmem:[%s6214_s1 + $0x118] sm:$0xff]  }
  0xff   :  { %3670 = vmatprep.subr.bf16.mxu0 %v5522_v57  ;;  %3698 = vmatprep.subr.bf16.mxu1 %v5528_v60  ;;  %6396 = vst [vmem:[#allocation20_spill] sm:$0xff] %v5540_v59  ;;  %6399 = vst [vmem:[#allocation24_spill] sm:$0xff] %v5558_v47  ;;  %v5582_v32 = vld [vmem:[%s6214_s1 + $0x1e0] sm:$0xff]   ;;  %v3284_v60 = vpop.f32.mrb[4].mxu0  ;;  %v5600_v56 = vld [vmem:[%s6214_s1 + $0x168] sm:$0xff]   ;;  %v3312_v45 = vpop.f32.mrb[4].mxu1 }
 0x100   :  { %2236 = vmatprep.mubr.bf16.mxu1 %v4199_v34  ;;  %6400 = vst [vmem:[#allocation9_spill] sm:$0xff] %v5564_v52  ;;  %6403 = vst [vmem:[#allocation28_spill] sm:$0xff] %v5582_v32  ;;  %v5588_v34 = vld [vmem:[%s6214_s1 + $0x120] sm:$0xff]   ;;  %v3285_v41 = vpop.f32.mrb[5].mxu0  ;;  %v3313_v7 = vpop.f32.mrb[5].mxu1 }
 0x101   :  { %6404 = vst [vmem:[#allocation13_spill] sm:$0xff] %v5588_v34  ;;  %6406 = vst [vmem:[#allocation15_spill] sm:$0xff] %v5600_v56  ;;  %v4200_v57 = vld [vmem:[%s6215_s0 + $0x21c] ss:$52 sps:$4 sm:$0xff]  }
 0x102   :  { %3671 = vmatpush3.bf16.msra.mxu0 %v5540_v59  ;;  %3699 = vmatpush3.bf16.msra.mxu1 %v5546_v18  ;;  %v5570_v18 = vld [vmem:[%s6214_s1 + $0x198] sm:$0xff]  }
 0x103   :  { %3672 = vmatprep.subr.bf16.mxu0 %v5552_v39  ;;  %3700 = vmatprep.subr.bf16.mxu1 %v5558_v47  ;;  %6401 = vst [vmem:[#allocation26_spill] sm:$0xff] %v5570_v18  ;;  %v5576_v47 = vld [vmem:[%s6214_s1 + $0x160] sm:$0xff]   ;;  %v5612_v39 = vld [vmem:[%s6214_s1 + $0x128] sm:$0xff]  }
 0x104   :  { %6402 = vst [vmem:[#allocation11_spill] sm:$0xff] %v5576_v47  ;;  %6408 = vst [vmem:[#allocation17_spill] sm:$0xff] %v5612_v39 }
 0x106   :  { %3673 = vmatpush3.bf16.msra.mxu0 %v5564_v52  ;;  %3701 = vmatpush3.bf16.msra.mxu1 %v5570_v18  ;;  %v5594_v18 = vld [vmem:[%s6214_s1 + $0x1a0] sm:$0xff]   ;;  %v3315_v52 = vpop.f32.mrb[6].mxu1 }
 0x107   :  { %3674 = vmatprep.subr.bf16.mxu0 %v5576_v47  ;;  %3702 = vmatprep.subr.bf16.mxu1 %v5582_v32  ;;  %6405 = vst [vmem:[#allocation30_spill] sm:$0xff] %v5594_v18  ;;  %v5606_v32 = vld [vmem:[%s6214_s1 + $0x1e8] sm:$0xff]   ;;  %v3314_v47 = vadd.f32 %v3313_v7, %v3312_v45  ;;  %v5624_v7 = vld [vmem:[%s6214_s1 + $0x170] sm:$0xff]  }
 0x108   :  { %6407 = vst [vmem:[#allocation32_spill] sm:$0xff] %v5606_v32  ;;  %6410 = vst [vmem:[#allocation19_spill] sm:$0xff] %v5624_v7  ;;  %v5630_v45 = vld [vmem:[%s6214_s1 + $0x1f0] sm:$0xff]  }
 0x109   :  { %6411 = vst [vmem:[#allocation36_spill] sm:$0xff] %v5630_v45 }
 0x10a   :  { %3675 = vmatpush3.bf16.msra.mxu0 %v5588_v34  ;;  %3703 = vmatpush3.bf16.msra.mxu1 %v5594_v18  ;;  %v3286_v34 = vadd.f32 %v3285_v41, %v3284_v60  ;;  %v3287_v18 = vpop.f32.mrb[6].mxu0  ;;  %v3316_v60 = vpop.f32.mrb[7].mxu1 }
 0x10b   :  { %3676 = vmatprep.subr.bf16.mxu0 %v5600_v56  ;;  %3704 = vmatprep.subr.bf16.mxu1 %v5606_v32  ;;  %v3288_v6 = vpop.f32.mrb[7].mxu0  ;;  %v5618_v56 = vld [vmem:[%s6214_s1 + $0x1a8] sm:$0xff]  }
 0x10c   :  { %6409 = vst [vmem:[#allocation34_spill] sm:$0xff] %v5618_v56  ;;  %v3289_v41 = vadd.f32 %v3288_v6, %v3287_v18  ;;  %v5633_v32 = vadd.f32 %v3314_v47, %v3286_v34  ;;  %v5640_v6 = vld [vmem:[%s6214_s1 + $0x130] sm:$0xff]   ;;  %v5652_v47 = vld [vmem:[%s6214_s1 + $0x178] sm:$0xff]  }
 0x10d   :  { %6412 = vst [vmem:[#allocation21_spill] sm:$0xff] %v5640_v6  ;;  %v5646_v18 = vld [vmem:[%s6214_s1 + $0x1b0] sm:$0xff]   ;;  %6414 = vst [vmem:[#allocation23_spill] sm:$0xff] %v5652_v47  ;;  %v4197_v34 = vld [vmem:[%s6215_s0 + $0x1b8] ss:$52 sps:$4 sm:$0xff]  }
 0x10e   :  { %3677 = vmatpush3.bf16.msra.mxu0 %v5612_v39  ;;  %3705 = vmatpush3.bf16.msra.mxu1 %v5618_v56  ;;  %v3317_v39 = vadd.f32 %v3316_v60, %v3315_v52  ;;  %6413 = vst [vmem:[#allocation38_spill] sm:$0xff] %v5646_v18  ;;  %v4194_v52 = vld [vmem:[%s6215_s0 + $0x1b0] ss:$52 sps:$4 sm:$0xff]   ;;  %v5670_v60 = vld [vmem:[%s6214_s1 + $0x138] sm:$0xff]  }
 0x10f   :  { %3678 = vmatprep.subr.bf16.mxu0 %v5624_v7  ;;  %3706 = vmatprep.subr.bf16.mxu1 %v5630_v45  ;;  %6416 = vst [vmem:[#allocation27_spill] sm:$0xff] %v5670_v60 }
 0x110   :  { %v5635_v56 = vadd.f32 %v3317_v39, %v3289_v41  ;;  %v5658_v39 = vld [vmem:[%s6214_s1 + $0x1f8] sm:$0xff]  }
 0x111   :  { %6415 = vst [vmem:[#allocation25_spill] sm:$0xff] %v5658_v39 }
 0x112   :  { %3679 = vmatpush3.bf16.msra.mxu0 %v5640_v6  ;;  %3707 = vmatpush3.bf16.msra.mxu1 %v5646_v18 }
 0x113   :  { %3680 = vmatprep.subr.bf16.mxu0 %v5652_v47  ;;  %3708 = vmatprep.subr.bf16.mxu1 %v5658_v39  ;;  %v5676_v39 = vld [vmem:[%s6214_s1 + $0x1b8] sm:$0xff]   ;;  %v5682_v47 = vld [vmem:[%s6214_s1 + $0x240] sm:$0xff]  }
 0x114   :  { %6417 = vst [vmem:[#allocation29_spill] sm:$0xff] %v5676_v39  ;;  %6418 = vst [vmem:[#allocation31_spill] sm:$0xff] %v5682_v47 }
 0x116   :  { %v3334_v41 = vpop.f32.mrb[8].mxu0  ;;  %3681 = vmatpush3.bf16.msra.mxu0 %v5670_v60  ;;  %3709 = vmatpush3.bf16.msra.mxu1 %v5676_v39  ;;  %v5688_v60 = vld [vmem:[%s6214_s1 + $0x2c0] sm:$0xff]  }
 0x117   :  { %v3335_v18 = vpop.f32.mrb[9].mxu0  ;;  %v3362_v45 = vpop.f32.mrb[8].mxu1  ;;  %3722 = vmatprep.subr.bf16.mxu0 %v5682_v47  ;;  %6419 = vst [vmem:[#allocation33_spill] sm:$0xff] %v5688_v60  ;;  %3750 = vmatprep.subr.bf16.mxu1 %v5688_v60  ;;  %v4203_v47 = vld [vmem:[%s6215_s0 + $0x224] ss:$52 sps:$4 sm:$0xff]  }
 0x118   :  { %v3336_v6 = vadd.f32 %v3335_v18, %v3334_v41  ;;  %v3337_v7 = vpop.f32.mrb[10].mxu0  ;;  %v3363_v50 = vpop.f32.mrb[9].mxu1  ;;  %v5701_v18 = vld [vmem:[%s6214_s1 + $0x200] sm:$0xff]   ;;  %v5736_v41 = vld [vmem:[%s6214_s1 + $0x208] sm:$0xff]  }
 0x119   :  { %v3338_v39 = vpop.f32.mrb[11].mxu0  ;;  %v3364_v59 = vadd.f32 %v3363_v50, %v3362_v45  ;;  %v3365_v43 = vpop.f32.mrb[10].mxu1  ;;  %2188 = vmatmul.mubr.bf16.vlgmr.msra.gmra.mrb[60].mxu0 %v4194_v52  ;;  %2237 = vmatmul.mubr.bf16.vlgmr.msra.gmra.mrb[60].mxu1 %v4197_v34  ;;  %v5707_v50 = vld [vmem:[%s6214_s1 + $0x280] sm:$0xff]   ;;  %v4202_v52 = vld [vmem:[%s6215_s0 + $0x218] ss:$52 sps:$4 sm:$0xff]  }
 0x11a   :  { %v1118_v38 = vadd.f32 %v3336_v6, %v5443_v58  ;;  %v3339_v53 = vadd.f32 %v3338_v39, %v3337_v7  ;;  %v3366_v60 = vpop.f32.mrb[11].mxu1  ;;  %3723 = vmatpush3.bf16.msra.mxu0 %v5701_v18  ;;  %6420 = vst [vmem:[#allocation35_spill] sm:$0xff] %v5707_v50  ;;  %3751 = vmatpush3.bf16.msra.mxu1 %v5707_v50  ;;  %v5713_v58 = vld [vmem:[%s6214_s1 + $0x248] sm:$0xff]   ;;  %v4205_v34 = vld [vmem:[%s6215_s0 + $0x220] ss:$52 sps:$4 sm:$0xff]   ;;  %v5798_v50 = vld [vmem:[%s6214_s1 + $0x298] sm:$0xff]  }
 0x11b   :  { %v3367_v45 = vadd.f32 %v3366_v60, %v3365_v43  ;;  %3724 = vmatprep.subr.bf16.mxu0 %v5713_v58  ;;  %v5719_v7 = vld [vmem:[%s6214_s1 + $0x2c8] sm:$0xff]   ;;  %2195 = vmatprep.mubr.bf16.mxu0 %v4200_v57  ;;  %6426 = vst [vmem:[#allocation43_spill] sm:$0xff] %v5798_v50 }
 0x11c   :  { %6421 = vst [vmem:[#allocation37_spill] sm:$0xff] %v5719_v7  ;;  %3752 = vmatprep.subr.bf16.mxu1 %v5719_v7  ;;  %v1121_v6 = vadd.f32 %v3339_v53, %v5469_v13  ;;  %v5723_v39 = vadd.f32 %v3364_v59, %v1118_v38  ;;  %2244 = vmatprep.mubr.bf16.mxu1 %v4203_v47  ;;  %v5742_v38 = vld [vmem:[%s6214_s1 + $0x288] sm:$0xff]   ;;  %v5748_v13 = vld [vmem:[%s6214_s1 + $0x250] sm:$0xff]   ;;  %v4208_v47 = vld [vmem:[%s6215_s0 + $0x1c4] ss:$52 sps:$4 sm:$0xff]  }
 0x11d   :  { %6422 = vst [vmem:[#allocation39_spill] sm:$0xff] %v5742_v38  ;;  %v5754_v53 = vld [vmem:[%s6214_s1 + $0x2d0] sm:$0xff]   ;;  %v4211_v60 = vld [vmem:[%s6215_s0 + $0x1cc] ss:$52 sps:$4 sm:$0xff]  }
 0x11e   :  { %v5725_v43 = vadd.f32 %v3367_v45, %v1121_v6  ;;  %3725 = vmatpush3.bf16.msra.mxu0 %v5736_v41  ;;  %3753 = vmatpush3.bf16.msra.mxu1 %v5742_v38  ;;  %6423 = vst [vmem:[#allocation40_spill] sm:$0xff] %v5754_v53  ;;  %v3340_v57 = vpop.f32.mrb[12].mxu0  ;;  %v5766_v38 = vld [vmem:[%s6214_s1 + $0x210] sm:$0xff]  }
 0x11f   :  { %3726 = vmatprep.subr.bf16.mxu0 %v5748_v13  ;;  %3754 = vmatprep.subr.bf16.mxu1 %v5754_v53  ;;  %v3341_v59 = vpop.f32.mrb[13].mxu0  ;;  %v5772_v53 = vld [vmem:[%s6214_s1 + $0x290] sm:$0xff]  }
 0x120   :  { %v3342_v45 = vadd.f32 %v3341_v59, %v3340_v57  ;;  %v3343_v6 = vpop.f32.mrb[14].mxu0  ;;  %6424 = vst [vmem:[#allocation41_spill] sm:$0xff] %v5772_v53  ;;  %v5785_v57 = vld [vmem:[%s6214_s1 + $0x2d8] sm:$0xff]  }
 0x121   :  { %2196 = vmatmul.mubr.bf16.gmra.mrb[64].mxu0 %v4202_v52  ;;  %2245 = vmatmul.mubr.bf16.gmra.mrb[64].mxu1 %v4205_v34  ;;  %v3344_v7 = vpop.f32.mrb[15].mxu0  ;;  %v5779_v34 = vld [vmem:[%s6214_s1 + $0x258] sm:$0xff]   ;;  %6425 = vst [vmem:[#allocation42_spill] sm:$0xff] %v5785_v57 }
 0x122   :  { %3727 = vmatpush3.bf16.msra.mxu0 %v5766_v38  ;;  %3755 = vmatpush3.bf16.msra.mxu1 %v5772_v53  ;;  %v1126_v52 = vadd.f32 %v3342_v45, %v5633_v32  ;;  %v3345_v59 = vadd.f32 %v3344_v7, %v3343_v6  ;;  %v3368_v53 = vpop.f32.mrb[12].mxu1  ;;  %v5792_v45 = vld [vmem:[%s6214_s1 + $0x218] sm:$0xff]   ;;  %v5810_v6 = vld [vmem:[%s6214_s1 + $0x2e0] sm:$0xff]  }
 0x123   :  { %3728 = vmatprep.subr.bf16.mxu0 %v5779_v34  ;;  %3756 = vmatprep.subr.bf16.mxu1 %v5785_v57  ;;  %v3369_v7 = vpop.f32.mrb[13].mxu1 }
 0x124   :  { %2285 = vmatprep.mubr.bf16.mxu0 %v4208_v47  ;;  %2334 = vmatprep.mubr.bf16.mxu1 %v4211_v60  ;;  %v1129_v32 = vadd.f32 %v3345_v59, %v5635_v56  ;;  %v3370_v47 = vadd.f32 %v3369_v7, %v3368_v53  ;;  %v3371_v60 = vpop.f32.mrb[14].mxu1  ;;  %v5804_v56 = vld [vmem:[%s6214_s1 + $0x260] sm:$0xff]  }
 0x125   :  { %6427 = vst [vmem:[#allocation44_spill] sm:$0xff] %v5804_v56  ;;  %v3372_v59 = vpop.f32.mrb[15].mxu1  ;;  %v5818_v53 = vld [vmem:[%s6214_s1 + $0x220] sm:$0xff]  }
 0x126   :  { %3729 = vmatpush3.bf16.msra.mxu0 %v5792_v45  ;;  %3757 = vmatpush3.bf16.msra.mxu1 %v5798_v50  ;;  %v5813_v57 = vadd.f32 %v3370_v47, %v1126_v52  ;;  %v3373_v50 = vadd.f32 %v3372_v59, %v3371_v60  ;;  %v5824_v7 = vld [vmem:[%s6214_s1 + $0x2a0] sm:$0xff]   ;;  %v5832_v52 = vld [vmem:[%s6214_s1 + $0x268] sm:$0xff]  }
 0x127   :  { %3730 = vmatprep.subr.bf16.mxu0 %v5804_v56  ;;  %3758 = vmatprep.subr.bf16.mxu1 %v5810_v6  ;;  %v5838_v47 = vld [vmem:[%s6214_s1 + $0x2e8] sm:$0xff]  }
 0x128   :  { %v5827_v56 = vadd.f32 %v3373_v50, %v1129_v32  ;;  %v5844_v60 = vld [vmem:[%s6214_s1 + $0x228] sm:$0xff]   ;;  %v4206_v50 = vld [vmem:[%s6215_s0 + $0x1c0] ss:$52 sps:$4 sm:$0xff]  }
 0x129   :  { %v4214_v32 = vld [vmem:[%s6215_s0 + $0x228] ss:$52 sps:$4 sm:$0xff]  }
 0x12a   :  { %3731 = vmatpush3.bf16.msra.mxu0 %v5818_v53  ;;  %3759 = vmatpush3.bf16.msra.mxu1 %v5824_v7 }
 0x12b   :  { %3732 = vmatprep.subr.bf16.mxu0 %v5832_v52  ;;  %3760 = vmatprep.subr.bf16.mxu1 %v5838_v47 }
 0x12e   :  { %3733 = vmatpush3.bf16.msra.mxu0 %v5844_v60  ;;  %3761 = vmatpush3.bf16.msra.mxu1 %v6380_v62  ;;  %v4209_v62 = vld [vmem:[%s6215_s0 + $0x1c8] ss:$52 sps:$4 sm:$0xff]  }
 0x12f   :  { %3734 = vmatprep.subr.bf16.mxu0 %v6369_v46  ;;  %3762 = vmatprep.subr.bf16.mxu1 %v6381_v0  ;;  %v4212_v46 = vld [vmem:[%s6215_s0 + $0x22c] ss:$52 sps:$4 sm:$0xff]  }
 0x132   :  { %3735 = vmatpush3.bf16.msra.mxu0 %v6371_v49  ;;  %3763 = vmatpush3.bf16.msra.mxu1 %v6382_v2  ;;  %v4215_v49 = vld [vmem:[%s6215_s0 + $0x234] ss:$52 sps:$4 sm:$0xff]  }
 0x133   :  { %3736 = vmatprep.subr.bf16.mxu0 %v6373_v51  ;;  %3764 = vmatprep.subr.bf16.mxu1 %v6383_v4 }
 0x136   :  { %3737 = vmatpush3.bf16.msra.mxu0 %v6375_v54  ;;  %3765 = vmatpush3.bf16.msra.mxu1 %v6384_v8  ;;  %v3390_v51 = vpop.f32.mrb[16].mxu0 }
 0x137   :  { %3982 = vmatprep.subr.bf16.mxu0 %v5023_v33  ;;  %3784 = vmatprep.subr.bf16.mxu1 %v5247_v1  ;;  %v3391_v54 = vpop.f32.mrb[17].mxu0  ;;  %v3418_v4 = vpop.f32.mrb[16].mxu1 }
 0x138   :  { %v3392_v0 = vadd.f32 %v3391_v54, %v3390_v51  ;;  %v3393_v2 = vpop.f32.mrb[18].mxu0  ;;  %v3419_v1 = vpop.f32.mrb[17].mxu1  ;;  %v4218_v51 = vld [vmem:[%s6215_s0 + $0x1d0] ss:$52 sps:$4 sm:$0xff]  }
 0x139   :  { %2286 = vmatmul.mubr.bf16.vlgmr.msra.gmra.mrb[68].mxu0 %v4206_v50  ;;  %2335 = vmatmul.mubr.bf16.vlgmr.msra.gmra.mrb[68].mxu1 %v4209_v62  ;;  %v3394_v8 = vpop.f32.mrb[19].mxu0  ;;  %v3420_v59 = vadd.f32 %v3419_v1, %v3418_v4  ;;  %v3421_v50 = vpop.f32.mrb[18].mxu1 }
 0x13a   :  { %3983 = vmatpush3.bf16.msra.mxu0 %v5023_v33  ;;  %3785 = vmatpush3.bf16.msra.mxu1 %v5266_v9  ;;  %v4217_v33 = vld [vmem:[%s6215_s0 + $0x230] ss:$52 sps:$4 sm:$0xff]   ;;  %v1216_v9 = vadd.f32 %v3392_v0, %v5723_v39  ;;  %v3422_v62 = vpop.f32.mrb[19].mxu1 }
 0x13b   :  { %3984 = vmatprep.subr.bf16.mxu0 %v5028_v35  ;;  %3786 = vmatprep.subr.bf16.mxu1 %v5278_v11  ;;  %v3395_v11 = vadd.f32 %v3394_v8, %v3393_v2 }
 0x13c   :  { %2293 = vmatprep.mubr.bf16.mxu0 %v4212_v46  ;;  %2342 = vmatprep.mubr.bf16.mxu1 %v4215_v49  ;;  %v3423_v49 = vadd.f32 %v3422_v62, %v3421_v50  ;;  %v1265_v39 = vadd.f32 %v3420_v59, %v1216_v9  ;;  %v4223_v62 = vld [vmem:[%s6215_s0 + $0x278] ss:$52 sps:$4 sm:$0xff]  }
 0x13d   :  { %v1219_v46 = vadd.f32 %v3395_v11, %v5725_v43 }
 0x13e   :  { %3985 = vmatpush3.bf16.msra.mxu0 %v5028_v35  ;;  %3787 = vmatpush3.bf16.msra.mxu1 %v5293_v14  ;;  %v4222_v35 = vld [vmem:[%s6215_s0 + $0x274] ss:$52 sps:$4 sm:$0xff]   ;;  %v3396_v14 = vpop.f32.mrb[20].mxu0 }
 0x13f   :  { %3986 = vmatprep.subr.bf16.mxu0 %v5044_v55  ;;  %3788 = vmatprep.subr.bf16.mxu1 %v5305_v16  ;;  %v1268_v16 = vadd.f32 %v3423_v49, %v1219_v46  ;;  %v3397_v54 = vpop.f32.mrb[21].mxu0  ;;  %v3424_v2 = vpop.f32.mrb[20].mxu1  ;;  %v6435_v49 = vld [vmem:[#allocation12_spill] sm:$0xff] }
 0x140   :  { %v3398_v43 = vadd.f32 %v3397_v54, %v3396_v14  ;;  %v3399_v0 = vpop.f32.mrb[22].mxu0  ;;  %v3425_v8 = vpop.f32.mrb[21].mxu1  ;;  %v6437_v14 = vld [vmem:[#allocation11_spill] sm:$0xff] }
 0x141   :  { %2294 = vmatmul.mubr.bf16.gmra.mrb[72].mxu0 %v4214_v32  ;;  %2343 = vmatmul.mubr.bf16.gmra.mrb[72].mxu1 %v4217_v33  ;;  %v3400_v4 = vpop.f32.mrb[23].mxu0  ;;  %v3427_v32 = vpop.f32.mrb[22].mxu1 }
 0x142   :  { %3987 = vmatpush3.bf16.msra.mxu0 %v5044_v55  ;;  %3789 = vmatpush3.bf16.msra.mxu1 %v5320_v19  ;;  %v4219_v55 = vld [vmem:[%s6215_s0 + $0x238] ss:$52 sps:$4 sm:$0xff]   ;;  %v1224_v19 = vadd.f32 %v3398_v43, %v5813_v57  ;;  %v3401_v1 = vadd.f32 %v3400_v4, %v3399_v0  ;;  %v3428_v33 = vpop.f32.mrb[23].mxu1  ;;  %v4225_v57 = vld [vmem:[%s6215_s0 + $0x27c] ss:$52 sps:$4 sm:$0xff]   ;;  %v6440_v4 = vld [vmem:[#allocation14_spill] sm:$0xff] }
 0x143   :  { %3988 = vmatprep.subr.bf16.mxu0 %v5061_v61  ;;  %3790 = vmatprep.subr.bf16.mxu1 %v5332_v21  ;;  %v3426_v21 = vadd.f32 %v3425_v8, %v3424_v2  ;;  %v3429_v11 = vadd.f32 %v3428_v33, %v3427_v32  ;;  %v4232_v43 = vld [vmem:[%s6215_s0 + $0x2e4] ss:$52 sps:$4 sm:$0xff]   ;;  %v6441_v8 = vld [vmem:[#allocation15_spill] sm:$0xff] }
 0x144   :  { %3990 = vmatprep.mubr.msk.bf16.mxu0 %vm978_vm0, %v4218_v51  ;;  %2621 = vmatprep.mubr.bf16.mxu1 %v4222_v35  ;;  %v1227_v9 = vadd.f32 %v3401_v1, %v5827_v56  ;;  %v6436_v51 = vld [vmem:[#allocation9_spill] sm:$0xff] }
 0x145   :  { %v1273_v59 = vadd.f32 %v3426_v21, %v1224_v19  ;;  %v6439_v2 = vld [vmem:[#allocation13_spill] sm:$0xff]  ;;  %v4234_v21 = vld [vmem:[%s6215_s0 + $0x2e0] ss:$52 sps:$4 sm:$0xff]  }
 0x146   :  { %3989 = vmatpush3.bf16.msra.mxu0 %v5061_v61  ;;  %3791 = vmatpush3.bf16.msra.mxu1 %v5344_v23  ;;  %v1276_v61 = vadd.f32 %v3429_v11, %v1227_v9  ;;  %v6443_v9 = vld [vmem:[#allocation17_spill] sm:$0xff]  ;;  %v6444_v11 = vld [vmem:[#allocation6_spill] sm:$0xff] }
 0x147   :  { %3792 = vmatprep.subr.bf16.mxu1 %v5356_v25  ;;  %3812 = vmatprep.subr.bf16.mxu0 %v5253_v3  ;;  %v3968_v3 = vpop.f32.mrb[24].mxu0 }
 0x148   :  { %v5914_v23 = vadd.f32 %v3968_v3, %v1273_v59  ;;  %v1313_v25 = vpop.f32.mrb[25].mxu0 }
 0x149   :  { %3991 = vmatmul.mubr.msk.bf16.vlgmr.msra.gmra.mrb[76].mxu0 %vm978_vm0, %v4219_v55  ;;  %v5916_v56 = vadd.f32 %v1313_v25, %v1265_v39  ;;  %v3969_v50 = vpop.f32.mrb[26].mxu0  ;;  %v6442_v55 = vld [vmem:[#allocation5_spill] sm:$0xff] }
 0x14a   :  { %3793 = vmatpush3.bf16.msra.mxu1 %v5368_v27  ;;  %3813 = vmatpush3.bf16.msra.mxu0 %v5272_v10  ;;  %v5920_v27 = vadd.f32 %v3969_v50, %v1276_v61  ;;  %v1316_v10 = vpop.f32.mrb[27].mxu0  ;;  %v6446_v61 = vld [vmem:[#allocation7_spill] sm:$0xff] }
 0x14b   :  { %3794 = vmatprep.subr.bf16.mxu1 %v5380_v29  ;;  %3814 = vmatprep.subr.bf16.mxu0 %v5284_v12  ;;  %v5924_v12 = vadd.f32 %v1316_v10, %v1268_v16  ;;  %v6438_v16 = vld [vmem:[#allocation4_spill] sm:$0xff]  ;;  %v4240_v50 = vld [vmem:[%s6215_s0 + $0x28c] ss:$52 sps:$4 sm:$0xff]  }
 0x14c   :  { %2670 = vmatprep.mubr.bf16.mxu0 %v4225_v57  ;;  %v6445_v57 = vld [vmem:[#allocation19_spill] sm:$0xff] }
 0x14e   :  { %3795 = vmatpush3.bf16.msra.mxu1 %v5392_v31  ;;  %3815 = vmatpush3.bf16.msra.mxu0 %v5299_v15  ;;  %v4220_v15 = vld [vmem:[%s6215_s0 + $0x270] ss:$52 sps:$4 sm:$0xff]  }
 0x14f   :  { %3796 = vmatprep.subr.bf16.mxu1 %v5404_v37  ;;  %3816 = vmatprep.subr.bf16.mxu0 %v5311_v17  ;;  %v4226_v17 = vld [vmem:[%s6215_s0 + $0x2dc] ss:$52 sps:$4 sm:$0xff]   ;;  %v6430_v37 = vld [vmem:[#allocation18_spill] sm:$0xff] }
 0x152   :  { %3797 = vmatpush3.bf16.msra.mxu1 %v5416_v42  ;;  %3817 = vmatpush3.bf16.msra.mxu0 %v5326_v20 }
 0x153   :  { %3798 = vmatprep.subr.bf16.mxu1 %v5428_v48  ;;  %3818 = vmatprep.subr.bf16.mxu0 %v5338_v22  ;;  %v4231_v48 = vld [vmem:[%s6215_s0 + $0x284] ss:$52 sps:$4 sm:$0xff]  }
 0x156   :  { %3799 = vmatpush3.bf16.msra.mxu1 %v5448_v63  ;;  %3819 = vmatpush3.bf16.msra.mxu0 %v5350_v24  ;;  %v4228_v24 = vld [vmem:[%s6215_s0 + $0x2d8] ss:$52 sps:$4 sm:$0xff]   ;;  %v6431_v63 = vld [vmem:[#allocation10_spill] sm:$0xff] }
 0x157   :  { %3820 = vmatprep.subr.bf16.mxu0 %v5362_v26  ;;  %3840 = vmatprep.subr.bf16.mxu1 %v5460_v5  ;;  %v3452_v20 = vpop.f32.mrb[24].mxu1  ;;  %v6428_v26 = vld [vmem:[#allocation16_spill] sm:$0xff] }
 0x158   :  { %v3453_v22 = vpop.f32.mrb[25].mxu1  ;;  %v6432_v5 = vld [vmem:[#allocation20_spill] sm:$0xff] }
 0x159   :  { %2622 = vmatmul.mubr.bf16.vlgmr.msra.gmra.mrb[76].mxu1 %v4220_v15  ;;  %v3454_v29 = vadd.f32 %v3453_v22, %v3452_v20  ;;  %v3455_v31 = vpop.f32.mrb[26].mxu1  ;;  %v6447_v15 = vld [vmem:[#allocation21_spill] sm:$0xff]  ;;  %v6449_v20 = vld [vmem:[#allocation23_spill] sm:$0xff]  ;;  %v6450_v22 = vld [vmem:[#allocation24_spill] sm:$0xff] }
 0x15a   :  { %3821 = vmatpush3.bf16.msra.mxu0 %v5374_v28  ;;  %3841 = vmatpush3.bf16.msra.mxu1 %v5480_v40  ;;  %v6429_v28 = vld [vmem:[#allocation2_spill] sm:$0xff] }
 0x15b   :  { %3822 = vmatprep.subr.bf16.mxu0 %v5386_v30  ;;  %3842 = vmatprep.subr.bf16.mxu1 %v5492_v44  ;;  %v3456_v30 = vpop.f32.mrb[27].mxu1  ;;  %v6434_v40 = vld [vmem:[#allocation22_spill] sm:$0xff] }
 0x15c   :  { %2629 = vmatprep.mubr.bf16.mxu1 %v4226_v17  ;;  %v3457_v42 = vadd.f32 %v3456_v30, %v3455_v31  ;;  %v6448_v17 = vld [vmem:[#allocation8_spill] sm:$0xff]  ;;  %v6451_v31 = vld [vmem:[#allocation27_spill] sm:$0xff] }
 0x15e   :  { %3823 = vmatpush3.bf16.msra.mxu0 %v5398_v36  ;;  %3843 = vmatpush3.bf16.msra.mxu1 %v6428_v26  ;;  %v6433_v36 = vld [vmem:[#allocation3_spill] sm:$0xff]  ;;  %v4229_v26 = vld [vmem:[%s6215_s0 + $0x280] ss:$52 sps:$4 sm:$0xff]  }
 0x15f   :  { %3824 = vmatprep.subr.bf16.mxu0 %v6429_v28  ;;  %3844 = vmatprep.subr.bf16.mxu1 %v6430_v37  ;;  %v3458_v44 = vpop.f32.mrb[28].mxu1  ;;  %v6452_v28 = vld [vmem:[#allocation26_spill] sm:$0xff] }
 0x160   :  { %v3459_v46 = vpop.f32.mrb[29].mxu1 }
 0x161   :  { %2630 = vmatmul.mubr.bf16.gmra.mrb[80].mxu1 %v4228_v24  ;;  %v3460_v39 = vadd.f32 %v3459_v46, %v3458_v44  ;;  %v3461_v35 = vpop.f32.mrb[30].mxu1  ;;  %v6455_v44 = vld [vmem:[#allocation30_spill] sm:$0xff]  ;;  %v6456_v46 = vld [vmem:[#allocation32_spill] sm:$0xff] }
 0x162   :  { %3825 = vmatpush3.bf16.msra.mxu0 %v6431_v63  ;;  %3845 = vmatpush3.bf16.msra.mxu1 %v6432_v5  ;;  %v3462_v54 = vpop.f32.mrb[31].mxu1 }
 0x163   :  { %3826 = vmatprep.subr.bf16.mxu0 %v6433_v36  ;;  %3846 = vmatprep.subr.bf16.mxu1 %v6434_v40  ;;  %v3463_v0 = vadd.f32 %v3462_v54, %v3461_v35  ;;  %v4235_v40 = vld [vmem:[%s6215_s0 + $0x2ec] ss:$52 sps:$4 sm:$0xff]  }
 0x164   :  { %2719 = vmatprep.mubr.bf16.mxu1 %v4231_v48  ;;  %v6454_v48 = vld [vmem:[#allocation31_spill] sm:$0xff] }
 0x166   :  { %3827 = vmatpush3.bf16.msra.mxu0 %v6435_v49  ;;  %3847 = vmatpush3.bf16.msra.mxu1 %v6436_v51 }
 0x167   :  { %3848 = vmatprep.subr.bf16.mxu1 %v6437_v14  ;;  %3868 = vmatprep.subr.bf16.mxu0 %v6438_v16  ;;  %v3480_v19 = vpop.f32.mrb[28].mxu0  ;;  %v6457_v16 = vld [vmem:[#allocation34_spill] sm:$0xff] }
 0x168   :  { %v3481_v1 = vpop.f32.mrb[29].mxu0 }
 0x169   :  { %2671 = vmatmul.mubr.bf16.vlgmr.msra.gmra.mrb[80].mxu0 %v4223_v62  ;;  %v3482_v32 = vadd.f32 %v3481_v1, %v3480_v19  ;;  %v3483_v33 = vpop.f32.mrb[30].mxu0 }
 0x16a   :  { %3849 = vmatpush3.bf16.msra.mxu1 %v6439_v2  ;;  %3869 = vmatpush3.bf16.msra.mxu0 %v6440_v4  ;;  %v3484_v59 = vpop.f32.mrb[31].mxu0  ;;  %v6459_v4 = vld [vmem:[#allocation38_spill] sm:$0xff] }
 0x16b   :  { %3850 = vmatprep.subr.bf16.mxu1 %v6441_v8  ;;  %3870 = vmatprep.subr.bf16.mxu0 %v6442_v55  ;;  %v1609_v3 = vadd.f32 %v3482_v32, %v3454_v29  ;;  %v3485_v25 = vadd.f32 %v3484_v59, %v3483_v33  ;;  %v6460_v8 = vld [vmem:[#allocation25_spill] sm:$0xff]  ;;  %v6462_v33 = vld [vmem:[#allocation44_spill] sm:$0xff] }
 0x16c   :  { %2678 = vmatprep.mubr.bf16.mxu0 %v4232_v43 }
 0x16d   :  { %v1612_v10 = vadd.f32 %v3485_v25, %v3457_v42  ;;  %v6453_v42 = vld [vmem:[#allocation28_spill] sm:$0xff] }
 0x16e   :  { %3851 = vmatpush3.bf16.msra.mxu1 %v6443_v9  ;;  %3871 = vmatpush3.bf16.msra.mxu0 %v6444_v11  ;;  %v4241_v11 = vld [vmem:[%s6215_s0 + $0x2f4] ss:$52 sps:$4 sm:$0xff]   ;;  %v4243_v25 = vld [vmem:[%s6215_s0 + $0x2f0] ss:$52 sps:$4 sm:$0xff]  }
 0x16f   :  { %3852 = vmatprep.subr.bf16.mxu1 %v6445_v57  ;;  %3872 = vmatprep.subr.bf16.mxu0 %v6446_v61  ;;  %v3486_v24 = vpop.f32.mrb[32].mxu0  ;;  %v6464_v57 = vld [vmem:[#allocation35_spill] sm:$0xff] }
 0x170   :  { %v3487_v29 = vpop.f32.mrb[33].mxu0 }
 0x171   :  { %2679 = vmatmul.mubr.bf16.gmra.mrb[84].mxu0 %v4234_v21  ;;  %v3488_v37 = vadd.f32 %v3487_v29, %v3486_v24  ;;  %v3489_v30 = vpop.f32.mrb[34].mxu0  ;;  %v6461_v21 = vld [vmem:[#allocation29_spill] sm:$0xff] }
 0x172   :  { %3853 = vmatpush3.bf16.msra.mxu1 %v6447_v15  ;;  %3873 = vmatpush3.bf16.msra.mxu0 %v6448_v17  ;;  %v3490_v63 = vpop.f32.mrb[35].mxu0  ;;  %v6466_v15 = vld [vmem:[#allocation39_spill] sm:$0xff]  ;;  %v6467_v17 = vld [vmem:[#allocation40_spill] sm:$0xff]  ;;  %v6468_v29 = vld [vmem:[#allocation41_spill] sm:$0xff] }
 0x173   :  { %3854 = vmatprep.subr.bf16.mxu1 %v6449_v20  ;;  %3874 = vmatprep.subr.bf16.mxu0 %v6450_v22  ;;  %v1617_v5 = vadd.f32 %v3488_v37, %v3460_v39  ;;  %v3491_v36 = vadd.f32 %v3490_v63, %v3489_v30  ;;  %v4237_v39 = vld [vmem:[%s6215_s0 + $0x2e8] ss:$52 sps:$4 sm:$0xff]  }
 0x174   :  { %2768 = vmatprep.mubr.bf16.mxu0 %v4240_v50  ;;  %v4252_v24 = vld [vmem:[%s6215_s0 + $0x29c] ss:$52 sps:$4 sm:$0xff]  }
 0x175   :  { %v1620_v62 = vadd.f32 %v3491_v36, %v3463_v0  ;;  %v4246_v0 = vld [vmem:[%s6215_s0 + $0x294] ss:$52 sps:$4 sm:$0xff]  }
 0x176   :  { %3855 = vmatpush3.bf16.msra.mxu1 %v6451_v31  ;;  %3875 = vmatpush3.bf16.msra.mxu0 %v6452_v28  ;;  %v4347_v31 = vld [vmem:[%s6214_s1 + $0x278] sm:$0xff]   ;;  %v6469_v28 = vld [vmem:[#allocation42_spill] sm:$0xff]  ;;  %v6470_v36 = vld [vmem:[#allocation43_spill] sm:$0xff] }
 0x177   :  { %3876 = vmatprep.subr.bf16.mxu0 %v6453_v42  ;;  %3896 = vmatprep.subr.bf16.mxu1 %v6454_v48  ;;  %v3508_v49 = vpop.f32.mrb[32].mxu1  ;;  %v4244_v42 = vld [vmem:[%s6215_s0 + $0x290] ss:$52 sps:$4 sm:$0xff]  }
 0x178   :  { %v3509_v51 = vpop.f32.mrb[33].mxu1 }
 0x179   :  { %2720 = vmatmul.mubr.bf16.vlgmr.msra.gmra.mrb[84].mxu1 %v4229_v26  ;;  %v3510_v35 = vadd.f32 %v3509_v51, %v3508_v49  ;;  %v3511_v14 = vpop.f32.mrb[34].mxu1 }
 0x17a   :  { %3877 = vmatpush3.bf16.msra.mxu0 %v6455_v44  ;;  %3897 = vmatpush3.bf16.msra.mxu1 %v5701_v18  ;;  %v3512_v54 = vpop.f32.mrb[35].mxu1  ;;  %v6458_v18 = vld [vmem:[#allocation36_spill] sm:$0xff]  ;;  %v4349_v44 = vld [vmem:[%s6214_s1 + $0x300] sm:$0xff]  }
 0x17b   :  { %3878 = vmatprep.subr.bf16.mxu0 %v6456_v46  ;;  %3898 = vmatprep.subr.bf16.mxu1 %v5713_v58  ;;  %v1658_v43 = vadd.f32 %v3510_v35, %v1609_v3  ;;  %v3513_v58 = vadd.f32 %v3512_v54, %v3511_v14  ;;  %v4249_v14 = vld [vmem:[%s6215_s0 + $0x2f8] ss:$52 sps:$4 sm:$0xff]  }
 0x17c   :  { %2727 = vmatprep.mubr.bf16.mxu1 %v4235_v40 }
 0x17d   :  { %v1661_v2 = vadd.f32 %v3513_v58, %v1612_v10 }
 0x17e   :  { %3879 = vmatpush3.bf16.msra.mxu0 %v6457_v16  ;;  %3899 = vmatpush3.bf16.msra.mxu1 %v5736_v41 }
 0x17f   :  { %3880 = vmatprep.subr.bf16.mxu0 %v6458_v18  ;;  %3900 = vmatprep.subr.bf16.mxu1 %v5748_v13  ;;  %v3514_v41 = vpop.f32.mrb[36].mxu1  ;;  %v4238_v13 = vld [vmem:[%s6215_s0 + $0x288] ss:$52 sps:$4 sm:$0xff]   ;;  %v4352_v18 = vld [vmem:[%s6214_s1 + $0x2f0] sm:$0xff]  }
 0x180   :  { %v3515_v55 = vpop.f32.mrb[37].mxu1 }
 0x181   :  { %2728 = vmatmul.mubr.bf16.gmra.mrb[88].mxu1 %v4237_v39  ;;  %v3516_v19 = vadd.f32 %v3515_v55, %v3514_v41  ;;  %v3517_v1 = vpop.f32.mrb[38].mxu1  ;;  %v4350_v39 = vld [vmem:[%s6214_s1 + $0x308] sm:$0xff]   ;;  %v4355_v41 = vld [vmem:[%s6214_s1 + $0x2f8] sm:$0xff]  }
 0x182   :  { %3881 = vmatpush3.bf16.msra.mxu0 %v6459_v4  ;;  %3901 = vmatpush3.bf16.msra.mxu1 %v5766_v38  ;;  %v3518_v32 = vpop.f32.mrb[39].mxu1  ;;  %v6463_v38 = vld [vmem:[#allocation33_spill] sm:$0xff] }
 0x183   :  { %3882 = vmatprep.subr.bf16.mxu0 %v6460_v8  ;;  %3902 = vmatprep.subr.bf16.mxu1 %v5779_v34  ;;  %v1666_v9 = vadd.f32 %v3516_v19, %v1617_v5  ;;  %v3519_v34 = vadd.f32 %v3518_v32, %v3517_v1  ;;  %v4348_v5 = vld [vmem:[%s6214_s1 + $0x238] sm:$0xff]   ;;  %v4354_v8 = vld [vmem:[%s6214_s1 + $0x2b0] sm:$0xff]  }
 0x184   :  { %2817 = vmatprep.mubr.bf16.mxu1 %v4246_v0  ;;  %v4356_v55 = vld [vmem:[%s6214_s1 + $0x318] sm:$0xff]  }
 0x185   :  { %v1669_v59 = vadd.f32 %v3519_v34, %v1620_v62  ;;  %v4247_v62 = vld [vmem:[%s6215_s0 + $0x2fc] ss:$52 sps:$4 sm:$0xff]   ;;  %v4250_v1 = vld [vmem:[%s6215_s0 + $0x298] ss:$52 sps:$4 sm:$0xff]  }
 0x186   :  { %3883 = vmatpush3.bf16.msra.mxu0 %v6461_v21  ;;  %3903 = vmatpush3.bf16.msra.mxu1 %v5792_v45  ;;  %v6465_v45 = vld [vmem:[#allocation37_spill] sm:$0xff] }
 0x187   :  { %3904 = vmatprep.subr.bf16.mxu1 %v6462_v33  ;;  %3924 = vmatprep.subr.bf16.mxu0 %v6463_v38  ;;  %v3536_v61 = vpop.f32.mrb[36].mxu0  ;;  %v4254_v21 = vld [vmem:[%s6215_s0 + $0x308] ss:$52 sps:$4 sm:$0xff]  }
 0x188   :  { %v3537_v3 = vpop.f32.mrb[37].mxu0  ;;  %v4357_v38 = vld [vmem:[%s6214_s1 + $0x2b8] sm:$0xff]  }
 0x189   :  { %2769 = vmatmul.mubr.bf16.vlgmr.msra.gmra.mrb[88].mxu0 %v4238_v13  ;;  %v3538_v50 = vadd.f32 %v3537_v3, %v3536_v61  ;;  %v3539_v10 = vpop.f32.mrb[38].mxu0 }
 0x18a   :  { %3905 = vmatpush3.bf16.msra.mxu1 %v5818_v53  ;;  %3925 = vmatpush3.bf16.msra.mxu0 %v6464_v57  ;;  %v3540_v53 = vpop.f32.mrb[39].mxu0  ;;  %v6108_v57 = vld [vmem:[%s6216_s2] ss:$0 sm:$0xff] }
 0x18b   :  { %3906 = vmatprep.subr.bf16.mxu1 %v5832_v52  ;;  %3926 = vmatprep.subr.bf16.mxu0 %v6465_v45  ;;  %v4345_v52 = vld [vmem:[%s6214_s1 + $0x270] sm:$0xff]   ;;  %v1707_v20 = vadd.f32 %v3538_v50, %v1658_v43  ;;  %v3541_v22 = vadd.f32 %v3540_v53, %v3539_v10  ;;  %v6118_v53 = vld [vmem:[%s6217_s3] ss:$0 sm:$0xff] }
 0x18c   :  { %2776 = vmatprep.mubr.bf16.mxu0 %v4241_v11  ;;  %v4353_v43 = vld [vmem:[%s6214_s1 + $0x310] sm:$0xff]  }
 0x18d   :  { %v1710_v26 = vadd.f32 %v3541_v22, %v1661_v2  ;;  %v4253_v2 = vld [vmem:[%s6215_s0 + $0x2a0] ss:$52 sps:$4 sm:$0xff]   ;;  %v1335_v22 = vmul.f32 %v6108_v57, %v5924_v12 }
 0x18e   :  { %3907 = vmatpush3.bf16.msra.mxu1 %v5844_v60  ;;  %3927 = vmatpush3.bf16.msra.mxu0 %v6466_v15  ;;  %v4346_v60 = vld [vmem:[%s6214_s1 + $0x230] sm:$0xff]  }
 0x18f   :  { %3908 = vmatprep.subr.bf16.mxu1 %v4345_v52  ;;  %3928 = vmatprep.subr.bf16.mxu0 %v6467_v17  ;;  %v3542_v37 = vpop.f32.mrb[40].mxu0  ;;  %v4257_v15 = vld [vmem:[%s6215_s0 + $0x300] ss:$52 sps:$4 sm:$0xff]  }
 0x190   :  { %v3543_v30 = vpop.f32.mrb[41].mxu0 }
 0x191   :  { %2777 = vmatmul.mubr.bf16.gmra.mrb[92].mxu0 %v4243_v25  ;;  %v3544_v48 = vadd.f32 %v3543_v30, %v3542_v37  ;;  %v3545_v63 = vpop.f32.mrb[42].mxu0  ;;  %v1334_v25 = vmul.f32 %v6108_v57, %v5916_v56  ;;  %v1336_v37 = vmul.f32 %v6108_v57, %v5914_v23  ;;  %v1345_v30 = vadd.f32 %v6118_v53, %v1335_v22 }
 0x192   :  { %3909 = vmatpush3.bf16.msra.mxu1 %v4346_v60  ;;  %3929 = vmatpush3.bf16.msra.mxu0 %v6468_v29  ;;  %v3546_v40 = vpop.f32.mrb[43].mxu0 }
 0x193   :  { %3910 = vmatprep.subr.bf16.mxu1 %v4347_v31  ;;  %3930 = vmatprep.subr.bf16.mxu0 %v6469_v28  ;;  %v1715_v46 = vadd.f32 %v3544_v48, %v1666_v9  ;;  %v3547_v49 = vadd.f32 %v3546_v40, %v3545_v63  ;;  %v4255_v9 = vld [vmem:[%s6215_s0 + $0x304] ss:$52 sps:$4 sm:$0xff]   ;;  %v1344_v29 = vadd.f32 %v6118_v53, %v1334_v25  ;;  %vm1349_vm3 = vcmp.gt.f32.partialorder %v1345_v30, 0.0 }
 0x194   :  { %2866 = vmatprep.mubr.bf16.mxu0 %v4252_v24 }
 0x195   :  { %v1718_v51 = vadd.f32 %v3547_v49, %v1669_v59  ;;  %vm1348_vm1 = vcmp.gt.f32.partialorder %v1344_v29, 0.0  ;;  %v1353_v49 = vmul.f32 0.01, %v1345_v30 }
 0x196   :  { %3911 = vmatpush3.bf16.msra.mxu1 %v4348_v5  ;;  %3931 = vmatpush3.bf16.msra.mxu0 %v6470_v36  ;;  %v1352_v5 = vmul.f32 0.01, %v1344_v29 }
 0x197   :  { %3932 = vmatprep.subr.bf16.mxu0 %v5810_v6  ;;  %3994 = vmatprep.subr.bf16.mxu1 %v4349_v44  ;;  %v3564_v6 = vpop.f32.mrb[40].mxu1 }
 0x198   :  { %v3565_v35 = vpop.f32.mrb[41].mxu1 }
 0x199   :  { %2818 = vmatmul.mubr.bf16.vlgmr.msra.gmra.mrb[92].mxu1 %v4244_v42  ;;  %v3566_v16 = vadd.f32 %v3565_v35, %v3564_v6  ;;  %v3567_v54 = vpop.f32.mrb[42].mxu1  ;;  %v6131_v35 = vsel %vm1348_vm1, %v1344_v29, %v1352_v5 }
 0x19a   :  { %3933 = vmatpush3.bf16.msra.mxu0 %v5824_v7  ;;  %3995 = vmatpush3.bf16.msra.mxu1 %v4349_v44  ;;  %v4351_v7 = vld [vmem:[%s6214_s1 + $0x2a8] sm:$0xff]  }
 0x19b   :  { %3934 = vmatprep.subr.bf16.mxu0 %v5838_v47  ;;  %2825 = vmatprep.mubr.bf16.mxu1 %v4247_v62  ;;  %v3568_v47 = vpop.f32.mrb[43].mxu1  ;;  %v1756_v58 = vadd.f32 %v3566_v16, %v1707_v20 }
 0x19c   :  { %3996 = vmatprep.subr.bf16.mxu1 %v4350_v39  ;;  %v3569_v0 = vadd.f32 %v3568_v47, %v3567_v54 }
 0x19e   :  { %3935 = vmatpush3.bf16.msra.mxu0 %v4351_v7  ;;  %3997 = vmatpush3.bf16.msra.mxu1 %v4350_v39  ;;  %v1759_v4 = vadd.f32 %v3569_v0, %v1710_v26 }
 0x19f   :  { %3936 = vmatprep.subr.bf16.mxu0 %v4352_v18  ;;  %3998 = vmatprep.subr.bf16.mxu1 %v4353_v43  ;;  %v3570_v13 = vpop.f32.mrb[44].mxu1 }
 0x1a0   :  { %v3571_v19 = vpop.f32.mrb[45].mxu1 }
 0x1a1   :  { %2826 = vmatmul.mubr.bf16.gmra.mrb[96].mxu1 %v4249_v14  ;;  %v3572_v32 = vadd.f32 %v3571_v19, %v3570_v13  ;;  %v3573_v33 = vpop.f32.mrb[46].mxu1  ;;  %v1337_v14 = vmul.f32 %v6108_v57, %v5920_v27 }
 0x1a2   :  { %3937 = vmatpush3.bf16.msra.mxu0 %v4354_v8  ;;  %3999 = vmatpush3.bf16.msra.mxu1 %v4353_v43  ;;  %v3574_v34 = vpop.f32.mrb[47].mxu1 }
 0x1a3   :  { %3938 = vmatprep.subr.bf16.mxu0 %v4355_v41  ;;  %4000 = vmatprep.subr.bf16.mxu1 %v4356_v55  ;;  %v1764_v11 = vadd.f32 %v3572_v32, %v1715_v46  ;;  %v3575_v59 = vadd.f32 %v3574_v34, %v3573_v33  ;;  %v1346_v46 = vadd.f32 %v6118_v53, %v1336_v37 }
 0x1a4   :  { %4002 = vmatprep.mubr.msk.bf16.mxu1 %vm978_vm0, %v4253_v2 }
 0x1a5   :  { %v1767_v45 = vadd.f32 %v3575_v59, %v1718_v51  ;;  %v1354_v41 = vmul.f32 0.01, %v1346_v46  ;;  %vm1350_vm5 = vcmp.gt.f32.partialorder %v1346_v46, 0.0 }
 0x1a6   :  { %3939 = vmatpush3.bf16.msra.mxu0 %v4357_v38  ;;  %4001 = vmatpush3.bf16.msra.mxu1 %v4356_v55 }
 0x1a7   :  { %v3592_v61 = vpop.f32.mrb[44].mxu0  ;;  %v3980_v3 = vpop.f32.mrb[48].mxu1  ;;  %v6150_v32 = vsel %vm1350_vm5, %v1346_v46, %v1354_v41 }
 0x1a8   :  { %v3593_v50 = vpop.f32.mrb[45].mxu0  ;;  %v1853_v10 = vpop.f32.mrb[49].mxu1 }
 0x1a9   :  { %2867 = vmatmul.mubr.bf16.vlgmr.msra.gmra.mrb[96].mxu0 %v4250_v1  ;;  %4003 = vmatmul.mubr.msk.bf16.vlgmr.msra.gmra.mrb[100].mxu1 %vm978_vm0, %v4254_v21  ;;  %v3594_v52 = vadd.f32 %v3593_v50, %v3592_v61  ;;  %v3595_v17 = vpop.f32.mrb[46].mxu0  ;;  %v3981_v20 = vpop.f32.mrb[50].mxu1 }
 0x1aa   :  { %2874 = vmatprep.mubr.bf16.mxu0 %v4255_v9  ;;  %v3596_v24 = vpop.f32.mrb[47].mxu0  ;;  %v1856_v26 = vpop.f32.mrb[51].mxu1 }
 0x1ab   :  { %v3597_v56 = vadd.f32 %v3596_v24, %v3595_v17  ;;  %v1805_v60 = vadd.f32 %v3594_v52, %v1756_v58  ;;  %v6139_v58 = vsel %vm1349_vm3, %v1345_v30, %v1353_v49 }
 0x1ad   :  { %v1854_v31 = vadd.f32 %v1853_v10, %v1805_v60  ;;  %v1808_v28 = vadd.f32 %v3597_v56, %v1759_v4  ;;  %v1347_v4 = vadd.f32 %v6118_v53, %v1337_v14 }
 0x1af   :  { %v1868_v42 = vmul.f32 %v6108_v57, %v1854_v31  ;;  %v1857_v48 = vadd.f32 %v1856_v26, %v1808_v28  ;;  %v3598_v63 = vpop.f32.mrb[48].mxu0  ;;  %v1355_v1 = vmul.f32 0.01, %v1347_v4  ;;  %vm1351_vm7 = vcmp.gt.f32.partialorder %v1347_v4, 0.0 }
 0x1b0   :  { %v3599_v12 = vpop.f32.mrb[49].mxu0 }
 0x1b1   :  { %2875 = vmatmul.mubr.bf16.gmra.mrb[100].mxu0 %v4257_v15  ;;  %v1872_v36 = vadd.f32 %v6118_v53, %v1868_v42  ;;  %v1869_v40 = vmul.f32 %v6108_v57, %v1857_v48  ;;  %v3600_v44 = vadd.f32 %v3599_v12, %v3598_v63  ;;  %v3601_v62 = vpop.f32.mrb[50].mxu0  ;;  %v6156_v34 = vsel %vm1351_vm7, %v1347_v4, %v1355_v1 }
 0x1b2   :  { %v3602_v51 = vpop.f32.mrb[51].mxu0 }
 0x1b3   :  { %vm1876_vm2 = vcmp.gt.f32.partialorder %v1872_v36, 0.0  ;;  %v1880_v23 = vmul.f32 0.01, %v1872_v36  ;;  %v1873_v6 = vadd.f32 %v6118_v53, %v1869_v40  ;;  %v1813_v39 = vadd.f32 %v3600_v44, %v1764_v11 }
 0x1b4   :  { %v3603_v16 = vadd.f32 %v3602_v51, %v3601_v62 }
 0x1b5   :  { %v6135_v54 = vsel %vm1876_vm2, %v1872_v36, %v1880_v23  ;;  %vm1877_vm4 = vcmp.gt.f32.partialorder %v1873_v6, 0.0  ;;  %v1881_v7 = vmul.f32 0.01, %v1873_v6  ;;  %v1862_v47 = vadd.f32 %v3980_v3, %v1813_v39 }
 0x1b6   :  { %v1888_v18 = vmax.f32 %v6131_v35, %v6135_v54  ;;  %v1816_v43 = vadd.f32 %v3603_v16, %v1767_v45 }
 0x1b7   :  { %v6141_v0 = vsel %vm1877_vm4, %v1873_v6, %v1881_v7  ;;  %v1870_v2 = vmul.f32 %v6108_v57, %v1862_v47 }
 0x1b8   :  { %v1889_v27 = vmax.f32 %v6139_v58, %v6141_v0  ;;  %v1865_v8 = vadd.f32 %v3981_v20, %v1816_v43 }
 0x1b9   :  { %v1874_v55 = vadd.f32 %v6118_v53, %v1870_v2 }
 0x1ba   :  { %v1871_v13 = vmul.f32 %v6108_v57, %v1865_v8 }
 0x1bb   :  { %vm1878_vm6 = vcmp.gt.f32.partialorder %v1874_v55, 0.0  ;;  %v1882_v19 = vmul.f32 0.01, %v1874_v55 }
 0x1bc   :  { %v1875_v21 = vadd.f32 %v6118_v53, %v1871_v13 }
 0x1bd   :  { %v6152_v33 = vsel %vm1878_vm6, %v1874_v55, %v1882_v19 }
 0x1be   :  { %vm1879_vm8 = vcmp.gt.f32.partialorder %v1875_v21, 0.0  ;;  %v1883_v38 = vmul.f32 0.01, %v1875_v21  ;;  %v1890_v9 = vmax.f32 %v6150_v32, %v6152_v33 }
 0x1c0   :  { %v6158_v11 = vsel %vm1879_vm8, %v1875_v21, %v1883_v38 }
 0x1c1   :  { %v1891_v59 = vmax.f32 %v6156_v34, %v6158_v11 }
 0x1c7   :  { %v3626_v45 = vpop.f32.mrb[52].mxu0  ;;  %v3654_v61 = vpop.f32.mrb[52].mxu1 }
 0x1c8   :  { %v3627_v3 = vpop.f32.mrb[53].mxu0  ;;  %v3655_v25 = vpop.f32.mrb[53].mxu1 }
 0x1c9   :  { %v3628_v50 = vadd.f32 %v3627_v3, %v3626_v45  ;;  %v3656_v10 = vadd.f32 %v3655_v25, %v3654_v61  ;;  %v3629_v15 = vpop.f32.mrb[54].mxu0  ;;  %v3657_v52 = vpop.f32.mrb[54].mxu1 }
 0x1ca   :  { %v3630_v17 = vpop.f32.mrb[55].mxu0  ;;  %v3658_v20 = vpop.f32.mrb[55].mxu1 }
 0x1cb   :  { %v2141_v22 = vadd.f32 %v3656_v10, %v3628_v50  ;;  %v3631_v24 = vadd.f32 %v3630_v17, %v3629_v15  ;;  %v3659_v26 = vadd.f32 %v3658_v20, %v3657_v52 }
 0x1cd   :  { %v2144_v56 = vadd.f32 %v3659_v26, %v3631_v24 }
 0x1cf   :  { %v3632_v60 = vpop.f32.mrb[56].mxu0 }
 0x1d0   :  { %v3660_v29 = vpop.f32.mrb[56].mxu1  ;;  %v3633_v31 = vpop.f32.mrb[57].mxu0 }
 0x1d1   :  { %v3661_v28 = vpop.f32.mrb[57].mxu1  ;;  %v3634_v37 = vadd.f32 %v3633_v31, %v3632_v60  ;;  %v3635_v42 = vpop.f32.mrb[58].mxu0 }
 0x1d2   :  { %v3662_v30 = vadd.f32 %v3661_v28, %v3660_v29  ;;  %v3663_v48 = vpop.f32.mrb[58].mxu1  ;;  %v3636_v63 = vpop.f32.mrb[59].mxu0 }
 0x1d3   :  { %v3664_v5 = vpop.f32.mrb[59].mxu1  ;;  %v3637_v36 = vadd.f32 %v3636_v63, %v3635_v42 }
 0x1d4   :  { %v2149_v12 = vadd.f32 %v3662_v30, %v3634_v37  ;;  %v3665_v40 = vadd.f32 %v3664_v5, %v3663_v48 }
 0x1d6   :  { %v2152_v44 = vadd.f32 %v3665_v40, %v3637_v36 }
 0x1ec   :  { %v3682_v62 = vpop.f32.mrb[60].mxu0  ;;  %v3710_v46 = vpop.f32.mrb[60].mxu1 }
 0x1ed   :  { %v3683_v49 = vpop.f32.mrb[61].mxu0  ;;  %v3711_v51 = vpop.f32.mrb[61].mxu1 }
 0x1ee   :  { %v3684_v23 = vadd.f32 %v3683_v49, %v3682_v62  ;;  %v3685_v6 = vpop.f32.mrb[62].mxu0  ;;  %v3712_v39 = vadd.f32 %v3711_v51, %v3710_v46  ;;  %v3713_v14 = vpop.f32.mrb[62].mxu1 }
 0x1ef   :  { %v3686_v16 = vpop.f32.mrb[63].mxu0  ;;  %v3714_v7 = vpop.f32.mrb[63].mxu1 }
 0x1f0   :  { %v2190_v47 = vadd.f32 %v3684_v23, %v2141_v22  ;;  %v3687_v43 = vadd.f32 %v3686_v16, %v3685_v6  ;;  %v3715_v2 = vadd.f32 %v3714_v7, %v3713_v14 }
 0x1f2   :  { %v2193_v4 = vadd.f32 %v3687_v43, %v2144_v56  ;;  %v2239_v8 = vadd.f32 %v3712_v39, %v2190_v47 }
 0x1f4   :  { %v2242_v41 = vadd.f32 %v3715_v2, %v2193_v4  ;;  %v3688_v55 = vpop.f32.mrb[64].mxu0  ;;  %v3716_v13 = vpop.f32.mrb[64].mxu1 }
 0x1f5   :  { %v3689_v19 = vpop.f32.mrb[65].mxu0  ;;  %v3717_v1 = vpop.f32.mrb[65].mxu1 }
 0x1f6   :  { %v3690_v21 = vadd.f32 %v3689_v19, %v3688_v55  ;;  %v3691_v38 = vpop.f32.mrb[66].mxu0  ;;  %v3718_v45 = vadd.f32 %v3717_v1, %v3716_v13  ;;  %v3719_v61 = vpop.f32.mrb[66].mxu1 }
 0x1f7   :  { %v3692_v3 = vpop.f32.mrb[67].mxu0  ;;  %v3720_v25 = vpop.f32.mrb[67].mxu1 }
 0x1f8   :  { %v2198_v50 = vadd.f32 %v3690_v21, %v2149_v12  ;;  %v3693_v10 = vadd.f32 %v3692_v3, %v3691_v38  ;;  %v3721_v15 = vadd.f32 %v3720_v25, %v3719_v61 }
 0x1fa   :  { %v2201_v52 = vadd.f32 %v3693_v10, %v2152_v44  ;;  %v2247_v17 = vadd.f32 %v3718_v45, %v2198_v50 }
 0x1fc   :  { %v2250_v20 = vadd.f32 %v3721_v15, %v2201_v52 }
 0x20c   :  { %v3738_v22 = vpop.f32.mrb[68].mxu0  ;;  %v3766_v24 = vpop.f32.mrb[68].mxu1 }
 0x20d   :  { %v3739_v26 = vpop.f32.mrb[69].mxu0  ;;  %v3767_v56 = vpop.f32.mrb[69].mxu1 }
 0x20e   :  { %v3740_v60 = vadd.f32 %v3739_v26, %v3738_v22  ;;  %v3741_v29 = vpop.f32.mrb[70].mxu0  ;;  %v3768_v31 = vadd.f32 %v3767_v56, %v3766_v24  ;;  %v3769_v28 = vpop.f32.mrb[70].mxu1 }
 0x20f   :  { %v3742_v37 = vpop.f32.mrb[71].mxu0  ;;  %v3770_v30 = vpop.f32.mrb[71].mxu1 }
 0x210   :  { %v2288_v42 = vadd.f32 %v3740_v60, %v2239_v8  ;;  %v3743_v48 = vadd.f32 %v3742_v37, %v3741_v29  ;;  %v3771_v63 = vadd.f32 %v3770_v30, %v3769_v28 }
 0x212   :  { %v2291_v5 = vadd.f32 %v3743_v48, %v2242_v41  ;;  %v2337_v12 = vadd.f32 %v3768_v31, %v2288_v42 }
 0x214   :  { %v3744_v36 = vpop.f32.mrb[72].mxu0  ;;  %v3772_v40 = vpop.f32.mrb[72].mxu1  ;;  %v2340_v44 = vadd.f32 %v3771_v63, %v2291_v5 }
 0x215   :  { %v3745_v62 = vpop.f32.mrb[73].mxu0  ;;  %v3773_v46 = vpop.f32.mrb[73].mxu1 }
 0x216   :  { %v3746_v49 = vadd.f32 %v3745_v62, %v3744_v36  ;;  %v3747_v51 = vpop.f32.mrb[74].mxu0  ;;  %v3774_v23 = vadd.f32 %v3773_v46, %v3772_v40  ;;  %v3775_v6 = vpop.f32.mrb[74].mxu1 }
 0x217   :  { %v3748_v39 = vpop.f32.mrb[75].mxu0  ;;  %v3776_v14 = vpop.f32.mrb[75].mxu1 }
 0x218   :  { %v2296_v16 = vadd.f32 %v3746_v49, %v2247_v17  ;;  %v3749_v7 = vadd.f32 %v3748_v39, %v3747_v51  ;;  %v3777_v47 = vadd.f32 %v3776_v14, %v3775_v6 }
 0x21a   :  { %v2299_v43 = vadd.f32 %v3749_v7, %v2250_v20  ;;  %v2345_v2 = vadd.f32 %v3774_v23, %v2296_v16 }
 0x21c   :  { %v3992_v4 = vpop.f32.mrb[76].mxu0  ;;  %v2348_v8 = vadd.f32 %v3777_v47, %v2299_v43 }
 0x21d   :  { %v2394_v41 = vadd.f32 %v3992_v4, %v2345_v2  ;;  %v2385_v55 = vpop.f32.mrb[77].mxu0 }
 0x21e   :  { %v2386_v13 = vadd.f32 %v2385_v55, %v2337_v12  ;;  %v3993_v19 = vpop.f32.mrb[78].mxu0 }
 0x21f   :  { %v2402_v1 = vmul.f32 %v6108_v57, %v2394_v41  ;;  %v2397_v21 = vadd.f32 %v3993_v19, %v2348_v8  ;;  %v2388_v38 = vpop.f32.mrb[79].mxu0 }
 0x220   :  { %v2400_v45 = vmul.f32 %v6108_v57, %v2386_v13  ;;  %v2389_v61 = vadd.f32 %v2388_v38, %v2340_v44 }
 0x221   :  { %v2406_v3 = vadd.f32 %v6118_v53, %v2402_v1  ;;  %v2403_v25 = vmul.f32 %v6108_v57, %v2397_v21 }
 0x222   :  { %v2404_v50 = vadd.f32 %v6118_v53, %v2400_v45  ;;  %v2401_v10 = vmul.f32 %v6108_v57, %v2389_v61 }
 0x223   :  { %vm2410_vm9 = vcmp.gt.f32.partialorder %v2406_v3, 0.0  ;;  %v2414_v15 = vmul.f32 0.01, %v2406_v3  ;;  %v2407_v52 = vadd.f32 %v6118_v53, %v2403_v25 }
 0x224   :  { %vm2408_vm10 = vcmp.gt.f32.partialorder %v2404_v50, 0.0  ;;  %v2412_v17 = vmul.f32 0.01, %v2404_v50  ;;  %v2405_v20 = vadd.f32 %v6118_v53, %v2401_v10 }
 0x225   :  { %v2418_v22 = vsel %vm2410_vm9, %v2406_v3, %v2414_v15  ;;  %vm2411_vm11 = vcmp.gt.f32.partialorder %v2407_v52, 0.0  ;;  %v2415_v24 = vmul.f32 0.01, %v2407_v52 }
 0x226   :  { %v6173_v26 = vmax.f32 %v1890_v9, %v2418_v22  ;;  %v2416_v56 = vsel %vm2408_vm10, %v2404_v50, %v2412_v17  ;;  %vm2409_vm12 = vcmp.gt.f32.partialorder %v2405_v20, 0.0  ;;  %v2413_v60 = vmul.f32 0.01, %v2405_v20 }
 0x227   :  { %v6178_v29 = vmax.f32 %v1888_v18, %v2416_v56  ;;  %v2419_v31 = vsel %vm2411_vm11, %v2407_v52, %v2415_v24 }
 0x228   :  { %v6183_v28 = vmax.f32 %v1891_v59, %v2419_v31  ;;  %v2417_v37 = vsel %vm2409_vm12, %v2405_v20, %v2413_v60 }
 0x229   :  { %v6188_v32 = vmax.f32 %v1889_v27, %v2417_v37 }
 0x22c   :  { %v3800_v33 = vpop.f32.mrb[76].mxu1 }
 0x22d   :  { %v3801_v9 = vpop.f32.mrb[77].mxu1 }
 0x22e   :  { %v3802_v30 = vadd.f32 %v3801_v9, %v3800_v33  ;;  %v3803_v42 = vpop.f32.mrb[78].mxu1 }
 0x22f   :  { %v3804_v48 = vpop.f32.mrb[79].mxu1 }
 0x230   :  { %v3805_v35 = vadd.f32 %v3804_v48, %v3803_v42 }
 0x234   :  { %v3806_v54 = vpop.f32.mrb[80].mxu1 }
 0x235   :  { %v3807_v18 = vpop.f32.mrb[81].mxu1 }
 0x236   :  { %v3808_v63 = vadd.f32 %v3807_v18, %v3806_v54  ;;  %v3809_v5 = vpop.f32.mrb[82].mxu1 }
 0x237   :  { %v3810_v12 = vpop.f32.mrb[83].mxu1 }
 0x238   :  { %v3811_v34 = vadd.f32 %v3810_v12, %v3809_v5 }
 0x23c   :  { %v3828_v11 = vpop.f32.mrb[80].mxu0 }
 0x23d   :  { %v3829_v59 = vpop.f32.mrb[81].mxu0 }
 0x23e   :  { %v3830_v36 = vadd.f32 %v3829_v59, %v3828_v11  ;;  %v3831_v40 = vpop.f32.mrb[82].mxu0 }
 0x23f   :  { %v3832_v44 = vpop.f32.mrb[83].mxu0 }
 0x240   :  { %v2673_v58 = vadd.f32 %v3830_v36, %v3802_v30  ;;  %v3833_v0 = vadd.f32 %v3832_v44, %v3831_v40 }
 0x242   :  { %v2676_v27 = vadd.f32 %v3833_v0, %v3805_v35 }
 0x244   :  { %v3834_v62 = vpop.f32.mrb[84].mxu0 }
 0x245   :  { %v3835_v46 = vpop.f32.mrb[85].mxu0 }
 0x246   :  { %v3836_v49 = vadd.f32 %v3835_v46, %v3834_v62  ;;  %v3837_v51 = vpop.f32.mrb[86].mxu0 }
 0x247   :  { %v3838_v23 = vpop.f32.mrb[87].mxu0 }
 0x248   :  { %v2681_v6 = vadd.f32 %v3836_v49, %v3808_v63  ;;  %v3839_v39 = vadd.f32 %v3838_v23, %v3837_v51 }
 0x24a   :  { %v2684_v14 = vadd.f32 %v3839_v39, %v3811_v34 }
 0x24c   :  { %v3856_v16 = vpop.f32.mrb[84].mxu1 }
 0x24d   :  { %v3857_v7 = vpop.f32.mrb[85].mxu1 }
 0x24e   :  { %v3858_v47 = vadd.f32 %v3857_v7, %v3856_v16  ;;  %v3859_v43 = vpop.f32.mrb[86].mxu1 }
 0x24f   :  { %v3860_v2 = vpop.f32.mrb[87].mxu1 }
 0x250   :  { %v2722_v4 = vadd.f32 %v3858_v47, %v2673_v58  ;;  %v3861_v8 = vadd.f32 %v3860_v2, %v3859_v43 }
 0x252   :  { %v2725_v41 = vadd.f32 %v3861_v8, %v2676_v27 }
 0x254   :  { %v3862_v55 = vpop.f32.mrb[88].mxu1 }
 0x255   :  { %v3863_v13 = vpop.f32.mrb[89].mxu1 }
 0x256   :  { %v3864_v19 = vadd.f32 %v3863_v13, %v3862_v55  ;;  %v3865_v1 = vpop.f32.mrb[90].mxu1 }
 0x257   :  { %v3866_v21 = vpop.f32.mrb[91].mxu1 }
 0x258   :  { %v2730_v38 = vadd.f32 %v3864_v19, %v2681_v6  ;;  %v3867_v45 = vadd.f32 %v3866_v21, %v3865_v1 }
 0x25a   :  { %v2733_v61 = vadd.f32 %v3867_v45, %v2684_v14 }
 0x25c   :  { %v3884_v3 = vpop.f32.mrb[88].mxu0 }
 0x25d   :  { %v3885_v25 = vpop.f32.mrb[89].mxu0 }
 0x25e   :  { %v3886_v50 = vadd.f32 %v3885_v25, %v3884_v3  ;;  %v3887_v10 = vpop.f32.mrb[90].mxu0 }
 0x25f   :  { %v3888_v15 = vpop.f32.mrb[91].mxu0 }
 0x260   :  { %v2771_v52 = vadd.f32 %v3886_v50, %v2722_v4  ;;  %v3889_v17 = vadd.f32 %v3888_v15, %v3887_v10 }
 0x262   :  { %v2774_v20 = vadd.f32 %v3889_v17, %v2725_v41 }
 0x264   :  { %v3890_v22 = vpop.f32.mrb[92].mxu0 }
 0x265   :  { %v3891_v24 = vpop.f32.mrb[93].mxu0 }
 0x266   :  { %v3892_v56 = vadd.f32 %v3891_v24, %v3890_v22  ;;  %v3893_v60 = vpop.f32.mrb[94].mxu0 }
 0x267   :  { %v3894_v31 = vpop.f32.mrb[95].mxu0 }
 0x268   :  { %v2779_v37 = vadd.f32 %v3892_v56, %v2730_v38  ;;  %v3895_v33 = vadd.f32 %v3894_v31, %v3893_v60 }
 0x26a   :  { %v2782_v9 = vadd.f32 %v3895_v33, %v2733_v61 }
 0x26c   :  { %v3912_v30 = vpop.f32.mrb[92].mxu1 }
 0x26d   :  { %v3913_v42 = vpop.f32.mrb[93].mxu1 }
 0x26e   :  { %v3914_v48 = vadd.f32 %v3913_v42, %v3912_v30  ;;  %v3915_v35 = vpop.f32.mrb[94].mxu1 }
 0x26f   :  { %v3916_v54 = vpop.f32.mrb[95].mxu1 }
 0x270   :  { %v2820_v18 = vadd.f32 %v3914_v48, %v2771_v52  ;;  %v3917_v63 = vadd.f32 %v3916_v54, %v3915_v35 }
 0x272   :  { %v2823_v5 = vadd.f32 %v3917_v63, %v2774_v20 }
 0x274   :  { %v3918_v12 = vpop.f32.mrb[96].mxu1 }
 0x275   :  { %v3919_v34 = vpop.f32.mrb[97].mxu1 }
 0x276   :  { %v3920_v11 = vadd.f32 %v3919_v34, %v3918_v12  ;;  %v3921_v59 = vpop.f32.mrb[98].mxu1 }
 0x277   :  { %v3922_v36 = vpop.f32.mrb[99].mxu1 }
 0x278   :  { %v2828_v40 = vadd.f32 %v3920_v11, %v2779_v37  ;;  %v3923_v44 = vadd.f32 %v3922_v36, %v3921_v59 }
 0x27a   :  { %v2831_v58 = vadd.f32 %v3923_v44, %v2782_v9 }
 0x27c   :  { %v3940_v0 = vpop.f32.mrb[96].mxu0  ;;  %v4004_v27 = vpop.f32.mrb[100].mxu1 }
 0x27d   :  { %v3941_v62 = vpop.f32.mrb[97].mxu0  ;;  %v2917_v46 = vpop.f32.mrb[101].mxu1 }
 0x27e   :  { %v3942_v49 = vadd.f32 %v3941_v62, %v3940_v0  ;;  %v3943_v51 = vpop.f32.mrb[98].mxu0  ;;  %v4005_v23 = vpop.f32.mrb[102].mxu1 }
 0x27f   :  { %v3944_v6 = vpop.f32.mrb[99].mxu0  ;;  %v2920_v39 = vpop.f32.mrb[103].mxu1 }
 0x280   :  { %v3945_v14 = vadd.f32 %v3944_v6, %v3943_v51  ;;  %v2869_v16 = vadd.f32 %v3942_v49, %v2820_v18 }
 0x282   :  { %v2918_v7 = vadd.f32 %v2917_v46, %v2869_v16  ;;  %v2872_v47 = vadd.f32 %v3945_v14, %v2823_v5 }
 0x284   :  { %v2932_v43 = vmul.f32 %v6108_v57, %v2918_v7  ;;  %v2921_v2 = vadd.f32 %v2920_v39, %v2872_v47  ;;  %v3946_v4 = vpop.f32.mrb[100].mxu0 }
 0x285   :  { %v3947_v8 = vpop.f32.mrb[101].mxu0 }
 0x286   :  { %v2936_v41 = vadd.f32 %v6118_v53, %v2932_v43  ;;  %v2933_v55 = vmul.f32 %v6108_v57, %v2921_v2  ;;  %v3948_v13 = vadd.f32 %v3947_v8, %v3946_v4  ;;  %v3949_v19 = vpop.f32.mrb[102].mxu0 }
 0x287   :  { %v3950_v1 = vpop.f32.mrb[103].mxu0 }
 0x288   :  { %vm2940_vm13 = vcmp.gt.f32.partialorder %v2936_v41, 0.0  ;;  %v2944_v21 = vmul.f32 0.01, %v2936_v41  ;;  %v2937_v38 = vadd.f32 %v6118_v53, %v2933_v55  ;;  %v2877_v45 = vadd.f32 %v3948_v13, %v2828_v40 }
 0x289   :  { %v3951_v61 = vadd.f32 %v3950_v1, %v3949_v19 }
 0x28a   :  { %v2948_v3 = vsel %vm2940_vm13, %v2936_v41, %v2944_v21  ;;  %vm2941_vm14 = vcmp.gt.f32.partialorder %v2937_v38, 0.0  ;;  %v2945_v25 = vmul.f32 0.01, %v2937_v38  ;;  %v2926_v50 = vadd.f32 %v4004_v27, %v2877_v45 }
 0x28b   :  { %v2952_v10 = vmax.f32 %v6178_v29, %v2948_v3  ;;  %v2880_v15 = vadd.f32 %v3951_v61, %v2831_v58 }
 0x28c   :  { %v2949_v52 = vsel %vm2941_vm14, %v2937_v38, %v2945_v25  ;;  %v2934_v17 = vmul.f32 %v6108_v57, %v2926_v50 }
 0x28d   :  { %2956 = vst [vmem:[%s6218_s4] sm:$0xff] %v2952_v10  ;;  %v2953_v20 = vmax.f32 %v6188_v32, %v2949_v52  ;;  %v2929_v22 = vadd.f32 %v4005_v23, %v2880_v15 }
 0x28e   :  { %v2938_v24 = vadd.f32 %v6118_v53, %v2934_v17 }
 0x28f   :  { %2957 = vst [vmem:[%s6218_s4 + $0x8] sm:$0xff] %v2953_v20  ;;  %v2935_v56 = vmul.f32 %v6108_v57, %v2929_v22 }
 0x290   :  { %vm2942_vm15 = vcmp.gt.f32.partialorder %v2938_v24, 0.0  ;;  %v2946_v29 = vmul.f32 0.01, %v2938_v24 }
 0x291   :  { %v2939_v60 = vadd.f32 %v6118_v53, %v2935_v56 }
 0x292   :  { %v2950_v31 = vsel %vm2942_vm15, %v2938_v24, %v2946_v29 }
 0x293   :  { %v2954_v37 = vmax.f32 %v6173_v26, %v2950_v31  ;;  %vm2943_vm0 = vcmp.gt.f32.partialorder %v2939_v60, 0.0  ;;  %v2947_v33 = vmul.f32 0.01, %v2939_v60 }
 0x295   :  { %2958 = vst [vmem:[%s6218_s4 + $0x10] sm:$0xff] %v2954_v37  ;;  %v2951_v32 = vsel %vm2943_vm0, %v2939_v60, %v2947_v33 }
 0x296   :  { %v2955_v9 = vmax.f32 %v6183_v28, %v2951_v32 }
 0x298   :  { %2959 = vst [vmem:[%s6218_s4 + $0x18] sm:$0xff] %v2955_v9 }

// kernel: cnn_forward.6
= control target key start
LH: loop header
LB: loop body
LE: loop exit
PB: predicated region body
PF: predicated region fallthrough
CT: control target
= control target key end

     0   :  { %v2569_v7 = vmov 1966171168   ;;  %v172_v9 = vlaneseq  ;;  %s4052_s1 = inlined_call_operand.vmem [shape: bf16[1152,256], index: 1, kind: input, shape index: {}]   ;;  %s4053_s0 = inlined_call_operand.vmem [shape: bf16[4,2,1152], index: 0, kind: input, shape index: {}]   ;;  %s4054_s2 = inlined_call_operand.vmem [shape: f32[1,256], index: 2, kind: input, shape index: {}]   ;;  %s4055_s3 = inlined_call_operand.vmem [shape: f32[1,256], index: 3, kind: input, shape index: {}]   ;;  %s4056_s4 = inlined_call_operand.vmem [shape: f32[2,256], index: 4, kind: output, shape index: {}]  }
   0x1   :  { %v2316_v0 = vld [vmem:[%s4052_s1 + $0x4] ss:$8 sps:$4 sm:$0xff]   ;;  %v2318_v1 = vld [vmem:[%s4052_s1] ss:$8 sps:$4 sm:$0xff]   ;;  %v2319_v2 = vld [vmem:[%s4052_s1 + $0x14] ss:$8 sps:$4 sm:$0xff]   ;;  %v170_v8 = vunpack.c.l.s4 %v2569_v7 }
   0x2   :  { %960 = vmatprep.subr.bf16.mxu0 %v2316_v0  ;;  %1274 = vmatprep.subr.bf16.mxu1 %v2316_v0  ;;  %v2321_v3 = vld [vmem:[%s4052_s1 + $0x10] ss:$8 sps:$4 sm:$0xff]   ;;  %v2322_v4 = vld [vmem:[%s4052_s1 + $0x24] ss:$8 sps:$4 sm:$0xff]   ;;  %v2324_v5 = vld [vmem:[%s4052_s1 + $0x20] ss:$8 sps:$4 sm:$0xff]  }
   0x3   :  { %961 = vmatpush1.bf16.msra.mxu0 %v2318_v1  ;;  %1275 = vmatpush1.bf16.msra.mxu1 %v2318_v1  ;;  %v2325_v6 = vld [vmem:[%s4052_s1 + $0x34] ss:$8 sps:$4 sm:$0xff]   ;;  %v2327_v10 = vld [vmem:[%s4052_s1 + $0x30] ss:$8 sps:$4 sm:$0xff]   ;;  %v2328_v11 = vld [vmem:[%s4052_s1 + $0x44] ss:$8 sps:$4 sm:$0xff]   ;;  %v171_v12 = vunpack.c.0.s8 %v170_v8 }
   0x4   :  { %962 = vmatprep.subr.bf16.mxu0 %v2319_v2  ;;  %1276 = vmatprep.subr.bf16.mxu1 %v2319_v2  ;;  %v2623_v13 = vshrl.u32 %v172_v9, 7  ;;  %v2330_v14 = vld [vmem:[%s4052_s1 + $0x40] ss:$8 sps:$4 sm:$0xff]   ;;  %v2331_v15 = vld [vmem:[%s4052_s1 + $0x54] ss:$8 sps:$4 sm:$0xff]  }
   0x5   :  { %v2333_v17 = vld [vmem:[%s4052_s1 + $0x50] ss:$8 sps:$4 sm:$0xff]   ;;  %v2334_v18 = vld [vmem:[%s4052_s1 + $0x64] ss:$8 sps:$4 sm:$0xff]   ;;  %v2336_v22 = vld [vmem:[%s4052_s1 + $0x60] ss:$8 sps:$4 sm:$0xff]  }
   0x6   :  { %4185 = vst [vmem:[#allocation2_spill] sm:$0xff] %v2623_v13  ;;  %v2632_v16 = vsub.s32 %v171_v12, %v2623_v13  ;;  %v2643_v19 = vld [vmem:[%s4053_s0] sm:$0xff]  ;;  %v2652_v21 = vld [vmem:[%s4053_s0 + $0x9] sm:$0xff]  ;;  %v2337_v24 = vld [vmem:[%s4052_s1 + $0x74] ss:$8 sps:$4 sm:$0xff]  }
   0x7   :  { %963 = vmatpush1.bf16.msra.mxu0 %v2321_v3  ;;  %1277 = vmatpush1.bf16.msra.mxu1 %v2321_v3  ;;  %v2339_v28 = vld [vmem:[%s4052_s1 + $0x70] ss:$8 sps:$4 sm:$0xff]   ;;  %v2340_v30 = vld [vmem:[%s4052_s1 + $0x84] ss:$8 sps:$4 sm:$0xff]   ;;  %v2342_v31 = vld [vmem:[%s4052_s1 + $0x80] ss:$8 sps:$4 sm:$0xff]  }
   0x8   :  { %964 = vmatprep.subr.bf16.mxu0 %v2322_v4  ;;  %1278 = vmatprep.subr.bf16.mxu1 %v2322_v4  ;;  %v2647_v20 = vrot.slane %v2643_v19, %v2632_v16  ;;  %v2659_v23 = vrot.slane %v2652_v21, %v2632_v16  ;;  %v2343_v32 = vld [vmem:[%s4052_s1 + $0x94] ss:$8 sps:$4 sm:$0xff]   ;;  %v2345_v33 = vld [vmem:[%s4052_s1 + $0x90] ss:$8 sps:$4 sm:$0xff]   ;;  %v2346_v34 = vld [vmem:[%s4052_s1 + $0xa4] ss:$8 sps:$4 sm:$0xff]  }
   0x9   :  { %v2348_v35 = vld [vmem:[%s4052_s1 + $0xa0] ss:$8 sps:$4 sm:$0xff]   ;;  %v2349_v36 = vld [vmem:[%s4052_s1 + $0xb4] ss:$8 sps:$4 sm:$0xff]   ;;  %v2351_v37 = vld [vmem:[%s4052_s1 + $0xb0] ss:$8 sps:$4 sm:$0xff]  }
   0xa   :  { %v183_v25 = vcombine.high %v2647_v20, %v2647_v20  ;;  %v1217_v26 = vcombine.high %v2659_v23, %v2659_v23  ;;  %v2352_v38 = vld [vmem:[%s4052_s1 + $0xc4] ss:$8 sps:$4 sm:$0xff]   ;;  %v2354_v39 = vld [vmem:[%s4052_s1 + $0xc0] ss:$8 sps:$4 sm:$0xff]   ;;  %v2355_v40 = vld [vmem:[%s4052_s1 + $0xd4] ss:$8 sps:$4 sm:$0xff]   ;;  %v2734_v47 = vrot.slane %v2647_v20, %v2632_v16  ;;  %v2738_v48 = vrot.slane %v2659_v23, %v2632_v16 }
   0xb   :  { %965 = vmatpush1.bf16.msra.mxu0 %v2324_v5  ;;  %1279 = vmatpush1.bf16.msra.mxu1 %v2324_v5  ;;  %v2357_v41 = vld [vmem:[%s4052_s1 + $0xd0] ss:$8 sps:$4 sm:$0xff]   ;;  %v2358_v42 = vld [vmem:[%s4052_s1 + $0xe4] ss:$8 sps:$4 sm:$0xff]   ;;  %v2360_v43 = vld [vmem:[%s4052_s1 + $0xe0] ss:$8 sps:$4 sm:$0xff]  }
   0xc   :  { %966 = vmatprep.subr.bf16.mxu0 %v2325_v6  ;;  %1280 = vmatprep.subr.bf16.mxu1 %v2325_v6  ;;  %v2669_v27 = vrot.slane %v183_v25, %v2632_v16  ;;  %v2675_v29 = vrot.slane %v1217_v26, %v2632_v16  ;;  %v2361_v44 = vld [vmem:[%s4052_s1 + $0xf4] ss:$8 sps:$4 sm:$0xff]   ;;  %v2363_v45 = vld [vmem:[%s4052_s1 + $0xf0] ss:$8 sps:$4 sm:$0xff]   ;;  %v2730_v46 = vld [vmem:[%s4052_s1 + $0x104] ss:$8 sps:$4 sm:$0xff]  }
   0xd   :  { %v2743_v49 = vld [vmem:[%s4052_s1 + $0x100] ss:$8 sps:$4 sm:$0xff]   ;;  %v2750_v50 = vld [vmem:[%s4052_s1 + $0x114] ss:$8 sps:$4 sm:$0xff]   ;;  %v2763_v53 = vld [vmem:[%s4052_s1 + $0x110] ss:$8 sps:$4 sm:$0xff]  }
   0xe   :  { %992 = vmatprep.mubr.bf16.mxu0 %v2669_v27  ;;  %1306 = vmatprep.mubr.bf16.mxu1 %v2675_v29  ;;  %v215_v51 = vcombine.high %v2669_v27, %v2669_v27  ;;  %v1249_v52 = vcombine.high %v2675_v29, %v2675_v29  ;;  %v2770_v54 = vld [vmem:[%s4052_s1 + $0x124] ss:$8 sps:$4 sm:$0xff]   ;;  %v2777_v55 = vld [vmem:[%s4052_s1 + $0x120] ss:$8 sps:$4 sm:$0xff]   ;;  %v2784_v56 = vld [vmem:[%s4052_s1 + $0x134] ss:$8 sps:$4 sm:$0xff]   ;;  %v213_v27 = vcombine.high %v2734_v47, %v2734_v47 }
   0xf   :  { %967 = vmatpush1.bf16.msra.mxu0 %v2327_v10  ;;  %1281 = vmatpush1.bf16.msra.mxu1 %v2327_v10  ;;  %v2791_v57 = vld [vmem:[%s4052_s1 + $0x130] ss:$8 sps:$4 sm:$0xff]   ;;  %v2798_v58 = vld [vmem:[%s4052_s1 + $0x144] ss:$8 sps:$4 sm:$0xff]   ;;  %v2805_v59 = vld [vmem:[%s4052_s1 + $0x140] ss:$8 sps:$4 sm:$0xff]  }
  0x10   :  { %968 = vmatprep.subr.bf16.mxu0 %v2328_v11  ;;  %1282 = vmatprep.subr.bf16.mxu1 %v2328_v11  ;;  %v2812_v60 = vld [vmem:[%s4052_s1 + $0x154] ss:$8 sps:$4 sm:$0xff]   ;;  %v2819_v61 = vld [vmem:[%s4052_s1 + $0x150] ss:$8 sps:$4 sm:$0xff]   ;;  %v2826_v62 = vld [vmem:[%s4052_s1 + $0x164] ss:$8 sps:$4 sm:$0xff]  }
  0x11   :  { %v2833_v63 = vld [vmem:[%s4052_s1 + $0x160] ss:$8 sps:$4 sm:$0xff]   ;;  %v2840_v0 = vld [vmem:[%s4052_s1 + $0x174] ss:$8 sps:$4 sm:$0xff]   ;;  %v2847_v1 = vld [vmem:[%s4052_s1 + $0x170] ss:$8 sps:$4 sm:$0xff]  }
  0x12   :  { %v2854_v2 = vld [vmem:[%s4052_s1 + $0x184] ss:$8 sps:$4 sm:$0xff]   ;;  %v2861_v3 = vld [vmem:[%s4052_s1 + $0x180] ss:$8 sps:$4 sm:$0xff]   ;;  %v2868_v4 = vld [vmem:[%s4052_s1 + $0x194] ss:$8 sps:$4 sm:$0xff]  }
  0x13   :  { %969 = vmatpush1.bf16.msra.mxu0 %v2330_v14  ;;  %1283 = vmatpush1.bf16.msra.mxu1 %v2330_v14  ;;  %v2875_v5 = vld [vmem:[%s4052_s1 + $0x190] ss:$8 sps:$4 sm:$0xff]   ;;  %v2882_v6 = vld [vmem:[%s4052_s1 + $0x1a4] ss:$8 sps:$4 sm:$0xff]   ;;  %v2889_v7 = vld [vmem:[%s4052_s1 + $0x1a0] ss:$8 sps:$4 sm:$0xff]  }
  0x14   :  { %970 = vmatprep.subr.bf16.mxu0 %v2331_v15  ;;  %1284 = vmatprep.subr.bf16.mxu1 %v2331_v15  ;;  %v2896_v8 = vld [vmem:[%s4052_s1 + $0x1b4] ss:$8 sps:$4 sm:$0xff]   ;;  %v2903_v9 = vld [vmem:[%s4052_s1 + $0x1b0] ss:$8 sps:$4 sm:$0xff]   ;;  %v2910_v10 = vld [vmem:[%s4052_s1 + $0x1c4] ss:$8 sps:$4 sm:$0xff]  }
  0x15   :  { %v2917_v11 = vld [vmem:[%s4052_s1 + $0x1c0] ss:$8 sps:$4 sm:$0xff]   ;;  %v2924_v12 = vld [vmem:[%s4052_s1 + $0x1d4] ss:$8 sps:$4 sm:$0xff]   ;;  %v2931_v14 = vld [vmem:[%s4052_s1 + $0x1d0] ss:$8 sps:$4 sm:$0xff]  }
  0x16   :  { %v2938_v15 = vld [vmem:[%s4052_s1 + $0x1e4] ss:$8 sps:$4 sm:$0xff]   ;;  %v2949_v20 = vld [vmem:[%s4052_s1 + $0x1e0] ss:$8 sps:$4 sm:$0xff]   ;;  %v2969_v23 = vld [vmem:[%s4052_s1 + $0x1f0] ss:$8 sps:$4 sm:$0xff]  }
  0x17   :  { %971 = vmatpush1.bf16.msra.mxu0 %v2333_v17  ;;  %1285 = vmatpush1.bf16.msra.mxu1 %v2333_v17  ;;  %v168_v17 = vcombine.high %v2643_v19, %v2643_v19  ;;  %v2956_v19 = vld [vmem:[%s4052_s1 + $0x1f4] ss:$8 sps:$4 sm:$0xff]   ;;  %v2991_v29 = vld [vmem:[%s4052_s1 + $0x200] ss:$8 sps:$4 sm:$0xff]  }
  0x18   :  { %972 = vmatprep.subr.bf16.mxu0 %v2334_v18  ;;  %1286 = vmatprep.subr.bf16.mxu1 %v2334_v18  ;;  %v1202_v18 = vcombine.high %v2652_v21, %v2652_v21  ;;  %v3174_v13 = vld [vmem:[%s4052_s1 + $0x2d4] ss:$8 sps:$4 sm:$0xff]  }
  0x19   :  { %v2959_v21 = vrot.slane %v168_v17, %v2632_v16  ;;  %v3132_v17 = vld [vmem:[%s4052_s1 + $0x2a4] ss:$8 sps:$4 sm:$0xff]   ;;  %4195 = vst [vmem:[#allocation12_spill] sm:$0xff] %v3174_v13 }
  0x1a   :  { %4189 = vst [vmem:[#allocation6_spill] sm:$0xff] %v3132_v17 }
  0x1b   :  { %973 = vmatpush1.bf16.msra.mxu0 %v2336_v22  ;;  %1287 = vmatpush1.bf16.msra.mxu1 %v2336_v22  ;;  %v2962_v22 = vrot.slane %v1202_v18, %v2632_v16  ;;  %v184_v25 = vcombine.high %v2959_v21, %v2959_v21  ;;  %v3139_v18 = vld [vmem:[%s4052_s1 + $0x2a0] ss:$8 sps:$4 sm:$0xff]  }
  0x1c   :  { %974 = vmatprep.subr.bf16.mxu0 %v2337_v24  ;;  %1288 = vmatprep.subr.bf16.mxu1 %v2337_v24  ;;  %v2976_v24 = vld [vmem:[%s4052_s1 + $0x204] ss:$8 sps:$4 sm:$0xff]   ;;  %4190 = vst [vmem:[#allocation7_spill] sm:$0xff] %v3139_v18 }
  0x1d   :  { %v1218_v26 = vcombine.high %v2962_v22, %v2962_v22 }
  0x1f   :  { %975 = vmatpush1.bf16.msra.mxu0 %v2339_v28  ;;  %1289 = vmatpush1.bf16.msra.mxu1 %v2339_v28  ;;  %v1247_v28 = vcombine.high %v2738_v48, %v2738_v48 }
  0x20   :  { %976 = vmatprep.subr.bf16.mxu0 %v2340_v30  ;;  %1290 = vmatprep.subr.bf16.mxu1 %v2340_v30  ;;  %v2998_v30 = vld [vmem:[%s4052_s1 + $0x214] ss:$8 sps:$4 sm:$0xff]  }
  0x23   :  { %977 = vmatpush1.bf16.msra.mxu0 %v2342_v31  ;;  %1291 = vmatpush1.bf16.msra.mxu1 %v2342_v31  ;;  %v3001_v31 = vrot.slane %v184_v25, %v2632_v16  ;;  %v3146_v25 = vld [vmem:[%s4052_s1 + $0x2b4] ss:$8 sps:$4 sm:$0xff]  }
  0x24   :  { %978 = vmatprep.subr.bf16.mxu0 %v2343_v32  ;;  %1292 = vmatprep.subr.bf16.mxu1 %v2343_v32  ;;  %v3004_v32 = vrot.slane %v1218_v26, %v2632_v16  ;;  %4191 = vst [vmem:[#allocation8_spill] sm:$0xff] %v3146_v25  ;;  %v3153_v26 = vld [vmem:[%s4052_s1 + $0x2b0] ss:$8 sps:$4 sm:$0xff]  }
  0x25   :  { %4192 = vst [vmem:[#allocation9_spill] sm:$0xff] %v3153_v26 }
  0x27   :  { %979 = vmatpush1.bf16.msra.mxu0 %v2345_v33  ;;  %1293 = vmatpush1.bf16.msra.mxu1 %v2345_v33  ;;  %v3011_v33 = vld [vmem:[%s4052_s1 + $0x210] ss:$8 sps:$4 sm:$0xff]  }
  0x28   :  { %980 = vmatprep.subr.bf16.mxu0 %v2346_v34  ;;  %1294 = vmatprep.subr.bf16.mxu1 %v2346_v34  ;;  %v3018_v34 = vld [vmem:[%s4052_s1 + $0x224] ss:$8 sps:$4 sm:$0xff]  }
  0x2b   :  { %981 = vmatpush1.bf16.msra.mxu0 %v2348_v35  ;;  %1295 = vmatpush1.bf16.msra.mxu1 %v2348_v35  ;;  %v3027_v35 = vld [vmem:[%s4052_s1 + $0x220] ss:$8 sps:$4 sm:$0xff]  }
  0x2c   :  { %982 = vmatprep.subr.bf16.mxu0 %v2349_v36  ;;  %1296 = vmatprep.subr.bf16.mxu1 %v2349_v36  ;;  %v3034_v36 = vld [vmem:[%s4052_s1 + $0x234] ss:$8 sps:$4 sm:$0xff]  }
  0x2f   :  { %983 = vmatpush1.bf16.msra.mxu0 %v2351_v37  ;;  %1297 = vmatpush1.bf16.msra.mxu1 %v2351_v37  ;;  %v3041_v37 = vld [vmem:[%s4052_s1 + $0x230] ss:$8 sps:$4 sm:$0xff]  }
  0x30   :  { %984 = vmatprep.subr.bf16.mxu0 %v2352_v38  ;;  %1298 = vmatprep.subr.bf16.mxu1 %v2352_v38  ;;  %v3048_v38 = vld [vmem:[%s4052_s1 + $0x244] ss:$8 sps:$4 sm:$0xff]  }
  0x33   :  { %985 = vmatpush1.bf16.msra.mxu0 %v2354_v39  ;;  %1299 = vmatpush1.bf16.msra.mxu1 %v2354_v39  ;;  %v3055_v39 = vld [vmem:[%s4052_s1 + $0x240] ss:$8 sps:$4 sm:$0xff]  }
  0x34   :  { %986 = vmatprep.subr.bf16.mxu0 %v2355_v40  ;;  %1300 = vmatprep.subr.bf16.mxu1 %v2355_v40  ;;  %v3062_v40 = vld [vmem:[%s4052_s1 + $0x254] ss:$8 sps:$4 sm:$0xff]  }
  0x37   :  { %987 = vmatpush1.bf16.msra.mxu0 %v2357_v41  ;;  %1301 = vmatpush1.bf16.msra.mxu1 %v2357_v41  ;;  %v3069_v41 = vld [vmem:[%s4052_s1 + $0x250] ss:$8 sps:$4 sm:$0xff]  }
  0x38   :  { %988 = vmatprep.subr.bf16.mxu0 %v2358_v42  ;;  %1302 = vmatprep.subr.bf16.mxu1 %v2358_v42  ;;  %v3076_v42 = vld [vmem:[%s4052_s1 + $0x264] ss:$8 sps:$4 sm:$0xff]  }
  0x3b   :  { %989 = vmatpush1.bf16.msra.mxu0 %v2360_v43  ;;  %1303 = vmatpush1.bf16.msra.mxu1 %v2360_v43  ;;  %v3083_v43 = vld [vmem:[%s4052_s1 + $0x260] ss:$8 sps:$4 sm:$0xff]  }
  0x3c   :  { %990 = vmatprep.subr.bf16.mxu0 %v2361_v44  ;;  %1304 = vmatprep.subr.bf16.mxu1 %v2361_v44  ;;  %v3090_v44 = vld [vmem:[%s4052_s1 + $0x274] ss:$8 sps:$4 sm:$0xff]  }
  0x3f   :  { %991 = vmatpush1.bf16.msra.mxu0 %v2363_v45  ;;  %1305 = vmatpush1.bf16.msra.mxu1 %v2363_v45  ;;  %v3097_v45 = vld [vmem:[%s4052_s1 + $0x270] ss:$8 sps:$4 sm:$0xff]  }
  0x40   :  { %1001 = vmatprep.subr.bf16.mxu0 %v2730_v46  ;;  %1315 = vmatprep.subr.bf16.mxu1 %v2730_v46 }
  0x42   :  { %993 = vmatmul.mubr.bf16.vlgmr.msra.gmra.mrb[0].mxu0 %v2734_v47  ;;  %1307 = vmatmul.mubr.bf16.vlgmr.msra.gmra.mrb[0].mxu1 %v2738_v48  ;;  %v3104_v47 = vld [vmem:[%s4052_s1 + $0x284] ss:$8 sps:$4 sm:$0xff]   ;;  %v3111_v48 = vld [vmem:[%s4052_s1 + $0x280] ss:$8 sps:$4 sm:$0xff]  }
  0x43   :  { %1002 = vmatpush1.bf16.msra.mxu0 %v2743_v49  ;;  %1316 = vmatpush1.bf16.msra.mxu1 %v2743_v49  ;;  %4186 = vst [vmem:[#allocation3_spill] sm:$0xff] %v3111_v48 }
  0x44   :  { %1003 = vmatprep.subr.bf16.mxu0 %v2750_v50  ;;  %1317 = vmatprep.subr.bf16.mxu1 %v2750_v50 }
  0x45   :  { %1033 = vmatprep.mubr.bf16.mxu0 %v215_v51  ;;  %1347 = vmatprep.mubr.bf16.mxu1 %v1249_v52  ;;  %v3118_v51 = vld [vmem:[%s4052_s1 + $0x294] ss:$8 sps:$4 sm:$0xff]   ;;  %v3125_v52 = vld [vmem:[%s4052_s1 + $0x290] ss:$8 sps:$4 sm:$0xff]  }
  0x46   :  { %4187 = vst [vmem:[#allocation4_spill] sm:$0xff] %v3118_v51  ;;  %4188 = vst [vmem:[#allocation5_spill] sm:$0xff] %v3125_v52 }
  0x47   :  { %1004 = vmatpush1.bf16.msra.mxu0 %v2763_v53  ;;  %1318 = vmatpush1.bf16.msra.mxu1 %v2763_v53 }
  0x48   :  { %1005 = vmatprep.subr.bf16.mxu0 %v2770_v54  ;;  %1319 = vmatprep.subr.bf16.mxu1 %v2770_v54 }
  0x4b   :  { %1006 = vmatpush1.bf16.msra.mxu0 %v2777_v55  ;;  %1320 = vmatpush1.bf16.msra.mxu1 %v2777_v55 }
  0x4c   :  { %1007 = vmatprep.subr.bf16.mxu0 %v2784_v56  ;;  %1321 = vmatprep.subr.bf16.mxu1 %v2784_v56 }
  0x4f   :  { %1008 = vmatpush1.bf16.msra.mxu0 %v2791_v57  ;;  %1322 = vmatpush1.bf16.msra.mxu1 %v2791_v57 }
  0x50   :  { %1009 = vmatprep.subr.bf16.mxu0 %v2798_v58  ;;  %1323 = vmatprep.subr.bf16.mxu1 %v2798_v58 }
  0x53   :  { %1010 = vmatpush1.bf16.msra.mxu0 %v2805_v59  ;;  %1324 = vmatpush1.bf16.msra.mxu1 %v2805_v59 }
  0x54   :  { %1011 = vmatprep.subr.bf16.mxu0 %v2812_v60  ;;  %1325 = vmatprep.subr.bf16.mxu1 %v2812_v60 }
  0x57   :  { %1012 = vmatpush1.bf16.msra.mxu0 %v2819_v61  ;;  %1326 = vmatpush1.bf16.msra.mxu1 %v2819_v61 }
  0x58   :  { %1013 = vmatprep.subr.bf16.mxu0 %v2826_v62  ;;  %1327 = vmatprep.subr.bf16.mxu1 %v2826_v62 }
  0x5b   :  { %1014 = vmatpush1.bf16.msra.mxu0 %v2833_v63  ;;  %1328 = vmatpush1.bf16.msra.mxu1 %v2833_v63 }
  0x5c   :  { %1015 = vmatprep.subr.bf16.mxu0 %v2840_v0  ;;  %1329 = vmatprep.subr.bf16.mxu1 %v2840_v0 }
  0x5f   :  { %1016 = vmatpush1.bf16.msra.mxu0 %v2847_v1  ;;  %1330 = vmatpush1.bf16.msra.mxu1 %v2847_v1 }
  0x60   :  { %1017 = vmatprep.subr.bf16.mxu0 %v2854_v2  ;;  %1331 = vmatprep.subr.bf16.mxu1 %v2854_v2 }
  0x63   :  { %1018 = vmatpush1.bf16.msra.mxu0 %v2861_v3  ;;  %1332 = vmatpush1.bf16.msra.mxu1 %v2861_v3 }
  0x64   :  { %1019 = vmatprep.subr.bf16.mxu0 %v2868_v4  ;;  %1333 = vmatprep.subr.bf16.mxu1 %v2868_v4 }
  0x67   :  { %1020 = vmatpush1.bf16.msra.mxu0 %v2875_v5  ;;  %1334 = vmatpush1.bf16.msra.mxu1 %v2875_v5 }
  0x68   :  { %1021 = vmatprep.subr.bf16.mxu0 %v2882_v6  ;;  %1335 = vmatprep.subr.bf16.mxu1 %v2882_v6 }
  0x6b   :  { %1022 = vmatpush1.bf16.msra.mxu0 %v2889_v7  ;;  %1336 = vmatpush1.bf16.msra.mxu1 %v2889_v7 }
  0x6c   :  { %1023 = vmatprep.subr.bf16.mxu0 %v2896_v8  ;;  %1337 = vmatprep.subr.bf16.mxu1 %v2896_v8 }
  0x6f   :  { %1024 = vmatpush1.bf16.msra.mxu0 %v2903_v9  ;;  %1338 = vmatpush1.bf16.msra.mxu1 %v2903_v9 }
  0x70   :  { %1025 = vmatprep.subr.bf16.mxu0 %v2910_v10  ;;  %1339 = vmatprep.subr.bf16.mxu1 %v2910_v10 }
  0x73   :  { %1026 = vmatpush1.bf16.msra.mxu0 %v2917_v11  ;;  %1340 = vmatpush1.bf16.msra.mxu1 %v2917_v11 }
  0x74   :  { %1027 = vmatprep.subr.bf16.mxu0 %v2924_v12  ;;  %1341 = vmatprep.subr.bf16.mxu1 %v2924_v12 }
  0x77   :  { %1028 = vmatpush1.bf16.msra.mxu0 %v2931_v14  ;;  %1342 = vmatpush1.bf16.msra.mxu1 %v2931_v14 }
  0x78   :  { %1029 = vmatprep.subr.bf16.mxu0 %v2938_v15  ;;  %1343 = vmatprep.subr.bf16.mxu1 %v2938_v15 }
  0x7b   :  { %1030 = vmatpush1.bf16.msra.mxu0 %v2949_v20  ;;  %1344 = vmatpush1.bf16.msra.mxu1 %v2949_v20 }
  0x7c   :  { %1031 = vmatprep.subr.bf16.mxu0 %v2956_v19  ;;  %1345 = vmatprep.subr.bf16.mxu1 %v2956_v19 }
  0x7f   :  { %1032 = vmatpush1.bf16.msra.mxu0 %v2969_v23  ;;  %1346 = vmatpush1.bf16.msra.mxu1 %v2969_v23 }
  0x80   :  { %1042 = vmatprep.subr.bf16.mxu0 %v2976_v24  ;;  %1356 = vmatprep.subr.bf16.mxu1 %v2976_v24 }
  0x82   :  { %1034 = vmatmul.mubr.bf16.vlgmr.msra.gmra.mrb[0].mxu0 %v213_v27  ;;  %1348 = vmatmul.mubr.bf16.vlgmr.msra.gmra.mrb[0].mxu1 %v1247_v28  ;;  %v3160_v27 = vld [vmem:[%s4052_s1 + $0x2c4] ss:$8 sps:$4 sm:$0xff]   ;;  %v3167_v28 = vld [vmem:[%s4052_s1 + $0x2c0] ss:$8 sps:$4 sm:$0xff]  }
  0x83   :  { %1043 = vmatpush1.bf16.msra.mxu0 %v2991_v29  ;;  %1357 = vmatpush1.bf16.msra.mxu1 %v2991_v29  ;;  %4193 = vst [vmem:[#allocation10_spill] sm:$0xff] %v3160_v27  ;;  %4194 = vst [vmem:[#allocation11_spill] sm:$0xff] %v3167_v28 }
  0x84   :  { %1044 = vmatprep.subr.bf16.mxu0 %v2998_v30  ;;  %1358 = vmatprep.subr.bf16.mxu1 %v2998_v30 }
  0x85   :  { %1074 = vmatprep.mubr.bf16.mxu0 %v3001_v31  ;;  %1388 = vmatprep.mubr.bf16.mxu1 %v3004_v32 }
  0x87   :  { %1045 = vmatpush1.bf16.msra.mxu0 %v3011_v33  ;;  %1359 = vmatpush1.bf16.msra.mxu1 %v3011_v33 }
  0x88   :  { %1046 = vmatprep.subr.bf16.mxu0 %v3018_v34  ;;  %1360 = vmatprep.subr.bf16.mxu1 %v3018_v34 }
  0x8b   :  { %1047 = vmatpush1.bf16.msra.mxu0 %v3027_v35  ;;  %1361 = vmatpush1.bf16.msra.mxu1 %v3027_v35 }
  0x8c   :  { %1048 = vmatprep.subr.bf16.mxu0 %v3034_v36  ;;  %1362 = vmatprep.subr.bf16.mxu1 %v3034_v36 }
  0x8f   :  { %1049 = vmatpush1.bf16.msra.mxu0 %v3041_v37  ;;  %1363 = vmatpush1.bf16.msra.mxu1 %v3041_v37 }
  0x90   :  { %1050 = vmatprep.subr.bf16.mxu0 %v3048_v38  ;;  %1364 = vmatprep.subr.bf16.mxu1 %v3048_v38 }
  0x93   :  { %1051 = vmatpush1.bf16.msra.mxu0 %v3055_v39  ;;  %1365 = vmatpush1.bf16.msra.mxu1 %v3055_v39 }
  0x94   :  { %1052 = vmatprep.subr.bf16.mxu0 %v3062_v40  ;;  %1366 = vmatprep.subr.bf16.mxu1 %v3062_v40 }
  0x97   :  { %1053 = vmatpush1.bf16.msra.mxu0 %v3069_v41  ;;  %1367 = vmatpush1.bf16.msra.mxu1 %v3069_v41 }
  0x98   :  { %1054 = vmatprep.subr.bf16.mxu0 %v3076_v42  ;;  %1368 = vmatprep.subr.bf16.mxu1 %v3076_v42 }
  0x9b   :  { %1055 = vmatpush1.bf16.msra.mxu0 %v3083_v43  ;;  %1369 = vmatpush1.bf16.msra.mxu1 %v3083_v43 }
  0x9c   :  { %1056 = vmatprep.subr.bf16.mxu0 %v3090_v44  ;;  %1370 = vmatprep.subr.bf16.mxu1 %v3090_v44 }
  0x9f   :  { %1057 = vmatpush1.bf16.msra.mxu0 %v3097_v45  ;;  %1371 = vmatpush1.bf16.msra.mxu1 %v3097_v45 }
  0xa0   :  { %1058 = vmatprep.subr.bf16.mxu0 %v3104_v47  ;;  %1372 = vmatprep.subr.bf16.mxu1 %v3104_v47 }
  0xa3   :  { %1059 = vmatpush1.bf16.msra.mxu0 %v3111_v48  ;;  %1373 = vmatpush1.bf16.msra.mxu1 %v3111_v48 }
  0xa4   :  { %1060 = vmatprep.subr.bf16.mxu0 %v3118_v51  ;;  %1374 = vmatprep.subr.bf16.mxu1 %v3118_v51  ;;  %v2536_v51 = vld [vmem:[%s4052_s1 + $0x4] ss:$8 sps:$4 sm:$0xff]  }
  0xa7   :  { %1061 = vmatpush1.bf16.msra.mxu0 %v3125_v52  ;;  %1375 = vmatpush1.bf16.msra.mxu1 %v3125_v52 }
  0xa8   :  { %1062 = vmatprep.subr.bf16.mxu0 %v3132_v17  ;;  %1376 = vmatprep.subr.bf16.mxu1 %v3132_v17 }
  0xab   :  { %1063 = vmatpush1.bf16.msra.mxu0 %v3139_v18  ;;  %1377 = vmatpush1.bf16.msra.mxu1 %v3139_v18 }
  0xac   :  { %1064 = vmatprep.subr.bf16.mxu0 %v3146_v25  ;;  %1378 = vmatprep.subr.bf16.mxu1 %v3146_v25  ;;  %v3220_v25 = vrot.slane %v2959_v21, %v2632_v16  ;;  %v3238_v21 = vld [vmem:[%s4052_s1 + $0x314] ss:$8 sps:$4 sm:$0xff]  }
  0xad   :  { %4203 = vst [vmem:[#allocation20_spill] sm:$0xff] %v3238_v21 }
  0xaf   :  { %1065 = vmatpush1.bf16.msra.mxu0 %v3153_v26  ;;  %1379 = vmatpush1.bf16.msra.mxu1 %v3153_v26  ;;  %v3181_v26 = vld [vmem:[%s4052_s1 + $0x2d0] ss:$8 sps:$4 sm:$0xff]  }
  0xb0   :  { %1066 = vmatprep.subr.bf16.mxu0 %v3160_v27  ;;  %1380 = vmatprep.subr.bf16.mxu1 %v3160_v27  ;;  %4196 = vst [vmem:[#allocation13_spill] sm:$0xff] %v3181_v26  ;;  %v3188_v27 = vld [vmem:[%s4052_s1 + $0x2e4] ss:$8 sps:$4 sm:$0xff]  }
  0xb1   :  { %4197 = vst [vmem:[#allocation14_spill] sm:$0xff] %v3188_v27 }
  0xb3   :  { %1067 = vmatpush1.bf16.msra.mxu0 %v3167_v28  ;;  %1381 = vmatpush1.bf16.msra.mxu1 %v3167_v28  ;;  %v3195_v28 = vld [vmem:[%s4052_s1 + $0x2e0] ss:$8 sps:$4 sm:$0xff]  }
  0xb4   :  { %1068 = vmatprep.subr.bf16.mxu0 %v3174_v13  ;;  %1382 = vmatprep.subr.bf16.mxu1 %v3174_v13  ;;  %4198 = vst [vmem:[#allocation15_spill] sm:$0xff] %v3195_v28  ;;  %v3202_v13 = vld [vmem:[%s4052_s1 + $0x2f4] ss:$8 sps:$4 sm:$0xff]  }
  0xb5   :  { %4199 = vst [vmem:[#allocation16_spill] sm:$0xff] %v3202_v13 }
  0xb7   :  { %1069 = vmatpush1.bf16.msra.mxu0 %v3181_v26  ;;  %1383 = vmatpush1.bf16.msra.mxu1 %v3181_v26  ;;  %v3209_v26 = vld [vmem:[%s4052_s1 + $0x2f0] ss:$8 sps:$4 sm:$0xff]  }
  0xb8   :  { %1070 = vmatprep.subr.bf16.mxu0 %v3188_v27  ;;  %1384 = vmatprep.subr.bf16.mxu1 %v3188_v27  ;;  %4200 = vst [vmem:[#allocation17_spill] sm:$0xff] %v3209_v26  ;;  %v3216_v27 = vld [vmem:[%s4052_s1 + $0x304] ss:$8 sps:$4 sm:$0xff]  }
  0xb9   :  { %4201 = vst [vmem:[#allocation18_spill] sm:$0xff] %v3216_v27 }
  0xbb   :  { %1071 = vmatpush1.bf16.msra.mxu0 %v3195_v28  ;;  %1385 = vmatpush1.bf16.msra.mxu1 %v3195_v28  ;;  %v3224_v28 = vrot.slane %v2962_v22, %v2632_v16  ;;  %v216_v22 = vcombine.high %v3001_v31, %v3001_v31  ;;  %v3258_v31 = vld [vmem:[%s4052_s1 + $0x324] ss:$8 sps:$4 sm:$0xff]  }
  0xbc   :  { %1072 = vmatprep.subr.bf16.mxu0 %v3202_v13  ;;  %1386 = vmatprep.subr.bf16.mxu1 %v3202_v13  ;;  %v3231_v13 = vld [vmem:[%s4052_s1 + $0x300] ss:$8 sps:$4 sm:$0xff]   ;;  %4205 = vst [vmem:[#allocation22_spill] sm:$0xff] %v3258_v31 }
  0xbd   :  { %4202 = vst [vmem:[#allocation19_spill] sm:$0xff] %v3231_v13 }
  0xbf   :  { %1073 = vmatpush1.bf16.msra.mxu0 %v3209_v26  ;;  %1387 = vmatpush1.bf16.msra.mxu1 %v3209_v26  ;;  %v1250_v26 = vcombine.high %v3004_v32, %v3004_v32  ;;  %v3265_v32 = vld [vmem:[%s4052_s1 + $0x320] ss:$8 sps:$4 sm:$0xff]  }
  0xc0   :  { %1083 = vmatprep.subr.bf16.mxu0 %v3216_v27  ;;  %1397 = vmatprep.subr.bf16.mxu1 %v3216_v27  ;;  %v3251_v27 = vld [vmem:[%s4052_s1 + $0x310] ss:$8 sps:$4 sm:$0xff]   ;;  %4206 = vst [vmem:[#allocation23_spill] sm:$0xff] %v3265_v32 }
  0xc1   :  { %4204 = vst [vmem:[#allocation21_spill] sm:$0xff] %v3251_v27 }
  0xc2   :  { %1075 = vmatmul.mubr.bf16.vlgmr.msra.gmra.mrb[0].mxu0 %v3220_v25  ;;  %1389 = vmatmul.mubr.bf16.vlgmr.msra.gmra.mrb[0].mxu1 %v3224_v28 }
  0xc3   :  { %1084 = vmatpush1.bf16.msra.mxu0 %v3231_v13  ;;  %1398 = vmatpush1.bf16.msra.mxu1 %v3231_v13  ;;  %v2242_v13 = vld.sshfl [vmem:[%s4053_s0 + $0x11] sm:$0x1 pattern:$0x75316420] }
  0xc4   :  { %1085 = vmatprep.subr.bf16.mxu0 %v3238_v21  ;;  %1399 = vmatprep.subr.bf16.mxu1 %v3238_v21  ;;  %v3272_v21 = vld [vmem:[%s4052_s1 + $0x334] ss:$8 sps:$4 sm:$0xff]   ;;  %v1264_v52 = vrot.slane %v2242_v13, %v2632_v16  ;;  %v2537_v13 = vld [vmem:[%s4052_s1] ss:$8 sps:$4 sm:$0xff]  }
  0xc5   :  { %1115 = vmatprep.mubr.bf16.mxu0 %v216_v22  ;;  %1429 = vmatprep.mubr.bf16.mxu1 %v1250_v26  ;;  %4207 = vst [vmem:[#allocation24_spill] sm:$0xff] %v3272_v21  ;;  %v3279_v26 = vld [vmem:[%s4052_s1 + $0x330] ss:$8 sps:$4 sm:$0xff]   ;;  %v3286_v22 = vld [vmem:[%s4052_s1 + $0x344] ss:$8 sps:$4 sm:$0xff]  }
  0xc6   :  { %4208 = vst [vmem:[#allocation25_spill] sm:$0xff] %v3279_v26  ;;  %4209 = vst [vmem:[#allocation26_spill] sm:$0xff] %v3286_v22 }
  0xc7   :  { %1086 = vmatpush1.bf16.msra.mxu0 %v3251_v27  ;;  %1400 = vmatpush1.bf16.msra.mxu1 %v3251_v27  ;;  %v3465_v27 = vld [vmem:[%s4052_s1 + $0x400] ss:$8 sps:$4 sm:$0xff]  }
  0xc8   :  { %1087 = vmatprep.subr.bf16.mxu0 %v3258_v31  ;;  %1401 = vmatprep.subr.bf16.mxu1 %v3258_v31  ;;  %v214_v31 = vcombine.high %v3220_v25, %v3220_v25  ;;  %4234 = vst [vmem:[#allocation51_spill] sm:$0xff] %v3465_v27  ;;  %v3472_v25 = vld [vmem:[%s4052_s1 + $0x414] ss:$8 sps:$4 sm:$0xff]  }
  0xc9   :  { %4235 = vst [vmem:[#allocation52_spill] sm:$0xff] %v3472_v25 }
  0xcb   :  { %1088 = vmatpush1.bf16.msra.mxu0 %v3265_v32  ;;  %1402 = vmatpush1.bf16.msra.mxu1 %v3265_v32  ;;  %v3293_v32 = vld [vmem:[%s4052_s1 + $0x340] ss:$8 sps:$4 sm:$0xff]  }
  0xcc   :  { %1089 = vmatprep.subr.bf16.mxu0 %v3272_v21  ;;  %1403 = vmatprep.subr.bf16.mxu1 %v3272_v21  ;;  %4210 = vst [vmem:[#allocation27_spill] sm:$0xff] %v3293_v32  ;;  %v3300_v21 = vld [vmem:[%s4052_s1 + $0x354] ss:$8 sps:$4 sm:$0xff]  }
  0xcd   :  { %4211 = vst [vmem:[#allocation28_spill] sm:$0xff] %v3300_v21 }
  0xcf   :  { %1090 = vmatpush1.bf16.msra.mxu0 %v3279_v26  ;;  %1404 = vmatpush1.bf16.msra.mxu1 %v3279_v26  ;;  %v3307_v26 = vld [vmem:[%s4052_s1 + $0x350] ss:$8 sps:$4 sm:$0xff]  }
  0xd0   :  { %1091 = vmatprep.subr.bf16.mxu0 %v3286_v22  ;;  %1405 = vmatprep.subr.bf16.mxu1 %v3286_v22  ;;  %4212 = vst [vmem:[#allocation29_spill] sm:$0xff] %v3307_v26  ;;  %v3314_v22 = vld [vmem:[%s4052_s1 + $0x364] ss:$8 sps:$4 sm:$0xff]  }
  0xd1   :  { %4213 = vst [vmem:[#allocation30_spill] sm:$0xff] %v3314_v22 }
  0xd3   :  { %1092 = vmatpush1.bf16.msra.mxu0 %v3293_v32  ;;  %1406 = vmatpush1.bf16.msra.mxu1 %v3293_v32  ;;  %v3321_v32 = vld [vmem:[%s4052_s1 + $0x360] ss:$8 sps:$4 sm:$0xff]  }
  0xd4   :  { %1093 = vmatprep.subr.bf16.mxu0 %v3300_v21  ;;  %1407 = vmatprep.subr.bf16.mxu1 %v3300_v21  ;;  %4214 = vst [vmem:[#allocation31_spill] sm:$0xff] %v3321_v32  ;;  %v3328_v21 = vld [vmem:[%s4052_s1 + $0x374] ss:$8 sps:$4 sm:$0xff]  }
  0xd5   :  { %4215 = vst [vmem:[#allocation32_spill] sm:$0xff] %v3328_v21 }
  0xd7   :  { %1094 = vmatpush1.bf16.msra.mxu0 %v3307_v26  ;;  %1408 = vmatpush1.bf16.msra.mxu1 %v3307_v26  ;;  %v3335_v26 = vld [vmem:[%s4052_s1 + $0x370] ss:$8 sps:$4 sm:$0xff]  }
  0xd8   :  { %1095 = vmatprep.subr.bf16.mxu0 %v3314_v22  ;;  %1409 = vmatprep.subr.bf16.mxu1 %v3314_v22  ;;  %4216 = vst [vmem:[#allocation33_spill] sm:$0xff] %v3335_v26  ;;  %v3342_v22 = vld [vmem:[%s4052_s1 + $0x384] ss:$8 sps:$4 sm:$0xff]  }
  0xd9   :  { %4217 = vst [vmem:[#allocation34_spill] sm:$0xff] %v3342_v22 }
  0xdb   :  { %1096 = vmatpush1.bf16.msra.mxu0 %v3321_v32  ;;  %1410 = vmatpush1.bf16.msra.mxu1 %v3321_v32  ;;  %v3349_v32 = vld [vmem:[%s4052_s1 + $0x380] ss:$8 sps:$4 sm:$0xff]  }
  0xdc   :  { %1097 = vmatprep.subr.bf16.mxu0 %v3328_v21  ;;  %1411 = vmatprep.subr.bf16.mxu1 %v3328_v21  ;;  %4218 = vst [vmem:[#allocation35_spill] sm:$0xff] %v3349_v32  ;;  %v3356_v21 = vld [vmem:[%s4052_s1 + $0x394] ss:$8 sps:$4 sm:$0xff]  }
  0xdd   :  { %4219 = vst [vmem:[#allocation36_spill] sm:$0xff] %v3356_v21 }
  0xdf   :  { %1098 = vmatpush1.bf16.msra.mxu0 %v3335_v26  ;;  %1412 = vmatpush1.bf16.msra.mxu1 %v3335_v26  ;;  %v3363_v26 = vld [vmem:[%s4052_s1 + $0x390] ss:$8 sps:$4 sm:$0xff]  }
  0xe0   :  { %1099 = vmatprep.subr.bf16.mxu0 %v3342_v22  ;;  %1413 = vmatprep.subr.bf16.mxu1 %v3342_v22  ;;  %4220 = vst [vmem:[#allocation37_spill] sm:$0xff] %v3363_v26  ;;  %v3370_v22 = vld [vmem:[%s4052_s1 + $0x3a4] ss:$8 sps:$4 sm:$0xff]  }
  0xe1   :  { %4221 = vst [vmem:[#allocation38_spill] sm:$0xff] %v3370_v22 }
  0xe3   :  { %1100 = vmatpush1.bf16.msra.mxu0 %v3349_v32  ;;  %1414 = vmatpush1.bf16.msra.mxu1 %v3349_v32  ;;  %v3377_v32 = vld [vmem:[%s4052_s1 + $0x3a0] ss:$8 sps:$4 sm:$0xff]  }
  0xe4   :  { %1101 = vmatprep.subr.bf16.mxu0 %v3356_v21  ;;  %1415 = vmatprep.subr.bf16.mxu1 %v3356_v21  ;;  %4222 = vst [vmem:[#allocation39_spill] sm:$0xff] %v3377_v32  ;;  %v3384_v21 = vld [vmem:[%s4052_s1 + $0x3b4] ss:$8 sps:$4 sm:$0xff]  }
  0xe5   :  { %4223 = vst [vmem:[#allocation40_spill] sm:$0xff] %v3384_v21 }
  0xe7   :  { %1102 = vmatpush1.bf16.msra.mxu0 %v3363_v26  ;;  %1416 = vmatpush1.bf16.msra.mxu1 %v3363_v26  ;;  %v3391_v26 = vld [vmem:[%s4052_s1 + $0x3b0] ss:$8 sps:$4 sm:$0xff]  }
  0xe8   :  { %1103 = vmatprep.subr.bf16.mxu0 %v3370_v22  ;;  %1417 = vmatprep.subr.bf16.mxu1 %v3370_v22  ;;  %4224 = vst [vmem:[#allocation41_spill] sm:$0xff] %v3391_v26  ;;  %v3398_v22 = vld [vmem:[%s4052_s1 + $0x3c4] ss:$8 sps:$4 sm:$0xff]  }
  0xe9   :  { %4225 = vst [vmem:[#allocation42_spill] sm:$0xff] %v3398_v22 }
  0xeb   :  { %1104 = vmatpush1.bf16.msra.mxu0 %v3377_v32  ;;  %1418 = vmatpush1.bf16.msra.mxu1 %v3377_v32  ;;  %v3405_v32 = vld [vmem:[%s4052_s1 + $0x3c0] ss:$8 sps:$4 sm:$0xff]  }
  0xec   :  { %1105 = vmatprep.subr.bf16.mxu0 %v3384_v21  ;;  %1419 = vmatprep.subr.bf16.mxu1 %v3384_v21  ;;  %4226 = vst [vmem:[#allocation43_spill] sm:$0xff] %v3405_v32  ;;  %v3412_v21 = vld [vmem:[%s4052_s1 + $0x3d4] ss:$8 sps:$4 sm:$0xff]  }
  0xed   :  { %4227 = vst [vmem:[#allocation44_spill] sm:$0xff] %v3412_v21 }
  0xef   :  { %1106 = vmatpush1.bf16.msra.mxu0 %v3391_v26  ;;  %1420 = vmatpush1.bf16.msra.mxu1 %v3391_v26  ;;  %v3419_v26 = vld [vmem:[%s4052_s1 + $0x3d0] ss:$8 sps:$4 sm:$0xff]  }
  0xf0   :  { %1107 = vmatprep.subr.bf16.mxu0 %v3398_v22  ;;  %1421 = vmatprep.subr.bf16.mxu1 %v3398_v22  ;;  %4228 = vst [vmem:[#allocation45_spill] sm:$0xff] %v3419_v26  ;;  %v3426_v22 = vld [vmem:[%s4052_s1 + $0x3e4] ss:$8 sps:$4 sm:$0xff]  }
  0xf1   :  { %4229 = vst [vmem:[#allocation46_spill] sm:$0xff] %v3426_v22 }
  0xf3   :  { %1108 = vmatpush1.bf16.msra.mxu0 %v3405_v32  ;;  %1422 = vmatpush1.bf16.msra.mxu1 %v3405_v32  ;;  %v3433_v32 = vld [vmem:[%s4052_s1 + $0x3e0] ss:$8 sps:$4 sm:$0xff]  }
  0xf4   :  { %1109 = vmatprep.subr.bf16.mxu0 %v3412_v21  ;;  %1423 = vmatprep.subr.bf16.mxu1 %v3412_v21  ;;  %4230 = vst [vmem:[#allocation47_spill] sm:$0xff] %v3433_v32  ;;  %v3440_v21 = vld [vmem:[%s4052_s1 + $0x3f4] ss:$8 sps:$4 sm:$0xff]  }
  0xf5   :  { %4231 = vst [vmem:[#allocation48_spill] sm:$0xff] %v3440_v21 }
  0xf7   :  { %1110 = vmatpush1.bf16.msra.mxu0 %v3419_v26  ;;  %1424 = vmatpush1.bf16.msra.mxu1 %v3419_v26  ;;  %v3447_v26 = vld [vmem:[%s4052_s1 + $0x3f0] ss:$8 sps:$4 sm:$0xff]  }
  0xf8   :  { %1111 = vmatprep.subr.bf16.mxu0 %v3426_v22  ;;  %1425 = vmatprep.subr.bf16.mxu1 %v3426_v22  ;;  %4232 = vst [vmem:[#allocation49_spill] sm:$0xff] %v3447_v26  ;;  %v3454_v22 = vld [vmem:[%s4052_s1 + $0x404] ss:$8 sps:$4 sm:$0xff]  }
  0xf9   :  { %4233 = vst [vmem:[#allocation50_spill] sm:$0xff] %v3454_v22 }
  0xfb   :  { %1112 = vmatpush1.bf16.msra.mxu0 %v3433_v32  ;;  %1426 = vmatpush1.bf16.msra.mxu1 %v3433_v32  ;;  %v1248_v32 = vcombine.high %v3224_v28, %v3224_v28  ;;  %v3479_v28 = vld [vmem:[%s4052_s1 + $0x410] ss:$8 sps:$4 sm:$0xff]  }
  0xfc   :  { %1113 = vmatprep.subr.bf16.mxu0 %v3440_v21  ;;  %1427 = vmatprep.subr.bf16.mxu1 %v3440_v21  ;;  %4236 = vst [vmem:[#allocation53_spill] sm:$0xff] %v3479_v28  ;;  %v2095_v21 = vld.sshfl [vmem:[%s4053_s0 + $0x8] sm:$0x1 pattern:$0x75316420] }
  0xff   :  { %1114 = vmatpush1.bf16.msra.mxu0 %v3447_v26  ;;  %1428 = vmatpush1.bf16.msra.mxu1 %v3447_v26 }
 0x100   :  { %1124 = vmatprep.subr.bf16.mxu0 %v3454_v22  ;;  %1438 = vmatprep.subr.bf16.mxu1 %v3454_v22  ;;  %v3486_v22 = vld [vmem:[%s4052_s1 + $0x424] ss:$8 sps:$4 sm:$0xff]  }
 0x101   :  { %4237 = vst [vmem:[#allocation54_spill] sm:$0xff] %v3486_v22 }
 0x102   :  { %1116 = vmatmul.mubr.bf16.vlgmr.msra.gmra.mrb[0].mxu0 %v214_v31  ;;  %1430 = vmatmul.mubr.bf16.vlgmr.msra.gmra.mrb[0].mxu1 %v1248_v32  ;;  %v4141_v31 = vmov 0   ;;  %v3495_v32 = vld [vmem:[%s4052_s1 + $0x420] ss:$8 sps:$4 sm:$0xff]  }
 0x103   :  { %1125 = vmatpush1.bf16.msra.mxu0 %v3465_v27  ;;  %1439 = vmatpush1.bf16.msra.mxu1 %v3465_v27  ;;  %4238 = vst [vmem:[#allocation55_spill] sm:$0xff] %v3495_v32  ;;  %v3568_v27 = vld [vmem:[%s4052_s1 + $0x474] ss:$8 sps:$4 sm:$0xff]  }
 0x104   :  { %1126 = vmatprep.subr.bf16.mxu0 %v3472_v25  ;;  %1440 = vmatprep.subr.bf16.mxu1 %v3472_v25  ;;  %v3502_v25 = vld [vmem:[%s4052_s1 + $0x434] ss:$8 sps:$4 sm:$0xff]   ;;  %4247 = vst [vmem:[#allocation64_spill] sm:$0xff] %v3568_v27 }
 0x105   :  { %1156 = vmatprep.mubr.bf16.mxu0 %v4141_v31  ;;  %1470 = vmatprep.mubr.bf16.mxu1 %v4141_v31  ;;  %4239 = vst [vmem:[#allocation56_spill] sm:$0xff] %v3502_v25  ;;  %v3509_v31 = vld [vmem:[%s4052_s1 + $0x430] ss:$8 sps:$4 sm:$0xff]  }
 0x106   :  { %4240 = vst [vmem:[#allocation57_spill] sm:$0xff] %v3509_v31 }
 0x107   :  { %1127 = vmatpush1.bf16.msra.mxu0 %v3479_v28  ;;  %1441 = vmatpush1.bf16.msra.mxu1 %v3479_v28  ;;  %v3549_v28 = vld [vmem:[%s4053_s0 + $0x12] sm:$0xff] }
 0x108   :  { %1128 = vmatprep.subr.bf16.mxu0 %v3486_v22  ;;  %1442 = vmatprep.subr.bf16.mxu1 %v3486_v22  ;;  %v3516_v22 = vld [vmem:[%s4052_s1 + $0x444] ss:$8 sps:$4 sm:$0xff]   ;;  %v3572_v26 = vrot.slane %v3549_v28, %v2632_v16 }
 0x109   :  { %4241 = vst [vmem:[#allocation58_spill] sm:$0xff] %v3516_v22 }
 0x10a   :  { %v1511_v18 = vcombine.high %v3572_v26, %v3572_v26 }
 0x10b   :  { %1129 = vmatpush1.bf16.msra.mxu0 %v3495_v32  ;;  %1443 = vmatpush1.bf16.msra.mxu1 %v3495_v32  ;;  %v3523_v32 = vld [vmem:[%s4052_s1 + $0x440] ss:$8 sps:$4 sm:$0xff]  }
 0x10c   :  { %1130 = vmatprep.subr.bf16.mxu0 %v3502_v25  ;;  %1444 = vmatprep.subr.bf16.mxu1 %v3502_v25  ;;  %4242 = vst [vmem:[#allocation59_spill] sm:$0xff] %v3523_v32  ;;  %v3530_v25 = vld [vmem:[%s4052_s1 + $0x454] ss:$8 sps:$4 sm:$0xff]  }
 0x10d   :  { %4243 = vst [vmem:[#allocation60_spill] sm:$0xff] %v3530_v25 }
 0x10f   :  { %1131 = vmatpush1.bf16.msra.mxu0 %v3509_v31  ;;  %1445 = vmatpush1.bf16.msra.mxu1 %v3509_v31  ;;  %v3537_v31 = vld [vmem:[%s4052_s1 + $0x450] ss:$8 sps:$4 sm:$0xff]  }
 0x110   :  { %1132 = vmatprep.subr.bf16.mxu0 %v3516_v22  ;;  %1446 = vmatprep.subr.bf16.mxu1 %v3516_v22  ;;  %4244 = vst [vmem:[#allocation61_spill] sm:$0xff] %v3537_v31  ;;  %v3544_v22 = vld [vmem:[%s4052_s1 + $0x464] ss:$8 sps:$4 sm:$0xff]  }
 0x111   :  { %4245 = vst [vmem:[#allocation62_spill] sm:$0xff] %v3544_v22 }
 0x113   :  { %1133 = vmatpush1.bf16.msra.mxu0 %v3523_v32  ;;  %1447 = vmatpush1.bf16.msra.mxu1 %v3523_v32  ;;  %v3554_v32 = vld [vmem:[%s4053_s0 + $0x1b] sm:$0xff] }
 0x114   :  { %1134 = vmatprep.subr.bf16.mxu0 %v3530_v25  ;;  %1448 = vmatprep.subr.bf16.mxu1 %v3530_v25  ;;  %v3561_v25 = vld [vmem:[%s4052_s1 + $0x460] ss:$8 sps:$4 sm:$0xff]  }
 0x115   :  { %4246 = vst [vmem:[#allocation63_spill] sm:$0xff] %v3561_v25 }
 0x117   :  { %1135 = vmatpush1.bf16.msra.mxu0 %v3537_v31  ;;  %1449 = vmatpush1.bf16.msra.mxu1 %v3537_v31  ;;  %v3576_v31 = vrot.slane %v3554_v32, %v2632_v16 }
 0x118   :  { %1136 = vmatprep.subr.bf16.mxu0 %v3544_v22  ;;  %1450 = vmatprep.subr.bf16.mxu1 %v3544_v22  ;;  %v3586_v22 = vld [vmem:[%s4052_s1 + $0x470] ss:$8 sps:$4 sm:$0xff]  }
 0x119   :  { %v1805_v17 = vcombine.high %v3576_v31, %v3576_v31 }
 0x11b   :  { %1137 = vmatpush1.bf16.msra.mxu0 %v3561_v25  ;;  %1451 = vmatpush1.bf16.msra.mxu1 %v3561_v25  ;;  %v230_v25 = vrot.slane %v2095_v21, %v2632_v16  ;;  %v3608_v48 = vrot.slane %v1805_v17, %v2632_v16  ;;  %v2538_v21 = vld [vmem:[%s4052_s1 + $0x14] ss:$8 sps:$4 sm:$0xff]   ;;  %v2541_v17 = vld [vmem:[%s4052_s1 + $0x20] ss:$8 sps:$4 sm:$0xff]  }
 0x11c   :  { %1138 = vmatprep.subr.bf16.mxu0 %v3568_v27  ;;  %1452 = vmatprep.subr.bf16.mxu1 %v3568_v27  ;;  %v3605_v27 = vrot.slane %v1511_v18, %v2632_v16  ;;  %v2542_v18 = vld [vmem:[%s4052_s1 + $0x34] ss:$8 sps:$4 sm:$0xff]  }
 0x11f   :  { %1139 = vmatpush1.bf16.msra.mxu0 %v3586_v22  ;;  %1453 = vmatpush1.bf16.msra.mxu1 %v3586_v22 }
 0x120   :  { %1568 = vmatprep.subr.bf16.mxu0 %v2536_v51  ;;  %1862 = vmatprep.subr.bf16.mxu1 %v2536_v51  ;;  %v2539_v51 = vld [vmem:[%s4052_s1 + $0x10] ss:$8 sps:$4 sm:$0xff]  }
 0x122   :  { %1157 = vmatmul.mubr.bf16.vlgmr.msra.gmra.mrb[0].mxu0 %v230_v25  ;;  %1471 = vmatmul.mubr.bf16.vlgmr.msra.gmra.mrb[0].mxu1 %v1264_v52  ;;  %v2540_v52 = vld [vmem:[%s4052_s1 + $0x24] ss:$8 sps:$4 sm:$0xff]   ;;  %v2543_v25 = vld [vmem:[%s4052_s1 + $0x30] ss:$8 sps:$4 sm:$0xff]  }
 0x123   :  { %1569 = vmatpush1.bf16.msra.mxu0 %v2537_v13  ;;  %1863 = vmatpush1.bf16.msra.mxu1 %v2537_v13  ;;  %v2544_v13 = vld [vmem:[%s4052_s1 + $0x44] ss:$8 sps:$4 sm:$0xff]  }
 0x124   :  { %1570 = vmatprep.subr.bf16.mxu0 %v2538_v21  ;;  %1864 = vmatprep.subr.bf16.mxu1 %v2538_v21  ;;  %v2545_v21 = vld [vmem:[%s4052_s1 + $0x40] ss:$8 sps:$4 sm:$0xff]  }
 0x125   :  { %1600 = vmatprep.mubr.bf16.mxu0 %v3605_v27  ;;  %1894 = vmatprep.mubr.bf16.mxu1 %v3608_v48 }
 0x127   :  { %1571 = vmatpush1.bf16.msra.mxu0 %v2539_v51  ;;  %1865 = vmatpush1.bf16.msra.mxu1 %v2539_v51  ;;  %v2546_v51 = vld [vmem:[%s4052_s1 + $0x54] ss:$8 sps:$4 sm:$0xff]  }
 0x128   :  { %1572 = vmatprep.subr.bf16.mxu0 %v2540_v52  ;;  %1866 = vmatprep.subr.bf16.mxu1 %v2540_v52  ;;  %v2547_v52 = vld [vmem:[%s4052_s1 + $0x50] ss:$8 sps:$4 sm:$0xff]  }
 0x12b   :  { %1573 = vmatpush1.bf16.msra.mxu0 %v2541_v17  ;;  %1867 = vmatpush1.bf16.msra.mxu1 %v2541_v17  ;;  %v2548_v17 = vld [vmem:[%s4052_s1 + $0x64] ss:$8 sps:$4 sm:$0xff]  }
 0x12c   :  { %1574 = vmatprep.subr.bf16.mxu0 %v2542_v18  ;;  %1868 = vmatprep.subr.bf16.mxu1 %v2542_v18  ;;  %v2549_v18 = vld [vmem:[%s4052_s1 + $0x60] ss:$8 sps:$4 sm:$0xff]  }
 0x12f   :  { %1575 = vmatpush1.bf16.msra.mxu0 %v2543_v25  ;;  %1869 = vmatpush1.bf16.msra.mxu1 %v2543_v25  ;;  %v2550_v25 = vld [vmem:[%s4052_s1 + $0x74] ss:$8 sps:$4 sm:$0xff]  }
 0x130   :  { %1576 = vmatprep.subr.bf16.mxu0 %v2544_v13  ;;  %1870 = vmatprep.subr.bf16.mxu1 %v2544_v13  ;;  %v2551_v13 = vld [vmem:[%s4052_s1 + $0x70] ss:$8 sps:$4 sm:$0xff]  }
 0x133   :  { %1577 = vmatpush1.bf16.msra.mxu0 %v2545_v21  ;;  %1871 = vmatpush1.bf16.msra.mxu1 %v2545_v21  ;;  %v2552_v21 = vld [vmem:[%s4052_s1 + $0x84] ss:$8 sps:$4 sm:$0xff]  }
 0x134   :  { %1578 = vmatprep.subr.bf16.mxu0 %v2546_v51  ;;  %1872 = vmatprep.subr.bf16.mxu1 %v2546_v51  ;;  %v2553_v51 = vld [vmem:[%s4052_s1 + $0x80] ss:$8 sps:$4 sm:$0xff]  }
 0x137   :  { %1579 = vmatpush1.bf16.msra.mxu0 %v2547_v52  ;;  %1873 = vmatpush1.bf16.msra.mxu1 %v2547_v52  ;;  %v2554_v52 = vld [vmem:[%s4052_s1 + $0x94] ss:$8 sps:$4 sm:$0xff]  }
 0x138   :  { %1580 = vmatprep.subr.bf16.mxu0 %v2548_v17  ;;  %1874 = vmatprep.subr.bf16.mxu1 %v2548_v17  ;;  %v2555_v17 = vld [vmem:[%s4052_s1 + $0x90] ss:$8 sps:$4 sm:$0xff]  }
 0x13b   :  { %1581 = vmatpush1.bf16.msra.mxu0 %v2549_v18  ;;  %1875 = vmatpush1.bf16.msra.mxu1 %v2549_v18  ;;  %v2556_v18 = vld [vmem:[%s4052_s1 + $0xa4] ss:$8 sps:$4 sm:$0xff]  }
 0x13c   :  { %1582 = vmatprep.subr.bf16.mxu0 %v2550_v25  ;;  %1876 = vmatprep.subr.bf16.mxu1 %v2550_v25  ;;  %v2557_v25 = vld [vmem:[%s4052_s1 + $0xa0] ss:$8 sps:$4 sm:$0xff]  }
 0x13f   :  { %1583 = vmatpush1.bf16.msra.mxu0 %v2551_v13  ;;  %1877 = vmatpush1.bf16.msra.mxu1 %v2551_v13  ;;  %v2558_v13 = vld [vmem:[%s4052_s1 + $0xb4] ss:$8 sps:$4 sm:$0xff]  }
 0x140   :  { %1584 = vmatprep.subr.bf16.mxu0 %v2552_v21  ;;  %1878 = vmatprep.subr.bf16.mxu1 %v2552_v21  ;;  %v2559_v21 = vld [vmem:[%s4052_s1 + $0xb0] ss:$8 sps:$4 sm:$0xff]  }
 0x143   :  { %1585 = vmatpush1.bf16.msra.mxu0 %v2553_v51  ;;  %1879 = vmatpush1.bf16.msra.mxu1 %v2553_v51  ;;  %v2560_v51 = vld [vmem:[%s4052_s1 + $0xc4] ss:$8 sps:$4 sm:$0xff]  }
 0x144   :  { %1586 = vmatprep.subr.bf16.mxu0 %v2554_v52  ;;  %1880 = vmatprep.subr.bf16.mxu1 %v2554_v52  ;;  %v2561_v52 = vld [vmem:[%s4052_s1 + $0xc0] ss:$8 sps:$4 sm:$0xff]  }
 0x147   :  { %1587 = vmatpush1.bf16.msra.mxu0 %v2555_v17  ;;  %1881 = vmatpush1.bf16.msra.mxu1 %v2555_v17  ;;  %v2562_v17 = vld [vmem:[%s4052_s1 + $0xd4] ss:$8 sps:$4 sm:$0xff]  }
 0x148   :  { %1588 = vmatprep.subr.bf16.mxu0 %v2556_v18  ;;  %1882 = vmatprep.subr.bf16.mxu1 %v2556_v18  ;;  %v2563_v18 = vld [vmem:[%s4052_s1 + $0xd0] ss:$8 sps:$4 sm:$0xff]  }
 0x14b   :  { %1589 = vmatpush1.bf16.msra.mxu0 %v2557_v25  ;;  %1883 = vmatpush1.bf16.msra.mxu1 %v2557_v25  ;;  %v2564_v25 = vld [vmem:[%s4052_s1 + $0xe4] ss:$8 sps:$4 sm:$0xff]  }
 0x14c   :  { %1590 = vmatprep.subr.bf16.mxu0 %v2558_v13  ;;  %1884 = vmatprep.subr.bf16.mxu1 %v2558_v13  ;;  %v2565_v13 = vld [vmem:[%s4052_s1 + $0xe0] ss:$8 sps:$4 sm:$0xff]  }
 0x14f   :  { %1591 = vmatpush1.bf16.msra.mxu0 %v2559_v21  ;;  %1885 = vmatpush1.bf16.msra.mxu1 %v2559_v21  ;;  %v2566_v21 = vld [vmem:[%s4052_s1 + $0xf4] ss:$8 sps:$4 sm:$0xff]  }
 0x150   :  { %1592 = vmatprep.subr.bf16.mxu0 %v2560_v51  ;;  %1886 = vmatprep.subr.bf16.mxu1 %v2560_v51  ;;  %v3704_v51 = vrot.slane %v3572_v26, %v2632_v16  ;;  %v1543_v26 = vcombine.high %v3605_v27, %v3605_v27 }
 0x153   :  { %1593 = vmatpush1.bf16.msra.mxu0 %v2561_v52  ;;  %1887 = vmatpush1.bf16.msra.mxu1 %v2561_v52  ;;  %v3708_v52 = vrot.slane %v3576_v31, %v2632_v16  ;;  %v1837_v31 = vcombine.high %v3608_v48, %v3608_v48 }
 0x154   :  { %1594 = vmatprep.subr.bf16.mxu0 %v2562_v17  ;;  %1888 = vmatprep.subr.bf16.mxu1 %v2562_v17  ;;  %v2567_v17 = vld [vmem:[%s4052_s1 + $0xf0] ss:$8 sps:$4 sm:$0xff]  }
 0x157   :  { %1595 = vmatpush1.bf16.msra.mxu0 %v2563_v18  ;;  %1889 = vmatpush1.bf16.msra.mxu1 %v2563_v18  ;;  %v2568_v18 = vld [vmem:[%s4052_s1 + $0x104] ss:$8 sps:$4 sm:$0xff]  }
 0x158   :  { %1596 = vmatprep.subr.bf16.mxu0 %v2564_v25  ;;  %1890 = vmatprep.subr.bf16.mxu1 %v2564_v25 }
 0x15b   :  { %1597 = vmatpush1.bf16.msra.mxu0 %v2565_v13  ;;  %1891 = vmatpush1.bf16.msra.mxu1 %v2565_v13 }
 0x15c   :  { %1598 = vmatprep.subr.bf16.mxu0 %v2566_v21  ;;  %1892 = vmatprep.subr.bf16.mxu1 %v2566_v21 }
 0x15f   :  { %1599 = vmatpush1.bf16.msra.mxu0 %v2567_v17  ;;  %1893 = vmatpush1.bf16.msra.mxu1 %v2567_v17 }
 0x160   :  { %1609 = vmatprep.subr.bf16.mxu0 %v2730_v46  ;;  %1903 = vmatprep.subr.bf16.mxu1 %v2568_v18  ;;  %v1496_v46 = vcombine.high %v3549_v28, %v3549_v28  ;;  %v4275_v18 = vld [vmem:[#allocation29_spill] sm:$0xff] }
 0x162   :  { %1601 = vmatmul.mubr.bf16.vlgmr.msra.gmra.mrb[4].mxu0 %v3704_v51  ;;  %1895 = vmatmul.mubr.bf16.vlgmr.msra.gmra.mrb[4].mxu1 %v3708_v52 }
 0x163   :  { %1610 = vmatpush1.bf16.msra.mxu0 %v2743_v49  ;;  %1904 = vmatpush1.bf16.msra.mxu1 %v2743_v49  ;;  %v1790_v49 = vcombine.high %v3554_v32, %v3554_v32 }
 0x164   :  { %1611 = vmatprep.subr.bf16.mxu0 %v2750_v50  ;;  %1905 = vmatprep.subr.bf16.mxu1 %v2750_v50  ;;  %v3784_v50 = vrot.slane %v1496_v46, %v2632_v16 }
 0x165   :  { %1641 = vmatprep.mubr.bf16.mxu0 %v1543_v26  ;;  %1935 = vmatprep.mubr.bf16.mxu1 %v1837_v31 }
 0x167   :  { %1612 = vmatpush1.bf16.msra.mxu0 %v2763_v53  ;;  %1906 = vmatpush1.bf16.msra.mxu1 %v2763_v53  ;;  %v3787_v53 = vrot.slane %v1790_v49, %v2632_v16 }
 0x168   :  { %1613 = vmatprep.subr.bf16.mxu0 %v2770_v54  ;;  %1907 = vmatprep.subr.bf16.mxu1 %v2770_v54  ;;  %v1512_v54 = vcombine.high %v3784_v50, %v3784_v50 }
 0x16b   :  { %1614 = vmatpush1.bf16.msra.mxu0 %v2777_v55  ;;  %1908 = vmatpush1.bf16.msra.mxu1 %v2777_v55  ;;  %v1806_v55 = vcombine.high %v3787_v53, %v3787_v53 }
 0x16c   :  { %1615 = vmatprep.subr.bf16.mxu0 %v2784_v56  ;;  %1909 = vmatprep.subr.bf16.mxu1 %v2784_v56  ;;  %v1541_v56 = vcombine.high %v3704_v51, %v3704_v51 }
 0x16f   :  { %1616 = vmatpush1.bf16.msra.mxu0 %v2791_v57  ;;  %1910 = vmatpush1.bf16.msra.mxu1 %v2791_v57  ;;  %v1835_v57 = vcombine.high %v3708_v52, %v3708_v52 }
 0x170   :  { %1617 = vmatprep.subr.bf16.mxu0 %v2798_v58  ;;  %1911 = vmatprep.subr.bf16.mxu1 %v2798_v58  ;;  %v3806_v58 = vrot.slane %v1512_v54, %v2632_v16 }
 0x173   :  { %1618 = vmatpush1.bf16.msra.mxu0 %v2805_v59  ;;  %1912 = vmatpush1.bf16.msra.mxu1 %v2805_v59  ;;  %v3809_v59 = vrot.slane %v1806_v55, %v2632_v16 }
 0x174   :  { %1619 = vmatprep.subr.bf16.mxu0 %v2812_v60  ;;  %1913 = vmatprep.subr.bf16.mxu1 %v2812_v60  ;;  %v4248_v60 = vld [vmem:[#allocation3_spill] sm:$0xff] }
 0x177   :  { %1620 = vmatpush1.bf16.msra.mxu0 %v2819_v61  ;;  %1914 = vmatpush1.bf16.msra.mxu1 %v2819_v61  ;;  %v4249_v61 = vld [vmem:[#allocation4_spill] sm:$0xff] }
 0x178   :  { %1621 = vmatprep.subr.bf16.mxu0 %v2826_v62  ;;  %1915 = vmatprep.subr.bf16.mxu1 %v2826_v62  ;;  %v4250_v62 = vld [vmem:[#allocation5_spill] sm:$0xff] }
 0x17b   :  { %1622 = vmatpush1.bf16.msra.mxu0 %v2833_v63  ;;  %1916 = vmatpush1.bf16.msra.mxu1 %v2833_v63  ;;  %v4251_v63 = vld [vmem:[#allocation6_spill] sm:$0xff] }
 0x17c   :  { %1623 = vmatprep.subr.bf16.mxu0 %v2840_v0  ;;  %1917 = vmatprep.subr.bf16.mxu1 %v2840_v0  ;;  %v4252_v0 = vld [vmem:[#allocation7_spill] sm:$0xff] }
 0x17f   :  { %1624 = vmatpush1.bf16.msra.mxu0 %v2847_v1  ;;  %1918 = vmatpush1.bf16.msra.mxu1 %v2847_v1  ;;  %v4253_v1 = vld [vmem:[#allocation8_spill] sm:$0xff] }
 0x180   :  { %1625 = vmatprep.subr.bf16.mxu0 %v2854_v2  ;;  %1919 = vmatprep.subr.bf16.mxu1 %v2854_v2  ;;  %v4254_v2 = vld [vmem:[#allocation9_spill] sm:$0xff] }
 0x183   :  { %1626 = vmatpush1.bf16.msra.mxu0 %v2861_v3  ;;  %1920 = vmatpush1.bf16.msra.mxu1 %v2861_v3  ;;  %v4255_v3 = vld [vmem:[#allocation10_spill] sm:$0xff] }
 0x184   :  { %1627 = vmatprep.subr.bf16.mxu0 %v2868_v4  ;;  %1921 = vmatprep.subr.bf16.mxu1 %v2868_v4  ;;  %v4256_v4 = vld [vmem:[#allocation11_spill] sm:$0xff] }
 0x187   :  { %1628 = vmatpush1.bf16.msra.mxu0 %v2875_v5  ;;  %1922 = vmatpush1.bf16.msra.mxu1 %v2875_v5  ;;  %v4257_v5 = vld [vmem:[#allocation12_spill] sm:$0xff] }
 0x188   :  { %1629 = vmatprep.subr.bf16.mxu0 %v2882_v6  ;;  %1923 = vmatprep.subr.bf16.mxu1 %v2882_v6  ;;  %v4258_v6 = vld [vmem:[#allocation13_spill] sm:$0xff] }
 0x18b   :  { %1630 = vmatpush1.bf16.msra.mxu0 %v2889_v7  ;;  %1924 = vmatpush1.bf16.msra.mxu1 %v2889_v7  ;;  %v4259_v7 = vld [vmem:[#allocation14_spill] sm:$0xff] }
 0x18c   :  { %1631 = vmatprep.subr.bf16.mxu0 %v2896_v8  ;;  %1925 = vmatprep.subr.bf16.mxu1 %v2896_v8  ;;  %v4260_v8 = vld [vmem:[#allocation15_spill] sm:$0xff] }
 0x18f   :  { %1632 = vmatpush1.bf16.msra.mxu0 %v2903_v9  ;;  %1926 = vmatpush1.bf16.msra.mxu1 %v2903_v9  ;;  %v4261_v9 = vld [vmem:[#allocation16_spill] sm:$0xff] }
 0x190   :  { %1633 = vmatprep.subr.bf16.mxu0 %v2910_v10  ;;  %1927 = vmatprep.subr.bf16.mxu1 %v2910_v10  ;;  %v3875_v10 = vrot.slane %v3784_v50, %v2632_v16  ;;  %v4276_v50 = vld [vmem:[#allocation30_spill] sm:$0xff] }
 0x193   :  { %1634 = vmatpush1.bf16.msra.mxu0 %v2917_v11  ;;  %1928 = vmatpush1.bf16.msra.mxu1 %v2917_v11  ;;  %v3879_v11 = vrot.slane %v3787_v53, %v2632_v16 }
 0x194   :  { %1635 = vmatprep.subr.bf16.mxu0 %v2924_v12  ;;  %1929 = vmatprep.subr.bf16.mxu1 %v2924_v12  ;;  %v4262_v12 = vld [vmem:[#allocation17_spill] sm:$0xff] }
 0x197   :  { %1636 = vmatpush1.bf16.msra.mxu0 %v2931_v14  ;;  %1930 = vmatpush1.bf16.msra.mxu1 %v2931_v14  ;;  %v4263_v14 = vld [vmem:[#allocation18_spill] sm:$0xff] }
 0x198   :  { %1637 = vmatprep.subr.bf16.mxu0 %v2938_v15  ;;  %1931 = vmatprep.subr.bf16.mxu1 %v2938_v15  ;;  %v1544_v15 = vcombine.high %v3806_v58, %v3806_v58 }
 0x19b   :  { %1638 = vmatpush1.bf16.msra.mxu0 %v2949_v20  ;;  %1932 = vmatpush1.bf16.msra.mxu1 %v2949_v20  ;;  %v1838_v20 = vcombine.high %v3809_v59, %v3809_v59 }
 0x19c   :  { %1639 = vmatprep.subr.bf16.mxu0 %v2956_v19  ;;  %1933 = vmatprep.subr.bf16.mxu1 %v2956_v19  ;;  %v4264_v19 = vld [vmem:[#allocation19_spill] sm:$0xff] }
 0x19f   :  { %1640 = vmatpush1.bf16.msra.mxu0 %v2969_v23  ;;  %1934 = vmatpush1.bf16.msra.mxu1 %v2969_v23  ;;  %v4265_v23 = vld [vmem:[#allocation20_spill] sm:$0xff] }
 0x1a0   :  { %1650 = vmatprep.subr.bf16.mxu0 %v2976_v24  ;;  %1944 = vmatprep.subr.bf16.mxu1 %v2976_v24  ;;  %v4266_v24 = vld [vmem:[#allocation21_spill] sm:$0xff] }
 0x1a2   :  { %1642 = vmatmul.mubr.bf16.vlgmr.msra.gmra.mrb[4].mxu0 %v1541_v56  ;;  %1936 = vmatmul.mubr.bf16.vlgmr.msra.gmra.mrb[4].mxu1 %v1835_v57 }
 0x1a3   :  { %1651 = vmatpush1.bf16.msra.mxu0 %v2991_v29  ;;  %1945 = vmatpush1.bf16.msra.mxu1 %v2991_v29  ;;  %v4267_v29 = vld [vmem:[#allocation22_spill] sm:$0xff] }
 0x1a4   :  { %1652 = vmatprep.subr.bf16.mxu0 %v2998_v30  ;;  %1946 = vmatprep.subr.bf16.mxu1 %v2998_v30  ;;  %v4268_v30 = vld [vmem:[#allocation23_spill] sm:$0xff] }
 0x1a5   :  { %1682 = vmatprep.mubr.bf16.mxu0 %v3806_v58  ;;  %1976 = vmatprep.mubr.bf16.mxu1 %v3809_v59  ;;  %v4277_v59 = vld [vmem:[#allocation31_spill] sm:$0xff] }
 0x1a7   :  { %1653 = vmatpush1.bf16.msra.mxu0 %v3011_v33  ;;  %1947 = vmatpush1.bf16.msra.mxu1 %v3011_v33  ;;  %v4269_v33 = vld [vmem:[#allocation24_spill] sm:$0xff] }
 0x1a8   :  { %1654 = vmatprep.subr.bf16.mxu0 %v3018_v34  ;;  %1948 = vmatprep.subr.bf16.mxu1 %v3018_v34  ;;  %v4270_v34 = vld [vmem:[#allocation2_spill] sm:$0xff] }
 0x1ab   :  { %1655 = vmatpush1.bf16.msra.mxu0 %v3027_v35  ;;  %1949 = vmatpush1.bf16.msra.mxu1 %v3027_v35  ;;  %v1168_v35 = vsub.s32 0, %v4270_v34 }
 0x1ac   :  { %1656 = vmatprep.subr.bf16.mxu0 %v3034_v36  ;;  %1950 = vmatprep.subr.bf16.mxu1 %v3034_v36  ;;  %v4271_v36 = vld [vmem:[#allocation25_spill] sm:$0xff] }
 0x1af   :  { %1657 = vmatpush1.bf16.msra.mxu0 %v3041_v37  ;;  %1951 = vmatpush1.bf16.msra.mxu1 %v3041_v37  ;;  %v162_v37 = vld [vmem:[%s4054_s2] sm:$0x3] }
 0x1b0   :  { %1658 = vmatprep.subr.bf16.mxu0 %v3048_v38  ;;  %1952 = vmatprep.subr.bf16.mxu1 %v3048_v38  ;;  %v1172_v38 = vsub.s32 1, %v4270_v34  ;;  %v1836_v34 = vcombine.high %v3879_v11, %v3879_v11 }
 0x1b3   :  { %1659 = vmatpush1.bf16.msra.mxu0 %v3055_v39  ;;  %1953 = vmatpush1.bf16.msra.mxu1 %v3055_v39  ;;  %v4272_v39 = vld [vmem:[#allocation26_spill] sm:$0xff] }
 0x1b4   :  { %1660 = vmatprep.subr.bf16.mxu0 %v3062_v40  ;;  %1954 = vmatprep.subr.bf16.mxu1 %v3062_v40  ;;  %v163_v40 = vld [vmem:[%s4055_s3] sm:$0x3] }
 0x1b5   :  { %v3925_v27 = vrot.slane %v163_v40, %v1172_v38 }
 0x1b7   :  { %1661 = vmatpush1.bf16.msra.mxu0 %v3069_v41  ;;  %1955 = vmatpush1.bf16.msra.mxu1 %v3069_v41  ;;  %v3915_v41 = vrot.slane %v162_v37, %v1168_v35 }
 0x1b8   :  { %1662 = vmatprep.subr.bf16.mxu0 %v3076_v42  ;;  %1956 = vmatprep.subr.bf16.mxu1 %v3076_v42  ;;  %v4273_v42 = vld [vmem:[#allocation27_spill] sm:$0xff] }
 0x1bb   :  { %1663 = vmatpush1.bf16.msra.mxu0 %v3083_v43  ;;  %1957 = vmatpush1.bf16.msra.mxu1 %v3083_v43  ;;  %v3919_v43 = vrot.slane %v162_v37, %v1172_v38  ;;  %v4297_v37 = vld [vmem:[#allocation51_spill] sm:$0xff]  ;;  %v4298_v38 = vld [vmem:[#allocation52_spill] sm:$0xff] }
 0x1bc   :  { %1664 = vmatprep.subr.bf16.mxu0 %v3090_v44  ;;  %1958 = vmatprep.subr.bf16.mxu1 %v3090_v44  ;;  %v3921_v44 = vrot.slane %v163_v40, %v1168_v35  ;;  %v4295_v35 = vld [vmem:[#allocation49_spill] sm:$0xff]  ;;  %v4302_v40 = vld [vmem:[#allocation55_spill] sm:$0xff] }
 0x1bf   :  { %1665 = vmatpush1.bf16.msra.mxu0 %v3097_v45  ;;  %1959 = vmatpush1.bf16.msra.mxu1 %v3097_v45  ;;  %v4274_v45 = vld [vmem:[#allocation28_spill] sm:$0xff] }
 0x1c0   :  { %1666 = vmatprep.subr.bf16.mxu0 %v3104_v47  ;;  %1960 = vmatprep.subr.bf16.mxu1 %v3104_v47 }
 0x1c3   :  { %1667 = vmatpush1.bf16.msra.mxu0 %v4248_v60  ;;  %1961 = vmatpush1.bf16.msra.mxu1 %v4248_v60 }
 0x1c4   :  { %1668 = vmatprep.subr.bf16.mxu0 %v4249_v61  ;;  %1962 = vmatprep.subr.bf16.mxu1 %v4249_v61 }
 0x1c7   :  { %1669 = vmatpush1.bf16.msra.mxu0 %v4250_v62  ;;  %1963 = vmatpush1.bf16.msra.mxu1 %v4250_v62  ;;  %v4278_v62 = vld [vmem:[#allocation32_spill] sm:$0xff] }
 0x1c8   :  { %1670 = vmatprep.subr.bf16.mxu0 %v4251_v63  ;;  %1964 = vmatprep.subr.bf16.mxu1 %v4251_v63 }
 0x1cb   :  { %1671 = vmatpush1.bf16.msra.mxu0 %v4252_v0  ;;  %1965 = vmatpush1.bf16.msra.mxu1 %v4252_v0 }
 0x1cc   :  { %1672 = vmatprep.subr.bf16.mxu0 %v4253_v1  ;;  %1966 = vmatprep.subr.bf16.mxu1 %v4253_v1 }
 0x1cf   :  { %1673 = vmatpush1.bf16.msra.mxu0 %v4254_v2  ;;  %1967 = vmatpush1.bf16.msra.mxu1 %v4254_v2 }
 0x1d0   :  { %1674 = vmatprep.subr.bf16.mxu0 %v4255_v3  ;;  %1968 = vmatprep.subr.bf16.mxu1 %v4255_v3  ;;  %v4279_v3 = vld [vmem:[#allocation33_spill] sm:$0xff] }
 0x1d3   :  { %1675 = vmatpush1.bf16.msra.mxu0 %v4256_v4  ;;  %1969 = vmatpush1.bf16.msra.mxu1 %v4256_v4  ;;  %v4280_v4 = vld [vmem:[#allocation34_spill] sm:$0xff] }
 0x1d4   :  { %1676 = vmatprep.subr.bf16.mxu0 %v4257_v5  ;;  %1970 = vmatprep.subr.bf16.mxu1 %v4257_v5  ;;  %v4281_v5 = vld [vmem:[#allocation35_spill] sm:$0xff] }
 0x1d7   :  { %1677 = vmatpush1.bf16.msra.mxu0 %v4258_v6  ;;  %1971 = vmatpush1.bf16.msra.mxu1 %v4258_v6  ;;  %v4282_v6 = vld [vmem:[#allocation36_spill] sm:$0xff] }
 0x1d8   :  { %1678 = vmatprep.subr.bf16.mxu0 %v4259_v7  ;;  %1972 = vmatprep.subr.bf16.mxu1 %v4259_v7  ;;  %v4283_v7 = vld [vmem:[#allocation37_spill] sm:$0xff] }
 0x1db   :  { %1679 = vmatpush1.bf16.msra.mxu0 %v4260_v8  ;;  %1973 = vmatpush1.bf16.msra.mxu1 %v4260_v8  ;;  %v4284_v8 = vld [vmem:[#allocation38_spill] sm:$0xff] }
 0x1dc   :  { %1680 = vmatprep.subr.bf16.mxu0 %v4261_v9  ;;  %1974 = vmatprep.subr.bf16.mxu1 %v4261_v9  ;;  %v4285_v9 = vld [vmem:[#allocation39_spill] sm:$0xff] }
 0x1df   :  { %1681 = vmatpush1.bf16.msra.mxu0 %v4262_v12  ;;  %1975 = vmatpush1.bf16.msra.mxu1 %v4262_v12  ;;  %v4286_v12 = vld [vmem:[#allocation40_spill] sm:$0xff] }
 0x1e0   :  { %1691 = vmatprep.subr.bf16.mxu0 %v4263_v14  ;;  %1985 = vmatprep.subr.bf16.mxu1 %v4263_v14  ;;  %v4287_v14 = vld [vmem:[#allocation41_spill] sm:$0xff] }
 0x1e2   :  { %1683 = vmatmul.mubr.bf16.vlgmr.msra.gmra.mrb[4].mxu0 %v3875_v10  ;;  %1977 = vmatmul.mubr.bf16.vlgmr.msra.gmra.mrb[4].mxu1 %v3879_v11  ;;  %v4300_v11 = vld [vmem:[#allocation53_spill] sm:$0xff] }
 0x1e3   :  { %1692 = vmatpush1.bf16.msra.mxu0 %v4264_v19  ;;  %1986 = vmatpush1.bf16.msra.mxu1 %v4264_v19  ;;  %v4290_v19 = vld [vmem:[#allocation44_spill] sm:$0xff] }
 0x1e4   :  { %1693 = vmatprep.subr.bf16.mxu0 %v4265_v23  ;;  %1987 = vmatprep.subr.bf16.mxu1 %v4265_v23  ;;  %v4291_v23 = vld [vmem:[#allocation45_spill] sm:$0xff] }
 0x1e5   :  { %1723 = vmatprep.mubr.bf16.mxu0 %v1544_v15  ;;  %2017 = vmatprep.mubr.bf16.mxu1 %v1838_v20  ;;  %v4288_v15 = vld [vmem:[#allocation42_spill] sm:$0xff]  ;;  %v4289_v20 = vld [vmem:[#allocation43_spill] sm:$0xff] }
 0x1e7   :  { %1694 = vmatpush1.bf16.msra.mxu0 %v4266_v24  ;;  %1988 = vmatpush1.bf16.msra.mxu1 %v4266_v24  ;;  %v4292_v24 = vld [vmem:[#allocation46_spill] sm:$0xff] }
 0x1e8   :  { %1695 = vmatprep.subr.bf16.mxu0 %v4267_v29  ;;  %1989 = vmatprep.subr.bf16.mxu1 %v4267_v29  ;;  %v4293_v29 = vld [vmem:[#allocation47_spill] sm:$0xff] }
 0x1eb   :  { %1696 = vmatpush1.bf16.msra.mxu0 %v4268_v30  ;;  %1990 = vmatpush1.bf16.msra.mxu1 %v4268_v30  ;;  %v4294_v30 = vld [vmem:[#allocation48_spill] sm:$0xff] }
 0x1ec   :  { %1697 = vmatprep.subr.bf16.mxu0 %v4269_v33  ;;  %1991 = vmatprep.subr.bf16.mxu1 %v4269_v33  ;;  %v1542_v33 = vcombine.high %v3875_v10, %v3875_v10  ;;  %v4299_v10 = vmov 0  }
 0x1ef   :  { %1698 = vmatpush1.bf16.msra.mxu0 %v4271_v36  ;;  %1992 = vmatpush1.bf16.msra.mxu1 %v4271_v36  ;;  %v4296_v36 = vld [vmem:[#allocation50_spill] sm:$0xff] }
 0x1f0   :  { %1699 = vmatprep.subr.bf16.mxu0 %v4272_v39  ;;  %1993 = vmatprep.subr.bf16.mxu1 %v4272_v39  ;;  %v4301_v39 = vld [vmem:[#allocation54_spill] sm:$0xff] }
 0x1f3   :  { %1700 = vmatpush1.bf16.msra.mxu0 %v4273_v42  ;;  %1994 = vmatpush1.bf16.msra.mxu1 %v4273_v42  ;;  %v4303_v42 = vld [vmem:[#allocation56_spill] sm:$0xff] }
 0x1f4   :  { %1701 = vmatprep.subr.bf16.mxu0 %v4274_v45  ;;  %1995 = vmatprep.subr.bf16.mxu1 %v4274_v45  ;;  %v4304_v45 = vld [vmem:[#allocation57_spill] sm:$0xff] }
 0x1f5   :  { %v1158_v47 = vpop.f32.mrb[0].mxu0  ;;  %v1472_v48 = vpop.f32.mrb[0].mxu1 }
 0x1f6   :  { %v1176_v28 = vmul.f32 %v3915_v41, %v1158_v47  ;;  %v1479_v32 = vmul.f32 %v1472_v48, %v3915_v41  ;;  %v1160_v25 = vpop.f32.mrb[1].mxu0  ;;  %v1474_v13 = vpop.f32.mrb[1].mxu1  ;;  %v4305_v47 = vld [vmem:[#allocation58_spill] sm:$0xff]  ;;  %v4306_v48 = vld [vmem:[#allocation59_spill] sm:$0xff] }
 0x1f7   :  { %v1177_v21 = vmul.f32 %v3919_v43, %v1160_v25  ;;  %v1480_v51 = vmul.f32 %v1474_v13, %v3919_v43  ;;  %v1162_v52 = vpop.f32.mrb[2].mxu0  ;;  %v1476_v17 = vpop.f32.mrb[2].mxu1  ;;  %1702 = vmatpush1.bf16.msra.mxu0 %v4275_v18  ;;  %1996 = vmatpush1.bf16.msra.mxu1 %v4275_v18  ;;  %v4309_v25 = vld [vmem:[#allocation62_spill] sm:$0xff] }
 0x1f8   :  { %v1189_v26 = vadd.f32 %v3921_v44, %v1176_v28  ;;  %v1481_v31 = vadd.f32 %v1479_v32, %v3921_v44  ;;  %v1163_v46 = vpop.f32.mrb[3].mxu0  ;;  %v1477_v49 = vpop.f32.mrb[3].mxu1  ;;  %1703 = vmatprep.subr.bf16.mxu0 %v4276_v50  ;;  %1997 = vmatprep.subr.bf16.mxu1 %v4276_v50  ;;  %v4307_v28 = vld [vmem:[#allocation60_spill] sm:$0xff]  ;;  %v4308_v32 = vld [vmem:[#allocation61_spill] sm:$0xff] }
 0x1f9   :  { %v1190_v53 = vadd.f32 %v3925_v27, %v1177_v21  ;;  %v1482_v54 = vadd.f32 %v1480_v51, %v3925_v27  ;;  %v2245_v13 = vld.sshfl [vmem:[%s4053_s0 + $0x1a] sm:$0x1 pattern:$0x75316420]  ;;  %v4310_v21 = vld [vmem:[#allocation63_spill] sm:$0xff]  ;;  %v4311_v52 = vld [vmem:[#allocation64_spill] sm:$0xff] }
 0x1fa   :  { %vm1191_vm0 = vcmp.gt.f32.partialorder %v1189_v26, 0.0  ;;  %v1193_v55 = vmul.f32 0.01, %v1189_v26  ;;  %vm1483_vm1 = vcmp.gt.f32.partialorder %v1481_v31, 0.0  ;;  %v1485_v56 = vmul.f32 0.01, %v1481_v31 }
 0x1fb   :  { %vm1192_vm2 = vcmp.gt.f32.partialorder %v1190_v53, 0.0  ;;  %v1194_v57 = vmul.f32 0.01, %v1190_v53  ;;  %vm1484_vm3 = vcmp.gt.f32.partialorder %v1482_v54, 0.0  ;;  %v1486_v58 = vmul.f32 0.01, %v1482_v54  ;;  %1704 = vmatpush1.bf16.msra.mxu0 %v4277_v59  ;;  %1998 = vmatpush1.bf16.msra.mxu1 %v4277_v59 }
 0x1fc   :  { %v3941_v60 = vsel %vm1191_vm0, %v1189_v26, %v1193_v55  ;;  %v3943_v61 = vsel %vm1483_vm1, %v1481_v31, %v1485_v56  ;;  %1705 = vmatprep.subr.bf16.mxu0 %v4278_v62  ;;  %1999 = vmatprep.subr.bf16.mxu1 %v4278_v62  ;;  %v2248_v51 = vld.sshfl [vmem:[%s4053_s0 + $0x23] sm:$0x1 pattern:$0x75316420]  ;;  %v1558_v17 = vrot.slane %v2245_v13, %v2632_v16 }
 0x1fd   :  { %v1489_v63 = vmax.f32 %v3941_v60, %v3943_v61  ;;  %v3949_v0 = vsel %vm1192_vm2, %v1190_v53, %v1194_v57  ;;  %v3951_v1 = vsel %vm1484_vm3, %v1482_v54, %v1486_v58  ;;  %v1852_v18 = vrot.slane %v2248_v51, %v2632_v16 }
 0x1fe   :  { %v1490_v2 = vmax.f32 %v3949_v0, %v3951_v1 }
 0x1ff   :  { %1706 = vmatpush1.bf16.msra.mxu0 %v4279_v3  ;;  %2000 = vmatpush1.bf16.msra.mxu1 %v4279_v3 }
 0x200   :  { %1707 = vmatprep.subr.bf16.mxu0 %v4280_v4  ;;  %2001 = vmatprep.subr.bf16.mxu1 %v4280_v4 }
 0x203   :  { %1708 = vmatpush1.bf16.msra.mxu0 %v4281_v5  ;;  %2002 = vmatpush1.bf16.msra.mxu1 %v4281_v5 }
 0x204   :  { %1709 = vmatprep.subr.bf16.mxu0 %v4282_v6  ;;  %2003 = vmatprep.subr.bf16.mxu1 %v4282_v6 }
 0x207   :  { %1710 = vmatpush1.bf16.msra.mxu0 %v4283_v7  ;;  %2004 = vmatpush1.bf16.msra.mxu1 %v4283_v7 }
 0x208   :  { %1711 = vmatprep.subr.bf16.mxu0 %v4284_v8  ;;  %2005 = vmatprep.subr.bf16.mxu1 %v4284_v8 }
 0x20b   :  { %1712 = vmatpush1.bf16.msra.mxu0 %v4285_v9  ;;  %2006 = vmatpush1.bf16.msra.mxu1 %v4285_v9 }
 0x20c   :  { %1713 = vmatprep.subr.bf16.mxu0 %v4286_v12  ;;  %2007 = vmatprep.subr.bf16.mxu1 %v4286_v12 }
 0x20f   :  { %1714 = vmatpush1.bf16.msra.mxu0 %v4287_v14  ;;  %2008 = vmatpush1.bf16.msra.mxu1 %v4287_v14 }
 0x210   :  { %1715 = vmatprep.subr.bf16.mxu0 %v4288_v15  ;;  %2009 = vmatprep.subr.bf16.mxu1 %v4288_v15 }
 0x213   :  { %1716 = vmatpush1.bf16.msra.mxu0 %v4289_v20  ;;  %2010 = vmatpush1.bf16.msra.mxu1 %v4289_v20 }
 0x214   :  { %1717 = vmatprep.subr.bf16.mxu0 %v4290_v19  ;;  %2011 = vmatprep.subr.bf16.mxu1 %v4290_v19 }
 0x217   :  { %1718 = vmatpush1.bf16.msra.mxu0 %v4291_v23  ;;  %2012 = vmatpush1.bf16.msra.mxu1 %v4291_v23 }
 0x218   :  { %1719 = vmatprep.subr.bf16.mxu0 %v4292_v24  ;;  %2013 = vmatprep.subr.bf16.mxu1 %v4292_v24 }
 0x21b   :  { %1720 = vmatpush1.bf16.msra.mxu0 %v4293_v29  ;;  %2014 = vmatpush1.bf16.msra.mxu1 %v4293_v29 }
 0x21c   :  { %1721 = vmatprep.subr.bf16.mxu0 %v4294_v30  ;;  %2015 = vmatprep.subr.bf16.mxu1 %v4294_v30 }
 0x21f   :  { %1722 = vmatpush1.bf16.msra.mxu0 %v4295_v35  ;;  %2016 = vmatpush1.bf16.msra.mxu1 %v4295_v35 }
 0x220   :  { %1732 = vmatprep.subr.bf16.mxu0 %v4296_v36  ;;  %2026 = vmatprep.subr.bf16.mxu1 %v4296_v36 }
 0x222   :  { %1724 = vmatmul.mubr.bf16.vlgmr.msra.gmra.mrb[4].mxu0 %v1542_v33  ;;  %2018 = vmatmul.mubr.bf16.vlgmr.msra.gmra.mrb[4].mxu1 %v1836_v34 }
 0x223   :  { %1733 = vmatpush1.bf16.msra.mxu0 %v4297_v37  ;;  %2027 = vmatpush1.bf16.msra.mxu1 %v4297_v37 }
 0x224   :  { %1734 = vmatprep.subr.bf16.mxu0 %v4298_v38  ;;  %2028 = vmatprep.subr.bf16.mxu1 %v4298_v38 }
 0x225   :  { %1764 = vmatprep.mubr.bf16.mxu0 %v4299_v10  ;;  %2058 = vmatprep.mubr.bf16.mxu1 %v4299_v10 }
 0x227   :  { %1735 = vmatpush1.bf16.msra.mxu0 %v4300_v11  ;;  %2029 = vmatpush1.bf16.msra.mxu1 %v4300_v11 }
 0x228   :  { %1736 = vmatprep.subr.bf16.mxu0 %v4301_v39  ;;  %2030 = vmatprep.subr.bf16.mxu1 %v4301_v39 }
 0x22b   :  { %1737 = vmatpush1.bf16.msra.mxu0 %v4302_v40  ;;  %2031 = vmatpush1.bf16.msra.mxu1 %v4302_v40 }
 0x22c   :  { %1738 = vmatprep.subr.bf16.mxu0 %v4303_v42  ;;  %2032 = vmatprep.subr.bf16.mxu1 %v4303_v42 }
 0x22f   :  { %1739 = vmatpush1.bf16.msra.mxu0 %v4304_v45  ;;  %2033 = vmatpush1.bf16.msra.mxu1 %v4304_v45 }
 0x230   :  { %1740 = vmatprep.subr.bf16.mxu0 %v4305_v47  ;;  %2034 = vmatprep.subr.bf16.mxu1 %v4305_v47 }
 0x233   :  { %1741 = vmatpush1.bf16.msra.mxu0 %v4306_v48  ;;  %2035 = vmatpush1.bf16.msra.mxu1 %v4306_v48 }
 0x234   :  { %1742 = vmatprep.subr.bf16.mxu0 %v4307_v28  ;;  %2036 = vmatprep.subr.bf16.mxu1 %v4307_v28 }
 0x237   :  { %1743 = vmatpush1.bf16.msra.mxu0 %v4308_v32  ;;  %2037 = vmatpush1.bf16.msra.mxu1 %v4308_v32 }
 0x238   :  { %1744 = vmatprep.subr.bf16.mxu0 %v4309_v25  ;;  %2038 = vmatprep.subr.bf16.mxu1 %v4309_v25 }
 0x23b   :  { %1745 = vmatpush1.bf16.msra.mxu0 %v4310_v21  ;;  %2039 = vmatpush1.bf16.msra.mxu1 %v4310_v21 }
 0x23c   :  { %1746 = vmatprep.subr.bf16.mxu0 %v4311_v52  ;;  %2040 = vmatprep.subr.bf16.mxu1 %v4311_v52 }
 0x23f   :  { %1747 = vmatpush1.bf16.msra.mxu0 %v3586_v22  ;;  %2041 = vmatpush1.bf16.msra.mxu1 %v3586_v22 }
 0x242   :  { %1765 = vmatmul.mubr.bf16.vlgmr.msra.gmra.mrb[4].mxu0 %v1558_v17  ;;  %2059 = vmatmul.mubr.bf16.vlgmr.msra.gmra.mrb[4].mxu1 %v1852_v18 }
 0x315   :  { %v1766_v26 = vpop.f32.mrb[4].mxu0  ;;  %v2060_v31 = vpop.f32.mrb[4].mxu1 }
 0x316   :  { %v1773_v46 = vmul.f32 %v1766_v26, %v3915_v41  ;;  %v2067_v49 = vmul.f32 %v2060_v31, %v3915_v41  ;;  %v1768_v50 = vpop.f32.mrb[5].mxu0  ;;  %v2062_v53 = vpop.f32.mrb[5].mxu1 }
 0x317   :  { %v1774_v54 = vmul.f32 %v1768_v50, %v3919_v43  ;;  %v2068_v55 = vmul.f32 %v2062_v53, %v3919_v43  ;;  %v1770_v56 = vpop.f32.mrb[6].mxu0  ;;  %v2064_v16 = vpop.f32.mrb[6].mxu1 }
 0x318   :  { %v1775_v57 = vadd.f32 %v1773_v46, %v3921_v44  ;;  %v2069_v22 = vadd.f32 %v2067_v49, %v3921_v44  ;;  %v1771_v58 = vpop.f32.mrb[7].mxu0  ;;  %v2065_v59 = vpop.f32.mrb[7].mxu1 }
 0x319   :  { %v1776_v62 = vadd.f32 %v1774_v54, %v3925_v27  ;;  %v2070_v3 = vadd.f32 %v2068_v55, %v3925_v27 }
 0x31a   :  { %vm1777_vm4 = vcmp.gt.f32.partialorder %v1775_v57, 0.0  ;;  %v1779_v41 = vmul.f32 0.01, %v1775_v57  ;;  %v2073_v4 = vmul.f32 0.01, %v2069_v22  ;;  %vm2071_vm5 = vcmp.gt.f32.partialorder %v2069_v22, 0.0 }
 0x31b   :  { %vm1778_vm6 = vcmp.gt.f32.partialorder %v1776_v62, 0.0  ;;  %v1780_v5 = vmul.f32 0.01, %v1776_v62  ;;  %v2074_v6 = vmul.f32 0.01, %v2070_v3  ;;  %vm2072_vm7 = vcmp.gt.f32.partialorder %v2070_v3, 0.0 }
 0x31c   :  { %v1781_v43 = vsel %vm1777_vm4, %v1775_v57, %v1779_v41  ;;  %v2075_v8 = vsel %vm2071_vm5, %v2069_v22, %v2073_v4 }
 0x31d   :  { %v1783_v7 = vmax.f32 %v1489_v63, %v1781_v43  ;;  %v1782_v44 = vsel %vm1778_vm6, %v1776_v62, %v1780_v5  ;;  %v2076_v12 = vsel %vm2072_vm7, %v2070_v3, %v2074_v6 }
 0x31e   :  { %v1784_v9 = vmax.f32 %v1490_v2, %v1782_v44 }
 0x31f   :  { %v2077_v27 = vmax.f32 %v1783_v7, %v2075_v8 }
 0x320   :  { %v2078_v14 = vmax.f32 %v1784_v9, %v2076_v12 }
 0x322   :  { %v2081_v15 = vcombine.low %v2077_v27, %v2078_v14 }
 0x324   :  { %2249 = vst.sshfl [vmem:[%s4056_s4] sm:$0x33 pattern:$0x76325410] %v2081_v15 }

// kernel: cnn_forward.7
= control target key start
LH: loop header
LB: loop body
LE: loop exit
PB: predicated region body
PF: predicated region fallthrough
CT: control target
= control target key end

     0   :  { %v3099_v36 = vmov 1966171168   ;;  %v318_v38 = vlaneseq  ;;  %s4093_s0 = inlined_call_operand.vmem [shape: bf16[1,2,2304], index: 0, kind: input, shape index: {}]   ;;  %s4094_s1 = inlined_call_operand.vmem [shape: bf16[2304,256], index: 1, kind: input, shape index: {}]   ;;  %s4095_s2 = inlined_call_operand.vmem [shape: f32[1,256], index: 2, kind: input, shape index: {}]   ;;  %s4096_s3 = inlined_call_operand.vmem [shape: f32[1,256], index: 3, kind: input, shape index: {}]   ;;  %s4097_s4 = inlined_call_operand.hbm [shape: f32[2,256], index: 4, kind: output, shape index: {}]  }
   0x1   :  { %v2641_v0 = vld [vmem:[%s4094_s1 + $0x4] ss:$8 sps:$4 sm:$0xff]   ;;  %v2645_v2 = vld [vmem:[%s4094_s1] ss:$8 sps:$4 sm:$0xff]   ;;  %v2647_v4 = vld [vmem:[%s4094_s1 + $0x14] ss:$8 sps:$4 sm:$0xff]   ;;  %v316_v37 = vunpack.c.l.s4 %v3099_v36 }
   0x2   :  { %v2643_v1 = vld [vmem:[%s4094_s1 + $0x404] ss:$8 sps:$4 sm:$0xff]   ;;  %1892 = vmatprep.subr.bf16.mxu1 %v2641_v0  ;;  %v2646_v3 = vld [vmem:[%s4094_s1 + $0x400] ss:$8 sps:$4 sm:$0xff]   ;;  %v2649_v5 = vld [vmem:[%s4094_s1 + $0x414] ss:$8 sps:$4 sm:$0xff]  }
   0x3   :  { %2056 = vmatprep.subr.bf16.mxu0 %v2643_v1  ;;  %1893 = vmatpush1.bf16.msra.mxu1 %v2645_v2  ;;  %v2651_v6 = vld [vmem:[%s4094_s1 + $0x10] ss:$8 sps:$4 sm:$0xff]   ;;  %v2653_v8 = vld [vmem:[%s4094_s1 + $0x24] ss:$8 sps:$4 sm:$0xff]   ;;  %v2657_v10 = vld [vmem:[%s4094_s1 + $0x20] ss:$8 sps:$4 sm:$0xff]   ;;  %v317_v42 = vunpack.c.0.s8 %v316_v37 }
   0x4   :  { %2057 = vmatpush1.bf16.msra.mxu0 %v2646_v3  ;;  %1894 = vmatprep.subr.bf16.mxu1 %v2647_v4  ;;  %v2652_v7 = vld [vmem:[%s4094_s1 + $0x410] ss:$8 sps:$4 sm:$0xff]   ;;  %v2655_v9 = vld [vmem:[%s4094_s1 + $0x424] ss:$8 sps:$4 sm:$0xff]   ;;  %v2658_v11 = vld [vmem:[%s4094_s1 + $0x420] ss:$8 sps:$4 sm:$0xff]  }
   0x5   :  { %2058 = vmatprep.subr.bf16.mxu0 %v2649_v5  ;;  %v2659_v12 = vld [vmem:[%s4094_s1 + $0x34] ss:$8 sps:$4 sm:$0xff]   ;;  %v2663_v14 = vld [vmem:[%s4094_s1 + $0x30] ss:$8 sps:$4 sm:$0xff]   ;;  %v2665_v16 = vld [vmem:[%s4094_s1 + $0x44] ss:$8 sps:$4 sm:$0xff]  }
   0x6   :  { %v2661_v13 = vld [vmem:[%s4094_s1 + $0x434] ss:$8 sps:$4 sm:$0xff]   ;;  %v2664_v15 = vld [vmem:[%s4094_s1 + $0x430] ss:$8 sps:$4 sm:$0xff]   ;;  %v2667_v17 = vld [vmem:[%s4094_s1 + $0x444] ss:$8 sps:$4 sm:$0xff]  }
   0x7   :  { %1895 = vmatpush1.bf16.msra.mxu1 %v2651_v6  ;;  %v2669_v18 = vld [vmem:[%s4094_s1 + $0x40] ss:$8 sps:$4 sm:$0xff]   ;;  %v2671_v20 = vld [vmem:[%s4094_s1 + $0x54] ss:$8 sps:$4 sm:$0xff]   ;;  %v2675_v22 = vld [vmem:[%s4094_s1 + $0x50] ss:$8 sps:$4 sm:$0xff]  }
   0x8   :  { %2059 = vmatpush1.bf16.msra.mxu0 %v2652_v7  ;;  %1896 = vmatprep.subr.bf16.mxu1 %v2653_v8  ;;  %v2670_v19 = vld [vmem:[%s4094_s1 + $0x440] ss:$8 sps:$4 sm:$0xff]   ;;  %v2673_v21 = vld [vmem:[%s4094_s1 + $0x454] ss:$8 sps:$4 sm:$0xff]   ;;  %v2676_v23 = vld [vmem:[%s4094_s1 + $0x450] ss:$8 sps:$4 sm:$0xff]  }
   0x9   :  { %2060 = vmatprep.subr.bf16.mxu0 %v2655_v9  ;;  %v2677_v24 = vld [vmem:[%s4094_s1 + $0x64] ss:$8 sps:$4 sm:$0xff]   ;;  %v2681_v26 = vld [vmem:[%s4094_s1 + $0x60] ss:$8 sps:$4 sm:$0xff]   ;;  %v2683_v28 = vld [vmem:[%s4094_s1 + $0x74] ss:$8 sps:$4 sm:$0xff]  }
   0xa   :  { %v2679_v25 = vld [vmem:[%s4094_s1 + $0x464] ss:$8 sps:$4 sm:$0xff]   ;;  %v2682_v27 = vld [vmem:[%s4094_s1 + $0x460] ss:$8 sps:$4 sm:$0xff]   ;;  %v2685_v29 = vld [vmem:[%s4094_s1 + $0x474] ss:$8 sps:$4 sm:$0xff]  }
   0xb   :  { %1897 = vmatpush1.bf16.msra.mxu1 %v2657_v10  ;;  %v2687_v30 = vld [vmem:[%s4094_s1 + $0x70] ss:$8 sps:$4 sm:$0xff]   ;;  %v2689_v32 = vld [vmem:[%s4094_s1 + $0x84] ss:$8 sps:$4 sm:$0xff]   ;;  %v2693_v34 = vld [vmem:[%s4094_s1 + $0x80] ss:$8 sps:$4 sm:$0xff]  }
   0xc   :  { %2061 = vmatpush1.bf16.msra.mxu0 %v2658_v11  ;;  %1898 = vmatprep.subr.bf16.mxu1 %v2659_v12  ;;  %v2688_v31 = vld [vmem:[%s4094_s1 + $0x470] ss:$8 sps:$4 sm:$0xff]   ;;  %v2691_v33 = vld [vmem:[%s4094_s1 + $0x484] ss:$8 sps:$4 sm:$0xff]   ;;  %v2694_v35 = vld [vmem:[%s4094_s1 + $0x480] ss:$8 sps:$4 sm:$0xff]  }
   0xd   :  { %2062 = vmatprep.subr.bf16.mxu0 %v2661_v13  ;;  %v2695_v39 = vld [vmem:[%s4094_s1 + $0x94] ss:$8 sps:$4 sm:$0xff]   ;;  %v2699_v41 = vld [vmem:[%s4094_s1 + $0x90] ss:$8 sps:$4 sm:$0xff]   ;;  %v3243_v43 = vshrl.u32 %v318_v38, 7  ;;  %v3272_v52 = vld [vmem:[%s4093_s0] sm:$0xff] }
   0xe   :  { %v2697_v40 = vld [vmem:[%s4094_s1 + $0x494] ss:$8 sps:$4 sm:$0xff]   ;;  %v2700_v44 = vld [vmem:[%s4094_s1 + $0x490] ss:$8 sps:$4 sm:$0xff]   ;;  %v2701_v45 = vld [vmem:[%s4094_s1 + $0xa4] ss:$8 sps:$4 sm:$0xff]  }
   0xf   :  { %1899 = vmatpush1.bf16.msra.mxu1 %v2663_v14  ;;  %v2703_v46 = vld [vmem:[%s4094_s1 + $0x4a4] ss:$8 sps:$4 sm:$0xff]   ;;  %v2705_v47 = vld [vmem:[%s4094_s1 + $0xa0] ss:$8 sps:$4 sm:$0xff]   ;;  %v3261_v49 = vsub.s32 %v317_v42, %v3243_v43  ;;  %v2707_v50 = vld [vmem:[%s4094_s1 + $0xb4] ss:$8 sps:$4 sm:$0xff]  }
  0x10   :  { %2063 = vmatpush1.bf16.msra.mxu0 %v2664_v15  ;;  %1900 = vmatprep.subr.bf16.mxu1 %v2665_v16  ;;  %v2706_v48 = vld [vmem:[%s4094_s1 + $0x4a0] ss:$8 sps:$4 sm:$0xff]   ;;  %v2709_v51 = vld [vmem:[%s4094_s1 + $0x4b4] ss:$8 sps:$4 sm:$0xff]   ;;  %v2711_v53 = vld [vmem:[%s4094_s1 + $0xb0] ss:$8 sps:$4 sm:$0xff]  }
  0x11   :  { %2064 = vmatprep.subr.bf16.mxu0 %v2667_v17  ;;  %v321_v54 = vrot.slane %v3272_v52, %v3261_v49  ;;  %v2712_v55 = vld [vmem:[%s4094_s1 + $0x4b0] ss:$8 sps:$4 sm:$0xff]   ;;  %v3285_v56 = vld [vmem:[%s4093_s0 + $0x8] sm:$0xff]  ;;  %v2719_v1 = vld [vmem:[%s4094_s1 + $0xd4] ss:$8 sps:$4 sm:$0xff]  }
  0x12   :  { %v2713_v57 = vld [vmem:[%s4094_s1 + $0xc4] ss:$8 sps:$4 sm:$0xff]   ;;  %v370_v60 = vrot.slane %v3285_v56, %v3261_v49  ;;  %v2717_v63 = vld [vmem:[%s4094_s1 + $0xc0] ss:$8 sps:$4 sm:$0xff]   ;;  %v2721_v2 = vld [vmem:[%s4094_s1 + $0x4d4] ss:$8 sps:$4 sm:$0xff]  }
  0x13   :  { %1901 = vmatpush1.bf16.msra.mxu1 %v2669_v18  ;;  %v2715_v58 = vld [vmem:[%s4094_s1 + $0x4c4] ss:$8 sps:$4 sm:$0xff]   ;;  %v329_v59 = vcombine.high %v321_v54, %v321_v54  ;;  %v2718_v0 = vld [vmem:[%s4094_s1 + $0x4c0] ss:$8 sps:$4 sm:$0xff]   ;;  %v2723_v4 = vld [vmem:[%s4094_s1 + $0xd0] ss:$8 sps:$4 sm:$0xff]   ;;  %v3346_v16 = vrot.slane %v321_v54, %v3261_v49 }
  0x14   :  { %2065 = vmatpush1.bf16.msra.mxu0 %v2670_v19  ;;  %1902 = vmatprep.subr.bf16.mxu1 %v2671_v20  ;;  %v378_v62 = vcombine.high %v370_v60, %v370_v60  ;;  %v2724_v5 = vld [vmem:[%s4094_s1 + $0x4d0] ss:$8 sps:$4 sm:$0xff]   ;;  %v2725_v6 = vld [vmem:[%s4094_s1 + $0xe4] ss:$8 sps:$4 sm:$0xff]   ;;  %v2729_v8 = vld [vmem:[%s4094_s1 + $0xe0] ss:$8 sps:$4 sm:$0xff]   ;;  %v3349_v17 = vrot.slane %v370_v60, %v3261_v49 }
  0x15   :  { %2066 = vmatprep.subr.bf16.mxu0 %v2673_v21  ;;  %v351_v61 = vrot.slane %v329_v59, %v3261_v49  ;;  %v2727_v7 = vld [vmem:[%s4094_s1 + $0x4e4] ss:$8 sps:$4 sm:$0xff]   ;;  %v2730_v9 = vld [vmem:[%s4094_s1 + $0x4e0] ss:$8 sps:$4 sm:$0xff]   ;;  %v2731_v10 = vld [vmem:[%s4094_s1 + $0xf4] ss:$8 sps:$4 sm:$0xff]  }
  0x16   :  { %v400_v3 = vrot.slane %v378_v62, %v3261_v49  ;;  %v2733_v11 = vld [vmem:[%s4094_s1 + $0x4f4] ss:$8 sps:$4 sm:$0xff]   ;;  %v2735_v12 = vld [vmem:[%s4094_s1 + $0xf0] ss:$8 sps:$4 sm:$0xff]   ;;  %v2740_v14 = vld [vmem:[%s4094_s1 + $0x104] ss:$8 sps:$4 sm:$0xff]  }
  0x17   :  { %1903 = vmatpush1.bf16.msra.mxu1 %v2675_v22  ;;  %1924 = vmatprep.mubr.bf16.mxu1 %v351_v61  ;;  %v2736_v13 = vld [vmem:[%s4094_s1 + $0x4f0] ss:$8 sps:$4 sm:$0xff]   ;;  %v2744_v15 = vld [vmem:[%s4094_s1 + $0x504] ss:$8 sps:$4 sm:$0xff]   ;;  %v2738_v18 = vld [vmem:[%s4094_s1 + $0x100] ss:$8 sps:$4 sm:$0xff]   ;;  %v361_v22 = vcombine.high %v351_v61, %v351_v61 }
  0x18   :  { %2067 = vmatpush1.bf16.msra.mxu0 %v2676_v23  ;;  %1904 = vmatprep.subr.bf16.mxu1 %v2677_v24  ;;  %v2742_v19 = vld [vmem:[%s4094_s1 + $0x500] ss:$8 sps:$4 sm:$0xff]   ;;  %v2747_v20 = vld [vmem:[%s4094_s1 + $0x114] ss:$8 sps:$4 sm:$0xff]   ;;  %v410_v23 = vcombine.high %v400_v3, %v400_v3  ;;  %v2745_v24 = vld [vmem:[%s4094_s1 + $0x110] ss:$8 sps:$4 sm:$0xff]  }
  0x19   :  { %2068 = vmatprep.subr.bf16.mxu0 %v2679_v25  ;;  %2088 = vmatprep.mubr.bf16.mxu0 %v400_v3  ;;  %v2750_v21 = vld [vmem:[%s4094_s1 + $0x514] ss:$8 sps:$4 sm:$0xff]   ;;  %v2748_v25 = vld [vmem:[%s4094_s1 + $0x510] ss:$8 sps:$4 sm:$0xff]   ;;  %v2763_v36 = vld [vmem:[%s4094_s1 + $0x140] ss:$8 sps:$4 sm:$0xff]  }
  0x1a   :  { %v2766_v37 = vld [vmem:[%s4094_s1 + $0x540] ss:$8 sps:$4 sm:$0xff]   ;;  %v2771_v38 = vld [vmem:[%s4094_s1 + $0x154] ss:$8 sps:$4 sm:$0xff]   ;;  %v2777_v42 = vld [vmem:[%s4094_s1 + $0x164] ss:$8 sps:$4 sm:$0xff]  }
  0x1b   :  { %1905 = vmatpush1.bf16.msra.mxu1 %v2681_v26  ;;  %v2753_v26 = vld [vmem:[%s4094_s1 + $0x124] ss:$8 sps:$4 sm:$0xff]   ;;  %v2798_v59 = vld [vmem:[%s4094_s1 + $0x594] ss:$8 sps:$4 sm:$0xff]   ;;  %v2793_v60 = vld [vmem:[%s4094_s1 + $0x190] ss:$8 sps:$4 sm:$0xff]  }
  0x1c   :  { %2069 = vmatpush1.bf16.msra.mxu0 %v2682_v27  ;;  %1906 = vmatprep.subr.bf16.mxu1 %v2683_v28  ;;  %v2756_v27 = vld [vmem:[%s4094_s1 + $0x524] ss:$8 sps:$4 sm:$0xff]   ;;  %v2751_v28 = vld [vmem:[%s4094_s1 + $0x120] ss:$8 sps:$4 sm:$0xff]   ;;  %v2796_v61 = vld [vmem:[%s4094_s1 + $0x590] ss:$8 sps:$4 sm:$0xff]  }
  0x1d   :  { %2070 = vmatprep.subr.bf16.mxu0 %v2685_v29  ;;  %v2754_v29 = vld [vmem:[%s4094_s1 + $0x520] ss:$8 sps:$4 sm:$0xff]   ;;  %v2792_v54 = vld [vmem:[%s4094_s1 + $0x584] ss:$8 sps:$4 sm:$0xff]   ;;  %v2810_v3 = vld [vmem:[%s4094_s1 + $0x5b4] ss:$8 sps:$4 sm:$0xff]  }
  0x1e   :  { %v2801_v62 = vld [vmem:[%s4094_s1 + $0x1a4] ss:$8 sps:$4 sm:$0xff]  }
  0x1f   :  { %1907 = vmatpush1.bf16.msra.mxu1 %v2687_v30  ;;  %v2759_v30 = vld [vmem:[%s4094_s1 + $0x134] ss:$8 sps:$4 sm:$0xff]  }
  0x20   :  { %2071 = vmatpush1.bf16.msra.mxu0 %v2688_v31  ;;  %1908 = vmatprep.subr.bf16.mxu1 %v2689_v32  ;;  %v2762_v31 = vld [vmem:[%s4094_s1 + $0x534] ss:$8 sps:$4 sm:$0xff]   ;;  %v2757_v32 = vld [vmem:[%s4094_s1 + $0x130] ss:$8 sps:$4 sm:$0xff]  }
  0x21   :  { %2072 = vmatprep.subr.bf16.mxu0 %v2691_v33  ;;  %v2760_v33 = vld [vmem:[%s4094_s1 + $0x530] ss:$8 sps:$4 sm:$0xff]  }
  0x23   :  { %1909 = vmatpush1.bf16.msra.mxu1 %v2693_v34  ;;  %v2765_v34 = vld [vmem:[%s4094_s1 + $0x144] ss:$8 sps:$4 sm:$0xff]  }
  0x24   :  { %2073 = vmatpush1.bf16.msra.mxu0 %v2694_v35  ;;  %1910 = vmatprep.subr.bf16.mxu1 %v2695_v39  ;;  %v2768_v35 = vld [vmem:[%s4094_s1 + $0x544] ss:$8 sps:$4 sm:$0xff]   ;;  %v2774_v39 = vld [vmem:[%s4094_s1 + $0x554] ss:$8 sps:$4 sm:$0xff]  }
  0x25   :  { %2074 = vmatprep.subr.bf16.mxu0 %v2697_v40  ;;  %v2769_v40 = vld [vmem:[%s4094_s1 + $0x150] ss:$8 sps:$4 sm:$0xff]  }
  0x27   :  { %1911 = vmatpush1.bf16.msra.mxu1 %v2699_v41  ;;  %v2772_v41 = vld [vmem:[%s4094_s1 + $0x550] ss:$8 sps:$4 sm:$0xff]  }
  0x28   :  { %2075 = vmatpush1.bf16.msra.mxu0 %v2700_v44  ;;  %1912 = vmatprep.subr.bf16.mxu1 %v2701_v45  ;;  %v2780_v44 = vld [vmem:[%s4094_s1 + $0x564] ss:$8 sps:$4 sm:$0xff]   ;;  %v2775_v45 = vld [vmem:[%s4094_s1 + $0x160] ss:$8 sps:$4 sm:$0xff]  }
  0x29   :  { %2076 = vmatprep.subr.bf16.mxu0 %v2703_v46  ;;  %v2778_v46 = vld [vmem:[%s4094_s1 + $0x560] ss:$8 sps:$4 sm:$0xff]  }
  0x2b   :  { %1913 = vmatpush1.bf16.msra.mxu1 %v2705_v47  ;;  %v2783_v47 = vld [vmem:[%s4094_s1 + $0x174] ss:$8 sps:$4 sm:$0xff]  }
  0x2c   :  { %2077 = vmatpush1.bf16.msra.mxu0 %v2706_v48  ;;  %1914 = vmatprep.subr.bf16.mxu1 %v2707_v50  ;;  %v2786_v48 = vld [vmem:[%s4094_s1 + $0x574] ss:$8 sps:$4 sm:$0xff]   ;;  %v2781_v50 = vld [vmem:[%s4094_s1 + $0x170] ss:$8 sps:$4 sm:$0xff]  }
  0x2d   :  { %2078 = vmatprep.subr.bf16.mxu0 %v2709_v51  ;;  %v2784_v51 = vld [vmem:[%s4094_s1 + $0x570] ss:$8 sps:$4 sm:$0xff]  }
  0x2f   :  { %1915 = vmatpush1.bf16.msra.mxu1 %v2711_v53  ;;  %v2789_v53 = vld [vmem:[%s4094_s1 + $0x184] ss:$8 sps:$4 sm:$0xff]  }
  0x30   :  { %2079 = vmatpush1.bf16.msra.mxu0 %v2712_v55  ;;  %1916 = vmatprep.subr.bf16.mxu1 %v2713_v57  ;;  %v2787_v55 = vld [vmem:[%s4094_s1 + $0x180] ss:$8 sps:$4 sm:$0xff]  }
  0x31   :  { %2080 = vmatprep.subr.bf16.mxu0 %v2715_v58  ;;  %v2790_v57 = vld [vmem:[%s4094_s1 + $0x580] ss:$8 sps:$4 sm:$0xff]   ;;  %v2795_v58 = vld [vmem:[%s4094_s1 + $0x194] ss:$8 sps:$4 sm:$0xff]  }
  0x33   :  { %1917 = vmatpush1.bf16.msra.mxu1 %v2717_v63  ;;  %v2804_v63 = vld [vmem:[%s4094_s1 + $0x5a4] ss:$8 sps:$4 sm:$0xff]  }
  0x34   :  { %2081 = vmatpush1.bf16.msra.mxu0 %v2718_v0  ;;  %1918 = vmatprep.subr.bf16.mxu1 %v2719_v1  ;;  %v2799_v0 = vld [vmem:[%s4094_s1 + $0x1a0] ss:$8 sps:$4 sm:$0xff]  }
  0x35   :  { %2082 = vmatprep.subr.bf16.mxu0 %v2721_v2  ;;  %v2802_v1 = vld [vmem:[%s4094_s1 + $0x5a0] ss:$8 sps:$4 sm:$0xff]   ;;  %v2807_v2 = vld [vmem:[%s4094_s1 + $0x1b4] ss:$8 sps:$4 sm:$0xff]  }
  0x37   :  { %1919 = vmatpush1.bf16.msra.mxu1 %v2723_v4  ;;  %v2805_v4 = vld [vmem:[%s4094_s1 + $0x1b0] ss:$8 sps:$4 sm:$0xff]  }
  0x38   :  { %2083 = vmatpush1.bf16.msra.mxu0 %v2724_v5  ;;  %1920 = vmatprep.subr.bf16.mxu1 %v2725_v6  ;;  %v2808_v5 = vld [vmem:[%s4094_s1 + $0x5b0] ss:$8 sps:$4 sm:$0xff]   ;;  %v2813_v6 = vld [vmem:[%s4094_s1 + $0x1c4] ss:$8 sps:$4 sm:$0xff]  }
  0x39   :  { %2084 = vmatprep.subr.bf16.mxu0 %v2727_v7  ;;  %v2816_v7 = vld [vmem:[%s4094_s1 + $0x5c4] ss:$8 sps:$4 sm:$0xff]  }
  0x3b   :  { %1921 = vmatpush1.bf16.msra.mxu1 %v2729_v8  ;;  %v2811_v8 = vld [vmem:[%s4094_s1 + $0x1c0] ss:$8 sps:$4 sm:$0xff]  }
  0x3c   :  { %2085 = vmatpush1.bf16.msra.mxu0 %v2730_v9  ;;  %1922 = vmatprep.subr.bf16.mxu1 %v2731_v10  ;;  %v2814_v9 = vld [vmem:[%s4094_s1 + $0x5c0] ss:$8 sps:$4 sm:$0xff]   ;;  %v2819_v10 = vld [vmem:[%s4094_s1 + $0x1d4] ss:$8 sps:$4 sm:$0xff]  }
  0x3d   :  { %2086 = vmatprep.subr.bf16.mxu0 %v2733_v11  ;;  %v2822_v11 = vld [vmem:[%s4094_s1 + $0x5d4] ss:$8 sps:$4 sm:$0xff]  }
  0x3f   :  { %1923 = vmatpush1.bf16.msra.mxu1 %v2735_v12  ;;  %v2817_v12 = vld [vmem:[%s4094_s1 + $0x1d0] ss:$8 sps:$4 sm:$0xff]  }
  0x40   :  { %2087 = vmatpush1.bf16.msra.mxu0 %v2736_v13  ;;  %1933 = vmatprep.subr.bf16.mxu1 %v2740_v14  ;;  %v2820_v13 = vld [vmem:[%s4094_s1 + $0x5d0] ss:$8 sps:$4 sm:$0xff]   ;;  %v2825_v14 = vld [vmem:[%s4094_s1 + $0x1e4] ss:$8 sps:$4 sm:$0xff]  }
  0x41   :  { %2097 = vmatprep.subr.bf16.mxu0 %v2744_v15  ;;  %v2828_v15 = vld [vmem:[%s4094_s1 + $0x5e4] ss:$8 sps:$4 sm:$0xff]  }
  0x42   :  { %1925 = vmatmul.mubr.bf16.vlgmr.msra.gmra.mrb[0].mxu1 %v3346_v16 }
  0x43   :  { %2089 = vmatmul.mubr.bf16.vlgmr.msra.gmra.mrb[0].mxu0 %v3349_v17  ;;  %1934 = vmatpush1.bf16.msra.mxu1 %v2738_v18  ;;  %v314_v18 = vcombine.high %v3272_v52, %v3272_v52  ;;  %v2834_v52 = vld [vmem:[%s4094_s1 + $0x5f4] ss:$8 sps:$4 sm:$0xff]  }
  0x44   :  { %2098 = vmatpush1.bf16.msra.mxu0 %v2742_v19  ;;  %1935 = vmatprep.subr.bf16.mxu1 %v2747_v20  ;;  %v363_v19 = vcombine.high %v3285_v56, %v3285_v56  ;;  %v2823_v20 = vld [vmem:[%s4094_s1 + $0x1e0] ss:$8 sps:$4 sm:$0xff]  }
  0x45   :  { %2099 = vmatprep.subr.bf16.mxu0 %v2750_v21  ;;  %1965 = vmatprep.mubr.bf16.mxu1 %v361_v22  ;;  %v2826_v21 = vld [vmem:[%s4094_s1 + $0x5e0] ss:$8 sps:$4 sm:$0xff]   ;;  %v2831_v22 = vld [vmem:[%s4094_s1 + $0x1f4] ss:$8 sps:$4 sm:$0xff]   ;;  %v3538_v56 = vrot.slane %v314_v18, %v3261_v49  ;;  %v2901_v18 = vld [vmem:[%s4094_s1 + $0x2b0] ss:$8 sps:$4 sm:$0xff]  }
  0x46   :  { %2129 = vmatprep.mubr.bf16.mxu0 %v410_v23  ;;  %v3541_v23 = vrot.slane %v363_v19, %v3261_v49  ;;  %v2904_v19 = vld [vmem:[%s4094_s1 + $0x6b0] ss:$8 sps:$4 sm:$0xff]  }
  0x47   :  { %1936 = vmatpush1.bf16.msra.mxu1 %v2745_v24  ;;  %v2829_v24 = vld [vmem:[%s4094_s1 + $0x1f0] ss:$8 sps:$4 sm:$0xff]  }
  0x48   :  { %2100 = vmatpush1.bf16.msra.mxu0 %v2748_v25  ;;  %1937 = vmatprep.subr.bf16.mxu1 %v2753_v26  ;;  %v2832_v25 = vld [vmem:[%s4094_s1 + $0x5f0] ss:$8 sps:$4 sm:$0xff]   ;;  %v2837_v26 = vld [vmem:[%s4094_s1 + $0x204] ss:$8 sps:$4 sm:$0xff]  }
  0x49   :  { %2101 = vmatprep.subr.bf16.mxu0 %v2756_v27  ;;  %v2840_v27 = vld [vmem:[%s4094_s1 + $0x604] ss:$8 sps:$4 sm:$0xff]  }
  0x4b   :  { %1938 = vmatpush1.bf16.msra.mxu1 %v2751_v28  ;;  %v330_v28 = vcombine.high %v3538_v56, %v3538_v56 }
  0x4c   :  { %2102 = vmatpush1.bf16.msra.mxu0 %v2754_v29  ;;  %1939 = vmatprep.subr.bf16.mxu1 %v2759_v30  ;;  %v379_v29 = vcombine.high %v3541_v23, %v3541_v23  ;;  %v359_v30 = vcombine.high %v3346_v16, %v3346_v16  ;;  %v2846_v16 = vld [vmem:[%s4094_s1 + $0x614] ss:$8 sps:$4 sm:$0xff]  }
  0x4d   :  { %2103 = vmatprep.subr.bf16.mxu0 %v2762_v31  ;;  %v408_v31 = vcombine.high %v3349_v17, %v3349_v17  ;;  %v3576_v17 = vrot.slane %v330_v28, %v3261_v49  ;;  %v2921_v28 = vld [vmem:[%s4094_s1 + $0x2e4] ss:$8 sps:$4 sm:$0xff]  }
  0x4f   :  { %1940 = vmatpush1.bf16.msra.mxu1 %v2757_v32  ;;  %v2835_v32 = vld [vmem:[%s4094_s1 + $0x200] ss:$8 sps:$4 sm:$0xff]  }
  0x50   :  { %2104 = vmatpush1.bf16.msra.mxu0 %v2760_v33  ;;  %1941 = vmatprep.subr.bf16.mxu1 %v2765_v34  ;;  %v2838_v33 = vld [vmem:[%s4094_s1 + $0x600] ss:$8 sps:$4 sm:$0xff]   ;;  %v2843_v34 = vld [vmem:[%s4094_s1 + $0x214] ss:$8 sps:$4 sm:$0xff]  }
  0x51   :  { %2105 = vmatprep.subr.bf16.mxu0 %v2768_v35  ;;  %v3579_v35 = vrot.slane %v379_v29, %v3261_v49  ;;  %v2924_v29 = vld [vmem:[%s4094_s1 + $0x6e4] ss:$8 sps:$4 sm:$0xff]  }
  0x53   :  { %1942 = vmatpush1.bf16.msra.mxu1 %v2763_v36  ;;  %v2841_v36 = vld [vmem:[%s4094_s1 + $0x210] ss:$8 sps:$4 sm:$0xff]  }
  0x54   :  { %2106 = vmatpush1.bf16.msra.mxu0 %v2766_v37  ;;  %1943 = vmatprep.subr.bf16.mxu1 %v2771_v38  ;;  %v2844_v37 = vld [vmem:[%s4094_s1 + $0x610] ss:$8 sps:$4 sm:$0xff]   ;;  %v2849_v38 = vld [vmem:[%s4094_s1 + $0x224] ss:$8 sps:$4 sm:$0xff]  }
  0x55   :  { %2107 = vmatprep.subr.bf16.mxu0 %v2774_v39  ;;  %v2852_v39 = vld [vmem:[%s4094_s1 + $0x624] ss:$8 sps:$4 sm:$0xff]  }
  0x57   :  { %1944 = vmatpush1.bf16.msra.mxu1 %v2769_v40  ;;  %v2847_v40 = vld [vmem:[%s4094_s1 + $0x220] ss:$8 sps:$4 sm:$0xff]  }
  0x58   :  { %2108 = vmatpush1.bf16.msra.mxu0 %v2772_v41  ;;  %1945 = vmatprep.subr.bf16.mxu1 %v2777_v42  ;;  %v2850_v41 = vld [vmem:[%s4094_s1 + $0x620] ss:$8 sps:$4 sm:$0xff]   ;;  %v2855_v42 = vld [vmem:[%s4094_s1 + $0x234] ss:$8 sps:$4 sm:$0xff]  }
  0x59   :  { %2109 = vmatprep.subr.bf16.mxu0 %v2780_v44  ;;  %v2858_v44 = vld [vmem:[%s4094_s1 + $0x634] ss:$8 sps:$4 sm:$0xff]  }
  0x5b   :  { %1946 = vmatpush1.bf16.msra.mxu1 %v2775_v45  ;;  %v2853_v45 = vld [vmem:[%s4094_s1 + $0x230] ss:$8 sps:$4 sm:$0xff]  }
  0x5c   :  { %2110 = vmatpush1.bf16.msra.mxu0 %v2778_v46  ;;  %1947 = vmatprep.subr.bf16.mxu1 %v2783_v47  ;;  %v2856_v46 = vld [vmem:[%s4094_s1 + $0x630] ss:$8 sps:$4 sm:$0xff]   ;;  %v2861_v47 = vld [vmem:[%s4094_s1 + $0x244] ss:$8 sps:$4 sm:$0xff]  }
  0x5d   :  { %2111 = vmatprep.subr.bf16.mxu0 %v2786_v48  ;;  %v2864_v48 = vld [vmem:[%s4094_s1 + $0x644] ss:$8 sps:$4 sm:$0xff]  }
  0x5f   :  { %1948 = vmatpush1.bf16.msra.mxu1 %v2781_v50  ;;  %v2859_v50 = vld [vmem:[%s4094_s1 + $0x240] ss:$8 sps:$4 sm:$0xff]  }
  0x60   :  { %2112 = vmatpush1.bf16.msra.mxu0 %v2784_v51  ;;  %1949 = vmatprep.subr.bf16.mxu1 %v2789_v53  ;;  %v2862_v51 = vld [vmem:[%s4094_s1 + $0x640] ss:$8 sps:$4 sm:$0xff]   ;;  %v2867_v53 = vld [vmem:[%s4094_s1 + $0x254] ss:$8 sps:$4 sm:$0xff]  }
  0x61   :  { %2113 = vmatprep.subr.bf16.mxu0 %v2792_v54  ;;  %v2870_v54 = vld [vmem:[%s4094_s1 + $0x654] ss:$8 sps:$4 sm:$0xff]  }
  0x63   :  { %1950 = vmatpush1.bf16.msra.mxu1 %v2787_v55  ;;  %v2865_v55 = vld [vmem:[%s4094_s1 + $0x250] ss:$8 sps:$4 sm:$0xff]  }
  0x64   :  { %2114 = vmatpush1.bf16.msra.mxu0 %v2790_v57  ;;  %1951 = vmatprep.subr.bf16.mxu1 %v2795_v58  ;;  %v2868_v57 = vld [vmem:[%s4094_s1 + $0x650] ss:$8 sps:$4 sm:$0xff]   ;;  %v2873_v58 = vld [vmem:[%s4094_s1 + $0x264] ss:$8 sps:$4 sm:$0xff]  }
  0x65   :  { %2115 = vmatprep.subr.bf16.mxu0 %v2798_v59  ;;  %v2876_v59 = vld [vmem:[%s4094_s1 + $0x664] ss:$8 sps:$4 sm:$0xff]  }
  0x67   :  { %1952 = vmatpush1.bf16.msra.mxu1 %v2793_v60  ;;  %v2871_v60 = vld [vmem:[%s4094_s1 + $0x260] ss:$8 sps:$4 sm:$0xff]  }
  0x68   :  { %2116 = vmatpush1.bf16.msra.mxu0 %v2796_v61  ;;  %1953 = vmatprep.subr.bf16.mxu1 %v2801_v62  ;;  %v2874_v61 = vld [vmem:[%s4094_s1 + $0x660] ss:$8 sps:$4 sm:$0xff]   ;;  %v2879_v62 = vld [vmem:[%s4094_s1 + $0x274] ss:$8 sps:$4 sm:$0xff]  }
  0x69   :  { %2117 = vmatprep.subr.bf16.mxu0 %v2804_v63  ;;  %v2882_v63 = vld [vmem:[%s4094_s1 + $0x674] ss:$8 sps:$4 sm:$0xff]  }
  0x6b   :  { %1954 = vmatpush1.bf16.msra.mxu1 %v2799_v0  ;;  %v2877_v0 = vld [vmem:[%s4094_s1 + $0x270] ss:$8 sps:$4 sm:$0xff]  }
  0x6c   :  { %2118 = vmatpush1.bf16.msra.mxu0 %v2802_v1  ;;  %1955 = vmatprep.subr.bf16.mxu1 %v2807_v2  ;;  %v2880_v1 = vld [vmem:[%s4094_s1 + $0x670] ss:$8 sps:$4 sm:$0xff]   ;;  %v2885_v2 = vld [vmem:[%s4094_s1 + $0x284] ss:$8 sps:$4 sm:$0xff]  }
  0x6d   :  { %2119 = vmatprep.subr.bf16.mxu0 %v2810_v3  ;;  %v2888_v3 = vld [vmem:[%s4094_s1 + $0x684] ss:$8 sps:$4 sm:$0xff]  }
  0x6f   :  { %1956 = vmatpush1.bf16.msra.mxu1 %v2805_v4  ;;  %v2883_v4 = vld [vmem:[%s4094_s1 + $0x280] ss:$8 sps:$4 sm:$0xff]  }
  0x70   :  { %2120 = vmatpush1.bf16.msra.mxu0 %v2808_v5  ;;  %1957 = vmatprep.subr.bf16.mxu1 %v2813_v6  ;;  %v2886_v5 = vld [vmem:[%s4094_s1 + $0x680] ss:$8 sps:$4 sm:$0xff]   ;;  %v2891_v6 = vld [vmem:[%s4094_s1 + $0x294] ss:$8 sps:$4 sm:$0xff]  }
  0x71   :  { %2121 = vmatprep.subr.bf16.mxu0 %v2816_v7  ;;  %v2894_v7 = vld [vmem:[%s4094_s1 + $0x694] ss:$8 sps:$4 sm:$0xff]  }
  0x73   :  { %1958 = vmatpush1.bf16.msra.mxu1 %v2811_v8  ;;  %v2889_v8 = vld [vmem:[%s4094_s1 + $0x290] ss:$8 sps:$4 sm:$0xff]  }
  0x74   :  { %2122 = vmatpush1.bf16.msra.mxu0 %v2814_v9  ;;  %1959 = vmatprep.subr.bf16.mxu1 %v2819_v10  ;;  %v2892_v9 = vld [vmem:[%s4094_s1 + $0x690] ss:$8 sps:$4 sm:$0xff]   ;;  %v2897_v10 = vld [vmem:[%s4094_s1 + $0x2a4] ss:$8 sps:$4 sm:$0xff]  }
  0x75   :  { %2123 = vmatprep.subr.bf16.mxu0 %v2822_v11  ;;  %v2900_v11 = vld [vmem:[%s4094_s1 + $0x6a4] ss:$8 sps:$4 sm:$0xff]  }
  0x77   :  { %1960 = vmatpush1.bf16.msra.mxu1 %v2817_v12  ;;  %v2895_v12 = vld [vmem:[%s4094_s1 + $0x2a0] ss:$8 sps:$4 sm:$0xff]  }
  0x78   :  { %2124 = vmatpush1.bf16.msra.mxu0 %v2820_v13  ;;  %1961 = vmatprep.subr.bf16.mxu1 %v2825_v14  ;;  %v2898_v13 = vld [vmem:[%s4094_s1 + $0x6a0] ss:$8 sps:$4 sm:$0xff]   ;;  %v2903_v14 = vld [vmem:[%s4094_s1 + $0x2b4] ss:$8 sps:$4 sm:$0xff]  }
  0x79   :  { %2125 = vmatprep.subr.bf16.mxu0 %v2828_v15  ;;  %v2906_v15 = vld [vmem:[%s4094_s1 + $0x6b4] ss:$8 sps:$4 sm:$0xff]  }
  0x7b   :  { %1962 = vmatpush1.bf16.msra.mxu1 %v2823_v20  ;;  %v2909_v20 = vld [vmem:[%s4094_s1 + $0x2c4] ss:$8 sps:$4 sm:$0xff]  }
  0x7c   :  { %2126 = vmatpush1.bf16.msra.mxu0 %v2826_v21  ;;  %1963 = vmatprep.subr.bf16.mxu1 %v2831_v22  ;;  %v2912_v21 = vld [vmem:[%s4094_s1 + $0x6c4] ss:$8 sps:$4 sm:$0xff]   ;;  %v2907_v22 = vld [vmem:[%s4094_s1 + $0x2c0] ss:$8 sps:$4 sm:$0xff]  }
  0x7d   :  { %2127 = vmatprep.subr.bf16.mxu0 %v2834_v52  ;;  %v2910_v52 = vld [vmem:[%s4094_s1 + $0x6c0] ss:$8 sps:$4 sm:$0xff]  }
  0x7f   :  { %1964 = vmatpush1.bf16.msra.mxu1 %v2829_v24  ;;  %v2915_v24 = vld [vmem:[%s4094_s1 + $0x2d4] ss:$8 sps:$4 sm:$0xff]  }
  0x80   :  { %2128 = vmatpush1.bf16.msra.mxu0 %v2832_v25  ;;  %1974 = vmatprep.subr.bf16.mxu1 %v2837_v26  ;;  %v2918_v25 = vld [vmem:[%s4094_s1 + $0x6d4] ss:$8 sps:$4 sm:$0xff]   ;;  %v2913_v26 = vld [vmem:[%s4094_s1 + $0x2d0] ss:$8 sps:$4 sm:$0xff]  }
  0x81   :  { %2138 = vmatprep.subr.bf16.mxu0 %v2840_v27  ;;  %v2916_v27 = vld [vmem:[%s4094_s1 + $0x6d0] ss:$8 sps:$4 sm:$0xff]  }
  0x82   :  { %1966 = vmatmul.mubr.bf16.vlgmr.msra.gmra.mrb[0].mxu1 %v359_v30  ;;  %v2919_v30 = vld [vmem:[%s4094_s1 + $0x2e0] ss:$8 sps:$4 sm:$0xff]  }
  0x83   :  { %2130 = vmatmul.mubr.bf16.vlgmr.msra.gmra.mrb[0].mxu0 %v408_v31  ;;  %1975 = vmatpush1.bf16.msra.mxu1 %v2835_v32  ;;  %v2922_v31 = vld [vmem:[%s4094_s1 + $0x6e0] ss:$8 sps:$4 sm:$0xff]   ;;  %v2927_v32 = vld [vmem:[%s4094_s1 + $0x2f4] ss:$8 sps:$4 sm:$0xff]  }
  0x84   :  { %2139 = vmatpush1.bf16.msra.mxu0 %v2838_v33  ;;  %1976 = vmatprep.subr.bf16.mxu1 %v2843_v34  ;;  %v2930_v33 = vld [vmem:[%s4094_s1 + $0x6f4] ss:$8 sps:$4 sm:$0xff]   ;;  %v2925_v34 = vld [vmem:[%s4094_s1 + $0x2f0] ss:$8 sps:$4 sm:$0xff]  }
  0x85   :  { %2140 = vmatprep.subr.bf16.mxu0 %v2846_v16  ;;  %2006 = vmatprep.mubr.bf16.mxu1 %v3576_v17  ;;  %v2928_v16 = vld [vmem:[%s4094_s1 + $0x6f0] ss:$8 sps:$4 sm:$0xff]  }
  0x86   :  { %2170 = vmatprep.mubr.bf16.mxu0 %v3579_v35 }
  0x87   :  { %1977 = vmatpush1.bf16.msra.mxu1 %v2841_v36  ;;  %v2933_v36 = vld [vmem:[%s4094_s1 + $0x304] ss:$8 sps:$4 sm:$0xff]  }
  0x88   :  { %2141 = vmatpush1.bf16.msra.mxu0 %v2844_v37  ;;  %1978 = vmatprep.subr.bf16.mxu1 %v2849_v38  ;;  %v2936_v37 = vld [vmem:[%s4094_s1 + $0x704] ss:$8 sps:$4 sm:$0xff]   ;;  %v3765_v38 = vrot.slane %v3538_v56, %v3261_v49 }
  0x89   :  { %2142 = vmatprep.subr.bf16.mxu0 %v2852_v39  ;;  %v3769_v39 = vrot.slane %v3541_v23, %v3261_v49 }
  0x8b   :  { %1979 = vmatpush1.bf16.msra.mxu1 %v2847_v40  ;;  %v2931_v40 = vld [vmem:[%s4094_s1 + $0x300] ss:$8 sps:$4 sm:$0xff]  }
  0x8c   :  { %2143 = vmatpush1.bf16.msra.mxu0 %v2850_v41  ;;  %1980 = vmatprep.subr.bf16.mxu1 %v2855_v42  ;;  %v2934_v41 = vld [vmem:[%s4094_s1 + $0x700] ss:$8 sps:$4 sm:$0xff]  }
  0x8d   :  { %2144 = vmatprep.subr.bf16.mxu0 %v2858_v44 }
  0x8f   :  { %1981 = vmatpush1.bf16.msra.mxu1 %v2853_v45 }
  0x90   :  { %2145 = vmatpush1.bf16.msra.mxu0 %v2856_v46  ;;  %1982 = vmatprep.subr.bf16.mxu1 %v2861_v47 }
  0x91   :  { %2146 = vmatprep.subr.bf16.mxu0 %v2864_v48 }
  0x93   :  { %1983 = vmatpush1.bf16.msra.mxu1 %v2859_v50 }
  0x94   :  { %2147 = vmatpush1.bf16.msra.mxu0 %v2862_v51  ;;  %1984 = vmatprep.subr.bf16.mxu1 %v2867_v53 }
  0x95   :  { %2148 = vmatprep.subr.bf16.mxu0 %v2870_v54 }
  0x97   :  { %1985 = vmatpush1.bf16.msra.mxu1 %v2865_v55 }
  0x98   :  { %2149 = vmatpush1.bf16.msra.mxu0 %v2868_v57  ;;  %1986 = vmatprep.subr.bf16.mxu1 %v2873_v58 }
  0x99   :  { %2150 = vmatprep.subr.bf16.mxu0 %v2876_v59 }
  0x9b   :  { %1987 = vmatpush1.bf16.msra.mxu1 %v2871_v60 }
  0x9c   :  { %2151 = vmatpush1.bf16.msra.mxu0 %v2874_v61  ;;  %1988 = vmatprep.subr.bf16.mxu1 %v2879_v62 }
  0x9d   :  { %2152 = vmatprep.subr.bf16.mxu0 %v2882_v63 }
  0x9f   :  { %1989 = vmatpush1.bf16.msra.mxu1 %v2877_v0 }
  0xa0   :  { %2153 = vmatpush1.bf16.msra.mxu0 %v2880_v1  ;;  %1990 = vmatprep.subr.bf16.mxu1 %v2885_v2 }
  0xa1   :  { %2154 = vmatprep.subr.bf16.mxu0 %v2888_v3 }
  0xa3   :  { %1991 = vmatpush1.bf16.msra.mxu1 %v2883_v4 }
  0xa4   :  { %2155 = vmatpush1.bf16.msra.mxu0 %v2886_v5  ;;  %1992 = vmatprep.subr.bf16.mxu1 %v2891_v6 }
  0xa5   :  { %2156 = vmatprep.subr.bf16.mxu0 %v2894_v7 }
  0xa7   :  { %1993 = vmatpush1.bf16.msra.mxu1 %v2889_v8 }
  0xa8   :  { %2157 = vmatpush1.bf16.msra.mxu0 %v2892_v9  ;;  %1994 = vmatprep.subr.bf16.mxu1 %v2897_v10 }
  0xa9   :  { %2158 = vmatprep.subr.bf16.mxu0 %v2900_v11 }
  0xab   :  { %1995 = vmatpush1.bf16.msra.mxu1 %v2895_v12 }
  0xac   :  { %2159 = vmatpush1.bf16.msra.mxu0 %v2898_v13  ;;  %1996 = vmatprep.subr.bf16.mxu1 %v2903_v14 }
  0xad   :  { %2160 = vmatprep.subr.bf16.mxu0 %v2906_v15 }
  0xaf   :  { %1997 = vmatpush1.bf16.msra.mxu1 %v2901_v18 }
  0xb0   :  { %2161 = vmatpush1.bf16.msra.mxu0 %v2904_v19  ;;  %1998 = vmatprep.subr.bf16.mxu1 %v2909_v20 }
  0xb1   :  { %2162 = vmatprep.subr.bf16.mxu0 %v2912_v21 }
  0xb3   :  { %1999 = vmatpush1.bf16.msra.mxu1 %v2907_v22 }
  0xb4   :  { %2163 = vmatpush1.bf16.msra.mxu0 %v2910_v52  ;;  %2000 = vmatprep.subr.bf16.mxu1 %v2915_v24 }
  0xb5   :  { %2164 = vmatprep.subr.bf16.mxu0 %v2918_v25 }
  0xb7   :  { %2001 = vmatpush1.bf16.msra.mxu1 %v2913_v26 }
  0xb8   :  { %2165 = vmatpush1.bf16.msra.mxu0 %v2916_v27  ;;  %2002 = vmatprep.subr.bf16.mxu1 %v2921_v28 }
  0xb9   :  { %2166 = vmatprep.subr.bf16.mxu0 %v2924_v29 }
  0xbb   :  { %2003 = vmatpush1.bf16.msra.mxu1 %v2919_v30 }
  0xbc   :  { %2167 = vmatpush1.bf16.msra.mxu0 %v2922_v31  ;;  %2004 = vmatprep.subr.bf16.mxu1 %v2927_v32 }
  0xbd   :  { %2168 = vmatprep.subr.bf16.mxu0 %v2930_v33 }
  0xbf   :  { %2005 = vmatpush1.bf16.msra.mxu1 %v2925_v34 }
  0xc0   :  { %2169 = vmatpush1.bf16.msra.mxu0 %v2928_v16 }
  0xc1   :  { %9 = vsyncpa [#allocation3], 0  ;;  %2015 = vmatprep.subr.bf16.mxu1 %v2933_v36  ;;  %2179 = vmatprep.subr.bf16.mxu0 %v2936_v37  ;;  %v2939_v56 = vld [vmem:[%s4094_s1 + $0x314] ss:$8 sps:$4 sm:$0xff]   ;;  %v362_v42 = vcombine.high %v3576_v17, %v3576_v17  ;;  %v411_v44 = vcombine.high %v3579_v35, %v3579_v35  ;;  %v2937_v45 = vld [vmem:[%s4094_s1 + $0x310] ss:$8 sps:$4 sm:$0xff]  }
  0xc2   :  { %v2942_v23 = vld [vmem:[%s4094_s1 + $0x714] ss:$8 sps:$4 sm:$0xff]   ;;  %2007 = vmatmul.mubr.bf16.vlgmr.msra.gmra.mrb[0].mxu1 %v3765_v38  ;;  %v2940_v46 = vld [vmem:[%s4094_s1 + $0x710] ss:$8 sps:$4 sm:$0xff]   ;;  %v2945_v17 = vld [vmem:[%s4094_s1 + $0x324] ss:$8 sps:$4 sm:$0xff]  }
  0xc3   :  { %2171 = vmatmul.mubr.bf16.vlgmr.msra.gmra.mrb[0].mxu0 %v3769_v39  ;;  %2016 = vmatpush1.bf16.msra.mxu1 %v2931_v40  ;;  %v2948_v35 = vld [vmem:[%s4094_s1 + $0x724] ss:$8 sps:$4 sm:$0xff]   ;;  %v2943_v47 = vld [vmem:[%s4094_s1 + $0x320] ss:$8 sps:$4 sm:$0xff]   ;;  %v2951_v50 = vld [vmem:[%s4094_s1 + $0x334] ss:$8 sps:$4 sm:$0xff]  }
  0xc4   :  { %2180 = vmatpush1.bf16.msra.mxu0 %v2934_v41  ;;  %2017 = vmatprep.subr.bf16.mxu1 %v2939_v56  ;;  %v2946_v48 = vld [vmem:[%s4094_s1 + $0x720] ss:$8 sps:$4 sm:$0xff]   ;;  %v2954_v51 = vld [vmem:[%s4094_s1 + $0x734] ss:$8 sps:$4 sm:$0xff]   ;;  %v2949_v53 = vld [vmem:[%s4094_s1 + $0x330] ss:$8 sps:$4 sm:$0xff]  }
  0xc5   :  { %2181 = vmatprep.subr.bf16.mxu0 %v2942_v23  ;;  %2047 = vmatprep.mubr.bf16.mxu1 %v362_v42  ;;  %v2952_v54 = vld [vmem:[%s4094_s1 + $0x730] ss:$8 sps:$4 sm:$0xff]   ;;  %v2957_v55 = vld [vmem:[%s4094_s1 + $0x344] ss:$8 sps:$4 sm:$0xff]   ;;  %v2955_v58 = vld [vmem:[%s4094_s1 + $0x340] ss:$8 sps:$4 sm:$0xff]  }
  0xc6   :  { %2211 = vmatprep.mubr.bf16.mxu0 %v411_v44  ;;  %v2960_v57 = vld [vmem:[%s4094_s1 + $0x744] ss:$8 sps:$4 sm:$0xff]   ;;  %v2958_v59 = vld [vmem:[%s4094_s1 + $0x740] ss:$8 sps:$4 sm:$0xff]   ;;  %v2963_v60 = vld [vmem:[%s4094_s1 + $0x354] ss:$8 sps:$4 sm:$0xff]  }
  0xc7   :  { %2018 = vmatpush1.bf16.msra.mxu1 %v2937_v45  ;;  %v2966_v61 = vld [vmem:[%s4094_s1 + $0x754] ss:$8 sps:$4 sm:$0xff]   ;;  %v2961_v62 = vld [vmem:[%s4094_s1 + $0x350] ss:$8 sps:$4 sm:$0xff]   ;;  %v2969_v0 = vld [vmem:[%s4094_s1 + $0x364] ss:$8 sps:$4 sm:$0xff]  }
  0xc8   :  { %2182 = vmatpush1.bf16.msra.mxu0 %v2940_v46  ;;  %2019 = vmatprep.subr.bf16.mxu1 %v2945_v17  ;;  %v2964_v63 = vld [vmem:[%s4094_s1 + $0x750] ss:$8 sps:$4 sm:$0xff]   ;;  %v2972_v1 = vld [vmem:[%s4094_s1 + $0x764] ss:$8 sps:$4 sm:$0xff]   ;;  %v2967_v2 = vld [vmem:[%s4094_s1 + $0x360] ss:$8 sps:$4 sm:$0xff]   ;;  %v360_v46 = vcombine.high %v3765_v38, %v3765_v38  ;;  %v409_v17 = vcombine.high %v3769_v39, %v3769_v39 }
  0xc9   :  { %2183 = vmatprep.subr.bf16.mxu0 %v2948_v35  ;;  %v2970_v3 = vld [vmem:[%s4094_s1 + $0x760] ss:$8 sps:$4 sm:$0xff]   ;;  %v2975_v4 = vld [vmem:[%s4094_s1 + $0x374] ss:$8 sps:$4 sm:$0xff]   ;;  %v2973_v6 = vld [vmem:[%s4094_s1 + $0x370] ss:$8 sps:$4 sm:$0xff]  }
  0xca   :  { %v2978_v5 = vld [vmem:[%s4094_s1 + $0x774] ss:$8 sps:$4 sm:$0xff]   ;;  %v2976_v7 = vld [vmem:[%s4094_s1 + $0x770] ss:$8 sps:$4 sm:$0xff]   ;;  %v2981_v8 = vld [vmem:[%s4094_s1 + $0x384] ss:$8 sps:$4 sm:$0xff]  }
  0xcb   :  { %2020 = vmatpush1.bf16.msra.mxu1 %v2943_v47  ;;  %v2984_v9 = vld [vmem:[%s4094_s1 + $0x784] ss:$8 sps:$4 sm:$0xff]   ;;  %v2979_v10 = vld [vmem:[%s4094_s1 + $0x380] ss:$8 sps:$4 sm:$0xff]   ;;  %v2987_v12 = vld [vmem:[%s4094_s1 + $0x394] ss:$8 sps:$4 sm:$0xff]  }
  0xcc   :  { %2184 = vmatpush1.bf16.msra.mxu0 %v2946_v48  ;;  %2021 = vmatprep.subr.bf16.mxu1 %v2951_v50  ;;  %v2982_v11 = vld [vmem:[%s4094_s1 + $0x780] ss:$8 sps:$4 sm:$0xff]   ;;  %v2990_v13 = vld [vmem:[%s4094_s1 + $0x794] ss:$8 sps:$4 sm:$0xff]   ;;  %v2985_v14 = vld [vmem:[%s4094_s1 + $0x390] ss:$8 sps:$4 sm:$0xff]  }
  0xcd   :  { %2185 = vmatprep.subr.bf16.mxu0 %v2954_v51  ;;  %v2988_v15 = vld [vmem:[%s4094_s1 + $0x790] ss:$8 sps:$4 sm:$0xff]   ;;  %v2993_v18 = vld [vmem:[%s4094_s1 + $0x3a4] ss:$8 sps:$4 sm:$0xff]   ;;  %v2991_v20 = vld [vmem:[%s4094_s1 + $0x3a0] ss:$8 sps:$4 sm:$0xff]  }
  0xce   :  { %v2996_v19 = vld [vmem:[%s4094_s1 + $0x7a4] ss:$8 sps:$4 sm:$0xff]   ;;  %v2994_v21 = vld [vmem:[%s4094_s1 + $0x7a0] ss:$8 sps:$4 sm:$0xff]   ;;  %v2999_v22 = vld [vmem:[%s4094_s1 + $0x3b4] ss:$8 sps:$4 sm:$0xff]  }
  0xcf   :  { %2022 = vmatpush1.bf16.msra.mxu1 %v2949_v53  ;;  %v3002_v52 = vld [vmem:[%s4094_s1 + $0x7b4] ss:$8 sps:$4 sm:$0xff]   ;;  %v2997_v24 = vld [vmem:[%s4094_s1 + $0x3b0] ss:$8 sps:$4 sm:$0xff]   ;;  %v3005_v26 = vld [vmem:[%s4094_s1 + $0x3c4] ss:$8 sps:$4 sm:$0xff]  }
  0xd0   :  { %2186 = vmatpush1.bf16.msra.mxu0 %v2952_v54  ;;  %2023 = vmatprep.subr.bf16.mxu1 %v2957_v55  ;;  %v3000_v25 = vld [vmem:[%s4094_s1 + $0x7b0] ss:$8 sps:$4 sm:$0xff]   ;;  %v3008_v27 = vld [vmem:[%s4094_s1 + $0x7c4] ss:$8 sps:$4 sm:$0xff]   ;;  %v3003_v28 = vld [vmem:[%s4094_s1 + $0x3c0] ss:$8 sps:$4 sm:$0xff]  }
  0xd1   :  { %2187 = vmatprep.subr.bf16.mxu0 %v2960_v57  ;;  %v3006_v29 = vld [vmem:[%s4094_s1 + $0x7c0] ss:$8 sps:$4 sm:$0xff]   ;;  %v3011_v30 = vld [vmem:[%s4094_s1 + $0x3d4] ss:$8 sps:$4 sm:$0xff]   ;;  %v3009_v32 = vld [vmem:[%s4094_s1 + $0x3d0] ss:$8 sps:$4 sm:$0xff]  }
  0xd2   :  { %v3014_v31 = vld [vmem:[%s4094_s1 + $0x7d4] ss:$8 sps:$4 sm:$0xff]   ;;  %v3012_v33 = vld [vmem:[%s4094_s1 + $0x7d0] ss:$8 sps:$4 sm:$0xff]   ;;  %v3017_v34 = vld [vmem:[%s4094_s1 + $0x3e4] ss:$8 sps:$4 sm:$0xff]  }
  0xd3   :  { %2024 = vmatpush1.bf16.msra.mxu1 %v2955_v58  ;;  %v3020_v16 = vld [vmem:[%s4094_s1 + $0x7e4] ss:$8 sps:$4 sm:$0xff]   ;;  %v3015_v36 = vld [vmem:[%s4094_s1 + $0x3e0] ss:$8 sps:$4 sm:$0xff]   ;;  %v3023_v40 = vld [vmem:[%s4094_s1 + $0x3f4] ss:$8 sps:$4 sm:$0xff]  }
  0xd4   :  { %2188 = vmatpush1.bf16.msra.mxu0 %v2958_v59  ;;  %2025 = vmatprep.subr.bf16.mxu1 %v2963_v60  ;;  %v3018_v37 = vld [vmem:[%s4094_s1 + $0x7e0] ss:$8 sps:$4 sm:$0xff]   ;;  %v3026_v41 = vld [vmem:[%s4094_s1 + $0x7f4] ss:$8 sps:$4 sm:$0xff]   ;;  %v3021_v23 = vld [vmem:[%s4094_s1 + $0x3f0] ss:$8 sps:$4 sm:$0xff]  }
  0xd5   :  { %2189 = vmatprep.subr.bf16.mxu0 %v2966_v61  ;;  %v3960_v56 = vld.sshfl [vmem:[%s4093_s0 + $0x10] sm:$0x11 pattern:$0x75316420]  ;;  %v3029_v45 = vld [vmem:[%s4094_s1 + $0x804] ss:$8 sps:$4 sm:$0xff]  }
  0xd6   :  { %v3024_v42 = vld [vmem:[%s4094_s1 + $0x7f0] ss:$8 sps:$4 sm:$0xff]   ;;  %v419_v44 = vcombine.high %v3960_v56, %v3960_v56  ;;  %v3027_v35 = vld [vmem:[%s4094_s1 + $0x800] ss:$8 sps:$4 sm:$0xff]   ;;  %v3032_v48 = vld [vmem:[%s4094_s1 + $0x814] ss:$8 sps:$4 sm:$0xff]  }
  0xd7   :  { %2026 = vmatpush1.bf16.msra.mxu1 %v2961_v62  ;;  %v3030_v38 = vld [vmem:[%s4094_s1 + $0x810] ss:$8 sps:$4 sm:$0xff]   ;;  %v3035_v39 = vld [vmem:[%s4094_s1 + $0x824] ss:$8 sps:$4 sm:$0xff]   ;;  %v3033_v50 = vld [vmem:[%s4094_s1 + $0x820] ss:$8 sps:$4 sm:$0xff]  }
  0xd8   :  { %2190 = vmatpush1.bf16.msra.mxu0 %v2964_v63  ;;  %2027 = vmatprep.subr.bf16.mxu1 %v2969_v0  ;;  %v433_v47 = vrot.slane %v419_v44, %v3261_v49  ;;  %v3038_v51 = vld [vmem:[%s4094_s1 + $0x834] ss:$8 sps:$4 sm:$0xff]   ;;  %v3036_v53 = vld [vmem:[%s4094_s1 + $0x830] ss:$8 sps:$4 sm:$0xff]   ;;  %v3041_v54 = vld [vmem:[%s4094_s1 + $0x844] ss:$8 sps:$4 sm:$0xff]  }
  0xd9   :  { %2191 = vmatprep.subr.bf16.mxu0 %v2972_v1  ;;  %v3039_v55 = vld [vmem:[%s4094_s1 + $0x840] ss:$8 sps:$4 sm:$0xff]   ;;  %v3044_v57 = vld [vmem:[%s4094_s1 + $0x854] ss:$8 sps:$4 sm:$0xff]   ;;  %v3042_v58 = vld [vmem:[%s4094_s1 + $0x850] ss:$8 sps:$4 sm:$0xff]  }
  0xda   :  { %v3047_v59 = vld [vmem:[%s4094_s1 + $0x864] ss:$8 sps:$4 sm:$0xff]   ;;  %v3045_v60 = vld [vmem:[%s4094_s1 + $0x860] ss:$8 sps:$4 sm:$0xff]   ;;  %v3050_v61 = vld [vmem:[%s4094_s1 + $0x874] ss:$8 sps:$4 sm:$0xff]  }
  0xdb   :  { %2028 = vmatpush1.bf16.msra.mxu1 %v2967_v2  ;;  %v3048_v62 = vld [vmem:[%s4094_s1 + $0x870] ss:$8 sps:$4 sm:$0xff]   ;;  %v3053_v63 = vld [vmem:[%s4094_s1 + $0x884] ss:$8 sps:$4 sm:$0xff]   ;;  %v3051_v0 = vld [vmem:[%s4094_s1 + $0x880] ss:$8 sps:$4 sm:$0xff]  }
  0xdc   :  { %2192 = vmatpush1.bf16.msra.mxu0 %v2970_v3  ;;  %2029 = vmatprep.subr.bf16.mxu1 %v2975_v4  ;;  %v3056_v1 = vld [vmem:[%s4094_s1 + $0x894] ss:$8 sps:$4 sm:$0xff]   ;;  %v3054_v2 = vld [vmem:[%s4094_s1 + $0x890] ss:$8 sps:$4 sm:$0xff]   ;;  %v3059_v3 = vld [vmem:[%s4094_s1 + $0x8a4] ss:$8 sps:$4 sm:$0xff]  }
  0xdd   :  { %2193 = vmatprep.subr.bf16.mxu0 %v2978_v5  ;;  %v3057_v4 = vld [vmem:[%s4094_s1 + $0x8a0] ss:$8 sps:$4 sm:$0xff]   ;;  %v3062_v5 = vld [vmem:[%s4094_s1 + $0x8b4] ss:$8 sps:$4 sm:$0xff]  }
  0xdf   :  { %2030 = vmatpush1.bf16.msra.mxu1 %v2973_v6  ;;  %v3060_v6 = vld [vmem:[%s4094_s1 + $0x8b0] ss:$8 sps:$4 sm:$0xff]  }
  0xe0   :  { %2194 = vmatpush1.bf16.msra.mxu0 %v2976_v7  ;;  %2031 = vmatprep.subr.bf16.mxu1 %v2981_v8  ;;  %v3065_v7 = vld [vmem:[%s4094_s1 + $0x8c4] ss:$8 sps:$4 sm:$0xff]   ;;  %v3063_v8 = vld [vmem:[%s4094_s1 + $0x8c0] ss:$8 sps:$4 sm:$0xff]  }
  0xe1   :  { %2195 = vmatprep.subr.bf16.mxu0 %v2984_v9  ;;  %v3068_v9 = vld [vmem:[%s4094_s1 + $0x8d4] ss:$8 sps:$4 sm:$0xff]  }
  0xe3   :  { %2032 = vmatpush1.bf16.msra.mxu1 %v2979_v10  ;;  %v3066_v10 = vld [vmem:[%s4094_s1 + $0x8d0] ss:$8 sps:$4 sm:$0xff]  }
  0xe4   :  { %2196 = vmatpush1.bf16.msra.mxu0 %v2982_v11  ;;  %2033 = vmatprep.subr.bf16.mxu1 %v2987_v12  ;;  %v3071_v11 = vld [vmem:[%s4094_s1 + $0x8e4] ss:$8 sps:$4 sm:$0xff]   ;;  %v3069_v12 = vld [vmem:[%s4094_s1 + $0x8e0] ss:$8 sps:$4 sm:$0xff]  }
  0xe5   :  { %2197 = vmatprep.subr.bf16.mxu0 %v2990_v13  ;;  %v3074_v13 = vld [vmem:[%s4094_s1 + $0x8f4] ss:$8 sps:$4 sm:$0xff]  }
  0xe7   :  { %2034 = vmatpush1.bf16.msra.mxu1 %v2985_v14  ;;  %v3072_v14 = vld [vmem:[%s4094_s1 + $0x8f0] ss:$8 sps:$4 sm:$0xff]  }
  0xe8   :  { %2198 = vmatpush1.bf16.msra.mxu0 %v2988_v15  ;;  %2035 = vmatprep.subr.bf16.mxu1 %v2993_v18  ;;  %v426_v15 = vrot.slane %v3960_v56, %v3261_v49 }
  0xe9   :  { %2199 = vmatprep.subr.bf16.mxu0 %v2996_v19 }
  0xeb   :  { %2036 = vmatpush1.bf16.msra.mxu1 %v2991_v20 }
  0xec   :  { %2200 = vmatpush1.bf16.msra.mxu0 %v2994_v21  ;;  %2037 = vmatprep.subr.bf16.mxu1 %v2999_v22  ;;  %v2264_v22 = vsub.s32 0, %v3243_v43 }
  0xed   :  { %2201 = vmatprep.subr.bf16.mxu0 %v3002_v52  ;;  %v306_v52 = vld [vmem:[%s4095_s2] sm:$0x3]  ;;  %s3100_s2 = smov [#allocation2]  }
  0xef   :  { %2038 = vmatpush1.bf16.msra.mxu1 %v2997_v24  ;;  %v2268_v24 = vsub.s32 1, %v3243_v43 }
  0xf0   :  { %2202 = vmatpush1.bf16.msra.mxu0 %v3000_v25  ;;  %2039 = vmatprep.subr.bf16.mxu1 %v3005_v26  ;;  %v307_v25 = vld [vmem:[%s4096_s3] sm:$0x3]  ;;  %v2265_v26 = vrot.slane %v306_v52, %v2264_v22  ;;  %s2311_s3 = sshll.u32 %s3100_s2, 4  ;;  %s2312_s3 = int_to_ptr.vmem [resolvable:$true] %s2311_s3 }
  0xf1   :  { %2203 = vmatprep.subr.bf16.mxu0 %v3008_v27  ;;  %v2269_v27 = vrot.slane %v306_v52, %v2268_v24  ;;  %s3075_s25 = scalar_lea.vmem %s2312_s3, 64  ;;  %p3080_p1 = scmp.lt.s32.totalorder %s2312_s3, %s2312_s3 }
  0xf2   :  { %p3076_p0 = scmp.ne.s32.totalorder %s2312_s3, %s3075_s25  ;;  %p3081_p2 = scmp.lt.s32.totalorder %s3075_s25, %s3075_s25 }
  0xf3   :  { %2040 = vmatpush1.bf16.msra.mxu1 %v3003_v28 }
  0xf4   :  { %2204 = vmatpush1.bf16.msra.mxu0 %v3006_v29  ;;  %2041 = vmatprep.subr.bf16.mxu1 %v3011_v30  ;;  %v2278_v29 = vrot.slane %v307_v25, %v2264_v22  ;;  %p3082_p3 = por %p3081_p2, %p3080_p1 }
  0xf5   :  { %2205 = vmatprep.subr.bf16.mxu0 %v3014_v31 }
  0xf6   :  { %p3083_p4 = pnand %p3082_p3, %p3076_p0 }
  0xf7   :  { %2042 = vmatpush1.bf16.msra.mxu1 %v3009_v32  ;;  %v2282_v32 = vrot.slane %v307_v25, %v2268_v24 }
  0xf8   :  { %2206 = vmatpush1.bf16.msra.mxu0 %v3012_v33  ;;  %2043 = vmatprep.subr.bf16.mxu1 %v3017_v34 }
  0xf9   :  { %2207 = vmatprep.subr.bf16.mxu0 %v3020_v16 }
  0xfb   :  { %2044 = vmatpush1.bf16.msra.mxu1 %v3015_v36 }
  0xfc   :  { %2208 = vmatpush1.bf16.msra.mxu0 %v3018_v37  ;;  %2045 = vmatprep.subr.bf16.mxu1 %v3023_v40 }
  0xfd   :  { %2209 = vmatprep.subr.bf16.mxu0 %v3026_v41 }
  0xff   :  { %2046 = vmatpush1.bf16.msra.mxu1 %v3021_v23 }
 0x100   :  { %2210 = vmatpush1.bf16.msra.mxu0 %v3024_v42 }
 0x101   :  { %2220 = vmatprep.subr.bf16.mxu0 %v3029_v45 }
 0x102   :  { %2048 = vmatmul.mubr.bf16.vlgmr.msra.gmra.mrb[0].mxu1 %v360_v46 }
 0x103   :  { %2212 = vmatmul.mubr.bf16.vlgmr.msra.gmra.mrb[0].mxu0 %v409_v17 }
 0x104   :  { %2221 = vmatpush1.bf16.msra.mxu0 %v3027_v35  ;;  %2252 = vmatprep.mubr.bf16.mxu0 %v433_v47 }
 0x105   :  { %2222 = vmatprep.subr.bf16.mxu0 %v3032_v48 }
 0x108   :  { %2223 = vmatpush1.bf16.msra.mxu0 %v3030_v38 }
 0x109   :  { %2224 = vmatprep.subr.bf16.mxu0 %v3035_v39 }
 0x10c   :  { %2225 = vmatpush1.bf16.msra.mxu0 %v3033_v50 }
 0x10d   :  { %2226 = vmatprep.subr.bf16.mxu0 %v3038_v51 }
 0x110   :  { %2227 = vmatpush1.bf16.msra.mxu0 %v3036_v53 }
 0x111   :  { %2228 = vmatprep.subr.bf16.mxu0 %v3041_v54 }
 0x114   :  { %2229 = vmatpush1.bf16.msra.mxu0 %v3039_v55 }
 0x115   :  { %2230 = vmatprep.subr.bf16.mxu0 %v3044_v57 }
 0x118   :  { %2231 = vmatpush1.bf16.msra.mxu0 %v3042_v58 }
 0x119   :  { %2232 = vmatprep.subr.bf16.mxu0 %v3047_v59 }
 0x11c   :  { %2233 = vmatpush1.bf16.msra.mxu0 %v3045_v60 }
 0x11d   :  { %2234 = vmatprep.subr.bf16.mxu0 %v3050_v61 }
 0x120   :  { %2235 = vmatpush1.bf16.msra.mxu0 %v3048_v62 }
 0x121   :  { %2236 = vmatprep.subr.bf16.mxu0 %v3053_v63 }
 0x124   :  { %2237 = vmatpush1.bf16.msra.mxu0 %v3051_v0 }
 0x125   :  { %2238 = vmatprep.subr.bf16.mxu0 %v3056_v1 }
 0x128   :  { %2239 = vmatpush1.bf16.msra.mxu0 %v3054_v2 }
 0x129   :  { %2240 = vmatprep.subr.bf16.mxu0 %v3059_v3 }
 0x12c   :  { %2241 = vmatpush1.bf16.msra.mxu0 %v3057_v4 }
 0x12d   :  { %2242 = vmatprep.subr.bf16.mxu0 %v3062_v5 }
 0x130   :  { %2243 = vmatpush1.bf16.msra.mxu0 %v3060_v6 }
 0x131   :  { %2244 = vmatprep.subr.bf16.mxu0 %v3065_v7 }
 0x134   :  { %2245 = vmatpush1.bf16.msra.mxu0 %v3063_v8 }
 0x135   :  { %2246 = vmatprep.subr.bf16.mxu0 %v3068_v9 }
 0x138   :  { %2247 = vmatpush1.bf16.msra.mxu0 %v3066_v10 }
 0x139   :  { %2248 = vmatprep.subr.bf16.mxu0 %v3071_v11 }
 0x13c   :  { %2249 = vmatpush1.bf16.msra.mxu0 %v3069_v12 }
 0x13d   :  { %2250 = vmatprep.subr.bf16.mxu0 %v3074_v13 }
 0x140   :  { %2251 = vmatpush1.bf16.msra.mxu0 %v3072_v14 }
 0x143   :  { %2253 = vmatmul.mubr.bf16.vlgmr.msra.gmra.mrb[0].mxu0 %v426_v15 }
 0x1d5   :  { %v2049_v18 = vpop.f32.mrb[0].mxu1 }
 0x1d6   :  { %v2051_v19 = vpop.f32.mrb[1].mxu1 }
 0x1d7   :  { %v2053_v20 = vpop.f32.mrb[2].mxu1 }
 0x1d8   :  { %v2054_v21 = vpop.f32.mrb[3].mxu1 }
 0x216   :  { %v2254_v49 = vpop.f32.mrb[0].mxu0 }
 0x217   :  { %v2609_v28 = vadd.f32 %v2254_v49, %v2049_v18  ;;  %v2256_v30 = vpop.f32.mrb[1].mxu0 }
 0x218   :  { %v2610_v31 = vadd.f32 %v2256_v30, %v2051_v19  ;;  %v2258_v33 = vpop.f32.mrb[2].mxu0 }
 0x219   :  { %v2272_v34 = vmul.f32 %v2609_v28, %v2265_v26  ;;  %v2259_v16 = vpop.f32.mrb[3].mxu0 }
 0x21a   :  { %v2273_v36 = vmul.f32 %v2610_v31, %v2269_v27 }
 0x21b   :  { %v2285_v37 = vadd.f32 %v2278_v29, %v2272_v34 }
 0x21c   :  { %v2286_v40 = vadd.f32 %v2282_v32, %v2273_v36 }
 0x21d   :  { %vm2287_vm0 = vcmp.gt.f32.partialorder %v2285_v37, 0.0  ;;  %v2289_v43 = vmul.f32 0.01, %v2285_v37 }
 0x21e   :  { %vm2288_vm1 = vcmp.gt.f32.partialorder %v2286_v40, 0.0  ;;  %v2290_v41 = vmul.f32 0.01, %v2286_v40 }
 0x21f   :  { %v2291_v56 = vsel %vm2287_vm0, %v2285_v37, %v2289_v43 }
 0x220   :  { %v2292_v23 = vsel %vm2288_vm1, %v2286_v40, %v2290_v41 }
 0x221   :  { %v2295_v42 = vcombine.low %v2291_v56, %v2292_v23 }
 0x223   :  { %2608 = vst.sshfl [vmem:[#allocation2] sm:$0x33 pattern:$0x76325410] %v2295_v42 }
 0x224   :  { %3086 = shalt.err (!%p3083_p4)
}
 0x225   :  { %s3087_s28 = scalar_lea.hbm %s4097_s4, 64 }
 0x226   :  { %p3088_p5 = scmp.ne.s32.totalorder %s4097_s4, %s3087_s28  ;;  %p3091_p6 = scmp.lt.u32.totalorder %s3087_s28, %s4097_s4 }
 0x228   :  { %p3093_p7 = pnand %p3091_p6, %p3088_p5 }
 0x22a   :  { %3096 = shalt.err (!%p3093_p7)
}
 0x22b   :  { %2314 = dma.vmem_to_hbm [thread:$0]  %s2312_s3, 64, %s4097_s4, [#allocation3]  }
 0x22c   :  { %3097 = dma.done.wait [#allocation3], 64  }
 0x22d   :  { %3098 = vsyncadd [#allocation3], 4294967232 }
 0x22e   :  { %2318 = vsyncpa [#allocation3], 1 }

</bundles_post_ra>
